<compile_context>
chip_gen: v5e
topology: v5e:2x2
jax: 0.10.0
libtpu: 0.0.40
codegen_flags: <defaults>
</compile_context>

<pallas_src>
import functools

import numpy as np
import jax
import jax.numpy as jnp
from jax.experimental import pallas as pl
from jax.experimental.pallas import tpu as pltpu


def _round_up(x, m):
    return (x + m - 1) // m * m


def _mish(x):
    # mish(x) = x * tanh(softplus(x)) = x * (u^2 - 1) / (u^2 + 1), u = 1 + e^x.
    # Clamp the exp argument so u^2 stays finite in f32 (for x > 20 the true
    # tanh(softplus(x)) == 1 to f32 precision anyway).
    u = 1.0 + jnp.exp(jnp.minimum(x, 20.0))
    n = u * u
    return x * (n - 1.0) * pl.reciprocal(n + 1.0, approx=True)


# ---------------------------------------------------------------------------
# Kernel 1: conv1 (3x3 s2, as matmul over im2col) fused with conv2+conv3
# ---------------------------------------------------------------------------

def _head_kernel(xcol_ref, w1_ref, s1_ref, b1_ref,
                 w23_ref, s23_ref, b23_ref, x2_ref, x3_ref, *, co):
    h1 = jnp.dot(xcol_ref[...], w1_ref[...], preferred_element_type=jnp.float32)
    h1 = _mish(h1 * s1_ref[...] + b1_ref[...])                    # conv1+BN+Mish
    h23 = jnp.dot(h1.astype(jnp.bfloat16), w23_ref[...],
                  preferred_element_type=jnp.float32)
    h23 = _mish(h23 * s23_ref[...] + b23_ref[...])                 # conv2|conv3
    x2_ref[...] = h23[:, :co].astype(x2_ref.dtype)
    x3_ref[...] = h23[:, co:].astype(x3_ref.dtype)


def conv1_conv23(x_nhwc, p1, p23):
    """x_nhwc: (N,H,W,128) f32 -> (x2 (M,128) bf16, x3 (M,128) bf16, dims)."""
    N, H, W, Cin = x_nhwc.shape
    Ho = (H - 1) // 2 + 1
    Wo = (W - 1) // 2 + 1
    w1, s1, b1 = p1
    w23, s23, b23 = p23
    K = w1.shape[0]              # 9 * Cin
    C1 = w1.shape[1]             # 256
    co = w23.shape[1] // 2       # 128

    # im2col for the 3x3 stride-2 pad-1 conv (XLA strided slices), in bf16.
    xb = x_nhwc.astype(jnp.bfloat16)
    xp = jnp.pad(xb, ((0, 0), (1, 1), (1, 1), (0, 0)))
    cols = []
    for kh in range(3):
        for kw in range(3):
            cols.append(jax.lax.slice(
                xp, (0, kh, kw, 0),
                (N, kh + 2 * (Ho - 1) + 1, kw + 2 * (Wo - 1) + 1, Cin),
                (1, 2, 2, 1)))
    xcol = jnp.concatenate(cols, axis=-1).reshape(N * Ho * Wo, K)

    M = N * Ho * Wo
    Mp = _round_up(M, 128)
    if Mp != M:
        xcol = jnp.pad(xcol, ((0, Mp - M), (0, 0)))
    tm = next(t for t in (512, 256, 128) if Mp % t == 0)

    x2, x3 = pl.pallas_call(
        functools.partial(_head_kernel, co=co),
        out_shape=(jax.ShapeDtypeStruct((Mp, co), jnp.bfloat16),
                   jax.ShapeDtypeStruct((Mp, co), jnp.bfloat16)),
        grid_spec=pltpu.PrefetchScalarGridSpec(
            num_scalar_prefetch=0,
            grid=(Mp // tm,),
            in_specs=[
                pl.BlockSpec((tm, K), lambda i: (i, 0)),
                pl.BlockSpec((K, C1), lambda i: (0, 0)),
                pl.BlockSpec((1, C1), lambda i: (0, 0)),
                pl.BlockSpec((1, C1), lambda i: (0, 0)),
                pl.BlockSpec((C1, 2 * co), lambda i: (0, 0)),
                pl.BlockSpec((1, 2 * co), lambda i: (0, 0)),
                pl.BlockSpec((1, 2 * co), lambda i: (0, 0)),
            ],
            out_specs=(pl.BlockSpec((tm, co), lambda i: (i, 0)),
                       pl.BlockSpec((tm, co), lambda i: (i, 0))),
        ),
        compiler_params=pltpu.CompilerParams(
            dimension_semantics=("parallel",)),
    )(xcol, w1, s1, b1, w23, s23, b23)
    if Mp != M:
        x2 = x2[:M]
        x3 = x3[:M]
    return x2, x3, (N, Ho, Wo)


# ---------------------------------------------------------------------------
# Kernel 2: 8 fused ResBlock units + conv4 -> cat([x4,x2]) -> conv5
# ---------------------------------------------------------------------------

def _res_tail_kernel(x3_ref, x2_ref, mask_ref,
                     w1s_ref, s1s_ref, b1s_ref,
                     w2s_ref, s2s_ref, b2s_ref,
                     w4_ref, s4_ref, b4_ref,
                     w5a_ref, w5b_ref, s5_ref, b5_ref,
                     o_ref, act_ref, col_ref, *, H, W, C):
    blk = pl.program_id(1)

    # Load the image once; the running residual stays resident in VMEM (f32)
    # across all 8 block steps of the 'arbitrary' grid axis.
    @pl.when(blk == 0)
    def _():
        act_ref[...] = x3_ref[...].reshape(H * W, C).astype(jnp.float32)

    x = act_ref[...]                                   # (H*W, C) f32
    xb = x.astype(jnp.bfloat16)

    # 1x1 conv + BN + Mish
    h1 = jnp.dot(xb, w1s_ref[...], preferred_element_type=jnp.float32)
    h1 = _mish(h1 * s1s_ref[...] + b1s_ref[...])       # (H*W, C) f32

    # 3x3 conv as ONE K=9C matmul: build the im2col tile in VMEM using XLU
    # rolls on the flattened (H*W, C) layout + precomputed 0/1 boundary masks
    # (no padded scratch, no misaligned stores, nothing to zero per step).
    for kh in range(3):
        for kw in range(3):
            k = kh * 3 + kw
            shift = (-((kh - 1) * W + (kw - 1))) % (H * W)
            if shift == 0:
                patch = h1
            else:
                patch = pltpu.roll(h1, shift=shift, axis=0) * mask_ref[k]
            col_ref[:, k * C:(k + 1) * C] = patch.astype(col_ref.dtype)

    h2 = jnp.dot(col_ref[...], w2s_ref[...], preferred_element_type=jnp.float32)
    h2 = _mish(h2 * s2s_ref[...] + b2s_ref[...])
    r = x + h2                                         # residual add (f32)
    act_ref[...] = r

    # Tail (conv4 -> implicit concat -> conv5) fused at the last block step.
    @pl.when(blk == pl.num_programs(1) - 1)
    def _():
        rb = r.astype(jnp.bfloat16)
        h4 = jnp.dot(rb, w4_ref[...], preferred_element_type=jnp.float32)
        h4 = _mish(h4 * s4_ref[...] + b4_ref[...])
        x2 = x2_ref[...].reshape(H * W, C)             # bf16
        acc = jnp.dot(h4.astype(jnp.bfloat16), w5a_ref[...],
                      preferred_element_type=jnp.float32)
        acc = acc + jnp.dot(x2, w5b_ref[...], preferred_element_type=jnp.float32)
        y = _mish(acc * s5_ref[...] + b5_ref[...])
        o_ref[...] = y.reshape(H, W, 2 * C).astype(o_ref.dtype)


def _make_shift_masks(H, W):
    """0/1 row-validity masks for the 9 (kh,kw) shifts of a 3x3 pad-1 conv."""
    ii, jj = np.meshgrid(np.arange(H), np.arange(W), indexing="ij")
    ii = ii.reshape(-1)
    jj = jj.reshape(-1)
    masks = np.zeros((9, H * W, 1), np.float32)
    for kh in range(3):
        for kw in range(3):
            dh, dw = kh - 1, kw - 1
            valid = ((ii + dh >= 0) & (ii + dh < H) &
                     (jj + dw >= 0) & (jj + dw < W))
            masks[kh * 3 + kw, :, 0] = valid.astype(np.float32)
    return jnp.asarray(masks)


def resblocks_tail(x3_nhwc, x2_nhwc, params):
    N, H, W, C = x3_nhwc.shape
    nblocks = params['res_w1'].shape[0]
    w4, s4, b4 = params['conv4']
    w5a, w5b, s5, b5 = params['conv5']
    C2 = w5a.shape[1]                                  # 256
    masks = _make_shift_masks(H, W)

    img_map = lambda n, b: (n, 0, 0, 0)
    blk_map = lambda n, b: (b, 0, 0)
    cst3_map = lambda n, b: (0, 0, 0)
    cst2_map = lambda n, b: (0, 0)

    return pl.pallas_call(
        functools.partial(_res_tail_kernel, H=H, W=W, C=C),
        out_shape=jax.ShapeDtypeStruct((N, H, W, C2), jnp.float32),
        grid_spec=pltpu.PrefetchScalarGridSpec(
            num_scalar_prefetch=0,
            grid=(N, nblocks),
            in_specs=[
                pl.BlockSpec((None, H, W, C), img_map),      # x3
                pl.BlockSpec((None, H, W, C), img_map),      # x2
                pl.BlockSpec((9, H * W, 1), cst3_map),       # shift masks
                pl.BlockSpec((None, C, C), blk_map),         # res w1 (stacked)
                pl.BlockSpec((None, 1, C), blk_map),         # res s1
                pl.BlockSpec((None, 1, C), blk_map),         # res b1
                pl.BlockSpec((None, 9 * C, C), blk_map),     # res w2 (stacked)
                pl.BlockSpec((None, 1, C), blk_map),         # res s2
                pl.BlockSpec((None, 1, C), blk_map),         # res b2
                pl.BlockSpec((C, C), cst2_map),              # conv4 w
                pl.BlockSpec((1, C), cst2_map),              # conv4 scale
                pl.BlockSpec((1, C), cst2_map),              # conv4 shift
                pl.BlockSpec((C, C2), cst2_map),             # conv5 w (x4 half)
                pl.BlockSpec((C, C2), cst2_map),             # conv5 w (x2 half)
                pl.BlockSpec((1, C2), cst2_map),             # conv5 scale
                pl.BlockSpec((1, C2), cst2_map),             # conv5 shift
            ],
            out_specs=pl.BlockSpec((None, H, W, C2), img_map),
            scratch_shapes=[
                pltpu.VMEM((H * W, C), jnp.float32),         # resident residual
                pltpu.VMEM((H * W, 9 * C), jnp.bfloat16),    # im2col tile
            ],
        ),
        compiler_params=pltpu.CompilerParams(
            dimension_semantics=("parallel", "arbitrary")),
    )(x3_nhwc, x2_nhwc, masks,
      params['res_w1'], params['res_s1'], params['res_b1'],
      params['res_w2'], params['res_s2'], params['res_b2'],
      w4, s4, b4, w5a, w5b, s5, b5)


# ---------------------------------------------------------------------------
# Parameters (synthetic, folded once into kernel layout)
# ---------------------------------------------------------------------------

def make_conv_bn_params(key, cin, cout, ksize):
    """Deterministic synthetic Conv_Bn_Activation params (bn=True, bias=False)."""
    k1, k2, k3, k4, k5 = jax.random.split(key, 5)
    fan_in = cin * ksize * ksize
    w = jax.random.normal(k1, (cout, cin, ksize, ksize), jnp.float32) / jnp.sqrt(
        jnp.float32(fan_in))
    gamma = 1.0 + 0.1 * jax.random.normal(k2, (cout,), jnp.float32)
    beta = 0.1 * jax.random.normal(k3, (cout,), jnp.float32)
    mean = 0.1 * jax.random.normal(k4, (cout,), jnp.float32)
    var = jnp.abs(1.0 + 0.1 * jax.random.normal(k5, (cout,), jnp.float32))
    scale = gamma / jnp.sqrt(var + 1e-5)
    shift = beta - mean * scale
    return w, scale, shift


def prepare_conv(w, scale, shift):
    """OIHW f32 -> ((KH*KW*Cin, Cout) bf16, (1,Cout) f32, (1,Cout) f32)."""
    cout, cin, kh, kw = w.shape
    w2 = jnp.transpose(w, (2, 3, 1, 0)).reshape(kh * kw * cin, cout)
    return (w2.astype(jnp.bfloat16),
            scale.reshape(1, cout).astype(jnp.float32),
            shift.reshape(1, cout).astype(jnp.float32))


def init_downsample3_params(key):
    cfg = {'conv1': (128, 256, 3),
           'conv2': (256, 128, 1),
           'conv3': (256, 128, 1),
           'conv4': (128, 128, 1),
           'conv5': (256, 256, 1)}
    for i in range(8):
        cfg[f'res{i}_1'] = (128, 128, 1)
        cfg[f'res{i}_2'] = (128, 128, 3)
    keys = jax.random.split(key, len(cfg))
    prep = {name: prepare_conv(*make_conv_bn_params(k, *spec))
            for k, (name, spec) in zip(keys, cfg.items())}

    p = {'conv1': prep['conv1'], 'conv4': prep['conv4']}
    # Fuse conv2 & conv3 (same input, both 1x1 256->128 mish) into one matmul.
    w2, s2, b2 = prep['conv2']
    w3, s3, b3 = prep['conv3']
    p['conv23'] = (jnp.concatenate([w2, w3], axis=1),
                   jnp.concatenate([s2, s3], axis=1),
                   jnp.concatenate([b2, b3], axis=1))
    # Split conv5 weight by input-channel halves: cat([x4, x2]) order.
    w5, s5, b5 = prep['conv5']
    p['conv5'] = (w5[:128], w5[128:], s5, b5)
    # Stack the 8 res-unit weights along a leading block axis.
    p['res_w1'] = jnp.stack([prep[f'res{i}_1'][0] for i in range(8)])
    p['res_s1'] = jnp.stack([prep[f'res{i}_1'][1] for i in range(8)])
    p['res_b1'] = jnp.stack([prep[f'res{i}_1'][2] for i in range(8)])
    p['res_w2'] = jnp.stack([prep[f'res{i}_2'][0] for i in range(8)])
    p['res_s2'] = jnp.stack([prep[f'res{i}_2'][1] for i in range(8)])
    p['res_b2'] = jnp.stack([prep[f'res{i}_2'][2] for i in range(8)])
    return p


# ---------------------------------------------------------------------------
# Forward pass
# ---------------------------------------------------------------------------

def downsample3_forward(params, x_nhwc):
    """x_nhwc: (N, H, W, 128) f32.  Returns (N, H/2, W/2, 256) f32."""
    x2_2d, x3_2d, (N, Ho, Wo) = conv1_conv23(
        x_nhwc, params['conv1'], params['conv23'])
    co = x2_2d.shape[1]
    x2 = x2_2d.reshape(N, Ho, Wo, co)
    x3 = x3_2d.reshape(N, Ho, Wo, co)
    return resblocks_tail(x3, x2, params)


if __name__ == "__main__":
    key = jax.random.PRNGKey(0)
    kp, kx = jax.random.split(key)
    params = init_downsample3_params(kp)

    # PyTorch-convention NCHW input (small), then -> NHWC.
    N, C, H, W = 2, 128, 16, 16
    x_nchw = jax.random.normal(kx, (N, C, H, W), jnp.float32)
    x_nhwc = jnp.transpose(x_nchw, (0, 2, 3, 1))

    out_nhwc = jax.jit(downsample3_forward)(params, x_nhwc)
    out_nchw = jax.block_until_ready(jnp.transpose(out_nhwc, (0, 3, 1, 2)))

    # Expected PyTorch output shape: (2, 256, 8, 8)
    assert tuple(out_nchw.shape) == (N, 256, H // 2, W // 2), out_nchw.shape
    assert bool(jnp.all(jnp.isfinite(out_nchw)))
    print("KERNEL_OK")
</pallas_src>

<mosaic_0001>
module attributes {stable_mosaic.version = 11 : i64} {
  func.func @_res_tail_kernel(%arg0: i32, %arg1: i32, %arg2: memref<1x8x8x128xbf16, #tpu.memory_space<vmem>>, %arg3: memref<1x8x8x128xbf16, #tpu.memory_space<vmem>>, %arg4: memref<9x64x1xf32, #tpu.memory_space<vmem>>, %arg5: memref<1x128x128xbf16, #tpu.memory_space<vmem>>, %arg6: memref<1x1x128xf32, #tpu.memory_space<vmem>>, %arg7: memref<1x1x128xf32, #tpu.memory_space<vmem>>, %arg8: memref<1x1152x128xbf16, #tpu.memory_space<vmem>>, %arg9: memref<1x1x128xf32, #tpu.memory_space<vmem>>, %arg10: memref<1x1x128xf32, #tpu.memory_space<vmem>>, %arg11: memref<128x128xbf16, #tpu.memory_space<vmem>>, %arg12: memref<1x128xf32, #tpu.memory_space<vmem>>, %arg13: memref<1x128xf32, #tpu.memory_space<vmem>>, %arg14: memref<128x256xbf16, #tpu.memory_space<vmem>>, %arg15: memref<128x256xbf16, #tpu.memory_space<vmem>>, %arg16: memref<1x256xf32, #tpu.memory_space<vmem>>, %arg17: memref<1x256xf32, #tpu.memory_space<vmem>>, %arg18: memref<1x8x8x256xf32, #tpu.memory_space<vmem>>, %arg19: memref<64x128xf32, #tpu.memory_space<vmem>>, %arg20: memref<64x1152xbf16, #tpu.memory_space<vmem>>) attributes {dimension_semantics = [#tpu.dimension_semantics<parallel>, #tpu.dimension_semantics<arbitrary>], iteration_bounds = array<i64: 2, 8>, scalar_prefetch = 0 : i64, scratch_operands = 2 : i64, tpu.core_type = #tpu.core_type<tc>, window_params = [{transform_indices = @transform_0, window_bounds = array<i64: 1, 8, 8, 128>}, {transform_indices = @transform_1, window_bounds = array<i64: 1, 8, 8, 128>}, {pipeline_mode = #tpu.pipeline_mode<synchronous>, transform_indices = @transform_2, window_bounds = array<i64: 9, 64, 1>}, {transform_indices = @transform_3, window_bounds = array<i64: 1, 128, 128>}, {transform_indices = @transform_4, window_bounds = array<i64: 1, 1, 128>}, {transform_indices = @transform_5, window_bounds = array<i64: 1, 1, 128>}, {transform_indices = @transform_6, window_bounds = array<i64: 1, 1152, 128>}, {transform_indices = @transform_7, window_bounds = array<i64: 1, 1, 128>}, {transform_indices = @transform_8, window_bounds = array<i64: 1, 1, 128>}, {pipeline_mode = #tpu.pipeline_mode<synchronous>, transform_indices = @transform_9, window_bounds = array<i64: 128, 128>}, {pipeline_mode = #tpu.pipeline_mode<synchronous>, transform_indices = @transform_10, window_bounds = array<i64: 1, 128>}, {pipeline_mode = #tpu.pipeline_mode<synchronous>, transform_indices = @transform_11, window_bounds = array<i64: 1, 128>}, {pipeline_mode = #tpu.pipeline_mode<synchronous>, transform_indices = @transform_12, window_bounds = array<i64: 128, 256>}, {pipeline_mode = #tpu.pipeline_mode<synchronous>, transform_indices = @transform_13, window_bounds = array<i64: 128, 256>}, {pipeline_mode = #tpu.pipeline_mode<synchronous>, transform_indices = @transform_14, window_bounds = array<i64: 1, 256>}, {pipeline_mode = #tpu.pipeline_mode<synchronous>, transform_indices = @transform_15, window_bounds = array<i64: 1, 256>}, {transform_indices = @transform_16, window_bounds = array<i64: 1, 8, 8, 256>}]} {
    %c0_i32 = arith.constant 0 : i32
    %0 = arith.cmpi eq, %arg1, %c0_i32 : i32
    %1 = arith.extui %0 : i1 to i32
    %c0_i32_0 = arith.constant 0 : i32
    %2 = arith.cmpi ne, %1, %c0_i32_0 : i32
    scf.if %2 {
      %c0_62 = arith.constant 0 : index
      %c0_63 = arith.constant 0 : index
      %c0_64 = arith.constant 0 : index
      %c0_65 = arith.constant 0 : index
      %117 = vector.load %arg2[%c0_62, %c0_63, %c0_64, %c0_65] : memref<1x8x8x128xbf16, #tpu.memory_space<vmem>>, vector<1x8x8x128xbf16>
      %118 = vector.shape_cast %117 : vector<1x8x8x128xbf16> to vector<8x8x128xbf16>
      %119 = vector.shape_cast %118 : vector<8x8x128xbf16> to vector<64x128xbf16>
      %120 = arith.extf %119 : vector<64x128xbf16> to vector<64x128xf32>
      %c0_66 = arith.constant 0 : index
      %c0_67 = arith.constant 0 : index
      %121 = vector.load %arg19[%c0_66, %c0_67] : memref<64x128xf32, #tpu.memory_space<vmem>>, vector<64x128xf32>
      tpu.vector_store %arg19[%c0_66, %c0_67], %120 {strides = array<i32>} : memref<64x128xf32, #tpu.memory_space<vmem>>, vector<64x128xf32>,
    } else {
    }
    %c0 = arith.constant 0 : index
    %c0_1 = arith.constant 0 : index
    %3 = vector.load %arg19[%c0, %c0_1] : memref<64x128xf32, #tpu.memory_space<vmem>>, vector<64x128xf32>
    %4 = arith.truncf %3 : vector<64x128xf32> to vector<64x128xbf16>
    %c0_2 = arith.constant 0 : index
    %c0_3 = arith.constant 0 : index
    %c0_4 = arith.constant 0 : index
    %5 = vector.load %arg5[%c0_2, %c0_3, %c0_4] : memref<1x128x128xbf16, #tpu.memory_space<vmem>>, vector<1x128x128xbf16>
    %6 = vector.shape_cast %5 : vector<1x128x128xbf16> to vector<128x128xbf16>
    %cst = arith.constant dense<0.000000e+00> : vector<64x128xf32>
    %7 = tpu.matmul %4, %6, %cst {dimension_numbers = #tpu.dot_dimension_numbers<[1], [0], [0], [1], [0, 0, 1, 1], [], []>} : vector<64x128xbf16>, vector<128x128xbf16>, vector<64x128xf32> -> vector<64x128xf32>
    %c0_5 = arith.constant 0 : index
    %c0_6 = arith.constant 0 : index
    %c0_7 = arith.constant 0 : index
    %8 = vector.load %arg6[%c0_5, %c0_6, %c0_7] : memref<1x1x128xf32, #tpu.memory_space<vmem>>, vector<1x1x128xf32>
    %9 = vector.shape_cast %8 : vector<1x1x128xf32> to vector<1x128xf32>
    %10 = vector.broadcast %9 : vector<1x128xf32> to vector<64x128xf32>
    %11 = arith.mulf %7, %10 : vector<64x128xf32>
    %c0_8 = arith.constant 0 : index
    %c0_9 = arith.constant 0 : index
    %c0_10 = arith.constant 0 : index
    %12 = vector.load %arg7[%c0_8, %c0_9, %c0_10] : memref<1x1x128xf32, #tpu.memory_space<vmem>>, vector<1x1x128xf32>
    %13 = vector.shape_cast %12 : vector<1x1x128xf32> to vector<1x128xf32>
    %14 = vector.broadcast %13 : vector<1x128xf32> to vector<64x128xf32>
    %15 = arith.addf %11, %14 : vector<64x128xf32>
    %cst_11 = arith.constant 2.000000e+01 : f32
    %16 = vector.broadcast %cst_11 : f32 to vector<64x128xf32>
    %17 = arith.minimumf %15, %16 : vector<64x128xf32>
    %18 = math.exp %17 : vector<64x128xf32>
    %cst_12 = arith.constant 1.000000e+00 : f32
    %19 = vector.broadcast %cst_12 : f32 to vector<64x128xf32>
    %20 = arith.addf %19, %18 : vector<64x128xf32>
    %21 = arith.mulf %20, %20 : vector<64x128xf32>
    %cst_13 = arith.constant 1.000000e+00 : f32
    %22 = vector.broadcast %cst_13 : f32 to vector<64x128xf32>
    %23 = arith.subf %21, %22 : vector<64x128xf32>
    %24 = arith.mulf %15, %23 : vector<64x128xf32>
    %cst_14 = arith.constant 1.000000e+00 : f32
    %25 = vector.broadcast %cst_14 : f32 to vector<64x128xf32>
    %26 = arith.addf %21, %25 : vector<64x128xf32>
    %27 = tpu.reciprocal %26 {approx = true} : vector<64x128xf32> -> vector<64x128xf32>
    %28 = arith.mulf %24, %27 : vector<64x128xf32>
    %c9_i32 = arith.constant 9 : i32
    %29 = tpu.dynamic_rotate %28 by %c9_i32 dim 0 : vector<64x128xf32>, i32 -> vector<64x128xf32>
    %c0_15 = arith.constant 0 : index
    %c0_16 = arith.constant 0 : index
    %c0_17 = arith.constant 0 : index
    %30 = vector.load %arg4[%c0_15, %c0_16, %c0_17] : memref<9x64x1xf32, #tpu.memory_space<vmem>>, vector<1x64x1xf32>
    %31 = vector.shape_cast %30 : vector<1x64x1xf32> to vector<64x1xf32>
    %32 = vector.broadcast %31 : vector<64x1xf32> to vector<64x128xf32>
    %33 = arith.mulf %29, %32 : vector<64x128xf32>
    %34 = arith.truncf %33 : vector<64x128xf32> to vector<64x128xbf16>
    %c0_18 = arith.constant 0 : index
    %c0_19 = arith.constant 0 : index
    %35 = vector.load %arg20[%c0_18, %c0_19] : memref<64x1152xbf16, #tpu.memory_space<vmem>>, vector<64x128xbf16>
    tpu.vector_store %arg20[%c0_18, %c0_19], %34 {strides = array<i32>} : memref<64x1152xbf16, #tpu.memory_space<vmem>>, vector<64x128xbf16>,
    %c8_i32 = arith.constant 8 : i32
    %36 = tpu.dynamic_rotate %28 by %c8_i32 dim 0 : vector<64x128xf32>, i32 -> vector<64x128xf32>
    %c1 = arith.constant 1 : index
    %c0_20 = arith.constant 0 : index
    %c0_21 = arith.constant 0 : index
    %37 = vector.load %arg4[%c1, %c0_20, %c0_21] : memref<9x64x1xf32, #tpu.memory_space<vmem>>, vector<1x64x1xf32>
    %38 = vector.shape_cast %37 : vector<1x64x1xf32> to vector<64x1xf32>
    %39 = vector.broadcast %38 : vector<64x1xf32> to vector<64x128xf32>
    %40 = arith.mulf %36, %39 : vector<64x128xf32>
    %41 = arith.truncf %40 : vector<64x128xf32> to vector<64x128xbf16>
    %c0_22 = arith.constant 0 : index
    %c128 = arith.constant 128 : index
    %42 = vector.load %arg20[%c0_22, %c128] : memref<64x1152xbf16, #tpu.memory_space<vmem>>, vector<64x128xbf16>
    tpu.vector_store %arg20[%c0_22, %c128], %41 {strides = array<i32>} : memref<64x1152xbf16, #tpu.memory_space<vmem>>, vector<64x128xbf16>,
    %c7_i32 = arith.constant 7 : i32
    %43 = tpu.dynamic_rotate %28 by %c7_i32 dim 0 : vector<64x128xf32>, i32 -> vector<64x128xf32>
    %c2 = arith.constant 2 : index
    %c0_23 = arith.constant 0 : index
    %c0_24 = arith.constant 0 : index
    %44 = vector.load %arg4[%c2, %c0_23, %c0_24] : memref<9x64x1xf32, #tpu.memory_space<vmem>>, vector<1x64x1xf32>
    %45 = vector.shape_cast %44 : vector<1x64x1xf32> to vector<64x1xf32>
    %46 = vector.broadcast %45 : vector<64x1xf32> to vector<64x128xf32>
    %47 = arith.mulf %43, %46 : vector<64x128xf32>
    %48 = arith.truncf %47 : vector<64x128xf32> to vector<64x128xbf16>
    %c0_25 = arith.constant 0 : index
    %c256 = arith.constant 256 : index
    %49 = vector.load %arg20[%c0_25, %c256] : memref<64x1152xbf16, #tpu.memory_space<vmem>>, vector<64x128xbf16>
    tpu.vector_store %arg20[%c0_25, %c256], %48 {strides = array<i32>} : memref<64x1152xbf16, #tpu.memory_space<vmem>>, vector<64x128xbf16>,
    %c1_i32 = arith.constant 1 : i32
    %50 = tpu.dynamic_rotate %28 by %c1_i32 dim 0 : vector<64x128xf32>, i32 -> vector<64x128xf32>
    %c3 = arith.constant 3 : index
    %c0_26 = arith.constant 0 : index
    %c0_27 = arith.constant 0 : index
    %51 = vector.load %arg4[%c3, %c0_26, %c0_27] : memref<9x64x1xf32, #tpu.memory_space<vmem>>, vector<1x64x1xf32>
    %52 = vector.shape_cast %51 : vector<1x64x1xf32> to vector<64x1xf32>
    %53 = vector.broadcast %52 : vector<64x1xf32> to vector<64x128xf32>
    %54 = arith.mulf %50, %53 : vector<64x128xf32>
    %55 = arith.truncf %54 : vector<64x128xf32> to vector<64x128xbf16>
    %c0_28 = arith.constant 0 : index
    %c384 = arith.constant 384 : index
    %56 = vector.load %arg20[%c0_28, %c384] : memref<64x1152xbf16, #tpu.memory_space<vmem>>, vector<64x128xbf16>
    tpu.vector_store %arg20[%c0_28, %c384], %55 {strides = array<i32>} : memref<64x1152xbf16, #tpu.memory_space<vmem>>, vector<64x128xbf16>,
    %57 = arith.truncf %28 : vector<64x128xf32> to vector<64x128xbf16>
    %c0_29 = arith.constant 0 : index
    %c512 = arith.constant 512 : index
    %58 = vector.load %arg20[%c0_29, %c512] : memref<64x1152xbf16, #tpu.memory_space<vmem>>, vector<64x128xbf16>
    tpu.vector_store %arg20[%c0_29, %c512], %57 {strides = array<i32>} : memref<64x1152xbf16, #tpu.memory_space<vmem>>, vector<64x128xbf16>,
    %c63_i32 = arith.constant 63 : i32
    %59 = tpu.dynamic_rotate %28 by %c63_i32 dim 0 : vector<64x128xf32>, i32 -> vector<64x128xf32>
    %c5 = arith.constant 5 : index
    %c0_30 = arith.constant 0 : index
    %c0_31 = arith.constant 0 : index
    %60 = vector.load %arg4[%c5, %c0_30, %c0_31] : memref<9x64x1xf32, #tpu.memory_space<vmem>>, vector<1x64x1xf32>
    %61 = vector.shape_cast %60 : vector<1x64x1xf32> to vector<64x1xf32>
    %62 = vector.broadcast %61 : vector<64x1xf32> to vector<64x128xf32>
    %63 = arith.mulf %59, %62 : vector<64x128xf32>
    %64 = arith.truncf %63 : vector<64x128xf32> to vector<64x128xbf16>
    %c0_32 = arith.constant 0 : index
    %c640 = arith.constant 640 : index
    %65 = vector.load %arg20[%c0_32, %c640] : memref<64x1152xbf16, #tpu.memory_space<vmem>>, vector<64x128xbf16>
    tpu.vector_store %arg20[%c0_32, %c640], %64 {strides = array<i32>} : memref<64x1152xbf16, #tpu.memory_space<vmem>>, vector<64x128xbf16>,
    %c57_i32 = arith.constant 57 : i32
    %66 = tpu.dynamic_rotate %28 by %c57_i32 dim 0 : vector<64x128xf32>, i32 -> vector<64x128xf32>
    %c6 = arith.constant 6 : index
    %c0_33 = arith.constant 0 : index
    %c0_34 = arith.constant 0 : index
    %67 = vector.load %arg4[%c6, %c0_33, %c0_34] : memref<9x64x1xf32, #tpu.memory_space<vmem>>, vector<1x64x1xf32>
    %68 = vector.shape_cast %67 : vector<1x64x1xf32> to vector<64x1xf32>
    %69 = vector.broadcast %68 : vector<64x1xf32> to vector<64x128xf32>
    %70 = arith.mulf %66, %69 : vector<64x128xf32>
    %71 = arith.truncf %70 : vector<64x128xf32> to vector<64x128xbf16>
    %c0_35 = arith.constant 0 : index
    %c768 = arith.constant 768 : index
    %72 = vector.load %arg20[%c0_35, %c768] : memref<64x1152xbf16, #tpu.memory_space<vmem>>, vector<64x128xbf16>
    tpu.vector_store %arg20[%c0_35, %c768], %71 {strides = array<i32>} : memref<64x1152xbf16, #tpu.memory_space<vmem>>, vector<64x128xbf16>,
    %c56_i32 = arith.constant 56 : i32
    %73 = tpu.dynamic_rotate %28 by %c56_i32 dim 0 : vector<64x128xf32>, i32 -> vector<64x128xf32>
    %c7 = arith.constant 7 : index
    %c0_36 = arith.constant 0 : index
    %c0_37 = arith.constant 0 : index
    %74 = vector.load %arg4[%c7, %c0_36, %c0_37] : memref<9x64x1xf32, #tpu.memory_space<vmem>>, vector<1x64x1xf32>
    %75 = vector.shape_cast %74 : vector<1x64x1xf32> to vector<64x1xf32>
    %76 = vector.broadcast %75 : vector<64x1xf32> to vector<64x128xf32>
    %77 = arith.mulf %73, %76 : vector<64x128xf32>
    %78 = arith.truncf %77 : vector<64x128xf32> to vector<64x128xbf16>
    %c0_38 = arith.constant 0 : index
    %c896 = arith.constant 896 : index
    %79 = vector.load %arg20[%c0_38, %c896] : memref<64x1152xbf16, #tpu.memory_space<vmem>>, vector<64x128xbf16>
    tpu.vector_store %arg20[%c0_38, %c896], %78 {strides = array<i32>} : memref<64x1152xbf16, #tpu.memory_space<vmem>>, vector<64x128xbf16>,
    %c55_i32 = arith.constant 55 : i32
    %80 = tpu.dynamic_rotate %28 by %c55_i32 dim 0 : vector<64x128xf32>, i32 -> vector<64x128xf32>
    %c8 = arith.constant 8 : index
    %c0_39 = arith.constant 0 : index
    %c0_40 = arith.constant 0 : index
    %81 = vector.load %arg4[%c8, %c0_39, %c0_40] : memref<9x64x1xf32, #tpu.memory_space<vmem>>, vector<1x64x1xf32>
    %82 = vector.shape_cast %81 : vector<1x64x1xf32> to vector<64x1xf32>
    %83 = vector.broadcast %82 : vector<64x1xf32> to vector<64x128xf32>
    %84 = arith.mulf %80, %83 : vector<64x128xf32>
    %85 = arith.truncf %84 : vector<64x128xf32> to vector<64x128xbf16>
    %c0_41 = arith.constant 0 : index
    %c1024 = arith.constant 1024 : index
    %86 = vector.load %arg20[%c0_41, %c1024] : memref<64x1152xbf16, #tpu.memory_space<vmem>>, vector<64x128xbf16>
    tpu.vector_store %arg20[%c0_41, %c1024], %85 {strides = array<i32>} : memref<64x1152xbf16, #tpu.memory_space<vmem>>, vector<64x128xbf16>,
    %c0_42 = arith.constant 0 : index
    %c0_43 = arith.constant 0 : index
    %87 = vector.load %arg20[%c0_42, %c0_43] : memref<64x1152xbf16, #tpu.memory_space<vmem>>, vector<64x1152xbf16>
    %c0_44 = arith.constant 0 : index
    %c0_45 = arith.constant 0 : index
    %c0_46 = arith.constant 0 : index
    %88 = vector.load %arg8[%c0_44, %c0_45, %c0_46] : memref<1x1152x128xbf16, #tpu.memory_space<vmem>>, vector<1x1152x128xbf16>
    %89 = vector.shape_cast %88 : vector<1x1152x128xbf16> to vector<1152x128xbf16>
    %cst_47 = arith.constant dense<0.000000e+00> : vector<64x128xf32>
    %90 = tpu.matmul %87, %89, %cst_47 {dimension_numbers = #tpu.dot_dimension_numbers<[1], [0], [0], [1], [0, 0, 1, 1], [], []>} : vector<64x1152xbf16>, vector<1152x128xbf16>, vector<64x128xf32> -> vector<64x128xf32>
    %c0_48 = arith.constant 0 : index
    %c0_49 = arith.constant 0 : index
    %c0_50 = arith.constant 0 : index
    %91 = vector.load %arg9[%c0_48, %c0_49, %c0_50] : memref<1x1x128xf32, #tpu.memory_space<vmem>>, vector<1x1x128xf32>
    %92 = vector.shape_cast %91 : vector<1x1x128xf32> to vector<1x128xf32>
    %93 = vector.broadcast %92 : vector<1x128xf32> to vector<64x128xf32>
    %94 = arith.mulf %90, %93 : vector<64x128xf32>
    %c0_51 = arith.constant 0 : index
    %c0_52 = arith.constant 0 : index
    %c0_53 = arith.constant 0 : index
    %95 = vector.load %arg10[%c0_51, %c0_52, %c0_53] : memref<1x1x128xf32, #tpu.memory_space<vmem>>, vector<1x1x128xf32>
    %96 = vector.shape_cast %95 : vector<1x1x128xf32> to vector<1x128xf32>
    %97 = vector.broadcast %96 : vector<1x128xf32> to vector<64x128xf32>
    %98 = arith.addf %94, %97 : vector<64x128xf32>
    %cst_54 = arith.constant 2.000000e+01 : f32
    %99 = vector.broadcast %cst_54 : f32 to vector<64x128xf32>
    %100 = arith.minimumf %98, %99 : vector<64x128xf32>
    %101 = math.exp %100 : vector<64x128xf32>
    %cst_55 = arith.constant 1.000000e+00 : f32
    %102 = vector.broadcast %cst_55 : f32 to vector<64x128xf32>
    %103 = arith.addf %102, %101 : vector<64x128xf32>
    %104 = arith.mulf %103, %103 : vector<64x128xf32>
    %cst_56 = arith.constant 1.000000e+00 : f32
    %105 = vector.broadcast %cst_56 : f32 to vector<64x128xf32>
    %106 = arith.subf %104, %105 : vector<64x128xf32>
    %107 = arith.mulf %98, %106 : vector<64x128xf32>
    %cst_57 = arith.constant 1.000000e+00 : f32
    %108 = vector.broadcast %cst_57 : f32 to vector<64x128xf32>
    %109 = arith.addf %104, %108 : vector<64x128xf32>
    %110 = tpu.reciprocal %109 {approx = true} : vector<64x128xf32> -> vector<64x128xf32>
    %111 = arith.mulf %107, %110 : vector<64x128xf32>
    %112 = arith.addf %3, %111 : vector<64x128xf32>
    %c0_58 = arith.constant 0 : index
    %c0_59 = arith.constant 0 : index
    %113 = vector.load %arg19[%c0_58, %c0_59] : memref<64x128xf32, #tpu.memory_space<vmem>>, vector<64x128xf32>
    tpu.vector_store %arg19[%c0_58, %c0_59], %112 {strides = array<i32>} : memref<64x128xf32, #tpu.memory_space<vmem>>, vector<64x128xf32>,
    %c7_i32_60 = arith.constant 7 : i32
    %114 = arith.cmpi eq, %arg1, %c7_i32_60 : i32
    %115 = arith.extui %114 : i1 to i32
    %c0_i32_61 = arith.constant 0 : i32
    %116 = arith.cmpi ne, %115, %c0_i32_61 : i32
    scf.if %116 {
      %117 = arith.truncf %112 : vector<64x128xf32> to vector<64x128xbf16>
      %c0_62 = arith.constant 0 : index
      %c0_63 = arith.constant 0 : index
      %118 = vector.load %arg11[%c0_62, %c0_63] : memref<128x128xbf16, #tpu.memory_space<vmem>>, vector<128x128xbf16>
      %cst_64 = arith.constant dense<0.000000e+00> : vector<64x128xf32>
      %119 = tpu.matmul %117, %118, %cst_64 {dimension_numbers = #tpu.dot_dimension_numbers<[1], [0], [0], [1], [0, 0, 1, 1], [], []>} : vector<64x128xbf16>, vector<128x128xbf16>, vector<64x128xf32> -> vector<64x128xf32>
      %c0_65 = arith.constant 0 : index
      %c0_66 = arith.constant 0 : index
      %120 = vector.load %arg12[%c0_65, %c0_66] : memref<1x128xf32, #tpu.memory_space<vmem>>, vector<1x128xf32>
      %121 = vector.broadcast %120 : vector<1x128xf32> to vector<64x128xf32>
      %122 = arith.mulf %119, %121 : vector<64x128xf32>
      %c0_67 = arith.constant 0 : index
      %c0_68 = arith.constant 0 : index
      %123 = vector.load %arg13[%c0_67, %c0_68] : memref<1x128xf32, #tpu.memory_space<vmem>>, vector<1x128xf32>
      %124 = vector.broadcast %123 : vector<1x128xf32> to vector<64x128xf32>
      %125 = arith.addf %122, %124 : vector<64x128xf32>
      %cst_69 = arith.constant 2.000000e+01 : f32
      %126 = vector.broadcast %cst_69 : f32 to vector<64x128xf32>
      %127 = arith.minimumf %125, %126 : vector<64x128xf32>
      %128 = math.exp %127 : vector<64x128xf32>
      %cst_70 = arith.constant 1.000000e+00 : f32
      %129 = vector.broadcast %cst_70 : f32 to vector<64x128xf32>
      %130 = arith.addf %129, %128 : vector<64x128xf32>
      %131 = arith.mulf %130, %130 : vector<64x128xf32>
      %cst_71 = arith.constant 1.000000e+00 : f32
      %132 = vector.broadcast %cst_71 : f32 to vector<64x128xf32>
      %133 = arith.subf %131, %132 : vector<64x128xf32>
      %134 = arith.mulf %125, %133 : vector<64x128xf32>
      %cst_72 = arith.constant 1.000000e+00 : f32
      %135 = vector.broadcast %cst_72 : f32 to vector<64x128xf32>
      %136 = arith.addf %131, %135 : vector<64x128xf32>
      %137 = tpu.reciprocal %136 {approx = true} : vector<64x128xf32> -> vector<64x128xf32>
      %138 = arith.mulf %134, %137 : vector<64x128xf32>
      %c0_73 = arith.constant 0 : index
      %c0_74 = arith.constant 0 : index
      %c0_75 = arith.constant 0 : index
      %c0_76 = arith.constant 0 : index
      %139 = vector.load %arg3[%c0_73, %c0_74, %c0_75, %c0_76] : memref<1x8x8x128xbf16, #tpu.memory_space<vmem>>, vector<1x8x8x128xbf16>
      %140 = vector.shape_cast %139 : vector<1x8x8x128xbf16> to vector<8x8x128xbf16>
      %141 = vector.shape_cast %140 : vector<8x8x128xbf16> to vector<64x128xbf16>
      %142 = arith.truncf %138 : vector<64x128xf32> to vector<64x128xbf16>
      %c0_77 = arith.constant 0 : index
      %c0_78 = arith.constant 0 : index
      %143 = vector.load %arg14[%c0_77, %c0_78] : memref<128x256xbf16, #tpu.memory_space<vmem>>, vector<128x256xbf16>
      %cst_79 = arith.constant dense<0.000000e+00> : vector<64x256xf32>
      %144 = tpu.matmul %142, %143, %cst_79 {dimension_numbers = #tpu.dot_dimension_numbers<[1], [0], [0], [1], [0, 0, 1, 1], [], []>} : vector<64x128xbf16>, vector<128x256xbf16>, vector<64x256xf32> -> vector<64x256xf32>
      %c0_80 = arith.constant 0 : index
      %c0_81 = arith.constant 0 : index
      %145 = vector.load %arg15[%c0_80, %c0_81] : memref<128x256xbf16, #tpu.memory_space<vmem>>, vector<128x256xbf16>
      %cst_82 = arith.constant dense<0.000000e+00> : vector<64x256xf32>
      %146 = tpu.matmul %141, %145, %cst_82 {dimension_numbers = #tpu.dot_dimension_numbers<[1], [0], [0], [1], [0, 0, 1, 1], [], []>} : vector<64x128xbf16>, vector<128x256xbf16>, vector<64x256xf32> -> vector<64x256xf32>
      %147 = arith.addf %144, %146 : vector<64x256xf32>
      %c0_83 = arith.constant 0 : index
      %c0_84 = arith.constant 0 : index
      %148 = vector.load %arg16[%c0_83, %c0_84] : memref<1x256xf32, #tpu.memory_space<vmem>>, vector<1x256xf32>
      %149 = vector.broadcast %148 : vector<1x256xf32> to vector<64x256xf32>
      %150 = arith.mulf %147, %149 : vector<64x256xf32>
      %c0_85 = arith.constant 0 : index
      %c0_86 = arith.constant 0 : index
      %151 = vector.load %arg17[%c0_85, %c0_86] : memref<1x256xf32, #tpu.memory_space<vmem>>, vector<1x256xf32>
      %152 = vector.broadcast %151 : vector<1x256xf32> to vector<64x256xf32>
      %153 = arith.addf %150, %152 : vector<64x256xf32>
      %cst_87 = arith.constant 2.000000e+01 : f32
      %154 = vector.broadcast %cst_87 : f32 to vector<64x256xf32>
      %155 = arith.minimumf %153, %154 : vector<64x256xf32>
      %156 = math.exp %155 : vector<64x256xf32>
      %cst_88 = arith.constant 1.000000e+00 : f32
      %157 = vector.broadcast %cst_88 : f32 to vector<64x256xf32>
      %158 = arith.addf %157, %156 : vector<64x256xf32>
      %159 = arith.mulf %158, %158 : vector<64x256xf32>
      %cst_89 = arith.constant 1.000000e+00 : f32
      %160 = vector.broadcast %cst_89 : f32 to vector<64x256xf32>
      %161 = arith.subf %159, %160 : vector<64x256xf32>
      %162 = arith.mulf %153, %161 : vector<64x256xf32>
      %cst_90 = arith.constant 1.000000e+00 : f32
      %163 = vector.broadcast %cst_90 : f32 to vector<64x256xf32>
      %164 = arith.addf %159, %163 : vector<64x256xf32>
      %165 = tpu.reciprocal %164 {approx = true} : vector<64x256xf32> -> vector<64x256xf32>
      %166 = arith.mulf %162, %165 : vector<64x256xf32>
      %167 = vector.shape_cast %166 : vector<64x256xf32> to vector<8x8x256xf32>
      %c0_91 = arith.constant 0 : index
      %c0_92 = arith.constant 0 : index
      %c0_93 = arith.constant 0 : index
      %c0_94 = arith.constant 0 : index
      %168 = vector.load %arg18[%c0_91, %c0_92, %c0_93, %c0_94] : memref<1x8x8x256xf32, #tpu.memory_space<vmem>>, vector<1x8x8x256xf32>
      %169 = vector.shape_cast %168 : vector<1x8x8x256xf32> to vector<8x8x256xf32>
      %170 = vector.shape_cast %167 : vector<8x8x256xf32> to vector<1x8x8x256xf32>
      tpu.vector_store %arg18[%c0_91, %c0_92, %c0_93, %c0_94], %170 {strides = array<i32>} : memref<1x8x8x256xf32, #tpu.memory_space<vmem>>, vector<1x8x8x256xf32>,
    } else {
    }
    return
  }
  func.func @transform_0(%arg0: i32, %arg1: i32) -> (i32, i32, i32, i32) {
    %c0_i32 = arith.constant 0 : i32
    %c0_i32_0 = arith.constant 0 : i32
    %c0_i32_1 = arith.constant 0 : i32
    %c0_i32_2 = arith.constant 0 : i32
    return %arg0, %c0_i32, %c0_i32_0, %c0_i32_1 : i32, i32, i32, i32
  }
  func.func @transform_1(%arg0: i32, %arg1: i32) -> (i32, i32, i32, i32) {
    %c0_i32 = arith.constant 0 : i32
    %c0_i32_0 = arith.constant 0 : i32
    %c0_i32_1 = arith.constant 0 : i32
    %c0_i32_2 = arith.constant 0 : i32
    return %arg0, %c0_i32, %c0_i32_0, %c0_i32_1 : i32, i32, i32, i32
  }
  func.func @transform_2(%arg0: i32, %arg1: i32) -> (i32, i32, i32) {
    %c0_i32 = arith.constant 0 : i32
    %c0_i32_0 = arith.constant 0 : i32
    %c0_i32_1 = arith.constant 0 : i32
    %c0_i32_2 = arith.constant 0 : i32
    return %c0_i32, %c0_i32_0, %c0_i32_1 : i32, i32, i32
  }
  func.func @transform_3(%arg0: i32, %arg1: i32) -> (i32, i32, i32) {
    %c0_i32 = arith.constant 0 : i32
    %c0_i32_0 = arith.constant 0 : i32
    %c0_i32_1 = arith.constant 0 : i32
    return %arg1, %c0_i32, %c0_i32_0 : i32, i32, i32
  }
  func.func @transform_4(%arg0: i32, %arg1: i32) -> (i32, i32, i32) {
    %c0_i32 = arith.constant 0 : i32
    %c0_i32_0 = arith.constant 0 : i32
    %c0_i32_1 = arith.constant 0 : i32
    return %arg1, %c0_i32, %c0_i32_0 : i32, i32, i32
  }
  func.func @transform_5(%arg0: i32, %arg1: i32) -> (i32, i32, i32) {
    %c0_i32 = arith.constant 0 : i32
    %c0_i32_0 = arith.constant 0 : i32
    %c0_i32_1 = arith.constant 0 : i32
    return %arg1, %c0_i32, %c0_i32_0 : i32, i32, i32
  }
  func.func @transform_6(%arg0: i32, %arg1: i32) -> (i32, i32, i32) {
    %c0_i32 = arith.constant 0 : i32
    %c0_i32_0 = arith.constant 0 : i32
    %c0_i32_1 = arith.constant 0 : i32
    return %arg1, %c0_i32, %c0_i32_0 : i32, i32, i32
  }
  func.func @transform_7(%arg0: i32, %arg1: i32) -> (i32, i32, i32) {
    %c0_i32 = arith.constant 0 : i32
    %c0_i32_0 = arith.constant 0 : i32
    %c0_i32_1 = arith.constant 0 : i32
    return %arg1, %c0_i32, %c0_i32_0 : i32, i32, i32
  }
  func.func @transform_8(%arg0: i32, %arg1: i32) -> (i32, i32, i32) {
    %c0_i32 = arith.constant 0 : i32
    %c0_i32_0 = arith.constant 0 : i32
    %c0_i32_1 = arith.constant 0 : i32
    return %arg1, %c0_i32, %c0_i32_0 : i32, i32, i32
  }
  func.func @transform_9(%arg0: i32, %arg1: i32) -> (i32, i32) {
    %c0_i32 = arith.constant 0 : i32
    %c0_i32_0 = arith.constant 0 : i32
    %c0_i32_1 = arith.constant 0 : i32
    return %c0_i32, %c0_i32_0 : i32, i32
  }
  func.func @transform_10(%arg0: i32, %arg1: i32) -> (i32, i32) {
    %c0_i32 = arith.constant 0 : i32
    %c0_i32_0 = arith.constant 0 : i32
    %c0_i32_1 = arith.constant 0 : i32
    return %c0_i32, %c0_i32_0 : i32, i32
  }
  func.func @transform_11(%arg0: i32, %arg1: i32) -> (i32, i32) {
    %c0_i32 = arith.constant 0 : i32
    %c0_i32_0 = arith.constant 0 : i32
    %c0_i32_1 = arith.constant 0 : i32
    return %c0_i32, %c0_i32_0 : i32, i32
  }
  func.func @transform_12(%arg0: i32, %arg1: i32) -> (i32, i32) {
    %c0_i32 = arith.constant 0 : i32
    %c0_i32_0 = arith.constant 0 : i32
    %c0_i32_1 = arith.constant 0 : i32
    return %c0_i32, %c0_i32_0 : i32, i32
  }
  func.func @transform_13(%arg0: i32, %arg1: i32) -> (i32, i32) {
    %c0_i32 = arith.constant 0 : i32
    %c0_i32_0 = arith.constant 0 : i32
    %c0_i32_1 = arith.constant 0 : i32
    return %c0_i32, %c0_i32_0 : i32, i32
  }
  func.func @transform_14(%arg0: i32, %arg1: i32) -> (i32, i32) {
    %c0_i32 = arith.constant 0 : i32
    %c0_i32_0 = arith.constant 0 : i32
    %c0_i32_1 = arith.constant 0 : i32
    return %c0_i32, %c0_i32_0 : i32, i32
  }
  func.func @transform_15(%arg0: i32, %arg1: i32) -> (i32, i32) {
    %c0_i32 = arith.constant 0 : i32
    %c0_i32_0 = arith.constant 0 : i32
    %c0_i32_1 = arith.constant 0 : i32
    return %c0_i32, %c0_i32_0 : i32, i32
  }
  func.func @transform_16(%arg0: i32, %arg1: i32) -> (i32, i32, i32, i32) {
    %c0_i32 = arith.constant 0 : i32
    %c0_i32_0 = arith.constant 0 : i32
    %c0_i32_1 = arith.constant 0 : i32
    %c0_i32_2 = arith.constant 0 : i32
    return %arg0, %c0_i32, %c0_i32_0, %c0_i32_1 : i32, i32, i32, i32
  }
}

module attributes {stable_mosaic.version = 11 : i64} {
  func.func @_head_kernel(%arg0: i32, %arg1: memref<128x1152xbf16, #tpu.memory_space<vmem>>, %arg2: memref<1152x256xbf16, #tpu.memory_space<vmem>>, %arg3: memref<1x256xf32, #tpu.memory_space<vmem>>, %arg4: memref<1x256xf32, #tpu.memory_space<vmem>>, %arg5: memref<256x256xbf16, #tpu.memory_space<vmem>>, %arg6: memref<1x256xf32, #tpu.memory_space<vmem>>, %arg7: memref<1x256xf32, #tpu.memory_space<vmem>>, %arg8: memref<128x128xbf16, #tpu.memory_space<vmem>>, %arg9: memref<128x128xbf16, #tpu.memory_space<vmem>>) attributes {dimension_semantics = [#tpu.dimension_semantics<parallel>], iteration_bounds = array<i64: 1>, scalar_prefetch = 0 : i64, scratch_operands = 0 : i64, tpu.core_type = #tpu.core_type<tc>, window_params = [{transform_indices = @transform_0, window_bounds = array<i64: 128, 1152>}, {pipeline_mode = #tpu.pipeline_mode<synchronous>, transform_indices = @transform_1, window_bounds = array<i64: 1152, 256>}, {pipeline_mode = #tpu.pipeline_mode<synchronous>, transform_indices = @transform_2, window_bounds = array<i64: 1, 256>}, {pipeline_mode = #tpu.pipeline_mode<synchronous>, transform_indices = @transform_3, window_bounds = array<i64: 1, 256>}, {pipeline_mode = #tpu.pipeline_mode<synchronous>, transform_indices = @transform_4, window_bounds = array<i64: 256, 256>}, {pipeline_mode = #tpu.pipeline_mode<synchronous>, transform_indices = @transform_5, window_bounds = array<i64: 1, 256>}, {pipeline_mode = #tpu.pipeline_mode<synchronous>, transform_indices = @transform_6, window_bounds = array<i64: 1, 256>}, {transform_indices = @transform_7, window_bounds = array<i64: 128, 128>}, {transform_indices = @transform_8, window_bounds = array<i64: 128, 128>}]} {
    %c0 = arith.constant 0 : index
    %c0_0 = arith.constant 0 : index
    %0 = vector.load %arg1[%c0, %c0_0] : memref<128x1152xbf16, #tpu.memory_space<vmem>>, vector<128x1152xbf16>
    %c0_1 = arith.constant 0 : index
    %c0_2 = arith.constant 0 : index
    %1 = vector.load %arg2[%c0_1, %c0_2] : memref<1152x256xbf16, #tpu.memory_space<vmem>>, vector<1152x256xbf16>
    %cst = arith.constant dense<0.000000e+00> : vector<128x256xf32>
    %2 = tpu.matmul %0, %1, %cst {dimension_numbers = #tpu.dot_dimension_numbers<[1], [0], [0], [1], [0, 0, 1, 1], [], []>} : vector<128x1152xbf16>, vector<1152x256xbf16>, vector<128x256xf32> -> vector<128x256xf32>
    %c0_3 = arith.constant 0 : index
    %c0_4 = arith.constant 0 : index
    %3 = vector.load %arg3[%c0_3, %c0_4] : memref<1x256xf32, #tpu.memory_space<vmem>>, vector<1x256xf32>
    %4 = vector.broadcast %3 : vector<1x256xf32> to vector<128x256xf32>
    %5 = arith.mulf %2, %4 : vector<128x256xf32>
    %c0_5 = arith.constant 0 : index
    %c0_6 = arith.constant 0 : index
    %6 = vector.load %arg4[%c0_5, %c0_6] : memref<1x256xf32, #tpu.memory_space<vmem>>, vector<1x256xf32>
    %7 = vector.broadcast %6 : vector<1x256xf32> to vector<128x256xf32>
    %8 = arith.addf %5, %7 : vector<128x256xf32>
    %cst_7 = arith.constant 2.000000e+01 : f32
    %9 = vector.broadcast %cst_7 : f32 to vector<128x256xf32>
    %10 = arith.minimumf %8, %9 : vector<128x256xf32>
    %11 = math.exp %10 : vector<128x256xf32>
    %cst_8 = arith.constant 1.000000e+00 : f32
    %12 = vector.broadcast %cst_8 : f32 to vector<128x256xf32>
    %13 = arith.addf %12, %11 : vector<128x256xf32>
    %14 = arith.mulf %13, %13 : vector<128x256xf32>
    %cst_9 = arith.constant 1.000000e+00 : f32
    %15 = vector.broadcast %cst_9 : f32 to vector<128x256xf32>
    %16 = arith.subf %14, %15 : vector<128x256xf32>
    %17 = arith.mulf %8, %16 : vector<128x256xf32>
    %cst_10 = arith.constant 1.000000e+00 : f32
    %18 = vector.broadcast %cst_10 : f32 to vector<128x256xf32>
    %19 = arith.addf %14, %18 : vector<128x256xf32>
    %20 = tpu.reciprocal %19 {approx = true} : vector<128x256xf32> -> vector<128x256xf32>
    %21 = arith.mulf %17, %20 : vector<128x256xf32>
    %22 = arith.truncf %21 : vector<128x256xf32> to vector<128x256xbf16>
    %c0_11 = arith.constant 0 : index
    %c0_12 = arith.constant 0 : index
    %23 = vector.load %arg5[%c0_11, %c0_12] : memref<256x256xbf16, #tpu.memory_space<vmem>>, vector<256x256xbf16>
    %cst_13 = arith.constant dense<0.000000e+00> : vector<128x256xf32>
    %24 = tpu.matmul %22, %23, %cst_13 {dimension_numbers = #tpu.dot_dimension_numbers<[1], [0], [0], [1], [0, 0, 1, 1], [], []>} : vector<128x256xbf16>, vector<256x256xbf16>, vector<128x256xf32> -> vector<128x256xf32>
    %c0_14 = arith.constant 0 : index
    %c0_15 = arith.constant 0 : index
    %25 = vector.load %arg6[%c0_14, %c0_15] : memref<1x256xf32, #tpu.memory_space<vmem>>, vector<1x256xf32>
    %26 = vector.broadcast %25 : vector<1x256xf32> to vector<128x256xf32>
    %27 = arith.mulf %24, %26 : vector<128x256xf32>
    %c0_16 = arith.constant 0 : index
    %c0_17 = arith.constant 0 : index
    %28 = vector.load %arg7[%c0_16, %c0_17] : memref<1x256xf32, #tpu.memory_space<vmem>>, vector<1x256xf32>
    %29 = vector.broadcast %28 : vector<1x256xf32> to vector<128x256xf32>
    %30 = arith.addf %27, %29 : vector<128x256xf32>
    %cst_18 = arith.constant 2.000000e+01 : f32
    %31 = vector.broadcast %cst_18 : f32 to vector<128x256xf32>
    %32 = arith.minimumf %30, %31 : vector<128x256xf32>
    %33 = math.exp %32 : vector<128x256xf32>
    %cst_19 = arith.constant 1.000000e+00 : f32
    %34 = vector.broadcast %cst_19 : f32 to vector<128x256xf32>
    %35 = arith.addf %34, %33 : vector<128x256xf32>
    %36 = arith.mulf %35, %35 : vector<128x256xf32>
    %cst_20 = arith.constant 1.000000e+00 : f32
    %37 = vector.broadcast %cst_20 : f32 to vector<128x256xf32>
    %38 = arith.subf %36, %37 : vector<128x256xf32>
    %39 = arith.mulf %30, %38 : vector<128x256xf32>
    %cst_21 = arith.constant 1.000000e+00 : f32
    %40 = vector.broadcast %cst_21 : f32 to vector<128x256xf32>
    %41 = arith.addf %36, %40 : vector<128x256xf32>
    %42 = tpu.reciprocal %41 {approx = true} : vector<128x256xf32> -> vector<128x256xf32>
    %43 = arith.mulf %39, %42 : vector<128x256xf32>
    %44 = vector.extract_strided_slice %43 {offsets = [0, 0], sizes = [128, 128], strides = [1, 1]} : vector<128x256xf32> to vector<128x128xf32>
    %45 = arith.truncf %44 : vector<128x128xf32> to vector<128x128xbf16>
    %c0_22 = arith.constant 0 : index
    %c0_23 = arith.constant 0 : index
    %46 = vector.load %arg8[%c0_22, %c0_23] : memref<128x128xbf16, #tpu.memory_space<vmem>>, vector<128x128xbf16>
    tpu.vector_store %arg8[%c0_22, %c0_23], %45 {strides = array<i32>} : memref<128x128xbf16, #tpu.memory_space<vmem>>, vector<128x128xbf16>,
    %47 = vector.extract_strided_slice %43 {offsets = [0, 128], sizes = [128, 128], strides = [1, 1]} : vector<128x256xf32> to vector<128x128xf32>
    %48 = arith.truncf %47 : vector<128x128xf32> to vector<128x128xbf16>
    %c0_24 = arith.constant 0 : index
    %c0_25 = arith.constant 0 : index
    %49 = vector.load %arg9[%c0_24, %c0_25] : memref<128x128xbf16, #tpu.memory_space<vmem>>, vector<128x128xbf16>
    tpu.vector_store %arg9[%c0_24, %c0_25], %48 {strides = array<i32>} : memref<128x128xbf16, #tpu.memory_space<vmem>>, vector<128x128xbf16>,
    return
  }
  func.func @transform_0(%arg0: i32) -> (i32, i32) {
    %c0_i32 = arith.constant 0 : i32
    %c0_i32_0 = arith.constant 0 : i32
    return %arg0, %c0_i32 : i32, i32
  }
  func.func @transform_1(%arg0: i32) -> (i32, i32) {
    %c0_i32 = arith.constant 0 : i32
    %c0_i32_0 = arith.constant 0 : i32
    %c0_i32_1 = arith.constant 0 : i32
    return %c0_i32, %c0_i32_0 : i32, i32
  }
  func.func @transform_2(%arg0: i32) -> (i32, i32) {
    %c0_i32 = arith.constant 0 : i32
    %c0_i32_0 = arith.constant 0 : i32
    %c0_i32_1 = arith.constant 0 : i32
    return %c0_i32, %c0_i32_0 : i32, i32
  }
  func.func @transform_3(%arg0: i32) -> (i32, i32) {
    %c0_i32 = arith.constant 0 : i32
    %c0_i32_0 = arith.constant 0 : i32
    %c0_i32_1 = arith.constant 0 : i32
    return %c0_i32, %c0_i32_0 : i32, i32
  }
  func.func @transform_4(%arg0: i32) -> (i32, i32) {
    %c0_i32 = arith.constant 0 : i32
    %c0_i32_0 = arith.constant 0 : i32
    %c0_i32_1 = arith.constant 0 : i32
    return %c0_i32, %c0_i32_0 : i32, i32
  }
  func.func @transform_5(%arg0: i32) -> (i32, i32) {
    %c0_i32 = arith.constant 0 : i32
    %c0_i32_0 = arith.constant 0 : i32
    %c0_i32_1 = arith.constant 0 : i32
    return %c0_i32, %c0_i32_0 : i32, i32
  }
  func.func @transform_6(%arg0: i32) -> (i32, i32) {
    %c0_i32 = arith.constant 0 : i32
    %c0_i32_0 = arith.constant 0 : i32
    %c0_i32_1 = arith.constant 0 : i32
    return %c0_i32, %c0_i32_0 : i32, i32
  }
  func.func @transform_7(%arg0: i32) -> (i32, i32) {
    %c0_i32 = arith.constant 0 : i32
    %c0_i32_0 = arith.constant 0 : i32
    return %arg0, %c0_i32 : i32, i32
  }
  func.func @transform_8(%arg0: i32) -> (i32, i32) {
    %c0_i32 = arith.constant 0 : i32
    %c0_i32_0 = arith.constant 0 : i32
    return %arg0, %c0_i32 : i32, i32
  }
}

</mosaic_0001>

<bundles_post_ra>
// kernel: downsample3_forward.2
= control target key start
LH: loop header
LB: loop body
LE: loop exit
PB: predicated region body
PF: predicated region fallthrough
CT: control target
= control target key end

     0   :  { %14 = vsyncpa [#allocation3], 0  ;;  %s6891_s0 = inlined_call_operand.vmem [shape: bf16[128,1152], index: 0, kind: input, shape index: {}]   ;;  %s6892_s1 = inlined_call_operand.hbm [shape: bf16[1152,256], index: 1, kind: input, shape index: {}]   ;;  %s6893_s2 = inlined_call_operand.hbm [shape: f32[1,256], index: 2, kind: input, shape index: {}]   ;;  %s6894_s3 = inlined_call_operand.hbm [shape: f32[1,256], index: 3, kind: input, shape index: {}]   ;;  %s6895_s4 = inlined_call_operand.hbm [shape: bf16[256,256], index: 4, kind: input, shape index: {}]   ;;  %s6896_s5 = inlined_call_operand.hbm [shape: f32[1,256], index: 5, kind: input, shape index: {}]   ;;  %s6897_s6 = inlined_call_operand.hbm [shape: f32[1,256], index: 6, kind: input, shape index: {}]   ;;  %s6898_s7 = inlined_call_operand.vmem [shape: bf16[128,128], index: 7, kind: output, shape index: {0}]   ;;  %s6899_s8 = inlined_call_operand.vmem [shape: bf16[128,128], index: 8, kind: output, shape index: {1}]  }
   0x1   :  { %15 = vsyncpa [#allocation5], 0 }
   0x2   :  { %16 = vsyncpa [#allocation8], 0  ;;  %s38_s29 = sshll.u32 %s6893_s2, 4  ;;  %s39_s29 = int_to_ptr.hbm [resolvable:$true] %s38_s29 }
   0x3   :  { %17 = vsyncpa [#allocation11], 0  ;;  %s5412_s30 = smov [#allocation4]   ;;  %s59_s12 = sshll.u32 %s6895_s4, 4  ;;  %s60_s12 = int_to_ptr.hbm [resolvable:$true] %s59_s12 }
   0x4   :  { %s40_s9 = sshll.u32 %s5412_s30, 4  ;;  %s5413_s13 = smov [#allocation7]   ;;  %s41_s9 = int_to_ptr.vmem [resolvable:$true] %s40_s9 }
   0x5   :  { %43 = dma.hbm_to_vmem [thread:$0]  %s39_s29, 32, %s41_s9, [#allocation5]  }
   0x6   :  { %s61_s14 = sshll.u32 %s5413_s13, 4  ;;  %s24_s17 = sshll.u32 %s6892_s1, 4  ;;  %s62_s14 = int_to_ptr.vmem [resolvable:$true] %s61_s14  ;;  %s25_s17 = int_to_ptr.hbm [resolvable:$true] %s24_s17 }
   0x7   :  { %s5414_s2 = smov 128   ;;  %s5415_s18 = smov 8  }
   0x8   :  { %67 = dma.hbm_to_vmem [thread:$0]  %s60_s12, 4096, %s62_s14, [#allocation8], %s5414_s2, %s5414_s2, %s5415_s18  }
   0x9   :  { %s49_s21 = sshll.u32 %s6894_s3, 4  ;;  %s5416_s22 = smov [#allocation2]   ;;  %s50_s21 = int_to_ptr.hbm [resolvable:$true] %s49_s21 }
   0xa   :  { %s26_s23 = sshll.u32 %s5416_s22, 4  ;;  %s5417_s4 = smov [#allocation6]   ;;  %s27_s23 = int_to_ptr.vmem [resolvable:$true] %s26_s23 }
   0xb   :  { %32 = dma.hbm_to_vmem [thread:$0]  %s25_s17, 18432, %s27_s23, [#allocation3], %s5414_s2, %s5414_s2, %s5415_s18  }
   0xc   :  { %s51_s24 = sshll.u32 %s5417_s4, 4  ;;  %s73_s1 = sshll.u32 %s6896_s5, 4  ;;  %s52_s24 = int_to_ptr.vmem [resolvable:$true] %s51_s24  ;;  %s74_s1 = int_to_ptr.hbm [resolvable:$true] %s73_s1 }
   0xd   :  { %54 = dma.hbm_to_vmem [thread:$0]  %s50_s21, 32, %s52_s24, [#allocation5]  }
   0xe   :  { %s84_s29 = sshll.u32 %s6897_s6, 4  ;;  %s5418_s30 = smov [#allocation9]   ;;  %s85_s29 = int_to_ptr.hbm [resolvable:$true] %s84_s29 }
   0xf   :  { %s75_s3 = sshll.u32 %s5418_s30, 4  ;;  %s5419_s9 = smov [#allocation10]   ;;  %s76_s3 = int_to_ptr.vmem [resolvable:$true] %s75_s3 }
  0x10   :  { %78 = dma.hbm_to_vmem [thread:$0]  %s74_s1, 32, %s76_s3, [#allocation8]  }
  0x11   :  { %s86_s10 = sshll.u32 %s5419_s9, 4  ;;  %s87_s10 = int_to_ptr.vmem [resolvable:$true] %s86_s10 }
  0x12   :  { %89 = dma.hbm_to_vmem [thread:$0]  %s85_s29, 32, %s87_s10, [#allocation11]  }
  0x13   :  { %5404 = dma.done.wait [#allocation3], 18432  }
  0x14   :  { %5405 = vsyncadd [#allocation3], 4294948864 }
  0x15   :  { %5406 = dma.done.wait [#allocation5], 64  }
  0x16   :  { %5407 = vsyncadd [#allocation5], 4294967232 }
  0x17   :  { %5408 = dma.done.wait [#allocation8], 4128  }
  0x18   :  { %5409 = vsyncadd [#allocation8], 4294963168 }
  0x19   :  { %5410 = dma.done.wait [#allocation11], 32  }
  0x1a   :  { %5411 = vsyncadd [#allocation11], 4294967264  ;;  %v3926_v0 = vld [vmem:[#allocation2 + $0x70] sm:$0xf]  ;;  %v4723_v1 = vld [vmem:[#allocation2 + $0x74] sm:$0xf0] }
  0x1b   :  { %v3990_v2 = vld [vmem:[#allocation2 + $0xf0] sm:$0xf]  ;;  %v3927_v3 = vor.u32 %v4723_v1, %v3926_v0  ;;  %v4739_v4 = vld [vmem:[#allocation2 + $0xf4] sm:$0xf0]  ;;  %v3918_v5 = vld [vmem:[#allocation2 + $0x60] sm:$0xf] }
  0x1c   :  { %v4721_v6 = vld [vmem:[#allocation2 + $0x64] sm:$0xf0]  ;;  %v3991_v7 = vor.u32 %v4739_v4, %v3990_v2  ;;  %v3982_v8 = vld [vmem:[#allocation2 + $0xe0] sm:$0xf]  ;;  %v3910_v12 = vld [vmem:[#allocation2 + $0x50] sm:$0xf] }
  0x1d   :  { %v4737_v9 = vld [vmem:[#allocation2 + $0xe4] sm:$0xf0]  ;;  %1426 = vmatpush.bf16.msra.mxu0 %v3927_v3  ;;  %4978 = vmatpush.bf16.msra.mxu2 %v3927_v3  ;;  %v3919_v10 = vor.u32 %v4721_v6, %v3918_v5  ;;  %v4719_v13 = vld [vmem:[#allocation2 + $0x54] sm:$0xf0]  ;;  %v3974_v14 = vld [vmem:[#allocation2 + $0xd0] sm:$0xf] }
  0x1e   :  { %4986 = vmatpush.bf16.msra.mxu3 %v3991_v7  ;;  %1475 = vmatpush.bf16.msra.mxu1 %v3991_v7  ;;  %v3983_v11 = vor.u32 %v4737_v9, %v3982_v8  ;;  %v4735_v15 = vld [vmem:[#allocation2 + $0xd4] sm:$0xf0]  ;;  %v3911_v16 = vor.u32 %v4719_v13, %v3910_v12  ;;  %v3902_v18 = vld [vmem:[#allocation2 + $0x40] sm:$0xf]  ;;  %v4717_v19 = vld [vmem:[#allocation2 + $0x44] sm:$0xf0] }
  0x1f   :  { %v3975_v17 = vor.u32 %v4735_v15, %v3974_v14  ;;  %v3966_v20 = vld [vmem:[#allocation2 + $0xc0] sm:$0xf]  ;;  %v4733_v21 = vld [vmem:[#allocation2 + $0xc4] sm:$0xf0]  ;;  %v3903_v22 = vor.u32 %v4717_v19, %v3902_v18  ;;  %v3894_v24 = vld [vmem:[#allocation2 + $0x30] sm:$0xf] }
  0x20   :  { %v3967_v23 = vor.u32 %v4733_v21, %v3966_v20  ;;  %v4715_v25 = vld [vmem:[#allocation2 + $0x34] sm:$0xf0]  ;;  %v3958_v26 = vld [vmem:[#allocation2 + $0xb0] sm:$0xf]  ;;  %v3886_v30 = vld [vmem:[#allocation2 + $0x20] sm:$0xf] }
  0x21   :  { %1427 = vmatpush.bf16.msra.mxu0 %v3919_v10  ;;  %4979 = vmatpush.bf16.msra.mxu2 %v3919_v10  ;;  %v4731_v27 = vld [vmem:[#allocation2 + $0xb4] sm:$0xf0]  ;;  %v3895_v28 = vor.u32 %v4715_v25, %v3894_v24  ;;  %v4713_v31 = vld [vmem:[#allocation2 + $0x24] sm:$0xf0]  ;;  %v3950_v32 = vld [vmem:[#allocation2 + $0xa0] sm:$0xf] }
  0x22   :  { %4987 = vmatpush.bf16.msra.mxu3 %v3983_v11  ;;  %1476 = vmatpush.bf16.msra.mxu1 %v3983_v11  ;;  %v3959_v29 = vor.u32 %v4731_v27, %v3958_v26  ;;  %v4729_v33 = vld [vmem:[#allocation2 + $0xa4] sm:$0xf0]  ;;  %v3887_v34 = vor.u32 %v4713_v31, %v3886_v30  ;;  %v3878_v36 = vld [vmem:[#allocation2 + $0x10] sm:$0xf]  ;;  %v4711_v37 = vld [vmem:[#allocation2 + $0x14] sm:$0xf0] }
  0x23   :  { %v3951_v35 = vor.u32 %v4729_v33, %v3950_v32  ;;  %v3942_v38 = vld [vmem:[#allocation2 + $0x90] sm:$0xf]  ;;  %v4727_v39 = vld [vmem:[#allocation2 + $0x94] sm:$0xf0]  ;;  %v3879_v40 = vor.u32 %v4711_v37, %v3878_v36  ;;  %v3870_v41 = vld [vmem:[#allocation2] sm:$0xf] }
  0x24   :  { %v3943_v42 = vor.u32 %v4727_v39, %v3942_v38  ;;  %v4709_v43 = vld [vmem:[#allocation2 + $0x4] sm:$0xf0]  ;;  %v3934_v44 = vld [vmem:[#allocation2 + $0x80] sm:$0xf]  ;;  %v4640_v47 = vld [vmem:[%s6891_s0 + $0x20] sm:$0xf0] }
  0x25   :  { %1428 = vmatpush.bf16.msra.mxu0 %v3911_v16  ;;  %4980 = vmatpush.bf16.msra.mxu2 %v3911_v16  ;;  %v4725_v45 = vld [vmem:[#allocation2 + $0x84] sm:$0xf0]  ;;  %v3582_v46 = vld [vmem:[%s6891_s0] sm:$0xf]  ;;  %v4676_v49 = vld [vmem:[%s6891_s0 + $0x140] sm:$0xf0]  ;;  %v3871_v54 = vor.u32 %v4709_v43, %v3870_v41 }
  0x26   :  { %4988 = vmatpush.bf16.msra.mxu3 %v3975_v17  ;;  %1477 = vmatpush.bf16.msra.mxu1 %v3975_v17  ;;  %v3726_v48 = vld [vmem:[%s6891_s0 + $0x120] sm:$0xf]  ;;  %v4054_v50 = vld [vmem:[#allocation2 + $0x170] sm:$0xf]  ;;  %v4755_v51 = vld [vmem:[#allocation2 + $0x174] sm:$0xf0]  ;;  %v3935_v58 = vor.u32 %v4725_v45, %v3934_v44  ;;  %v5507_v3 = vor.u32 %v4640_v47, %v3582_v46 }
  0x27   :  { %v4118_v52 = vld [vmem:[#allocation2 + $0x1f0] sm:$0xf]  ;;  %v4771_v53 = vld [vmem:[#allocation2 + $0x1f4] sm:$0xf0]  ;;  %v4672_v55 = vld [vmem:[%s6891_s0 + $0x124] sm:$0xf]  ;;  %v4055_v62 = vor.u32 %v4755_v51, %v4054_v50  ;;  %v5509_v4 = vor.u32 %v4676_v49, %v3726_v48 }
  0x28   :  { %v3728_v56 = vld [vmem:[%s6891_s0 + $0x144] sm:$0xf0]  ;;  %v4636_v57 = vld [vmem:[%s6891_s0 + $0x4] sm:$0xf]  ;;  %v4046_v60 = vld [vmem:[#allocation2 + $0x160] sm:$0xf]  ;;  %v4119_v63 = vor.u32 %v4771_v53, %v4118_v52 }
  0x29   :  { %1429 = vmatpush.bf16.msra.mxu0 %v3903_v22  ;;  %4981 = vmatpush.bf16.msra.mxu2 %v3903_v22  ;;  %v3584_v59 = vld [vmem:[%s6891_s0 + $0x24] sm:$0xf0]  ;;  %v4182_v61 = vld [vmem:[#allocation2 + $0x270] sm:$0xf]  ;;  %v4787_v0 = vld [vmem:[#allocation2 + $0x274] sm:$0xf0]  ;;  %v5511_v8 = vor.u32 %v4672_v55, %v3728_v56 }
  0x2a   :  { %4989 = vmatpush.bf16.msra.mxu3 %v3967_v23  ;;  %1478 = vmatpush.bf16.msra.mxu1 %v3967_v23  ;;  %v4246_v1 = vld [vmem:[#allocation2 + $0x2f0] sm:$0xf]  ;;  %v4803_v2 = vld [vmem:[#allocation2 + $0x2f4] sm:$0xf0]  ;;  %v4753_v5 = vld [vmem:[#allocation2 + $0x164] sm:$0xf0]  ;;  %v5513_v9 = vor.u32 %v4636_v57, %v3584_v59  ;;  %v4183_v10 = vor.u32 %v4787_v0, %v4182_v61 }
  0x2b   :  { %v4110_v6 = vld [vmem:[#allocation2 + $0x1e0] sm:$0xf]  ;;  %v4769_v7 = vld [vmem:[#allocation2 + $0x1e4] sm:$0xf0]  ;;  %v4247_v11 = vor.u32 %v4803_v2, %v4246_v1  ;;  %v4038_v12 = vld [vmem:[#allocation2 + $0x150] sm:$0xf]  ;;  %v4047_v14 = vor.u32 %v4753_v5, %v4046_v60 }
  0x2c   :  { %v4174_v13 = vld [vmem:[#allocation2 + $0x260] sm:$0xf]  ;;  %v4111_v15 = vor.u32 %v4769_v7, %v4110_v6  ;;  %v4785_v16 = vld [vmem:[#allocation2 + $0x264] sm:$0xf0]  ;;  %v4751_v19 = vld [vmem:[#allocation2 + $0x154] sm:$0xf0] }
  0x2d   :  { %1430 = vmatpush.bf16.msra.mxu0 %v3895_v28  ;;  %4982 = vmatpush.bf16.msra.mxu2 %v3895_v28  ;;  %v4238_v17 = vld [vmem:[#allocation2 + $0x2e0] sm:$0xf]  ;;  %v4801_v18 = vld [vmem:[#allocation2 + $0x2e4] sm:$0xf0]  ;;  %v4102_v20 = vld [vmem:[#allocation2 + $0x1d0] sm:$0xf]  ;;  %v4175_v22 = vor.u32 %v4785_v16, %v4174_v13  ;;  %v4039_v26 = vor.u32 %v4751_v19, %v4038_v12 }
  0x2e   :  { %4990 = vmatpush.bf16.msra.mxu3 %v3959_v29  ;;  %1479 = vmatpush.bf16.msra.mxu1 %v3959_v29  ;;  %v4767_v21 = vld [vmem:[#allocation2 + $0x1d4] sm:$0xf0]  ;;  %v4239_v23 = vor.u32 %v4801_v18, %v4238_v17  ;;  %v4030_v24 = vld [vmem:[#allocation2 + $0x140] sm:$0xf]  ;;  %v4166_v25 = vld [vmem:[#allocation2 + $0x250] sm:$0xf] }
  0x2f   :  { %v4103_v27 = vor.u32 %v4767_v21, %v4102_v20  ;;  %v4783_v28 = vld [vmem:[#allocation2 + $0x254] sm:$0xf0]  ;;  %v4230_v29 = vld [vmem:[#allocation2 + $0x2d0] sm:$0xf]  ;;  %v4749_v31 = vld [vmem:[#allocation2 + $0x144] sm:$0xf0] }
  0x30   :  { %v4799_v30 = vld [vmem:[#allocation2 + $0x2d4] sm:$0xf0]  ;;  %v4094_v32 = vld [vmem:[#allocation2 + $0x1c0] sm:$0xf]  ;;  %v4765_v33 = vld [vmem:[#allocation2 + $0x1c4] sm:$0xf0] }
  0x31   :  { %1431 = vmatpush.bf16.msra.mxu0 %v3887_v34  ;;  %4983 = vmatpush.bf16.msra.mxu2 %v3887_v34  ;;  %v4167_v34 = vor.u32 %v4783_v28, %v4166_v25  ;;  %v4022_v36 = vld [vmem:[#allocation2 + $0x130] sm:$0xf]  ;;  %v4158_v37 = vld [vmem:[#allocation2 + $0x240] sm:$0xf]  ;;  %v3618_v38 = vld [vmem:[%s6891_s0 + $0x48] sm:$0xf]  ;;  %v4095_v43 = vor.u32 %v4765_v33, %v4094_v32 }
  0x32   :  { %4991 = vmatpush.bf16.msra.mxu3 %v3951_v35  ;;  %1480 = vmatpush.bf16.msra.mxu1 %v3951_v35  ;;  %v4231_v35 = vor.u32 %v4799_v30, %v4230_v29  ;;  %v4649_v39 = vld [vmem:[%s6891_s0 + $0x68] sm:$0xf0]  ;;  %v4781_v44 = vld [vmem:[#allocation2 + $0x244] sm:$0xf0]  ;;  %v4222_v45 = vld [vmem:[#allocation2 + $0x2c0] sm:$0xf] }
  0x33   :  { %v4685_v41 = vld [vmem:[%s6891_s0 + $0x188] sm:$0xf0]  ;;  %v4797_v46 = vld [vmem:[#allocation2 + $0x2c4] sm:$0xf0]  ;;  %v4747_v47 = vld [vmem:[#allocation2 + $0x134] sm:$0xf0] }
  0x34   :  { %v4086_v48 = vld [vmem:[#allocation2 + $0x1b0] sm:$0xf]  ;;  %v4763_v49 = vld [vmem:[#allocation2 + $0x1b4] sm:$0xf0]  ;;  %v4681_v50 = vld [vmem:[%s6891_s0 + $0x16c] sm:$0xf]  ;;  %v4223_v55 = vor.u32 %v4797_v46, %v4222_v45 }
  0x35   :  { %1432 = vmatpush.bf16.msra.mxu0 %v3879_v40  ;;  %4984 = vmatpush.bf16.msra.mxu2 %v3879_v40  ;;  %v3762_v40 = vld [vmem:[%s6891_s0 + $0x168] sm:$0xf]  ;;  %v3764_v51 = vld [vmem:[%s6891_s0 + $0x18c] sm:$0xf0]  ;;  %v4645_v52 = vld [vmem:[%s6891_s0 + $0x4c] sm:$0xf]  ;;  %v4087_v59 = vor.u32 %v4763_v49, %v4086_v48 }
  0x36   :  { %4992 = vmatpush.bf16.msra.mxu3 %v3943_v42  ;;  %1481 = vmatpush.bf16.msra.mxu1 %v3943_v42  ;;  %v4031_v42 = vor.u32 %v4749_v31, %v4030_v24  ;;  %v3620_v53 = vld [vmem:[%s6891_s0 + $0x6c] sm:$0xf0]  ;;  %v4014_v56 = vld [vmem:[#allocation2 + $0x120] sm:$0xf]  ;;  %v4779_v60 = vld [vmem:[#allocation2 + $0x234] sm:$0xf0]  ;;  %v5545_v0 = vor.u32 %v4685_v41, %v3762_v40  ;;  %v5547_v6 = vor.u32 %v4681_v50, %v3764_v51 }
  0x37   :  { %v4150_v57 = vld [vmem:[#allocation2 + $0x230] sm:$0xf]  ;;  %v4745_v1 = vld [vmem:[#allocation2 + $0x124] sm:$0xf0]  ;;  %v4078_v2 = vld [vmem:[#allocation2 + $0x1a0] sm:$0xf]  ;;  %v5549_v7 = vor.u32 %v4645_v52, %v3620_v53 }
  0x38   :  { %v4214_v61 = vld [vmem:[#allocation2 + $0x2b0] sm:$0xf]  ;;  %v4761_v5 = vld [vmem:[#allocation2 + $0x1a4] sm:$0xf0]  ;;  %6936 = vst [vmem:[#allocation16_spill] sm:$0xff] %v5547_v6  ;;  %v4015_v12 = vor.u32 %v4745_v1, %v4014_v56 }
  0x39   :  { %1433 = vmatpush.bf16.msra.mxu0 %v3871_v54  ;;  %4985 = vmatpush.bf16.msra.mxu2 %v3871_v54  ;;  %v4159_v54 = vor.u32 %v4781_v44, %v4158_v37  ;;  %v4079_v13 = vor.u32 %v4761_v5, %v4078_v2  ;;  %v4070_v16 = vld [vmem:[#allocation2 + $0x190] sm:$0xf]  ;;  %v4759_v17 = vld [vmem:[#allocation2 + $0x194] sm:$0xf0]  ;;  %v4142_v18 = vld [vmem:[#allocation2 + $0x220] sm:$0xf] }
  0x3a   :  { %4993 = vmatpush.bf16.msra.mxu3 %v3935_v58  ;;  %1482 = vmatpush.bf16.msra.mxu1 %v3935_v58  ;;  %v4023_v58 = vor.u32 %v4747_v47, %v4022_v36  ;;  %v4777_v19 = vld [vmem:[#allocation2 + $0x224] sm:$0xf0]  ;;  %v4071_v21 = vor.u32 %v4759_v17, %v4070_v16  ;;  %v3998_v25 = vld [vmem:[#allocation2 + $0x100] sm:$0xf]  ;;  %v4134_v28 = vld [vmem:[#allocation2 + $0x210] sm:$0xf] }
  0x3b   :  { %v4793_v24 = vld [vmem:[#allocation2 + $0x2a4] sm:$0xf0]  ;;  %v4775_v29 = vld [vmem:[#allocation2 + $0x214] sm:$0xf0]  ;;  %v4062_v30 = vld [vmem:[#allocation2 + $0x180] sm:$0xf] }
  0x3c   :  { %1434 = vmatmul.bf16.vlgmr.msra.gmra.mxu0 %v5507_v3  ;;  %1454 = vmatmul.bf16.vlgmr.msra.gmra.mxu2 %v5509_v4  ;;  %v4757_v31 = vld [vmem:[#allocation2 + $0x184] sm:$0xf0]  ;;  %v4198_v32 = vld [vmem:[#allocation2 + $0x290] sm:$0xf]  ;;  %v4135_v33 = vor.u32 %v4775_v29, %v4134_v28  ;;  %v4658_v41 = vld [vmem:[%s6891_s0 + $0xb0] sm:$0xf0] }
  0x3d   :  { %1524 = vmatpush.bf16.msrb.mxu2 %v4055_v62  ;;  %1503 = vmatmul.bf16.vlgmr.msra.gmra.mxu3 %v5511_v8  ;;  %v4795_v62 = vld [vmem:[#allocation2 + $0x2b4] sm:$0xf0]  ;;  %v4063_v36 = vor.u32 %v4757_v31, %v4062_v30  ;;  %v3654_v40 = vld [vmem:[%s6891_s0 + $0x90] sm:$0xf]  ;;  %v4690_v44 = vld [vmem:[%s6891_s0 + $0x1b4] sm:$0xf] }
  0x3e   :  { %1573 = vmatpush.bf16.msrb.mxu3 %v4119_v63  ;;  %1483 = vmatmul.bf16.vlgmr.msra.gmra.mxu1 %v5513_v9  ;;  %v5543_v63 = vor.u32 %v4649_v39, %v3618_v38  ;;  %v4126_v38 = vld [vmem:[#allocation2 + $0x200] sm:$0xf]  ;;  %v4773_v39 = vld [vmem:[#allocation2 + $0x204] sm:$0xf0]  ;;  %v3800_v45 = vld [vmem:[%s6891_s0 + $0x1d4] sm:$0xf0]  ;;  %v5579_v49 = vor.u32 %v4658_v41, %v3654_v40 }
  0x3f   :  { %1622 = vmatpush.bf16.msrb.mxu0 %v4183_v10  ;;  %1671 = vmatpush.bf16.msrb.mxu1 %v4247_v11  ;;  %v4151_v10 = vor.u32 %v4779_v60, %v4150_v57  ;;  %v4215_v11 = vor.u32 %v4795_v62, %v4214_v61  ;;  %v4654_v46 = vld [vmem:[%s6891_s0 + $0x94] sm:$0xf]  ;;  %v3656_v47 = vld [vmem:[%s6891_s0 + $0xb4] sm:$0xf0]  ;;  %v4127_v48 = vor.u32 %v4773_v39, %v4126_v38  ;;  %v4190_v53 = vld [vmem:[#allocation2 + $0x280] sm:$0xf] }
  0x40   :  { %v5583_v51 = vor.u32 %v4690_v44, %v3800_v45  ;;  %v5585_v52 = vor.u32 %v4654_v46, %v3656_v47  ;;  %v4310_v56 = vld [vmem:[#allocation2 + $0x370] sm:$0xf]  ;;  %v4819_v57 = vld [vmem:[#allocation2 + $0x374] sm:$0xf0]  ;;  %v4722_v2 = vld [vmem:[#allocation2 + $0x74] sm:$0xf] }
  0x41   :  { %1525 = vmatpush.bf16.msrb.mxu2 %v4047_v14  ;;  %v4006_v14 = vld [vmem:[#allocation2 + $0x110] sm:$0xf]  ;;  %v4835_v60 = vld [vmem:[#allocation2 + $0x3f4] sm:$0xf0]  ;;  %v4699_v16 = vld [vmem:[%s6891_s0 + $0x1fc] sm:$0xf] }
  0x42   :  { %1574 = vmatpush.bf16.msrb.mxu3 %v4111_v15  ;;  %v4743_v15 = vld [vmem:[#allocation2 + $0x114] sm:$0xf0]  ;;  %6937 = vst [vmem:[#allocation17_spill] sm:$0xff] %v5583_v51  ;;  %v4438_v62 = vld [vmem:[#allocation2 + $0x470] sm:$0xf] }
  0x43   :  { %1623 = vmatpush.bf16.msrb.mxu0 %v4175_v22  ;;  %1672 = vmatpush.bf16.msrb.mxu1 %v4239_v23  ;;  %v4007_v20 = vor.u32 %v4743_v15, %v4006_v14  ;;  %v4143_v22 = vor.u32 %v4777_v19, %v4142_v18  ;;  %v4206_v23 = vld [vmem:[#allocation2 + $0x2a0] sm:$0xf]  ;;  %v4851_v1 = vld [vmem:[#allocation2 + $0x474] sm:$0xf0]  ;;  %v4703_v15 = vld [vmem:[%s6891_s0 + $0x218] sm:$0xf0] }
  0x44   :  { %v4439_v5 = vor.u32 %v4851_v1, %v4438_v62  ;;  %v3834_v14 = vld [vmem:[%s6891_s0 + $0x1f8] sm:$0xf]  ;;  %v3836_v17 = vld [vmem:[%s6891_s0 + $0x21c] sm:$0xf0]  ;;  %v4663_v18 = vld [vmem:[%s6891_s0 + $0xdc] sm:$0xf] }
  0x45   :  { %1526 = vmatpush.bf16.msrb.mxu2 %v4039_v26  ;;  %v4207_v26 = vor.u32 %v4793_v24, %v4206_v23  ;;  %v3692_v19 = vld [vmem:[%s6891_s0 + $0xfc] sm:$0xf0]  ;;  %v4833_v28 = vld [vmem:[#allocation2 + $0x3e4] sm:$0xf0]  ;;  %v4637_v38 = vld [vmem:[%s6891_s0 + $0xc] sm:$0xf] }
  0x46   :  { %1575 = vmatpush.bf16.msrb.mxu3 %v4103_v27  ;;  %v4741_v27 = vld [vmem:[#allocation2 + $0x104] sm:$0xf0]  ;;  %v5621_v23 = vor.u32 %v4663_v18, %v3692_v19  ;;  %v4302_v24 = vld [vmem:[#allocation2 + $0x360] sm:$0xf]  ;;  %v3598_v39 = vld [vmem:[%s6891_s0 + $0x10] sm:$0xf] }
  0x47   :  { %1624 = vmatpush.bf16.msrb.mxu0 %v4167_v34  ;;  %1673 = vmatpush.bf16.msrb.mxu1 %v4231_v35  ;;  %v4791_v34 = vld [vmem:[#allocation2 + $0x294] sm:$0xf0]  ;;  %v3999_v35 = vor.u32 %v4741_v27, %v3998_v25  ;;  %v4817_v25 = vld [vmem:[#allocation2 + $0x364] sm:$0xf0]  ;;  %v4430_v30 = vld [vmem:[#allocation2 + $0x460] sm:$0xf] }
  0x48   :  { %v4199_v37 = vor.u32 %v4791_v34, %v4198_v32  ;;  %v4303_v27 = vor.u32 %v4817_v25, %v4302_v24  ;;  %v4849_v31 = vld [vmem:[#allocation2 + $0x464] sm:$0xf0]  ;;  %v4720_v32 = vld [vmem:[#allocation2 + $0x64] sm:$0xf]  ;;  %v3920_v34 = vld [vmem:[#allocation2 + $0x68] sm:$0xf0] }
  0x49   :  { %1527 = vmatpush.bf16.msrb.mxu2 %v4031_v42  ;;  %v3798_v42 = vld [vmem:[%s6891_s0 + $0x1b0] sm:$0xf]  ;;  %v4642_v40 = vld [vmem:[%s6891_s0 + $0x30] sm:$0xf0]  ;;  %v3912_v62 = vld [vmem:[#allocation2 + $0x58] sm:$0xf0] }
  0x4a   :  { %1576 = vmatpush.bf16.msrb.mxu3 %v4095_v43  ;;  %v4694_v43 = vld [vmem:[%s6891_s0 + $0x1d0] sm:$0xf0]  ;;  %v3592_v41 = vld [vmem:[%s6891_s0 + $0x2c] sm:$0xf0]  ;;  %v5653_v45 = vor.u32 %v4642_v40, %v3598_v39  ;;  %v4286_v24 = vld [vmem:[#allocation2 + $0x340] sm:$0xf] }
  0x4b   :  { %1625 = vmatpush.bf16.msrb.mxu0 %v4159_v54  ;;  %1674 = vmatpush.bf16.msrb.mxu1 %v4223_v55  ;;  %v5581_v50 = vor.u32 %v4694_v43, %v3798_v42  ;;  %v4789_v54 = vld [vmem:[#allocation2 + $0x284] sm:$0xf0]  ;;  %v4638_v42 = vld [vmem:[%s6891_s0 + $0x14] sm:$0xf]  ;;  %v3600_v43 = vld [vmem:[%s6891_s0 + $0x34] sm:$0xf0]  ;;  %v5655_v46 = vor.u32 %v4637_v38, %v3592_v41 }
  0x4c   :  { %1439 = vmatmul.bf16.gmra.mxu0 %v5543_v63  ;;  %1459 = vmatmul.bf16.gmra.mxu2 %v5545_v0  ;;  %v4191_v55 = vor.u32 %v4789_v54, %v4190_v53  ;;  %v5657_v47 = vor.u32 %v4638_v42, %v3600_v43  ;;  %v4815_v53 = vld [vmem:[#allocation2 + $0x354] sm:$0xf0]  ;;  %v4358_v54 = vld [vmem:[#allocation2 + $0x3d0] sm:$0xf]  ;;  %v4813_v25 = vld [vmem:[#allocation2 + $0x344] sm:$0xf0] }
  0x4d   :  { %1528 = vmatpush.bf16.msrb.mxu2 %v4023_v58  ;;  %1508 = vmatmul.bf16.gmra.mxu3 %v5547_v6  ;;  %v4374_v58 = vld [vmem:[#allocation2 + $0x3f0] sm:$0xf]  ;;  %v4655_v38 = vld [vmem:[%s6891_s0 + $0x9c] sm:$0xf]  ;;  %v3670_v39 = vld [vmem:[%s6891_s0 + $0xa0] sm:$0xf] }
  0x4e   :  { %1577 = vmatpush.bf16.msrb.mxu3 %v4087_v59  ;;  %1488 = vmatmul.bf16.gmra.mxu1 %v5549_v7  ;;  %v4311_v59 = vor.u32 %v4819_v57, %v4310_v56  ;;  %v4375_v61 = vor.u32 %v4835_v60, %v4374_v58  ;;  %6939 = vst [vmem:[#allocation19_spill] sm:$0xff] %v5657_v47  ;;  %v4831_v56 = vld [vmem:[#allocation2 + $0x3d4] sm:$0xf0]  ;;  %v4422_v58 = vld [vmem:[#allocation2 + $0x450] sm:$0xf] }
  0x4f   :  { %1626 = vmatpush.bf16.msrb.mxu0 %v4151_v10  ;;  %1675 = vmatpush.bf16.msrb.mxu1 %v4215_v11  ;;  %v3928_v10 = vld [vmem:[#allocation2 + $0x78] sm:$0xf0]  ;;  %v4359_v57 = vor.u32 %v4831_v56, %v4358_v54  ;;  %v4718_v60 = vld [vmem:[#allocation2 + $0x54] sm:$0xf]  ;;  %v4660_v40 = vld [vmem:[%s6891_s0 + $0xc0] sm:$0xf0] }
  0x50   :  { %v3931_v11 = vor.u32 %v4722_v2, %v3928_v10  ;;  %v3915_v1 = vor.u32 %v4718_v60, %v3912_v62  ;;  %v3626_v2 = vld [vmem:[%s6891_s0 + $0x50] sm:$0xf]  ;;  %v4646_v10 = vld [vmem:[%s6891_s0 + $0x54] sm:$0xf]  ;;  %v3664_v41 = vld [vmem:[%s6891_s0 + $0xbc] sm:$0xf0] }
  0x51   :  { %1529 = vmatpush.bf16.msrb.mxu2 %v4015_v12  ;;  %v3690_v12 = vld [vmem:[%s6891_s0 + $0xd8] sm:$0xf]  ;;  %v4656_v42 = vld [vmem:[%s6891_s0 + $0xa4] sm:$0xf]  ;;  %v3672_v43 = vld [vmem:[%s6891_s0 + $0xc4] sm:$0xf0]  ;;  %v5727_v54 = vor.u32 %v4655_v38, %v3664_v41 }
  0x52   :  { %1578 = vmatpush.bf16.msrb.mxu3 %v4079_v13  ;;  %v4667_v13 = vld [vmem:[%s6891_s0 + $0xf8] sm:$0xf0]  ;;  %v4278_v56 = vld [vmem:[#allocation2 + $0x330] sm:$0xf]  ;;  %v4827_v60 = vld [vmem:[#allocation2 + $0x3b4] sm:$0xf0] }
  0x53   :  { %1627 = vmatpush.bf16.msrb.mxu0 %v4143_v22  ;;  %1676 = vmatpush.bf16.msrb.mxu1 %v4207_v26  ;;  %v5619_v22 = vor.u32 %v4699_v16, %v3836_v17  ;;  %v4366_v26 = vld [vmem:[#allocation2 + $0x3e0] sm:$0xf]  ;;  %v4406_v62 = vld [vmem:[#allocation2 + $0x430] sm:$0xf]  ;;  %v4677_v41 = vld [vmem:[%s6891_s0 + $0x148] sm:$0xf0] }
  0x54   :  { %v4367_v29 = vor.u32 %v4833_v28, %v4366_v26  ;;  %v4350_v26 = vld [vmem:[#allocation2 + $0x3c0] sm:$0xf]  ;;  %v4829_v28 = vld [vmem:[#allocation2 + $0x3c4] sm:$0xf0] }
  0x55   :  { %1530 = vmatpush.bf16.msrb.mxu2 %v4007_v20  ;;  %v5615_v20 = vor.u32 %v4667_v13, %v3690_v12  ;;  %6938 = vst [vmem:[#allocation18_spill] sm:$0xff] %v5619_v22  ;;  %v4651_v12 = vld [vmem:[%s6891_s0 + $0x78] sm:$0xf0]  ;;  %v3628_v13 = vld [vmem:[%s6891_s0 + $0x74] sm:$0xf0] }
  0x56   :  { %1579 = vmatpush.bf16.msrb.mxu3 %v4071_v21  ;;  %v5617_v21 = vor.u32 %v4703_v15, %v3834_v14  ;;  %v4647_v14 = vld [vmem:[%s6891_s0 + $0x5c] sm:$0xf]  ;;  %v3636_v15 = vld [vmem:[%s6891_s0 + $0x7c] sm:$0xf0]  ;;  %v5691_v18 = vor.u32 %v4646_v10, %v3628_v13  ;;  %v4669_v13 = vld [vmem:[%s6891_s0 + $0x108] sm:$0xf0] }
  0x57   :  { %1628 = vmatpush.bf16.msrb.mxu0 %v4135_v33  ;;  %1677 = vmatpush.bf16.msrb.mxu1 %v4199_v37  ;;  %v4431_v33 = vor.u32 %v4849_v31, %v4430_v30  ;;  %v4641_v37 = vld [vmem:[%s6891_s0 + $0x28] sm:$0xf0]  ;;  %v5693_v19 = vor.u32 %v4647_v14, %v3636_v15  ;;  %v4414_v30 = vld [vmem:[#allocation2 + $0x440] sm:$0xf]  ;;  %v4845_v31 = vld [vmem:[#allocation2 + $0x444] sm:$0xf0] }
  0x58   :  { %v3700_v14 = vld [vmem:[%s6891_s0 + $0x104] sm:$0xf0]  ;;  %v4665_v15 = vld [vmem:[%s6891_s0 + $0xec] sm:$0xf]  ;;  %v4398_v38 = vld [vmem:[#allocation2 + $0x420] sm:$0xf] }
  0x59   :  { %1531 = vmatpush.bf16.msrb.mxu2 %v3999_v35  ;;  %v3923_v35 = vor.u32 %v4720_v32, %v3920_v34  ;;  %6940 = vst [vmem:[#allocation20_spill] sm:$0xff] %v5693_v19  ;;  %v4716_v32 = vld [vmem:[#allocation2 + $0x44] sm:$0xf]  ;;  %v3904_v34 = vld [vmem:[#allocation2 + $0x48] sm:$0xf0] }
  0x5a   :  { %1580 = vmatpush.bf16.msrb.mxu3 %v4063_v36  ;;  %v3590_v36 = vld [vmem:[%s6891_s0 + $0x8] sm:$0xf] }
  0x5b   :  { %1629 = vmatpush.bf16.msrb.mxu0 %v4127_v48  ;;  %1678 = vmatpush.bf16.msrb.mxu1 %v4191_v55  ;;  %v5651_v44 = vor.u32 %v4641_v37, %v3590_v36  ;;  %v4294_v48 = vld [vmem:[#allocation2 + $0x350] sm:$0xf]  ;;  %v3662_v36 = vld [vmem:[%s6891_s0 + $0x98] sm:$0xf]  ;;  %v4659_v37 = vld [vmem:[%s6891_s0 + $0xb8] sm:$0xf0] }
  0x5c   :  { %1444 = vmatmul.bf16.gmra.mxu0 %v5579_v49  ;;  %1464 = vmatmul.bf16.gmra.mxu2 %v5581_v50  ;;  %v4295_v55 = vor.u32 %v4815_v53, %v4294_v48  ;;  %v5723_v48 = vor.u32 %v4659_v37, %v3662_v36  ;;  %v5725_v53 = vor.u32 %v4660_v40, %v3670_v39  ;;  %v4825_v36 = vld [vmem:[#allocation2 + $0x3a4] sm:$0xf0] }
  0x5d   :  { %1513 = vmatmul.bf16.gmra.mxu3 %v5583_v51  ;;  %1720 = vmatpush.bf16.msra.mxu2 %v4311_v59  ;;  %v4847_v59 = vld [vmem:[#allocation2 + $0x454] sm:$0xf0]  ;;  %v4841_v39 = vld [vmem:[#allocation2 + $0x424] sm:$0xf0]  ;;  %v4176_v51 = vld [vmem:[#allocation2 + $0x268] sm:$0xf0] }
  0x5e   :  { %1493 = vmatmul.bf16.gmra.mxu1 %v5585_v52  ;;  %1769 = vmatpush.bf16.msra.mxu3 %v4375_v61  ;;  %v4423_v61 = vor.u32 %v4847_v59, %v4422_v58  ;;  %v4342_v58 = vld [vmem:[#allocation2 + $0x3b0] sm:$0xf]  ;;  %v3734_v40 = vld [vmem:[%s6891_s0 + $0x128] sm:$0xf] }
  0x5f   :  { %1818 = vmatpush.bf16.msra.mxu0 %v4439_v5  ;;  %1867 = vmatpush.bf16.msra.mxu1 %v3931_v11  ;;  %v4650_v5 = vld [vmem:[%s6891_s0 + $0x70] sm:$0xf0]  ;;  %v3634_v11 = vld [vmem:[%s6891_s0 + $0x58] sm:$0xf] }
  0x60   :  { %v5687_v16 = vor.u32 %v4650_v5, %v3626_v2  ;;  %v5689_v17 = vor.u32 %v4651_v12, %v3634_v11  ;;  %v3698_v2 = vld [vmem:[%s6891_s0 + $0xe0] sm:$0xf]  ;;  %v4668_v5 = vld [vmem:[%s6891_s0 + $0x100] sm:$0xf0]  ;;  %v3706_v12 = vld [vmem:[%s6891_s0 + $0xe8] sm:$0xf] }
  0x61   :  { %1721 = vmatpush.bf16.msra.mxu2 %v4303_v27  ;;  %v4287_v27 = vor.u32 %v4813_v25, %v4286_v24  ;;  %v4664_v11 = vld [vmem:[%s6891_s0 + $0xe4] sm:$0xf]  ;;  %v3708_v24 = vld [vmem:[%s6891_s0 + $0x10c] sm:$0xf0]  ;;  %v5759_v25 = vor.u32 %v4668_v5, %v3698_v2 }
  0x62   :  { %1770 = vmatpush.bf16.msra.mxu3 %v4367_v29  ;;  %v4351_v29 = vor.u32 %v4829_v28, %v4350_v26  ;;  %v5761_v26 = vor.u32 %v4669_v13, %v3706_v12  ;;  %v5765_v28 = vor.u32 %v4665_v15, %v3708_v24  ;;  %v4262_v15 = vld [vmem:[#allocation2 + $0x310] sm:$0xf]  ;;  %v4807_v24 = vld [vmem:[#allocation2 + $0x314] sm:$0xf0] }
  0x63   :  { %1819 = vmatpush.bf16.msra.mxu0 %v4431_v33  ;;  %1868 = vmatpush.bf16.msra.mxu1 %v3923_v35  ;;  %v4415_v33 = vor.u32 %v4845_v31, %v4414_v30  ;;  %v3907_v35 = vor.u32 %v4716_v32, %v3904_v34  ;;  %v3896_v30 = vld [vmem:[#allocation2 + $0x38] sm:$0xf0]  ;;  %v4270_v32 = vld [vmem:[#allocation2 + $0x320] sm:$0xf] }
  0x64   :  { %6942 = vst [vmem:[#allocation22_spill] sm:$0xff] %v5765_v28  ;;  %v4334_v34 = vld [vmem:[#allocation2 + $0x3a0] sm:$0xf] }
  0x65   :  { %1722 = vmatpush.bf16.msra.mxu2 %v4295_v55  ;;  %v5729_v55 = vor.u32 %v4656_v42, %v3672_v43  ;;  %v4335_v37 = vor.u32 %v4825_v36, %v4334_v34  ;;  %v4399_v42 = vor.u32 %v4841_v39, %v4398_v38  ;;  %v4673_v43 = vld [vmem:[%s6891_s0 + $0x12c] sm:$0xf]  ;;  %v4390_v39 = vld [vmem:[#allocation2 + $0x410] sm:$0xf] }
  0x66   :  { %1771 = vmatpush.bf16.msra.mxu3 %v4359_v57  ;;  %v4811_v57 = vld [vmem:[#allocation2 + $0x334] sm:$0xf0] }
  0x67   :  { %1820 = vmatpush.bf16.msra.mxu0 %v4423_v61  ;;  %1869 = vmatpush.bf16.msra.mxu1 %v3915_v1  ;;  %6941 = vst [vmem:[#allocation21_spill] sm:$0xff] %v5729_v55  ;;  %v4279_v59 = vor.u32 %v4811_v57, %v4278_v56  ;;  %v4343_v61 = vor.u32 %v4827_v60, %v4342_v58  ;;  %v4843_v1 = vld [vmem:[#allocation2 + $0x434] sm:$0xf0]  ;;  %v3742_v56 = vld [vmem:[%s6891_s0 + $0x130] sm:$0xf] }
  0x68   :  { %v4407_v10 = vor.u32 %v4843_v1, %v4406_v62  ;;  %v4678_v57 = vld [vmem:[%s6891_s0 + $0x150] sm:$0xf0]  ;;  %v3736_v58 = vld [vmem:[%s6891_s0 + $0x14c] sm:$0xf0]  ;;  %v3744_v60 = vld [vmem:[%s6891_s0 + $0x154] sm:$0xf0] }
  0x69   :  { %1723 = vmatpush.bf16.msra.mxu2 %v4287_v27  ;;  %v5763_v27 = vor.u32 %v4664_v11, %v3700_v14  ;;  %v5797_v62 = vor.u32 %v4678_v57, %v3742_v56  ;;  %v5799_v2 = vor.u32 %v4673_v43, %v3736_v58  ;;  %v3888_v11 = vld [vmem:[#allocation2 + $0x28] sm:$0xf0]  ;;  %v4682_v56 = vld [vmem:[%s6891_s0 + $0x174] sm:$0xf]  ;;  %v3778_v57 = vld [vmem:[%s6891_s0 + $0x178] sm:$0xf] }
  0x6a   :  { %1772 = vmatpush.bf16.msra.mxu3 %v4351_v29  ;;  %v4714_v29 = vld [vmem:[#allocation2 + $0x34] sm:$0xf]  ;;  %v4687_v58 = vld [vmem:[%s6891_s0 + $0x198] sm:$0xf0] }
  0x6b   :  { %1821 = vmatpush.bf16.msra.mxu0 %v4415_v33  ;;  %1870 = vmatpush.bf16.msra.mxu1 %v3907_v35  ;;  %v3899_v31 = vor.u32 %v4714_v29, %v3896_v30  ;;  %v4809_v33 = vld [vmem:[#allocation2 + $0x324] sm:$0xf0]  ;;  %v4326_v29 = vld [vmem:[#allocation2 + $0x390] sm:$0xf]  ;;  %v4263_v30 = vor.u32 %v4807_v24, %v4262_v15 }
  0x6c   :  { %1449 = vmatmul.bf16.gmra.mxu0 %v5615_v20  ;;  %1469 = vmatmul.bf16.gmra.mxu2 %v5617_v21  ;;  %v4271_v35 = vor.u32 %v4809_v33, %v4270_v32 }
  0x6d   :  { %1518 = vmatmul.bf16.gmra.mxu3 %v5619_v22  ;;  %1724 = vmatpush.bf16.msra.mxu2 %v4279_v59  ;;  %v4674_v59 = vld [vmem:[%s6891_s0 + $0x134] sm:$0xf] }
  0x6e   :  { %1498 = vmatmul.bf16.gmra.mxu1 %v5621_v23  ;;  %1773 = vmatpush.bf16.msra.mxu3 %v4343_v61  ;;  %v5795_v61 = vor.u32 %v4677_v41, %v3734_v40  ;;  %v5801_v5 = vor.u32 %v4674_v59, %v3744_v60  ;;  %v4839_v40 = vld [vmem:[#allocation2 + $0x414] sm:$0xf0]  ;;  %v3770_v41 = vld [vmem:[%s6891_s0 + $0x170] sm:$0xf]  ;;  %v4683_v60 = vld [vmem:[%s6891_s0 + $0x17c] sm:$0xf] }
  0x6f   :  { %1822 = vmatpush.bf16.msra.mxu0 %v4407_v10  ;;  %1871 = vmatpush.bf16.msra.mxu1 %v3899_v31  ;;  %v4712_v10 = vld [vmem:[#allocation2 + $0x24] sm:$0xf]  ;;  %v4823_v31 = vld [vmem:[#allocation2 + $0x394] sm:$0xf0]  ;;  %v4391_v43 = vor.u32 %v4839_v40, %v4390_v39  ;;  %v4805_v39 = vld [vmem:[#allocation2 + $0x304] sm:$0xf0] }
  0x70   :  { %6943 = vst [vmem:[#allocation23_spill] sm:$0xff] %v5801_v5  ;;  %v3891_v13 = vor.u32 %v4712_v10, %v3888_v11  ;;  %v4327_v33 = vor.u32 %v4823_v31, %v4326_v29  ;;  %v3772_v59 = vld [vmem:[%s6891_s0 + $0x194] sm:$0xf0]  ;;  %v4710_v31 = vld [vmem:[#allocation2 + $0x14] sm:$0xf] }
  0x71   :  { %1725 = vmatpush.bf16.msra.mxu2 %v4271_v35  ;;  %v5843_v29 = vor.u32 %v4682_v56, %v3772_v59  ;;  %v4318_v40 = vld [vmem:[#allocation2 + $0x380] sm:$0xf] }
  0x72   :  { %1774 = vmatpush.bf16.msra.mxu3 %v4335_v37 }
  0x73   :  { %1823 = vmatpush.bf16.msra.mxu0 %v4399_v42  ;;  %1872 = vmatpush.bf16.msra.mxu1 %v3891_v13  ;;  %v4686_v42 = vld [vmem:[%s6891_s0 + $0x190] sm:$0xf0]  ;;  %v5839_v13 = vor.u32 %v4687_v58, %v3778_v57  ;;  %6946 = vst [vmem:[#allocation26_spill] sm:$0xff] %v5843_v29 }
  0x75   :  { %1726 = vmatpush.bf16.msra.mxu2 %v4263_v30  ;;  %6945 = vst [vmem:[#allocation25_spill] sm:$0xff] %v5839_v13 }
  0x76   :  { %1775 = vmatpush.bf16.msra.mxu3 %v4327_v33 }
  0x77   :  { %1824 = vmatpush.bf16.msra.mxu0 %v4391_v43 }
  0x7c   :  { %1532 = vmatmul.bf16.vlgmr.msrb.gmra.mxu2 %v5651_v44  ;;  %1630 = vmatmul.bf16.vlgmr.msrb.gmra.mxu0 %v5653_v45 }
  0x7d   :  { %1581 = vmatmul.bf16.vlgmr.msrb.gmra.mxu3 %v5655_v46 }
  0x7e   :  { %1679 = vmatmul.bf16.vlgmr.msrb.gmra.mxu1 %v5657_v47 }
  0x8c   :  { %1537 = vmatmul.bf16.gmra.mxu2 %v5687_v16  ;;  %1635 = vmatmul.bf16.gmra.mxu0 %v5689_v17 }
  0x8d   :  { %1586 = vmatmul.bf16.gmra.mxu3 %v5691_v18 }
  0x8e   :  { %1684 = vmatmul.bf16.gmra.mxu1 %v5693_v19 }
  0x9c   :  { %1542 = vmatmul.bf16.gmra.mxu2 %v5723_v48  ;;  %1640 = vmatmul.bf16.gmra.mxu0 %v5725_v53 }
  0x9d   :  { %1591 = vmatmul.bf16.gmra.mxu3 %v5727_v54 }
  0x9e   :  { %1689 = vmatmul.bf16.gmra.mxu1 %v5729_v55 }
  0xac   :  { %1547 = vmatmul.bf16.gmra.mxu2 %v5759_v25  ;;  %1645 = vmatmul.bf16.gmra.mxu0 %v5761_v26 }
  0xad   :  { %1596 = vmatmul.bf16.gmra.mxu3 %v5763_v27 }
  0xae   :  { %1694 = vmatmul.bf16.gmra.mxu1 %v5765_v28 }
  0xb9   :  { %v1435_v1 = vpop.f32.mrf.mxu0 }
  0xbb   :  { %v1484_v12 = vpop.f32.mrf.mxu1 }
  0xbc   :  { %v5803_v14 = vadd.f32 %v1484_v12, %v1435_v1  ;;  %1552 = vmatmul.bf16.gmra.mxu2 %v5795_v61  ;;  %1650 = vmatmul.bf16.gmra.mxu0 %v5797_v62  ;;  %v3780_v1 = vld [vmem:[%s6891_s0 + $0x19c] sm:$0xf0]  ;;  %v5837_v12 = vor.u32 %v4686_v42, %v3770_v41  ;;  %v4821_v42 = vld [vmem:[#allocation2 + $0x384] sm:$0xf0] }
  0xbd   :  { %1601 = vmatmul.bf16.gmra.mxu3 %v5799_v2  ;;  %v5845_v30 = vor.u32 %v4683_v60, %v3780_v1  ;;  %v4319_v56 = vor.u32 %v4821_v42, %v4318_v40  ;;  %v4692_v40 = vld [vmem:[%s6891_s0 + $0x1c4] sm:$0xf] }
  0xbe   :  { %1699 = vmatmul.bf16.gmra.mxu1 %v5801_v5  ;;  %6944 = vst [vmem:[#allocation24_spill] sm:$0xff] %v5837_v12  ;;  %v3872_v5 = vld [vmem:[#allocation2 + $0x8] sm:$0xf0] }
  0xbf   :  { %v1455_v32 = vpop.f32.mrf.mxu2  ;;  %6947 = vst [vmem:[#allocation27_spill] sm:$0xff] %v5845_v30  ;;  %1776 = vmatpush.bf16.msra.mxu3 %v4319_v56 }
  0xc0   :  { %v1504_v34 = vpop.f32.mrf.mxu3 }
  0xc1   :  { %v5809_v35 = vadd.f32 %v1504_v34, %v1455_v32  ;;  %v1437_v36 = vpop.f32.mrf.mxu0  ;;  %v3880_v32 = vld [vmem:[#allocation2 + $0x18] sm:$0xf0] }
  0xc2   :  { %v3883_v34 = vor.u32 %v4710_v31, %v3880_v32  ;;  %v4695_v31 = vld [vmem:[%s6891_s0 + $0x1d8] sm:$0xf0] }
  0xc3   :  { %v1486_v37 = vpop.f32.mrf.mxu1 }
  0xc4   :  { %v5811_v38 = vadd.f32 %v1486_v37, %v1437_v36  ;;  %v4254_v37 = vld [vmem:[#allocation2 + $0x300] sm:$0xf]  ;;  %1873 = vmatpush.bf16.msra.mxu1 %v3883_v34 }
  0xc5   :  { %v4255_v41 = vor.u32 %v4805_v39, %v4254_v37  ;;  %v3814_v34 = vld [vmem:[%s6891_s0 + $0x1c0] sm:$0xf]  ;;  %v4696_v37 = vld [vmem:[%s6891_s0 + $0x1e0] sm:$0xf0] }
  0xc6   :  { %v3808_v39 = vld [vmem:[%s6891_s0 + $0x1dc] sm:$0xf0] }
  0xc7   :  { %v1457_v10 = vpop.f32.mrf.mxu2  ;;  %1727 = vmatpush.bf16.msra.mxu2 %v4255_v41  ;;  %v3816_v41 = vld [vmem:[%s6891_s0 + $0x1e4] sm:$0xf0] }
  0xc8   :  { %v1506_v11 = vpop.f32.mrf.mxu3 }
  0xc9   :  { %v5841_v15 = vadd.f32 %v1506_v11, %v1457_v10  ;;  %v1440_v24 = vpop.f32.mrf.mxu0  ;;  %v4382_v10 = vld [vmem:[#allocation2 + $0x400] sm:$0xf]  ;;  %v4837_v11 = vld [vmem:[#allocation2 + $0x404] sm:$0xf0] }
  0xca   :  { %v4383_v32 = vor.u32 %v4837_v11, %v4382_v10  ;;  %v5889_v11 = vor.u32 %v4692_v40, %v3816_v41 }
  0xcb   :  { %v1489_v33 = vpop.f32.mrf.mxu1 }
  0xcc   :  { %v5847_v36 = vadd.f32 %v1489_v33, %v1440_v24  ;;  %1557 = vmatmul.bf16.gmra.mxu2 %v5837_v12  ;;  %1655 = vmatmul.bf16.gmra.mxu0 %v5839_v13  ;;  %v3806_v24 = vld [vmem:[%s6891_s0 + $0x1b8] sm:$0xf]  ;;  %v4691_v33 = vld [vmem:[%s6891_s0 + $0x1bc] sm:$0xf]  ;;  %6951 = vst [vmem:[#allocation31_spill] sm:$0xff] %v5889_v11 }
  0xcd   :  { %1606 = vmatmul.bf16.gmra.mxu3 %v5843_v29  ;;  %1825 = vmatpush.bf16.msra.mxu0 %v4383_v32  ;;  %v5881_v56 = vor.u32 %v4695_v31, %v3806_v24  ;;  %v5887_v10 = vor.u32 %v4691_v33, %v3808_v39  ;;  %v4738_v24 = vld [vmem:[#allocation2 + $0xf4] sm:$0xf]  ;;  %v3992_v31 = vld [vmem:[#allocation2 + $0xf8] sm:$0xf0] }
  0xce   :  { %1704 = vmatmul.bf16.gmra.mxu1 %v5845_v30  ;;  %v4708_v30 = vld [vmem:[#allocation2 + $0x4] sm:$0xf]  ;;  %v4754_v32 = vld [vmem:[#allocation2 + $0x174] sm:$0xf]  ;;  %v3995_v33 = vor.u32 %v4738_v24, %v3992_v31  ;;  %v3850_v31 = vld [vmem:[%s6891_s0 + $0x208] sm:$0xf] }
  0xcf   :  { %v1460_v43 = vpop.f32.mrf.mxu2  ;;  %6948 = vst [vmem:[#allocation28_spill] sm:$0xff] %v5881_v56  ;;  %v3875_v55 = vor.u32 %v4708_v30, %v3872_v5  ;;  %v4700_v24 = vld [vmem:[%s6891_s0 + $0x204] sm:$0xf] }
  0xd0   :  { %v1509_v57 = vpop.f32.mrf.mxu3  ;;  %6950 = vst [vmem:[#allocation30_spill] sm:$0xff] %v5887_v10  ;;  %1916 = vmatpush.bf16.msrb.mxu2 %v3995_v33 }
  0xd1   :  { %v5853_v58 = vadd.f32 %v1509_v57, %v1460_v43  ;;  %v1442_v59 = vpop.f32.mrf.mxu0  ;;  %v5883_v57 = vor.u32 %v4696_v37, %v3814_v34  ;;  %1874 = vmatpush.bf16.msra.mxu1 %v3875_v55  ;;  %v4056_v34 = vld [vmem:[#allocation2 + $0x178] sm:$0xf0]  ;;  %v4704_v55 = vld [vmem:[%s6891_s0 + $0x220] sm:$0xf0] }
  0xd2   :  { %v4059_v39 = vor.u32 %v4754_v32, %v4056_v34  ;;  %v4705_v32 = vld [vmem:[%s6891_s0 + $0x228] sm:$0xf0]  ;;  %v3844_v34 = vld [vmem:[%s6891_s0 + $0x224] sm:$0xf0] }
  0xd3   :  { %v1491_v60 = vpop.f32.mrf.mxu1  ;;  %6949 = vst [vmem:[#allocation29_spill] sm:$0xff] %v5883_v57  ;;  %v5931_v47 = vor.u32 %v4700_v24, %v3844_v34  ;;  %v4752_v24 = vld [vmem:[#allocation2 + $0x164] sm:$0xf]  ;;  %v4048_v34 = vld [vmem:[#allocation2 + $0x168] sm:$0xf0] }
  0xd4   :  { %v5855_v1 = vadd.f32 %v1491_v60, %v1442_v59  ;;  %1965 = vmatpush.bf16.msrb.mxu3 %v4059_v39  ;;  %v3852_v39 = vld [vmem:[%s6891_s0 + $0x22c] sm:$0xf0] }
  0xd5   :  { %6954 = vst [vmem:[#allocation34_spill] sm:$0xff] %v5931_v47 }
  0xd7   :  { %v1462_v42 = vpop.f32.mrf.mxu2 }
  0xd8   :  { %v1511_v43 = vpop.f32.mrf.mxu3 }
  0xd9   :  { %v5885_v59 = vadd.f32 %v1511_v43, %v1462_v42  ;;  %v1445_v60 = vpop.f32.mrf.mxu0  ;;  %v3842_v42 = vld [vmem:[%s6891_s0 + $0x200] sm:$0xf]  ;;  %v4770_v43 = vld [vmem:[#allocation2 + $0x1f4] sm:$0xf] }
  0xdb   :  { %v1494_v28 = vpop.f32.mrf.mxu1 }
  0xdc   :  { %v5891_v19 = vadd.f32 %v1494_v28, %v1445_v60  ;;  %1562 = vmatmul.bf16.gmra.mxu2 %v5881_v56  ;;  %1660 = vmatmul.bf16.gmra.mxu0 %v5883_v57  ;;  %v4120_v60 = vld [vmem:[#allocation2 + $0x1f8] sm:$0xf0] }
  0xdd   :  { %1611 = vmatmul.bf16.gmra.mxu3 %v5887_v10  ;;  %v4123_v33 = vor.u32 %v4770_v43, %v4120_v60  ;;  %v4184_v10 = vld [vmem:[#allocation2 + $0x278] sm:$0xf0] }
  0xde   :  { %1709 = vmatmul.bf16.gmra.mxu1 %v5889_v11  ;;  %v5927_v11 = vor.u32 %v4705_v32, %v3850_v31  ;;  %v3984_v31 = vld [vmem:[#allocation2 + $0xe8] sm:$0xf0] }
  0xdf   :  { %v1465_v37 = vpop.f32.mrf.mxu2  ;;  %2014 = vmatpush.bf16.msrb.mxu0 %v4123_v33  ;;  %v4786_v33 = vld [vmem:[#allocation2 + $0x274] sm:$0xf] }
  0xe0   :  { %v1514_v40 = vpop.f32.mrf.mxu3  ;;  %6953 = vst [vmem:[#allocation33_spill] sm:$0xff] %v5927_v11 }
  0xe1   :  { %v5897_v28 = vadd.f32 %v1514_v40, %v1465_v37  ;;  %v1447_v5 = vpop.f32.mrf.mxu0  ;;  %v4701_v37 = vld [vmem:[%s6891_s0 + $0x20c] sm:$0xf] }
  0xe2   :  { %v5933_v22 = vor.u32 %v4701_v37, %v3852_v39 }
  0xe3   :  { %v1496_v30 = vpop.f32.mrf.mxu1 }
  0xe4   :  { %v5899_v41 = vadd.f32 %v1496_v30, %v1447_v5  ;;  %v5925_v30 = vor.u32 %v4704_v55, %v3842_v42  ;;  %6955 = vst [vmem:[#allocation35_spill] sm:$0xff] %v5933_v22  ;;  %v4187_v42 = vor.u32 %v4786_v33, %v4184_v10  ;;  %v4736_v55 = vld [vmem:[#allocation2 + $0xe4] sm:$0xf]  ;;  %v3606_v10 = vld [vmem:[%s6891_s0 + $0x18] sm:$0xf] }
  0xe5   :  { %v3987_v32 = vor.u32 %v4736_v55, %v3984_v31  ;;  %v4768_v33 = vld [vmem:[#allocation2 + $0x1e4] sm:$0xf]  ;;  %v3614_v55 = vld [vmem:[%s6891_s0 + $0x20] sm:$0xf] }
  0xe6   :  { %6952 = vst [vmem:[#allocation32_spill] sm:$0xff] %v5925_v30  ;;  %2063 = vmatpush.bf16.msrb.mxu1 %v4187_v42  ;;  %v4643_v42 = vld [vmem:[%s6891_s0 + $0x38] sm:$0xf0]  ;;  %v4644_v31 = vld [vmem:[%s6891_s0 + $0x40] sm:$0xf0] }
  0xe7   :  { %v1467_v40 = vpop.f32.mrf.mxu2  ;;  %1917 = vmatpush.bf16.msrb.mxu2 %v3987_v32  ;;  %v4639_v32 = vld [vmem:[%s6891_s0 + $0x1c] sm:$0xf] }
  0xe8   :  { %v1516_v5 = vpop.f32.mrf.mxu3 }
  0xe9   :  { %v5929_v43 = vadd.f32 %v1516_v5, %v1467_v40  ;;  %v1450_v60 = vpop.f32.mrf.mxu0 }
  0xeb   :  { %v1499_v57 = vpop.f32.mrf.mxu1 }
  0xec   :  { %v5935_v56 = vadd.f32 %v1499_v57, %v1450_v60  ;;  %1567 = vmatmul.bf16.gmra.mxu2 %v5925_v30  ;;  %1665 = vmatmul.bf16.gmra.mxu0 %v5927_v11  ;;  %v4051_v57 = vor.u32 %v4752_v24, %v4048_v34  ;;  %v3608_v34 = vld [vmem:[%s6891_s0 + $0x3c] sm:$0xf0] }
  0xed   :  { %1616 = vmatmul.bf16.gmra.mxu3 %v5931_v47  ;;  %v5969_v47 = vor.u32 %v4639_v32, %v3608_v34 }
  0xee   :  { %1714 = vmatmul.bf16.gmra.mxu1 %v5933_v22  ;;  %1966 = vmatpush.bf16.msrb.mxu3 %v4051_v57  ;;  %v4112_v22 = vld [vmem:[#allocation2 + $0x1e8] sm:$0xf0] }
  0xef   :  { %v1470_v37 = vpop.f32.mrf.mxu2  ;;  %v4115_v24 = vor.u32 %v4768_v33, %v4112_v22  ;;  %6958 = vst [vmem:[#allocation38_spill] sm:$0xff] %v5969_v47  ;;  %v4784_v33 = vld [vmem:[#allocation2 + $0x264] sm:$0xf] }
  0xf0   :  { %v1519_v39 = vpop.f32.mrf.mxu3 }
  0xf1   :  { %v5941_v40 = vadd.f32 %v1519_v39, %v1470_v37  ;;  %v1452_v5 = vpop.f32.mrf.mxu0  ;;  %2015 = vmatpush.bf16.msrb.mxu0 %v4115_v24  ;;  %v5963_v39 = vor.u32 %v4643_v42, %v3606_v10  ;;  %v4179_v10 = vor.u32 %v4784_v33, %v4176_v51  ;;  %v4734_v42 = vld [vmem:[#allocation2 + $0xd4] sm:$0xf]  ;;  %v4104_v33 = vld [vmem:[#allocation2 + $0x1d8] sm:$0xf0] }
  0xf2   :  { %v4766_v51 = vld [vmem:[#allocation2 + $0x1d4] sm:$0xf] }
  0xf3   :  { %v1501_v60 = vpop.f32.mrf.mxu1  ;;  %6956 = vst [vmem:[#allocation36_spill] sm:$0xff] %v5963_v39  ;;  %2064 = vmatpush.bf16.msrb.mxu1 %v4179_v10  ;;  %v4652_v10 = vld [vmem:[%s6891_s0 + $0x80] sm:$0xf0] }
  0xf4   :  { %v5943_v11 = vadd.f32 %v1501_v60, %v1452_v5  ;;  %v5965_v5 = vor.u32 %v4644_v31, %v3614_v55  ;;  %v3976_v55 = vld [vmem:[#allocation2 + $0xd8] sm:$0xf0]  ;;  %v4750_v31 = vld [vmem:[#allocation2 + $0x154] sm:$0xf] }
  0xf5   :  { %v3979_v24 = vor.u32 %v4734_v42, %v3976_v55  ;;  %v4107_v42 = vor.u32 %v4766_v51, %v4104_v33 }
  0xf6   :  { %6957 = vst [vmem:[#allocation37_spill] sm:$0xff] %v5965_v5 }
  0xf7   :  { %v1472_v37 = vpop.f32.mrf.mxu2  ;;  %1918 = vmatpush.bf16.msrb.mxu2 %v3979_v24  ;;  %2016 = vmatpush.bf16.msrb.mxu0 %v4107_v42  ;;  %v4032_v42 = vld [vmem:[#allocation2 + $0x148] sm:$0xf0] }
  0xf8   :  { %v1521_v57 = vpop.f32.mrf.mxu3 }
  0xf9   :  { %v5967_v60 = vadd.f32 %v1521_v57, %v1472_v37  ;;  %v1631_v30 = vpop.f32.mrf.mxu0  ;;  %v4040_v37 = vld [vmem:[#allocation2 + $0x158] sm:$0xf0] }
  0xfa   :  { %v4043_v32 = vor.u32 %v4750_v31, %v4040_v37 }
  0xfb   :  { %v1680_v22 = vpop.f32.mrf.mxu1 }
  0xfc   :  { %1728 = vmatmul.bf16.vlgmr.msra.gmra.mxu2 %v5963_v39  ;;  %1826 = vmatmul.bf16.vlgmr.msra.gmra.mxu0 %v5965_v5 }
  0xfd   :  { %1777 = vmatmul.bf16.vlgmr.msra.gmra.mxu3 %v5969_v47 }
  0xfe   :  { %1875 = vmatmul.bf16.vlgmr.msra.gmra.mxu1 %v5507_v3  ;;  %1967 = vmatpush.bf16.msrb.mxu3 %v4043_v32  ;;  %v3642_v3 = vld [vmem:[%s6891_s0 + $0x60] sm:$0xf] }
  0xff   :  { %v1533_v57 = vpop.f32.mrf.mxu2 }
 0x100   :  { %v1534_v34 = vadd.f32 %v1533_v57, %v5803_v14  ;;  %v1582_v39 = vpop.f32.mrf.mxu3  ;;  %v3650_v14 = vld [vmem:[%s6891_s0 + $0x68] sm:$0xf]  ;;  %v5997_v57 = vor.u32 %v4652_v10, %v3642_v3  ;;  %v4732_v3 = vld [vmem:[#allocation2 + $0xc4] sm:$0xf]  ;;  %v3968_v10 = vld [vmem:[#allocation2 + $0xc8] sm:$0xf0] }
 0x101   :  { %v1633_v5 = vpop.f32.mrf.mxu0 }
 0x102   :  { %v1583_v13 = vadd.f32 %v1582_v39, %v1534_v34  ;;  %v4653_v39 = vld [vmem:[%s6891_s0 + $0x88] sm:$0xf0]  ;;  %6959 = vst [vmem:[#allocation39_spill] sm:$0xff] %v5997_v57 }
 0x103   :  { %v1682_v12 = vpop.f32.mrf.mxu1  ;;  %v5999_v32 = vor.u32 %v4653_v39, %v3650_v14  ;;  %v4748_v14 = vld [vmem:[#allocation2 + $0x144] sm:$0xf]  ;;  %v3971_v39 = vor.u32 %v4732_v3, %v3968_v10  ;;  %v4096_v3 = vld [vmem:[#allocation2 + $0x1c8] sm:$0xf0]  ;;  %v3680_v10 = vld [vmem:[%s6891_s0 + $0xcc] sm:$0xf0] }
 0x104   :  { %v1632_v47 = vadd.f32 %v1631_v30, %v1583_v13  ;;  %v4648_v13 = vld [vmem:[%s6891_s0 + $0x64] sm:$0xf]  ;;  %v3644_v30 = vld [vmem:[%s6891_s0 + $0x84] sm:$0xf0] }
 0x105   :  { %6960 = vst [vmem:[#allocation40_spill] sm:$0xff] %v5999_v32  ;;  %v6001_v51 = vor.u32 %v4648_v13, %v3644_v30  ;;  %1919 = vmatpush.bf16.msrb.mxu2 %v3971_v39 }
 0x106   :  { %v5994_v55 = vadd.f32 %v1680_v22, %v1632_v47  ;;  %v4782_v47 = vld [vmem:[#allocation2 + $0x254] sm:$0xf]  ;;  %v4168_v22 = vld [vmem:[#allocation2 + $0x258] sm:$0xf0] }
 0x107   :  { %v1535_v31 = vpop.f32.mrf.mxu2 }
 0x108   :  { %v1536_v24 = vadd.f32 %v1535_v31, %v5811_v38  ;;  %v1584_v37 = vpop.f32.mrf.mxu3  ;;  %v4171_v38 = vor.u32 %v4782_v47, %v4168_v22  ;;  %v3678_v47 = vld [vmem:[%s6891_s0 + $0xa8] sm:$0xf]  ;;  %v4764_v22 = vld [vmem:[#allocation2 + $0x1c4] sm:$0xf] }
 0x109   :  { %v1636_v34 = vpop.f32.mrf.mxu0 }
 0x10a   :  { %v1585_v33 = vadd.f32 %v1584_v37, %v1536_v24  ;;  %2065 = vmatpush.bf16.msrb.mxu1 %v4171_v38  ;;  %v4099_v38 = vor.u32 %v4764_v22, %v4096_v3 }
 0x10b   :  { %v1685_v29 = vpop.f32.mrf.mxu1 }
 0x10c   :  { %v1634_v6 = vadd.f32 %v1633_v5, %v1585_v33  ;;  %1733 = vmatmul.bf16.gmra.mxu2 %v5997_v57  ;;  %1831 = vmatmul.bf16.gmra.mxu0 %v5999_v32  ;;  %v4035_v5 = vor.u32 %v4748_v14, %v4032_v42 }
 0x10d   :  { %1782 = vmatmul.bf16.gmra.mxu3 %v6001_v51  ;;  %2017 = vmatpush.bf16.msrb.mxu0 %v4099_v38  ;;  %v4024_v38 = vld [vmem:[#allocation2 + $0x138] sm:$0xf0] }
 0x10e   :  { %1880 = vmatmul.bf16.gmra.mxu1 %v5543_v63  ;;  %v6007_v13 = vadd.f32 %v1682_v12, %v1634_v6  ;;  %1968 = vmatpush.bf16.msrb.mxu3 %v4035_v5  ;;  %v4661_v6 = vld [vmem:[%s6891_s0 + $0xc8] sm:$0xf0]  ;;  %v3686_v12 = vld [vmem:[%s6891_s0 + $0xb0] sm:$0xf] }
 0x10f   :  { %v1538_v30 = vpop.f32.mrf.mxu2  ;;  %v6031_v5 = vor.u32 %v4661_v6, %v3678_v47  ;;  %v4730_v47 = vld [vmem:[#allocation2 + $0xb4] sm:$0xf]  ;;  %v3960_v6 = vld [vmem:[#allocation2 + $0xb8] sm:$0xf0] }
 0x110   :  { %v1539_v31 = vadd.f32 %v1538_v30, %v5847_v36  ;;  %v1587_v24 = vpop.f32.mrf.mxu3  ;;  %v4662_v36 = vld [vmem:[%s6891_s0 + $0xd0] sm:$0xf0] }
 0x111   :  { %v1638_v37 = vpop.f32.mrf.mxu0  ;;  %6961 = vst [vmem:[#allocation41_spill] sm:$0xff] %v6031_v5 }
 0x112   :  { %v1588_v33 = vadd.f32 %v1587_v24, %v1539_v31  ;;  %v6033_v31 = vor.u32 %v4662_v36, %v3686_v12  ;;  %v4746_v12 = vld [vmem:[#allocation2 + $0x134] sm:$0xf]  ;;  %v3963_v36 = vor.u32 %v4730_v47, %v3960_v6  ;;  %v4088_v47 = vld [vmem:[#allocation2 + $0x1b8] sm:$0xf0]  ;;  %v3716_v6 = vld [vmem:[%s6891_s0 + $0x114] sm:$0xf0] }
 0x113   :  { %v1687_v32 = vpop.f32.mrf.mxu1 }
 0x114   :  { %v1637_v63 = vadd.f32 %v1636_v34, %v1588_v33  ;;  %v4657_v34 = vld [vmem:[%s6891_s0 + $0xac] sm:$0xf]  ;;  %6962 = vst [vmem:[#allocation42_spill] sm:$0xff] %v6033_v31  ;;  %1920 = vmatpush.bf16.msrb.mxu2 %v3963_v36 }
 0x115   :  { %v6035_v33 = vor.u32 %v4657_v34, %v3680_v10 }
 0x116   :  { %v6028_v14 = vadd.f32 %v1685_v29, %v1637_v63  ;;  %v4780_v29 = vld [vmem:[#allocation2 + $0x244] sm:$0xf]  ;;  %v4160_v63 = vld [vmem:[#allocation2 + $0x248] sm:$0xf0] }
 0x117   :  { %v1540_v39 = vpop.f32.mrf.mxu2 }
 0x118   :  { %v1541_v42 = vadd.f32 %v1540_v39, %v5855_v1  ;;  %v1589_v30 = vpop.f32.mrf.mxu3  ;;  %v4163_v1 = vor.u32 %v4780_v29, %v4160_v63  ;;  %v3714_v29 = vld [vmem:[%s6891_s0 + $0xf0] sm:$0xf]  ;;  %v4762_v63 = vld [vmem:[#allocation2 + $0x1b4] sm:$0xf] }
 0x119   :  { %v1641_v24 = vpop.f32.mrf.mxu0 }
 0x11a   :  { %v1590_v22 = vadd.f32 %v1589_v30, %v1541_v42  ;;  %2066 = vmatpush.bf16.msrb.mxu1 %v4163_v1  ;;  %v4091_v1 = vor.u32 %v4762_v63, %v4088_v47 }
 0x11b   :  { %v1690_v3 = vpop.f32.mrf.mxu1 }
 0x11c   :  { %v1639_v57 = vadd.f32 %v1638_v37, %v1590_v22  ;;  %1738 = vmatmul.bf16.gmra.mxu2 %v6031_v5  ;;  %1836 = vmatmul.bf16.gmra.mxu0 %v6033_v31  ;;  %v4027_v37 = vor.u32 %v4746_v12, %v4024_v38 }
 0x11d   :  { %1787 = vmatmul.bf16.gmra.mxu3 %v6035_v33  ;;  %2018 = vmatpush.bf16.msrb.mxu0 %v4091_v1  ;;  %v4016_v1 = vld [vmem:[#allocation2 + $0x128] sm:$0xf0] }
 0x11e   :  { %1885 = vmatmul.bf16.gmra.mxu1 %v5579_v49  ;;  %v6041_v34 = vadd.f32 %v1687_v32, %v1639_v57  ;;  %1969 = vmatpush.bf16.msrb.mxu3 %v4027_v37  ;;  %v4670_v57 = vld [vmem:[%s6891_s0 + $0x110] sm:$0xf0]  ;;  %v4671_v32 = vld [vmem:[%s6891_s0 + $0x118] sm:$0xf0] }
 0x11f   :  { %v1543_v10 = vpop.f32.mrf.mxu2  ;;  %v6065_v37 = vor.u32 %v4670_v57, %v3714_v29  ;;  %v4728_v29 = vld [vmem:[#allocation2 + $0xa4] sm:$0xf]  ;;  %v3952_v57 = vld [vmem:[#allocation2 + $0xa8] sm:$0xf0] }
 0x120   :  { %v1544_v39 = vadd.f32 %v1543_v10, %v5891_v19  ;;  %v1592_v42 = vpop.f32.mrf.mxu3  ;;  %v3722_v19 = vld [vmem:[%s6891_s0 + $0xf8] sm:$0xf] }
 0x121   :  { %v1643_v30 = vpop.f32.mrf.mxu0  ;;  %6963 = vst [vmem:[#allocation43_spill] sm:$0xff] %v6065_v37 }
 0x122   :  { %v1593_v22 = vadd.f32 %v1592_v42, %v1544_v39  ;;  %v6067_v39 = vor.u32 %v4671_v32, %v3722_v19  ;;  %v4744_v19 = vld [vmem:[#allocation2 + $0x124] sm:$0xf]  ;;  %v3955_v32 = vor.u32 %v4728_v29, %v3952_v57  ;;  %v4080_v29 = vld [vmem:[#allocation2 + $0x1a8] sm:$0xf0]  ;;  %v3752_v57 = vld [vmem:[%s6891_s0 + $0x15c] sm:$0xf0] }
 0x123   :  { %v1692_v31 = vpop.f32.mrf.mxu1 }
 0x124   :  { %v1642_v49 = vadd.f32 %v1641_v24, %v1593_v22  ;;  %v4666_v24 = vld [vmem:[%s6891_s0 + $0xf4] sm:$0xf]  ;;  %6964 = vst [vmem:[#allocation44_spill] sm:$0xff] %v6067_v39  ;;  %1921 = vmatpush.bf16.msrb.mxu2 %v3955_v32 }
 0x125   :  { %v6069_v22 = vor.u32 %v4666_v24, %v3716_v6 }
 0x126   :  { %v6062_v12 = vadd.f32 %v1690_v3, %v1642_v49  ;;  %v4778_v3 = vld [vmem:[#allocation2 + $0x234] sm:$0xf]  ;;  %v4152_v49 = vld [vmem:[#allocation2 + $0x238] sm:$0xf0] }
 0x127   :  { %v1545_v36 = vpop.f32.mrf.mxu2 }
 0x128   :  { %v1546_v38 = vadd.f32 %v1545_v36, %v5899_v41  ;;  %v1594_v10 = vpop.f32.mrf.mxu3  ;;  %v4155_v41 = vor.u32 %v4778_v3, %v4152_v49  ;;  %v3750_v3 = vld [vmem:[%s6891_s0 + $0x138] sm:$0xf]  ;;  %v4760_v49 = vld [vmem:[#allocation2 + $0x1a4] sm:$0xf] }
 0x129   :  { %v1646_v42 = vpop.f32.mrf.mxu0 }
 0x12a   :  { %v1595_v63 = vadd.f32 %v1594_v10, %v1546_v38  ;;  %2067 = vmatpush.bf16.msrb.mxu1 %v4155_v41  ;;  %v4083_v41 = vor.u32 %v4760_v49, %v4080_v29 }
 0x12b   :  { %v1695_v47 = vpop.f32.mrf.mxu1 }
 0x12c   :  { %v1644_v5 = vadd.f32 %v1643_v30, %v1595_v63  ;;  %1743 = vmatmul.bf16.gmra.mxu2 %v6065_v37  ;;  %1841 = vmatmul.bf16.gmra.mxu0 %v6067_v39  ;;  %v4019_v30 = vor.u32 %v4744_v19, %v4016_v1 }
 0x12d   :  { %1792 = vmatmul.bf16.gmra.mxu3 %v6069_v22  ;;  %2019 = vmatpush.bf16.msrb.mxu0 %v4083_v41  ;;  %v4008_v41 = vld [vmem:[#allocation2 + $0x118] sm:$0xf0] }
 0x12e   :  { %1890 = vmatmul.bf16.gmra.mxu1 %v5615_v20  ;;  %v6075_v24 = vadd.f32 %v1692_v31, %v1644_v5  ;;  %1970 = vmatpush.bf16.msrb.mxu3 %v4019_v30  ;;  %v4679_v5 = vld [vmem:[%s6891_s0 + $0x158] sm:$0xf0]  ;;  %v4680_v31 = vld [vmem:[%s6891_s0 + $0x160] sm:$0xf0] }
 0x12f   :  { %v1548_v6 = vpop.f32.mrf.mxu2  ;;  %v6099_v30 = vor.u32 %v4679_v5, %v3750_v3  ;;  %v4726_v3 = vld [vmem:[#allocation2 + $0x94] sm:$0xf]  ;;  %v3944_v5 = vld [vmem:[#allocation2 + $0x98] sm:$0xf0] }
 0x130   :  { %v1549_v36 = vadd.f32 %v1548_v6, %v5935_v56  ;;  %v1597_v38 = vpop.f32.mrf.mxu3  ;;  %v3758_v56 = vld [vmem:[%s6891_s0 + $0x140] sm:$0xf] }
 0x131   :  { %v1648_v10 = vpop.f32.mrf.mxu0  ;;  %6965 = vst [vmem:[#allocation45_spill] sm:$0xff] %v6099_v30 }
 0x132   :  { %v1598_v63 = vadd.f32 %v1597_v38, %v1549_v36  ;;  %v6101_v36 = vor.u32 %v4680_v31, %v3758_v56  ;;  %v4742_v56 = vld [vmem:[#allocation2 + $0x114] sm:$0xf]  ;;  %v3947_v31 = vor.u32 %v4726_v3, %v3944_v5  ;;  %v4072_v3 = vld [vmem:[#allocation2 + $0x198] sm:$0xf0]  ;;  %v3788_v5 = vld [vmem:[%s6891_s0 + $0x1a4] sm:$0xf0] }
 0x133   :  { %v1697_v39 = vpop.f32.mrf.mxu1 }
 0x134   :  { %v1647_v20 = vadd.f32 %v1646_v42, %v1598_v63  ;;  %v4675_v42 = vld [vmem:[%s6891_s0 + $0x13c] sm:$0xf]  ;;  %6966 = vst [vmem:[#allocation46_spill] sm:$0xff] %v6101_v36  ;;  %1922 = vmatpush.bf16.msrb.mxu2 %v3947_v31 }
 0x135   :  { %v6103_v63 = vor.u32 %v4675_v42, %v3752_v57 }
 0x136   :  { %v6096_v19 = vadd.f32 %v1695_v47, %v1647_v20  ;;  %v4776_v47 = vld [vmem:[#allocation2 + $0x224] sm:$0xf]  ;;  %v4144_v20 = vld [vmem:[#allocation2 + $0x228] sm:$0xf0] }
 0x137   :  { %v1550_v32 = vpop.f32.mrf.mxu2  ;;  %6967 = vst [vmem:[#allocation47_spill] sm:$0xff] %v6103_v63 }
 0x138   :  { %v1551_v1 = vadd.f32 %v1550_v32, %v5943_v11  ;;  %v1599_v6 = vpop.f32.mrf.mxu3  ;;  %v4147_v11 = vor.u32 %v4776_v47, %v4144_v20  ;;  %v3786_v47 = vld [vmem:[%s6891_s0 + $0x180] sm:$0xf]  ;;  %v4758_v20 = vld [vmem:[#allocation2 + $0x194] sm:$0xf] }
 0x139   :  { %v1651_v38 = vpop.f32.mrf.mxu0 }
 0x13a   :  { %v1600_v49 = vadd.f32 %v1599_v6, %v1551_v1  ;;  %2068 = vmatpush.bf16.msrb.mxu1 %v4147_v11  ;;  %v4075_v11 = vor.u32 %v4758_v20, %v4072_v3 }
 0x13b   :  { %v1700_v29 = vpop.f32.mrf.mxu1 }
 0x13c   :  { %v1649_v37 = vadd.f32 %v1648_v10, %v1600_v49  ;;  %1748 = vmatmul.bf16.gmra.mxu2 %v6099_v30  ;;  %1846 = vmatmul.bf16.gmra.mxu0 %v6101_v36  ;;  %v4011_v10 = vor.u32 %v4742_v56, %v4008_v41 }
 0x13d   :  { %1797 = vmatmul.bf16.gmra.mxu3 %v6103_v63  ;;  %2020 = vmatpush.bf16.msrb.mxu0 %v4075_v11  ;;  %v4000_v11 = vld [vmem:[#allocation2 + $0x108] sm:$0xf0] }
 0x13e   :  { %1895 = vmatmul.bf16.gmra.mxu1 %v5509_v4  ;;  %v6109_v42 = vadd.f32 %v1697_v39, %v1649_v37  ;;  %1971 = vmatpush.bf16.msrb.mxu3 %v4011_v10  ;;  %v4688_v37 = vld [vmem:[%s6891_s0 + $0x1a0] sm:$0xf0]  ;;  %v4689_v39 = vld [vmem:[%s6891_s0 + $0x1a8] sm:$0xf0] }
 0x13f   :  { %v1553_v57 = vpop.f32.mrf.mxu2  ;;  %v6133_v10 = vor.u32 %v4688_v37, %v3786_v47  ;;  %v4724_v47 = vld [vmem:[#allocation2 + $0x84] sm:$0xf]  ;;  %v3936_v37 = vld [vmem:[#allocation2 + $0x88] sm:$0xf0] }
 0x140   :  { %v1554_v32 = vadd.f32 %v1553_v57, %v5809_v35  ;;  %v1602_v1 = vpop.f32.mrf.mxu3  ;;  %v3794_v35 = vld [vmem:[%s6891_s0 + $0x188] sm:$0xf] }
 0x141   :  { %v1653_v6 = vpop.f32.mrf.mxu0  ;;  %6968 = vst [vmem:[#allocation48_spill] sm:$0xff] %v6133_v10 }
 0x142   :  { %v1603_v49 = vadd.f32 %v1602_v1, %v1554_v32  ;;  %v6135_v32 = vor.u32 %v4689_v39, %v3794_v35  ;;  %v4740_v35 = vld [vmem:[#allocation2 + $0x104] sm:$0xf]  ;;  %v3939_v39 = vor.u32 %v4724_v47, %v3936_v37  ;;  %v4064_v47 = vld [vmem:[#allocation2 + $0x188] sm:$0xf0]  ;;  %v3824_v37 = vld [vmem:[%s6891_s0 + $0x1ec] sm:$0xf0] }
 0x143   :  { %v1702_v36 = vpop.f32.mrf.mxu1 }
 0x144   :  { %v1652_v4 = vadd.f32 %v1651_v38, %v1603_v49  ;;  %v4684_v38 = vld [vmem:[%s6891_s0 + $0x184] sm:$0xf]  ;;  %6969 = vst [vmem:[#allocation49_spill] sm:$0xff] %v6135_v32  ;;  %1923 = vmatpush.bf16.msrb.mxu2 %v3939_v39 }
 0x145   :  { %v6137_v49 = vor.u32 %v4684_v38, %v3788_v5 }
 0x146   :  { %v6130_v56 = vadd.f32 %v1700_v29, %v1652_v4  ;;  %v4774_v29 = vld [vmem:[#allocation2 + $0x214] sm:$0xf]  ;;  %v4136_v4 = vld [vmem:[#allocation2 + $0x218] sm:$0xf0] }
 0x147   :  { %v1555_v31 = vpop.f32.mrf.mxu2  ;;  %6970 = vst [vmem:[#allocation50_spill] sm:$0xff] %v6137_v49 }
 0x148   :  { %v1556_v41 = vadd.f32 %v1555_v31, %v5841_v15  ;;  %v1604_v57 = vpop.f32.mrf.mxu3  ;;  %v4139_v15 = vor.u32 %v4774_v29, %v4136_v4  ;;  %v3822_v29 = vld [vmem:[%s6891_s0 + $0x1c8] sm:$0xf]  ;;  %v4756_v4 = vld [vmem:[#allocation2 + $0x184] sm:$0xf] }
 0x149   :  { %v1656_v1 = vpop.f32.mrf.mxu0 }
 0x14a   :  { %v1605_v20 = vadd.f32 %v1604_v57, %v1556_v41  ;;  %2069 = vmatpush.bf16.msrb.mxu1 %v4139_v15  ;;  %v4067_v15 = vor.u32 %v4756_v4, %v4064_v47 }
 0x14b   :  { %v1705_v3 = vpop.f32.mrf.mxu1 }
 0x14c   :  { %v1654_v30 = vadd.f32 %v1653_v6, %v1605_v20  ;;  %1753 = vmatmul.bf16.gmra.mxu2 %v6133_v10  ;;  %1851 = vmatmul.bf16.gmra.mxu0 %v6135_v32  ;;  %v4003_v6 = vor.u32 %v4740_v35, %v4000_v11  ;;  %v4772_v10 = vld [vmem:[#allocation2 + $0x204] sm:$0xf] }
 0x14d   :  { %1802 = vmatmul.bf16.gmra.mxu3 %v6137_v49  ;;  %2021 = vmatpush.bf16.msrb.mxu0 %v4067_v15  ;;  %v4128_v49 = vld [vmem:[#allocation2 + $0x208] sm:$0xf0] }
 0x14e   :  { %1900 = vmatmul.bf16.gmra.mxu1 %v5545_v0  ;;  %v6143_v38 = vadd.f32 %v1702_v36, %v1654_v30  ;;  %1972 = vmatpush.bf16.msrb.mxu3 %v4003_v6  ;;  %v4697_v30 = vld [vmem:[%s6891_s0 + $0x1e8] sm:$0xf0]  ;;  %v4698_v36 = vld [vmem:[%s6891_s0 + $0x1f0] sm:$0xf0] }
 0x14f   :  { %v1558_v5 = vpop.f32.mrf.mxu2  ;;  %v6167_v6 = vor.u32 %v4697_v30, %v3822_v29  ;;  %v4818_v29 = vld [vmem:[#allocation2 + $0x374] sm:$0xf] }
 0x150   :  { %v1559_v31 = vadd.f32 %v1558_v5, %v5853_v58  ;;  %v1607_v41 = vpop.f32.mrf.mxu3  ;;  %v3830_v58 = vld [vmem:[%s6891_s0 + $0x1d0] sm:$0xf] }
 0x151   :  { %v1658_v57 = vpop.f32.mrf.mxu0 }
 0x152   :  { %v1608_v20 = vadd.f32 %v1607_v41, %v1559_v31  ;;  %v6169_v31 = vor.u32 %v4698_v36, %v3830_v58  ;;  %v4312_v58 = vld [vmem:[#allocation2 + $0x378] sm:$0xf0] }
 0x153   :  { %v1707_v32 = vpop.f32.mrf.mxu1 }
 0x154   :  { %v1657_v0 = vadd.f32 %v1656_v1, %v1608_v20  ;;  %v4693_v1 = vld [vmem:[%s6891_s0 + $0x1cc] sm:$0xf] }
 0x155   :  { %v6171_v20 = vor.u32 %v4693_v1, %v3824_v37  ;;  %v4315_v1 = vor.u32 %v4818_v29, %v4312_v58 }
 0x156   :  { %v6164_v35 = vadd.f32 %v1705_v3, %v1657_v0  ;;  %v4131_v3 = vor.u32 %v4772_v10, %v4128_v49  ;;  %v4248_v0 = vld [vmem:[#allocation2 + $0x2f8] sm:$0xf0] }
 0x157   :  { %v1560_v39 = vpop.f32.mrf.mxu2  ;;  %2161 = vmatpush.bf16.msra.mxu3 %v4315_v1 }
 0x158   :  { %v1561_v11 = vadd.f32 %v1560_v39, %v5885_v59  ;;  %v1609_v5 = vpop.f32.mrf.mxu3  ;;  %v4802_v59 = vld [vmem:[#allocation2 + $0x2f4] sm:$0xf]  ;;  %2070 = vmatpush.bf16.msrb.mxu1 %v4131_v3 }
 0x159   :  { %v1661_v41 = vpop.f32.mrf.mxu0  ;;  %v4251_v30 = vor.u32 %v4802_v59, %v4248_v0 }
 0x15a   :  { %v1610_v4 = vadd.f32 %v1609_v5, %v1561_v11  ;;  %v4702_v5 = vld [vmem:[%s6891_s0 + $0x214] sm:$0xf] }
 0x15b   :  { %v1710_v47 = vpop.f32.mrf.mxu1  ;;  %2112 = vmatpush.bf16.msra.mxu2 %v4251_v30 }
 0x15c   :  { %v1659_v63 = vadd.f32 %v1658_v57, %v1610_v4  ;;  %1758 = vmatmul.bf16.gmra.mxu2 %v6167_v6  ;;  %1856 = vmatmul.bf16.gmra.mxu0 %v6169_v31 }
 0x15d   :  { %1807 = vmatmul.bf16.gmra.mxu3 %v6171_v20 }
 0x15e   :  { %1905 = vmatmul.bf16.gmra.mxu1 %v5581_v50  ;;  %v6177_v36 = vadd.f32 %v1707_v32, %v1659_v63  ;;  %v3858_v50 = vld [vmem:[%s6891_s0 + $0x210] sm:$0xf]  ;;  %v4706_v63 = vld [vmem:[%s6891_s0 + $0x230] sm:$0xf0]  ;;  %v3866_v32 = vld [vmem:[%s6891_s0 + $0x218] sm:$0xf] }
 0x15f   :  { %v1563_v15 = vpop.f32.mrf.mxu2  ;;  %v6201_v29 = vor.u32 %v4706_v63, %v3858_v50 }
 0x160   :  { %v1564_v57 = vadd.f32 %v1563_v15, %v5897_v28  ;;  %v1612_v37 = vpop.f32.mrf.mxu3  ;;  %v4707_v28 = vld [vmem:[%s6891_s0 + $0x238] sm:$0xf0] }
 0x161   :  { %v1663_v39 = vpop.f32.mrf.mxu0  ;;  %v6203_v30 = vor.u32 %v4707_v28, %v3866_v32 }
 0x162   :  { %v1613_v10 = vadd.f32 %v1612_v37, %v1564_v57 }
 0x163   :  { %v1712_v49 = vpop.f32.mrf.mxu1  ;;  %6971 = vst [vmem:[#allocation51_spill] sm:$0xff] %v6203_v30 }
 0x164   :  { %v1662_v11 = vadd.f32 %v1661_v41, %v1613_v10  ;;  %v3860_v41 = vld [vmem:[%s6891_s0 + $0x234] sm:$0xf0] }
 0x165   :  { %v6205_v15 = vor.u32 %v4702_v5, %v3860_v41 }
 0x166   :  { %v6198_v4 = vadd.f32 %v1710_v47, %v1662_v11 }
 0x167   :  { %v1565_v3 = vpop.f32.mrf.mxu2 }
 0x168   :  { %v1566_v59 = vadd.f32 %v1565_v3, %v5929_v43  ;;  %v1614_v0 = vpop.f32.mrf.mxu3 }
 0x169   :  { %v1666_v58 = vpop.f32.mrf.mxu0 }
 0x16a   :  { %v1615_v1 = vadd.f32 %v1614_v0, %v1566_v59 }
 0x16b   :  { %v1715_v57 = vpop.f32.mrf.mxu1 }
 0x16c   :  { %v1664_v37 = vadd.f32 %v1663_v39, %v1615_v1  ;;  %1763 = vmatmul.bf16.gmra.mxu2 %v6201_v29  ;;  %1861 = vmatmul.bf16.gmra.mxu0 %v6203_v30 }
 0x16d   :  { %1812 = vmatmul.bf16.gmra.mxu3 %v6205_v15 }
 0x16e   :  { %1910 = vmatmul.bf16.gmra.mxu1 %v5617_v21  ;;  %v6211_v43 = vadd.f32 %v1712_v49, %v1664_v37  ;;  %v2346_v37 = vld [vmem:[#allocation6] sm:$0x3] }
 0x16f   :  { %v1568_v47 = vpop.f32.mrf.mxu2 }
 0x170   :  { %v1569_v10 = vadd.f32 %v1568_v47, %v5941_v40  ;;  %v1617_v11 = vpop.f32.mrf.mxu3 }
 0x171   :  { %v1668_v50 = vpop.f32.mrf.mxu0 }
 0x172   :  { %v1618_v63 = vadd.f32 %v1617_v11, %v1569_v10 }
 0x173   :  { %v1717_v32 = vpop.f32.mrf.mxu1 }
 0x174   :  { %v1667_v28 = vadd.f32 %v1666_v58, %v1618_v63  ;;  %v2308_v58 = vld [vmem:[#allocation4] sm:$0x3] }
 0x175   :  { %v6226_v11 = vperm.slane %v2308_v58, 0  ;;  %v4440_v58 = vld [vmem:[#allocation2 + $0x478] sm:$0xf0] }
 0x176   :  { %v6214_v5 = vadd.f32 %v1715_v57, %v1667_v28  ;;  %v6230_v28 = vperm.slane %v2346_v37, 0  ;;  %v4240_v37 = vld [vmem:[#allocation2 + $0x2e8] sm:$0xf0] }
 0x177   :  { %v1570_v39 = vpop.f32.mrf.mxu2 }
 0x178   :  { %v1571_v41 = vadd.f32 %v1570_v39, %v5967_v60  ;;  %v1619_v3 = vpop.f32.mrf.mxu3 }
 0x179   :  { %v1827_v59 = vpop.f32.mrf.mxu0 }
 0x17a   :  { %v1620_v0 = vadd.f32 %v1619_v3, %v1571_v41 }
 0x17b   :  { %v6217_v1 = vpop.f32.mrf.mxu1 }
 0x17c   :  { %v1669_v21 = vadd.f32 %v1668_v50, %v1620_v0  ;;  %1924 = vmatmul.bf16.vlgmr.msrb.gmra.mxu2 %v5513_v9  ;;  %2022 = vmatmul.bf16.vlgmr.msrb.gmra.mxu0 %v5655_v46  ;;  %v4834_v9 = vld [vmem:[#allocation2 + $0x3f4] sm:$0xf]  ;;  %v4376_v46 = vld [vmem:[#allocation2 + $0x3f8] sm:$0xf0] }
 0x17d   :  { %1973 = vmatmul.bf16.vlgmr.msrb.gmra.mxu3 %v5651_v44  ;;  %v4379_v63 = vor.u32 %v4834_v9, %v4376_v46 }
 0x17e   :  { %2071 = vmatmul.bf16.vlgmr.msrb.gmra.mxu1 %v5653_v45  ;;  %v6223_v40 = vadd.f32 %v1717_v32, %v1669_v21 }
 0x17f   :  { %v1729_v49 = vpop.f32.mrf.mxu2  ;;  %2210 = vmatpush.bf16.msra.mxu0 %v4379_v63  ;;  %v4304_v63 = vld [vmem:[#allocation2 + $0x368] sm:$0xf0] }
 0x180   :  { %v1730_v60 = vadd.f32 %v1729_v49, %v5994_v55  ;;  %v1778_v57 = vpop.f32.mrf.mxu3  ;;  %v4850_v49 = vld [vmem:[#allocation2 + $0x474] sm:$0xf] }
 0x181   :  { %v1829_v47 = vpop.f32.mrf.mxu0 }
 0x182   :  { %v1779_v10 = vadd.f32 %v1778_v57, %v1730_v60  ;;  %v4800_v57 = vld [vmem:[#allocation2 + $0x2e4] sm:$0xf] }
 0x183   :  { %v6228_v50 = vpop.f32.mrf.mxu1 }
 0x184   :  { %v1828_v44 = vadd.f32 %v1827_v59, %v1779_v10  ;;  %v4443_v59 = vor.u32 %v4850_v49, %v4440_v58  ;;  %v4816_v10 = vld [vmem:[#allocation2 + $0x364] sm:$0xf] }
 0x186   :  { %v2314_v45 = vmul.f32 %v6226_v11, %v1828_v44  ;;  %v4832_v44 = vld [vmem:[#allocation2 + $0x3e4] sm:$0xf]  ;;  %2259 = vmatpush.bf16.msra.mxu1 %v4443_v59 }
 0x187   :  { %v1731_v32 = vpop.f32.mrf.mxu2 }
 0x188   :  { %v6234_v55 = vadd.f32 %v6230_v28, %v2314_v45  ;;  %v1732_v39 = vadd.f32 %v1731_v32, %v6007_v13  ;;  %v1780_v41 = vpop.f32.mrf.mxu3  ;;  %v4243_v13 = vor.u32 %v4800_v57, %v4240_v37  ;;  %v4307_v45 = vor.u32 %v4816_v10, %v4304_v63  ;;  %v4368_v32 = vld [vmem:[#allocation2 + $0x3e8] sm:$0xf0]  ;;  %v4296_v57 = vld [vmem:[#allocation2 + $0x358] sm:$0xf0] }
 0x189   :  { %v1832_v3 = vpop.f32.mrf.mxu0 }
 0x18a   :  { %v2384_v0 = vmin.f32 %v6234_v55, 20.0  ;;  %v1781_v21 = vadd.f32 %v1780_v41, %v1732_v39  ;;  %v4848_v39 = vld [vmem:[#allocation2 + $0x464] sm:$0xf]  ;;  %v4432_v41 = vld [vmem:[#allocation2 + $0x468] sm:$0xf0]  ;;  %2113 = vmatpush.bf16.msra.mxu2 %v4243_v13  ;;  %2162 = vmatpush.bf16.msra.mxu3 %v4307_v45 }
 0x18b   :  { %v6238_v60 = vpop.f32.mrf.mxu1 }
 0x18c   :  { %v2416_v9 = vmul.f32 1.442695, %v2384_v0  ;;  %v1830_v46 = vadd.f32 %v1829_v47, %v1781_v21  ;;  %1929 = vmatmul.bf16.gmra.mxu2 %v5549_v7  ;;  %2027 = vmatmul.bf16.gmra.mxu0 %v5691_v18  ;;  %v4371_v47 = vor.u32 %v4832_v44, %v4368_v32  ;;  %v4435_v7 = vor.u32 %v4848_v39, %v4432_v41  ;;  %v4798_v0 = vld [vmem:[#allocation2 + $0x2d4] sm:$0xf]  ;;  %v4232_v18 = vld [vmem:[#allocation2 + $0x2d8] sm:$0xf0] }
 0x18d   :  { %1978 = vmatmul.bf16.gmra.mxu3 %v5687_v16  ;;  %v4814_v21 = vld [vmem:[#allocation2 + $0x354] sm:$0xf]  ;;  %v4235_v59 = vor.u32 %v4798_v0, %v4232_v18 }
 0x18e   :  { %5002 = vpow2.f32 %v2416_v9  ;;  %v2316_v49 = vmul.f32 %v6226_v11, %v1830_v46  ;;  %2076 = vmatmul.bf16.gmra.mxu1 %v5689_v17  ;;  %2211 = vmatpush.bf16.msra.mxu0 %v4371_v47  ;;  %v4299_v9 = vor.u32 %v4814_v21, %v4296_v57  ;;  %v4360_v47 = vld [vmem:[#allocation2 + $0x3d8] sm:$0xf0]  ;;  %v4846_v0 = vld [vmem:[#allocation2 + $0x454] sm:$0xf] }
 0x18f   :  { %v1734_v58 = vpop.f32.mrf.mxu2  ;;  %2260 = vmatpush.bf16.msra.mxu1 %v4435_v7  ;;  %2114 = vmatpush.bf16.msra.mxu2 %v4235_v59  ;;  %v4424_v57 = vld [vmem:[#allocation2 + $0x458] sm:$0xf0] }
 0x190   :  { %v6246_v16 = vadd.f32 %v6230_v28, %v2316_v49  ;;  %v1735_v37 = vadd.f32 %v1734_v58, %v6028_v14  ;;  %v1783_v10 = vpop.f32.mrf.mxu3  ;;  %2163 = vmatpush.bf16.msra.mxu3 %v4299_v9  ;;  %v4830_v49 = vld [vmem:[#allocation2 + $0x3d4] sm:$0xf]  ;;  %v4427_v9 = vor.u32 %v4846_v0, %v4424_v57 }
 0x191   :  { %v1834_v46 = vpop.f32.mrf.mxu0  ;;  %v4363_v59 = vor.u32 %v4830_v49, %v4360_v47 }
 0x192   :  { %v2386_v17 = vmin.f32 %v6246_v16, 20.0  ;;  %v1784_v13 = vadd.f32 %v1783_v10, %v1735_v37  ;;  %v4796_v37 = vld [vmem:[#allocation2 + $0x2c4] sm:$0xf]  ;;  %v4224_v10 = vld [vmem:[#allocation2 + $0x2c8] sm:$0xf0] }
 0x193   :  { %v6250_v63 = vpop.f32.mrf.mxu1  ;;  %2212 = vmatpush.bf16.msra.mxu0 %v4363_v59  ;;  %2261 = vmatpush.bf16.msra.mxu1 %v4427_v9 }
 0x194   :  { %v5003_v44 = vpop.eup %5002  ;;  %v2420_v45 = vmul.f32 1.442695, %v2386_v17  ;;  %v1833_v32 = vadd.f32 %v1832_v3, %v1784_v13  ;;  %v4227_v17 = vor.u32 %v4796_v37, %v4224_v10  ;;  %v4812_v13 = vld [vmem:[#allocation2 + $0x344] sm:$0xf] }
 0x195   :  { %v2480_v39 = vadd.f32 1.0, %v5003_v44  ;;  %v4288_v44 = vld [vmem:[#allocation2 + $0x348] sm:$0xf0] }
 0x196   :  { %5004 = vpow2.f32 %v2420_v45  ;;  %v2318_v41 = vmul.f32 %v6226_v11, %v1833_v32  ;;  %2115 = vmatpush.bf16.msra.mxu2 %v4227_v17 }
 0x197   :  { %v1736_v14 = vpop.f32.mrf.mxu2  ;;  %v2512_v18 = vmul.f32 %v2480_v39, %v2480_v39  ;;  %v4291_v39 = vor.u32 %v4812_v13, %v4288_v44 }
 0x198   :  { %v6254_v7 = vadd.f32 %v6230_v28, %v2318_v41  ;;  %v1737_v21 = vadd.f32 %v1736_v14, %v6041_v34  ;;  %v1785_v58 = vpop.f32.mrf.mxu3 }
 0x199   :  { %v1837_v3 = vpop.f32.mrf.mxu0  ;;  %v2608_v41 = vadd.f32 1.0, %v2512_v18  ;;  %2164 = vmatpush.bf16.msra.mxu3 %v4291_v39  ;;  %v4444_v9 = vadd.f32 -1.0, %v2512_v18 }
 0x19a   :  { %v2388_v45 = vmin.f32 %v6254_v7, 20.0  ;;  %v1786_v32 = vadd.f32 %v1785_v58, %v1737_v21 }
 0x19b   :  { %v6258_v30 = vpop.f32.mrf.mxu1 }
 0x19c   :  { %v5005_v34 = vpop.eup %5004  ;;  %v2424_v14 = vmul.f32 1.442695, %v2388_v45  ;;  %v1835_v49 = vadd.f32 %v1834_v46, %v1786_v32  ;;  %1934 = vmatmul.bf16.gmra.mxu2 %v5585_v52  ;;  %2032 = vmatmul.bf16.gmra.mxu0 %v5727_v54 }
 0x19d   :  { %v2482_v47 = vadd.f32 1.0, %v5005_v34  ;;  %1983 = vmatmul.bf16.gmra.mxu3 %v5723_v48 }
 0x19e   :  { %5006 = vpow2.f32 %v2424_v14  ;;  %v2320_v0 = vmul.f32 %v6226_v11, %v1835_v49  ;;  %2081 = vmatmul.bf16.gmra.mxu1 %v5725_v53  ;;  %v4828_v14 = vld [vmem:[#allocation2 + $0x3c4] sm:$0xf]  ;;  %v4352_v49 = vld [vmem:[#allocation2 + $0x3c8] sm:$0xf0] }
 0x19f   :  { %v2514_v21 = vmul.f32 %v2482_v47, %v2482_v47  ;;  %v1739_v58 = vpop.f32.mrf.mxu2  ;;  %5008 = vrcp.f32 %v2608_v41  ;;  %v4844_v47 = vld [vmem:[#allocation2 + $0x444] sm:$0xf] }
 0x1a0   :  { %v6266_v59 = vadd.f32 %v6230_v28, %v2320_v0  ;;  %v1740_v46 = vadd.f32 %v1739_v58, %v6062_v12  ;;  %v1788_v52 = vpop.f32.mrf.mxu3  ;;  %v2576_v12 = vmul.f32 %v4444_v9, %v6234_v55  ;;  %v4355_v58 = vor.u32 %v4828_v14, %v4352_v49 }
 0x1a1   :  { %v2610_v57 = vadd.f32 1.0, %v2514_v21  ;;  %v1839_v54 = vpop.f32.mrf.mxu0  ;;  %v4446_v17 = vadd.f32 -1.0, %v2514_v21 }
 0x1a2   :  { %v2390_v37 = vmin.f32 %v6266_v59, 20.0  ;;  %v1789_v48 = vadd.f32 %v1788_v52, %v1740_v46  ;;  %v4416_v46 = vld [vmem:[#allocation2 + $0x448] sm:$0xf0]  ;;  %v4794_v52 = vld [vmem:[#allocation2 + $0x2b4] sm:$0xf]  ;;  %2213 = vmatpush.bf16.msra.mxu0 %v4355_v58 }
 0x1a3   :  { %v6270_v10 = vpop.f32.mrf.mxu1  ;;  %5010 = vrcp.f32 %v2610_v57  ;;  %v2578_v34 = vmul.f32 %v4446_v17, %v6246_v16  ;;  %v4216_v57 = vld [vmem:[#allocation2 + $0x2b8] sm:$0xf0]  ;;  %v4419_v9 = vor.u32 %v4844_v47, %v4416_v46  ;;  %v4810_v17 = vld [vmem:[#allocation2 + $0x334] sm:$0xf] }
 0x1a4   :  { %v5007_v53 = vpop.eup %5006  ;;  %v2428_v13 = vmul.f32 1.442695, %v2390_v37  ;;  %v1838_v44 = vadd.f32 %v1837_v3, %v1789_v48  ;;  %v4219_v16 = vor.u32 %v4794_v52, %v4216_v57 }
 0x1a5   :  { %v2484_v45 = vadd.f32 1.0, %v5007_v53  ;;  %v5009_v32 = vpop.eup %5008  ;;  %v4280_v53 = vld [vmem:[#allocation2 + $0x338] sm:$0xf0]  ;;  %2262 = vmatpush.bf16.msra.mxu1 %v4419_v9 }
 0x1a6   :  { %5012 = vpow2.f32 %v2428_v13  ;;  %v2322_v39 = vmul.f32 %v6226_v11, %v1838_v44  ;;  %v2672_v48 = vmul.f32 %v5009_v32, %v2576_v12  ;;  %2116 = vmatpush.bf16.msra.mxu2 %v4219_v16 }
 0x1a7   :  { %v1741_v41 = vpop.f32.mrf.mxu2  ;;  %v2516_v0 = vmul.f32 %v2484_v45, %v2484_v45 }
 0x1a8   :  { %v6276_v18 = vadd.f32 %v6230_v28, %v2322_v39  ;;  %v1742_v21 = vadd.f32 %v1741_v41, %v6075_v24  ;;  %v1790_v3 = vpop.f32.mrf.mxu3  ;;  %v4283_v24 = vor.u32 %v4810_v17, %v4280_v53 }
 0x1a9   :  { %v5011_v37 = vpop.eup %5010  ;;  %v1842_v55 = vpop.f32.mrf.mxu0  ;;  %v2612_v12 = vadd.f32 1.0, %v2516_v0 }
 0x1aa   :  { %v2674_v13 = vmul.f32 %v5011_v37, %v2578_v34  ;;  %v2392_v44 = vmin.f32 %v6276_v18, 20.0  ;;  %v1791_v45 = vadd.f32 %v1790_v3, %v1742_v21  ;;  %2165 = vmatpush.bf16.msra.mxu3 %v4283_v24  ;;  %v4448_v37 = vadd.f32 -1.0, %v2516_v0  ;;  %v4842_v24 = vld [vmem:[#allocation2 + $0x434] sm:$0xf] }
 0x1ab   :  { %v6280_v39 = vpop.f32.mrf.mxu1 }
 0x1ac   :  { %v5013_v41 = vpop.eup %5012  ;;  %v2432_v14 = vmul.f32 1.442695, %v2392_v44  ;;  %v1840_v49 = vadd.f32 %v1839_v54, %v1791_v45  ;;  %1939 = vmatmul.bf16.gmra.mxu2 %v5621_v23  ;;  %2037 = vmatmul.bf16.gmra.mxu0 %v5763_v27  ;;  %v6284_v32 = vpack.c.bf16 %v2674_v13, %v2672_v48  ;;  %v4826_v44 = vld [vmem:[#allocation2 + $0x3b4] sm:$0xf]  ;;  %v4344_v45 = vld [vmem:[#allocation2 + $0x3b8] sm:$0xf0] }
 0x1ad   :  { %1988 = vmatmul.bf16.gmra.mxu3 %v5759_v25  ;;  %v2486_v34 = vadd.f32 1.0, %v5013_v41  ;;  %v2580_v41 = vmul.f32 %v4448_v37, %v6254_v7 }
 0x1ae   :  { %5014 = vpow2.f32 %v2432_v14  ;;  %v2324_v47 = vmul.f32 %v6226_v11, %v1840_v49  ;;  %2086 = vmatmul.bf16.gmra.mxu1 %v5761_v26 }
 0x1af   :  { %v1744_v21 = vpop.f32.mrf.mxu2  ;;  %v2518_v3 = vmul.f32 %v2486_v34, %v2486_v34  ;;  %5016 = vrcp.f32 %v2612_v12  ;;  %v4347_v34 = vor.u32 %v4826_v44, %v4344_v45 }
 0x1b0   :  { %v6290_v54 = vadd.f32 %v6230_v28, %v2324_v47  ;;  %v1745_v23 = vadd.f32 %v1744_v21, %v6096_v19  ;;  %v1793_v27 = vpop.f32.mrf.mxu3  ;;  %v4408_v47 = vld [vmem:[#allocation2 + $0x438] sm:$0xf0]  ;;  %v4792_v21 = vld [vmem:[#allocation2 + $0x2a4] sm:$0xf] }
 0x1b1   :  { %v1844_v58 = vpop.f32.mrf.mxu0  ;;  %v2614_v46 = vadd.f32 1.0, %v2518_v3  ;;  %v4450_v48 = vadd.f32 -1.0, %v2518_v3  ;;  %v4208_v3 = vld [vmem:[#allocation2 + $0x2a8] sm:$0xf0]  ;;  %2214 = vmatpush.bf16.msra.mxu0 %v4347_v34 }
 0x1b2   :  { %v2394_v25 = vmin.f32 %v6290_v54, 20.0  ;;  %v1794_v52 = vadd.f32 %v1793_v27, %v1745_v23 }
 0x1b3   :  { %v6294_v57 = vpop.f32.mrf.mxu1  ;;  %5018 = vrcp.f32 %v2614_v46  ;;  %v2582_v14 = vmul.f32 %v4450_v48, %v6266_v59  ;;  %v4411_v46 = vor.u32 %v4842_v24, %v4408_v47 }
 0x1b4   :  { %v5015_v26 = vpop.eup %5014  ;;  %v2436_v9 = vmul.f32 1.442695, %v2394_v25  ;;  %v1843_v16 = vadd.f32 %v1842_v55, %v1794_v52  ;;  %v4211_v25 = vor.u32 %v4792_v21, %v4208_v3  ;;  %v4808_v52 = vld [vmem:[#allocation2 + $0x324] sm:$0xf] }
 0x1b5   :  { %v2488_v17 = vadd.f32 1.0, %v5015_v26  ;;  %v5017_v53 = vpop.eup %5016  ;;  %v4272_v26 = vld [vmem:[#allocation2 + $0x328] sm:$0xf0]  ;;  %2263 = vmatpush.bf16.msra.mxu1 %v4411_v46 }
 0x1b6   :  { %5020 = vpow2.f32 %v2436_v9  ;;  %v2326_v19 = vmul.f32 %v6226_v11, %v1843_v16  ;;  %v2676_v7 = vmul.f32 %v5017_v53, %v2580_v41  ;;  %v4275_v9 = vor.u32 %v4808_v52, %v4272_v26  ;;  %2117 = vmatpush.bf16.msra.mxu2 %v4211_v25  ;;  %v4824_v26 = vld [vmem:[#allocation2 + $0x3a4] sm:$0xf] }
 0x1b7   :  { %v1746_v13 = vpop.f32.mrf.mxu2  ;;  %v2520_v49 = vmul.f32 %v2488_v17, %v2488_v17 }
 0x1b8   :  { %v6300_v0 = vadd.f32 %v6230_v28, %v2326_v19  ;;  %v1747_v12 = vadd.f32 %v1746_v13, %v6109_v42  ;;  %v1795_v55 = vpop.f32.mrf.mxu3  ;;  %2166 = vmatpush.bf16.msra.mxu3 %v4275_v9 }
 0x1b9   :  { %v5019_v23 = vpop.eup %5018  ;;  %v1847_v27 = vpop.f32.mrf.mxu0  ;;  %v2616_v53 = vadd.f32 1.0, %v2520_v49  ;;  %v4452_v47 = vadd.f32 -1.0, %v2520_v49 }
 0x1ba   :  { %v2396_v59 = vmin.f32 %v6300_v0, 20.0  ;;  %v1796_v37 = vadd.f32 %v1795_v55, %v1747_v12  ;;  %v2678_v42 = vmul.f32 %v5019_v23, %v2582_v14 }
 0x1bb   :  { %v6304_v48 = vpop.f32.mrf.mxu1 }
 0x1bc   :  { %v5021_v16 = vpop.eup %5020  ;;  %v2440_v17 = vmul.f32 1.442695, %v2396_v59  ;;  %v1845_v19 = vadd.f32 %v1844_v58, %v1796_v37  ;;  %1944 = vmatmul.bf16.gmra.mxu2 %v5511_v8  ;;  %2042 = vmatmul.bf16.gmra.mxu0 %v5799_v2  ;;  %v6308_v13 = vpack.c.bf16 %v2678_v42, %v2676_v7  ;;  %v4336_v7 = vld [vmem:[#allocation2 + $0x3a8] sm:$0xf0]  ;;  %v4840_v59 = vld [vmem:[#allocation2 + $0x424] sm:$0xf]  ;;  %v2584_v37 = vmul.f32 %v4452_v47, %v6276_v18 }
 0x1bd   :  { %1993 = vmatmul.bf16.gmra.mxu3 %v5795_v61  ;;  %v2490_v44 = vadd.f32 1.0, %v5021_v16 }
 0x1be   :  { %5022 = vpow2.f32 %v2440_v17  ;;  %v2328_v45 = vmul.f32 %v6226_v11, %v1845_v19  ;;  %2091 = vmatmul.bf16.gmra.mxu1 %v5797_v62  ;;  %v4339_v17 = vor.u32 %v4824_v26, %v4336_v7  ;;  %v4400_v19 = vld [vmem:[#allocation2 + $0x428] sm:$0xf0] }
 0x1bf   :  { %v1749_v24 = vpop.f32.mrf.mxu2  ;;  %v2522_v41 = vmul.f32 %v2490_v44, %v2490_v44  ;;  %5024 = vrcp.f32 %v2616_v53  ;;  %v4790_v53 = vld [vmem:[#allocation2 + $0x294] sm:$0xf]  ;;  %v4200_v44 = vld [vmem:[#allocation2 + $0x298] sm:$0xf0] }
 0x1c0   :  { %v6314_v58 = vadd.f32 %v6230_v28, %v2328_v45  ;;  %v1750_v8 = vadd.f32 %v1749_v24, %v6130_v56  ;;  %v1798_v2 = vpop.f32.mrf.mxu3  ;;  %2215 = vmatpush.bf16.msra.mxu0 %v4339_v17 }
 0x1c1   :  { %v1849_v14 = vpop.f32.mrf.mxu0  ;;  %v2618_v12 = vadd.f32 1.0, %v2522_v41  ;;  %v4454_v21 = vadd.f32 -1.0, %v2522_v41  ;;  %v4403_v41 = vor.u32 %v4840_v59, %v4400_v19  ;;  %v6975_v59 = vld [vmem:[#allocation25_spill] sm:$0xff] }
 0x1c2   :  { %v2398_v61 = vmin.f32 %v6314_v58, 20.0  ;;  %v1799_v55 = vadd.f32 %v1798_v2, %v1750_v8  ;;  %v4203_v8 = vor.u32 %v4790_v53, %v4200_v44  ;;  %v4806_v2 = vld [vmem:[#allocation2 + $0x314] sm:$0xf] }
 0x1c3   :  { %v6318_v34 = vpop.f32.mrf.mxu1  ;;  %5026 = vrcp.f32 %v2618_v12  ;;  %v2586_v9 = vmul.f32 %v4454_v21, %v6290_v54  ;;  %v4264_v12 = vld [vmem:[#allocation2 + $0x318] sm:$0xf0]  ;;  %2264 = vmatpush.bf16.msra.mxu1 %v4403_v41  ;;  %v4822_v41 = vld [vmem:[#allocation2 + $0x394] sm:$0xf] }
 0x1c4   :  { %v5023_v62 = vpop.eup %5022  ;;  %v2444_v3 = vmul.f32 1.442695, %v2398_v61  ;;  %v1848_v23 = vadd.f32 %v1847_v27, %v1799_v55  ;;  %v4267_v47 = vor.u32 %v4806_v2, %v4264_v12  ;;  %2118 = vmatpush.bf16.msra.mxu2 %v4203_v8  ;;  %v4328_v8 = vld [vmem:[#allocation2 + $0x398] sm:$0xf0] }
 0x1c5   :  { %v2492_v46 = vadd.f32 1.0, %v5023_v62  ;;  %v5025_v25 = vpop.eup %5024 }
 0x1c6   :  { %5028 = vpow2.f32 %v2444_v3  ;;  %v2330_v56 = vmul.f32 %v6226_v11, %v1848_v23  ;;  %v2680_v18 = vmul.f32 %v5025_v25, %v2584_v37  ;;  %v6972_v23 = vld [vmem:[#allocation16_spill] sm:$0xff]  ;;  %2167 = vmatpush.bf16.msra.mxu3 %v4267_v47 }
 0x1c7   :  { %v1751_v52 = vpop.f32.mrf.mxu2  ;;  %v2524_v42 = vmul.f32 %v2492_v46, %v2492_v46  ;;  %v6973_v46 = vld [vmem:[#allocation26_spill] sm:$0xff] }
 0x1c8   :  { %v6324_v49 = vadd.f32 %v6230_v28, %v2330_v56  ;;  %v1752_v16 = vadd.f32 %v1751_v52, %v6143_v38  ;;  %v1800_v27 = vpop.f32.mrf.mxu3  ;;  %v6974_v52 = vld [vmem:[#allocation24_spill] sm:$0xff] }
 0x1c9   :  { %v5027_v45 = vpop.eup %5026  ;;  %v1852_v24 = vpop.f32.mrf.mxu0  ;;  %v2620_v25 = vadd.f32 1.0, %v2524_v42  ;;  %v4456_v2 = vadd.f32 -1.0, %v2524_v42 }
 0x1ca   :  { %v2400_v54 = vmin.f32 %v6324_v49, 20.0  ;;  %v1801_v61 = vadd.f32 %v1800_v27, %v1752_v16  ;;  %v2682_v38 = vmul.f32 %v5027_v45, %v2586_v9 }
 0x1cb   :  { %v6328_v55 = vpop.f32.mrf.mxu1 }
 0x1cc   :  { %v5029_v21 = vpop.eup %5028  ;;  %v2448_v62 = vmul.f32 1.442695, %v2400_v54  ;;  %v1850_v3 = vadd.f32 %v1849_v14, %v1801_v61  ;;  %1949 = vmatmul.bf16.gmra.mxu2 %v6972_v23  ;;  %2047 = vmatmul.bf16.gmra.mxu0 %v6973_v46  ;;  %v6332_v56 = vpack.c.bf16 %v2682_v38, %v2680_v18  ;;  %v4331_v61 = vor.u32 %v4822_v41, %v4328_v8  ;;  %v4392_v23 = vld [vmem:[#allocation2 + $0x418] sm:$0xf0]  ;;  %v4788_v46 = vld [vmem:[#allocation2 + $0x284] sm:$0xf] }
 0x1cd   :  { %1998 = vmatmul.bf16.gmra.mxu3 %v6974_v52  ;;  %v2494_v26 = vadd.f32 1.0, %v5029_v21  ;;  %v4820_v41 = vld [vmem:[#allocation2 + $0x384] sm:$0xf]  ;;  %v4320_v8 = vld [vmem:[#allocation2 + $0x388] sm:$0xf0] }
 0x1ce   :  { %5030 = vpow2.f32 %v2448_v62  ;;  %v2332_v7 = vmul.f32 %v6226_v11, %v1850_v3  ;;  %2096 = vmatmul.bf16.gmra.mxu1 %v6975_v59  ;;  %2216 = vmatpush.bf16.msra.mxu0 %v4331_v61  ;;  %v4838_v3 = vld [vmem:[#allocation2 + $0x414] sm:$0xf]  ;;  %v4804_v59 = vld [vmem:[#allocation2 + $0x304] sm:$0xf] }
 0x1cf   :  { %v1754_v37 = vpop.f32.mrf.mxu2  ;;  %v2526_v9 = vmul.f32 %v2494_v26, %v2494_v26  ;;  %5032 = vrcp.f32 %v2620_v25  ;;  %v2588_v25 = vmul.f32 %v4456_v2, %v6300_v0  ;;  %v4395_v26 = vor.u32 %v4838_v3, %v4392_v23  ;;  %v4836_v61 = vld [vmem:[#allocation2 + $0x404] sm:$0xf]  ;;  %v6977_v3 = vld [vmem:[#allocation30_spill] sm:$0xff] }
 0x1d0   :  { %v6338_v14 = vadd.f32 %v6230_v28, %v2332_v7  ;;  %v1755_v16 = vadd.f32 %v1754_v37, %v6164_v35  ;;  %v1803_v27 = vpop.f32.mrf.mxu3  ;;  %v4192_v7 = vld [vmem:[#allocation2 + $0x288] sm:$0xf0] }
 0x1d1   :  { %v1854_v17 = vpop.f32.mrf.mxu0  ;;  %v2622_v19 = vadd.f32 1.0, %v2526_v9  ;;  %v4458_v47 = vadd.f32 -1.0, %v2526_v9  ;;  %v4256_v37 = vld [vmem:[#allocation2 + $0x308] sm:$0xf0]  ;;  %2265 = vmatpush.bf16.msra.mxu1 %v4395_v26  ;;  %v6979_v26 = vld [vmem:[#allocation29_spill] sm:$0xff] }
 0x1d2   :  { %v2402_v53 = vmin.f32 %v6338_v14, 20.0  ;;  %v1804_v44 = vadd.f32 %v1803_v27, %v1755_v16 }
 0x1d3   :  { %v6342_v45 = vpop.f32.mrf.mxu1  ;;  %5034 = vrcp.f32 %v2622_v19  ;;  %v2590_v9 = vmul.f32 %v4458_v47, %v6314_v58  ;;  %v4384_v58 = vld [vmem:[#allocation2 + $0x408] sm:$0xf0] }
 0x1d4   :  { %v5031_v12 = vpop.eup %5030  ;;  %v2452_v18 = vmul.f32 1.442695, %v2402_v53  ;;  %v1853_v54 = vadd.f32 %v1852_v24, %v1804_v44  ;;  %v4195_v53 = vor.u32 %v4788_v46, %v4192_v7  ;;  %v4259_v44 = vor.u32 %v4804_v59, %v4256_v37  ;;  %v6978_v46 = vld [vmem:[#allocation28_spill] sm:$0xff] }
 0x1d5   :  { %v2496_v38 = vadd.f32 1.0, %v5031_v12  ;;  %v5033_v35 = vpop.eup %5032 }
 0x1d6   :  { %5036 = vpow2.f32 %v2452_v18  ;;  %v2334_v21 = vmul.f32 %v6226_v11, %v1853_v54  ;;  %v2684_v0 = vmul.f32 %v5033_v35, %v2588_v25  ;;  %2119 = vmatpush.bf16.msra.mxu2 %v4195_v53  ;;  %2168 = vmatpush.bf16.msra.mxu3 %v4259_v44  ;;  %v4387_v35 = vor.u32 %v4836_v61, %v4384_v58 }
 0x1d7   :  { %v1756_v62 = vpop.f32.mrf.mxu2  ;;  %v2528_v27 = vmul.f32 %v2496_v38, %v2496_v38 }
 0x1d8   :  { %v6347_v42 = vadd.f32 %v6230_v28, %v2334_v21  ;;  %v1757_v52 = vadd.f32 %v1756_v62, %v6177_v36  ;;  %v1805_v24 = vpop.f32.mrf.mxu3  ;;  %v4323_v36 = vor.u32 %v4820_v41, %v4320_v8  ;;  %v6976_v62 = vld [vmem:[#allocation17_spill] sm:$0xff]  ;;  %2266 = vmatpush.bf16.msra.mxu1 %v4387_v35 }
 0x1d9   :  { %v5035_v16 = vpop.eup %5034  ;;  %v1857_v19 = vpop.f32.mrf.mxu0 }
 0x1da   :  { %v2404_v2 = vmin.f32 %v6347_v42, 20.0  ;;  %v1806_v12 = vadd.f32 %v1805_v24, %v1757_v52  ;;  %v2686_v54 = vmul.f32 %v5035_v16, %v2590_v9  ;;  %2217 = vmatpush.bf16.msra.mxu0 %v4323_v36  ;;  %v2624_v52 = vadd.f32 1.0, %v2528_v27 }
 0x1db   :  { %v6352_v18 = vpop.f32.mrf.mxu1  ;;  %v4460_v36 = vadd.f32 -1.0, %v2528_v27 }
 0x1dc   :  { %v5037_v47 = vpop.eup %5036  ;;  %v2456_v38 = vmul.f32 1.442695, %v2404_v2  ;;  %v1855_v21 = vadd.f32 %v1854_v17, %v1806_v12  ;;  %1954 = vmatmul.bf16.gmra.mxu2 %v6976_v62  ;;  %2052 = vmatmul.bf16.gmra.mxu0 %v6977_v3  ;;  %v6356_v23 = vpack.c.bf16 %v2686_v54, %v2684_v0 }
 0x1dd   :  { %2003 = vmatmul.bf16.gmra.mxu3 %v6978_v46  ;;  %v2498_v25 = vadd.f32 1.0, %v5037_v47  ;;  %v2592_v3 = vmul.f32 %v4460_v36, %v6324_v49 }
 0x1de   :  { %5038 = vpow2.f32 %v2456_v38  ;;  %v2336_v24 = vmul.f32 %v6226_v11, %v1855_v21  ;;  %2101 = vmatmul.bf16.gmra.mxu1 %v6979_v26 }
 0x1df   :  { %v1759_v7 = vpop.f32.mrf.mxu2  ;;  %v2530_v17 = vmul.f32 %v2498_v25, %v2498_v25  ;;  %5040 = vrcp.f32 %v2624_v52 }
 0x1e0   :  { %v6362_v59 = vadd.f32 %v6230_v28, %v2336_v24  ;;  %v1760_v37 = vadd.f32 %v1759_v7, %v6198_v4  ;;  %v1808_v9 = vpop.f32.mrf.mxu3 }
 0x1e1   :  { %v1859_v16 = vpop.f32.mrf.mxu0  ;;  %v2626_v53 = vadd.f32 1.0, %v2530_v17  ;;  %v4462_v54 = vadd.f32 -1.0, %v2530_v17 }
 0x1e2   :  { %v2406_v44 = vmin.f32 %v6362_v59, 20.0  ;;  %v1809_v41 = vadd.f32 %v1808_v9, %v1760_v37 }
 0x1e3   :  { %v6366_v8 = vpop.f32.mrf.mxu1  ;;  %5042 = vrcp.f32 %v2626_v53  ;;  %v2594_v35 = vmul.f32 %v4462_v54, %v6338_v14  ;;  %v6980_v53 = vld [vmem:[#allocation18_spill] sm:$0xff]  ;;  %v6982_v14 = vld [vmem:[#allocation32_spill] sm:$0xff] }
 0x1e4   :  { %v5039_v0 = vpop.eup %5038  ;;  %v2460_v2 = vmul.f32 1.442695, %v2406_v44  ;;  %v1858_v12 = vadd.f32 %v1857_v19, %v1809_v41 }
 0x1e5   :  { %v2500_v61 = vadd.f32 1.0, %v5039_v0  ;;  %v5041_v4 = vpop.eup %5040 }
 0x1e6   :  { %5044 = vpow2.f32 %v2460_v2  ;;  %v2338_v58 = vmul.f32 %v6226_v11, %v1858_v12  ;;  %v2688_v26 = vmul.f32 %v5041_v4, %v2592_v3  ;;  %v6983_v2 = vld [vmem:[#allocation33_spill] sm:$0xff] }
 0x1e7   :  { %v1761_v47 = vpop.f32.mrf.mxu2  ;;  %v2532_v19 = vmul.f32 %v2500_v61, %v2500_v61 }
 0x1e8   :  { %v6370_v38 = vadd.f32 %v6230_v28, %v2338_v58  ;;  %v1762_v21 = vadd.f32 %v1761_v47, %v6211_v43  ;;  %v1810_v62 = vpop.f32.mrf.mxu3  ;;  %v6981_v43 = vld [vmem:[#allocation34_spill] sm:$0xff] }
 0x1e9   :  { %v5043_v46 = vpop.eup %5042  ;;  %v1862_v27 = vpop.f32.mrf.mxu0  ;;  %v2628_v41 = vadd.f32 1.0, %v2532_v19 }
 0x1ea   :  { %v2408_v25 = vmin.f32 %v6370_v38, 20.0  ;;  %v1811_v52 = vadd.f32 %v1810_v62, %v1762_v21  ;;  %v2690_v7 = vmul.f32 %v5043_v46, %v2594_v35 }
 0x1eb   :  { %v6376_v24 = vpop.f32.mrf.mxu1 }
 0x1ec   :  { %v5045_v17 = vpop.eup %5044  ;;  %v2464_v37 = vmul.f32 1.442695, %v2408_v25  ;;  %v1860_v9 = vadd.f32 %v1859_v16, %v1811_v52  ;;  %1959 = vmatmul.bf16.gmra.mxu2 %v6980_v53  ;;  %2057 = vmatmul.bf16.gmra.mxu0 %v6981_v43  ;;  %v6380_v49 = vpack.c.bf16 %v2690_v7, %v2688_v26  ;;  %v4464_v25 = vadd.f32 -1.0, %v2532_v19 }
 0x1ed   :  { %2008 = vmatmul.bf16.gmra.mxu3 %v6982_v14  ;;  %v2502_v44 = vadd.f32 1.0, %v5045_v17 }
 0x1ee   :  { %5046 = vpow2.f32 %v2464_v37  ;;  %v2340_v0 = vmul.f32 %v6226_v11, %v1860_v9  ;;  %2106 = vmatmul.bf16.gmra.mxu1 %v6983_v2  ;;  %v2596_v43 = vmul.f32 %v4464_v25, %v6347_v42  ;;  %v6986_v42 = vld [vmem:[#allocation36_spill] sm:$0xff] }
 0x1ef   :  { %v1764_v12 = vpop.f32.mrf.mxu2  ;;  %v2534_v36 = vmul.f32 %v2502_v44, %v2502_v44  ;;  %5048 = vrcp.f32 %v2628_v41 }
 0x1f0   :  { %v6386_v54 = vadd.f32 %v6230_v28, %v2340_v0  ;;  %v1765_v16 = vadd.f32 %v1764_v12, %v6214_v5  ;;  %v1813_v61 = vpop.f32.mrf.mxu3 }
 0x1f1   :  { %v1864_v58 = vpop.f32.mrf.mxu0  ;;  %v2630_v4 = vadd.f32 1.0, %v2534_v36  ;;  %v4466_v52 = vadd.f32 -1.0, %v2534_v36 }
 0x1f2   :  { %v2410_v47 = vmin.f32 %v6386_v54, 20.0  ;;  %v1814_v21 = vadd.f32 %v1813_v61, %v1765_v16 }
 0x1f3   :  { %v6390_v62 = vpop.f32.mrf.mxu1  ;;  %5050 = vrcp.f32 %v2630_v4  ;;  %v2598_v14 = vmul.f32 %v4466_v52, %v6362_v59 }
 0x1f4   :  { %v5047_v3 = vpop.eup %5046  ;;  %v2468_v35 = vmul.f32 1.442695, %v2410_v47  ;;  %v1863_v46 = vadd.f32 %v1862_v27, %v1814_v21  ;;  %v6984_v47 = vld [vmem:[#allocation19_spill] sm:$0xff] }
 0x1f5   :  { %v2504_v26 = vadd.f32 1.0, %v5047_v3  ;;  %v5049_v5 = vpop.eup %5048 }
 0x1f6   :  { %5052 = vpow2.f32 %v2468_v35  ;;  %v2342_v7 = vmul.f32 %v6226_v11, %v1863_v46  ;;  %v2692_v12 = vmul.f32 %v5049_v5, %v2596_v43  ;;  %v6987_v46 = vld [vmem:[#allocation37_spill] sm:$0xff] }
 0x1f7   :  { %v1766_v17 = vpop.f32.mrf.mxu2  ;;  %v2536_v27 = vmul.f32 %v2504_v26, %v2504_v26 }
 0x1f8   :  { %v6394_v37 = vadd.f32 %v6230_v28, %v2342_v7  ;;  %v1767_v9 = vadd.f32 %v1766_v17, %v6223_v40  ;;  %v1815_v53 = vpop.f32.mrf.mxu3  ;;  %v6985_v40 = vld [vmem:[#allocation38_spill] sm:$0xff] }
 0x1f9   :  { %v5051_v44 = vpop.eup %5050  ;;  %v2023_v19 = vpop.f32.mrf.mxu0  ;;  %v2632_v3 = vadd.f32 1.0, %v2536_v27 }
 0x1fa   :  { %v2412_v41 = vmin.f32 %v6394_v37, 20.0  ;;  %v1816_v0 = vadd.f32 %v1815_v53, %v1767_v9  ;;  %v2694_v36 = vmul.f32 %v5051_v44, %v2598_v14 }
 0x1fb   :  { %v2072_v2 = vpop.f32.mrf.mxu1 }
 0x1fc   :  { %v5053_v16 = vpop.eup %5052  ;;  %v2472_v61 = vmul.f32 1.442695, %v2412_v41  ;;  %v1865_v4 = vadd.f32 %v1864_v58, %v1816_v0  ;;  %2120 = vmatmul.bf16.vlgmr.msra.gmra.mxu2 %v6984_v47  ;;  %2218 = vmatmul.bf16.vlgmr.msra.gmra.mxu0 %v6985_v40  ;;  %v6402_v21 = vpack.c.bf16 %v2694_v36, %v2692_v12  ;;  %v4468_v41 = vadd.f32 -1.0, %v2536_v27 }
 0x1fd   :  { %2169 = vmatmul.bf16.vlgmr.msra.gmra.mxu3 %v6986_v42  ;;  %v2506_v59 = vadd.f32 1.0, %v5053_v16 }
 0x1fe   :  { %5054 = vpow2.f32 %v2472_v61  ;;  %v2344_v35 = vmul.f32 %v6226_v11, %v1865_v4  ;;  %2267 = vmatmul.bf16.vlgmr.msra.gmra.mxu1 %v6987_v46  ;;  %v2600_v4 = vmul.f32 %v4468_v41, %v6370_v38 }
 0x1ff   :  { %v1925_v25 = vpop.f32.mrf.mxu2  ;;  %v2538_v52 = vmul.f32 %v2506_v59, %v2506_v59  ;;  %5056 = vrcp.f32 %v2632_v3 }
 0x200   :  { %v6408_v26 = vadd.f32 %v6230_v28, %v2344_v35  ;;  %v1926_v58 = vadd.f32 %v1925_v25, %v6217_v1  ;;  %v1974_v7 = vpop.f32.mrf.mxu3 }
 0x201   :  { %v2025_v5 = vpop.f32.mrf.mxu0  ;;  %v2634_v17 = vadd.f32 1.0, %v2538_v52  ;;  %v4470_v0 = vadd.f32 -1.0, %v2538_v52 }
 0x202   :  { %v2414_v9 = vmin.f32 %v6408_v26, 20.0  ;;  %v1975_v53 = vadd.f32 %v1974_v7, %v1926_v58 }
 0x203   :  { %v2074_v43 = vpop.f32.mrf.mxu1  ;;  %5058 = vrcp.f32 %v2634_v17  ;;  %v2602_v47 = vmul.f32 %v4470_v0, %v6386_v54  ;;  %v6990_v54 = vld [vmem:[#allocation40_spill] sm:$0xff] }
 0x204   :  { %v5055_v14 = vpop.eup %5054  ;;  %v2476_v11 = vmul.f32 1.442695, %v2414_v9  ;;  %v2024_v44 = vadd.f32 %v2023_v19, %v1975_v53 }
 0x205   :  { %v2508_v12 = vadd.f32 1.0, %v5055_v14  ;;  %v5057_v36 = vpop.eup %5056 }
 0x206   :  { %5060 = vpow2.f32 %v2476_v11  ;;  %v6412_v28 = vadd.f32 %v2072_v2, %v2024_v44  ;;  %v2696_v19 = vmul.f32 %v5057_v36, %v2600_v4  ;;  %v6988_v2 = vld [vmem:[#allocation20_spill] sm:$0xff]  ;;  %v4534_v36 = vld [vmem:[#allocation7 + $0x70] sm:$0xf]  ;;  %v4866_v4 = vld [vmem:[#allocation7 + $0x74] sm:$0xf] }
 0x207   :  { %v1927_v1 = vpop.f32.mrf.mxu2  ;;  %v2540_v42 = vmul.f32 %v2508_v12, %v2508_v12 }
 0x208   :  { %v1928_v16 = vadd.f32 %v1927_v1, %v6228_v50  ;;  %v1976_v61 = vpop.f32.mrf.mxu3  ;;  %v6989_v50 = vld [vmem:[#allocation39_spill] sm:$0xff]  ;;  %v4867_v1 = vld [vmem:[#allocation7 + $0x74] sm:$0xf0] }
 0x209   :  { %v5059_v40 = vpop.eup %5058  ;;  %v2028_v59 = vpop.f32.mrf.mxu0  ;;  %v2636_v58 = vadd.f32 1.0, %v2540_v42  ;;  %v4472_v41 = vadd.f32 -1.0, %v2540_v42 }
 0x20a   :  { %v1977_v3 = vadd.f32 %v1976_v61, %v1928_v16  ;;  %v2698_v27 = vmul.f32 %v5059_v40, %v2602_v47  ;;  %v4598_v16 = vld [vmem:[#allocation7 + $0xf0] sm:$0xf]  ;;  %v4535_v61 = vor.u32 %v4867_v1, %v4534_v36  ;;  %v4536_v47 = vld [vmem:[#allocation7 + $0x78] sm:$0xf0] }
 0x20b   :  { %v2077_v35 = vpop.f32.mrf.mxu1  ;;  %5062 = vrcp.f32 %v2636_v58 }
 0x20c   :  { %v5061_v46 = vpop.eup %5060  ;;  %v2026_v25 = vadd.f32 %v2025_v5, %v1977_v3  ;;  %2125 = vmatmul.bf16.gmra.mxu2 %v6988_v2  ;;  %2223 = vmatmul.bf16.gmra.mxu0 %v6001_v51  ;;  %v6419_v52 = vpack.c.bf16 %v2698_v27, %v2696_v19  ;;  %v4539_v3 = vor.u32 %v4866_v4, %v4536_v47  ;;  %v4600_v19 = vld [vmem:[#allocation7 + $0xf8] sm:$0xf0]  ;;  %v4590_v4 = vld [vmem:[#allocation7 + $0xe0] sm:$0xf]  ;;  %v4881_v47 = vld [vmem:[#allocation7 + $0xe4] sm:$0xf0] }
 0x20d   :  { %2174 = vmatmul.bf16.gmra.mxu3 %v6989_v50  ;;  %v2510_v38 = vadd.f32 1.0, %v5061_v46  ;;  %2912 = vmatpush.bf16.msrb.mxu2 %v4535_v61  ;;  %v2604_v50 = vmul.f32 %v4472_v41, %v6394_v37  ;;  %v4526_v61 = vld [vmem:[#allocation7 + $0x60] sm:$0xf] }
 0x20e   :  { %2272 = vmatmul.bf16.gmra.mxu1 %v6990_v54  ;;  %v6423_v7 = vadd.f32 %v2074_v43, %v2026_v25  ;;  %v4883_v43 = vld [vmem:[#allocation7 + $0xf4] sm:$0xf0]  ;;  %3010 = vmatpush.bf16.msrb.mxu0 %v4539_v3  ;;  %v4528_v3 = vld [vmem:[#allocation7 + $0x68] sm:$0xf0] }
 0x20f   :  { %v1930_v17 = vpop.f32.mrf.mxu2  ;;  %v2542_v9 = vmul.f32 %v2510_v38, %v2510_v38  ;;  %v4599_v40 = vor.u32 %v4883_v43, %v4598_v16  ;;  %v4865_v43 = vld [vmem:[#allocation7 + $0x64] sm:$0xf0] }
 0x210   :  { %v1931_v53 = vadd.f32 %v1930_v17, %v6238_v60  ;;  %v1979_v14 = vpop.f32.mrf.mxu3  ;;  %v4882_v60 = vld [vmem:[#allocation7 + $0xf4] sm:$0xf] }
 0x211   :  { %v2030_v5 = vpop.f32.mrf.mxu0  ;;  %v2638_v11 = vadd.f32 1.0, %v2542_v9  ;;  %v4474_v0 = vadd.f32 -1.0, %v2542_v9  ;;  %v5063_v46 = vpop.eup %5062  ;;  %v4603_v42 = vor.u32 %v4882_v60, %v4600_v19  ;;  %2961 = vmatpush.bf16.msrb.mxu3 %v4599_v40  ;;  %v4864_v40 = vld [vmem:[#allocation7 + $0x64] sm:$0xf]  ;;  %v4591_v60 = vor.u32 %v4881_v47, %v4590_v4  ;;  %v4878_v47 = vld [vmem:[#allocation7 + $0xd4] sm:$0xf] }
 0x212   :  { %v1980_v44 = vadd.f32 %v1979_v14, %v1931_v53  ;;  %v2700_v9 = vmul.f32 %v5063_v46, %v2604_v50  ;;  %v4531_v19 = vor.u32 %v4864_v40, %v4528_v3  ;;  %v4880_v46 = vld [vmem:[#allocation7 + $0xe4] sm:$0xf] }
 0x213   :  { %v2079_v51 = vpop.f32.mrf.mxu1  ;;  %5064 = vrcp.f32 %v2638_v11  ;;  %v2606_v38 = vmul.f32 %v4474_v0, %v6408_v26  ;;  %3059 = vmatpush.bf16.msrb.mxu1 %v4603_v42  ;;  %v6991_v11 = vld [vmem:[#allocation21_spill] sm:$0xff] }
 0x214   :  { %v2029_v12 = vadd.f32 %v2028_v59, %v1980_v44  ;;  %v6992_v44 = vld [vmem:[#allocation41_spill] sm:$0xff]  ;;  %3011 = vmatpush.bf16.msrb.mxu0 %v4531_v19 }
 0x215   :  { %2962 = vmatpush.bf16.msrb.mxu3 %v4591_v60 }
 0x216   :  { %v6426_v27 = vadd.f32 %v2077_v35, %v2029_v12  ;;  %v6993_v12 = vld [vmem:[#allocation42_spill] sm:$0xff] }
 0x217   :  { %v1932_v25 = vpop.f32.mrf.mxu2 }
 0x218   :  { %v1933_v2 = vadd.f32 %v1932_v25, %v6250_v63  ;;  %v1981_v59 = vpop.f32.mrf.mxu3 }
 0x219   :  { %v5065_v58 = vpop.eup %5064  ;;  %v2033_v54 = vpop.f32.mrf.mxu0 }
 0x21a   :  { %v1982_v17 = vadd.f32 %v1981_v59, %v1933_v2  ;;  %v2702_v35 = vmul.f32 %v5065_v58, %v2606_v38 }
 0x21b   :  { %v2082_v53 = vpop.f32.mrf.mxu1 }
 0x21c   :  { %v2031_v14 = vadd.f32 %v2030_v5, %v1982_v17  ;;  %2130 = vmatmul.bf16.gmra.mxu2 %v6991_v11  ;;  %2228 = vmatmul.bf16.gmra.mxu0 %v6035_v33  ;;  %v6433_v63 = vpack.c.bf16 %v2702_v35, %v2700_v9  ;;  %v4527_v33 = vor.u32 %v4865_v43, %v4526_v61  ;;  %v6994_v17 = vld [vmem:[#allocation22_spill] sm:$0xff]  ;;  %v6995_v9 = vld [vmem:[#allocation43_spill] sm:$0xff]  ;;  %v6996_v35 = vld [vmem:[#allocation44_spill] sm:$0xff] }
 0x21d   :  { %2179 = vmatmul.bf16.gmra.mxu3 %v6992_v44  ;;  %v4879_v61 = vld [vmem:[#allocation7 + $0xd4] sm:$0xf0]  ;;  %v4520_v43 = vld [vmem:[#allocation7 + $0x58] sm:$0xf0] }
 0x21e   :  { %2277 = vmatmul.bf16.gmra.mxu1 %v6993_v12  ;;  %v6437_v37 = vadd.f32 %v2079_v51, %v2031_v14  ;;  %v4592_v51 = vld [vmem:[#allocation7 + $0xe8] sm:$0xf0]  ;;  %2913 = vmatpush.bf16.msrb.mxu2 %v4527_v33 }
 0x21f   :  { %v1935_v26 = vpop.f32.mrf.mxu2 }
 0x220   :  { %v1936_v41 = vadd.f32 %v1935_v26, %v6258_v30  ;;  %v1984_v0 = vpop.f32.mrf.mxu3  ;;  %v4595_v30 = vor.u32 %v4880_v46, %v4592_v51 }
 0x221   :  { %v2035_v36 = vpop.f32.mrf.mxu0 }
 0x222   :  { %v1985_v1 = vadd.f32 %v1984_v0, %v1936_v41  ;;  %3060 = vmatpush.bf16.msrb.mxu1 %v4595_v30  ;;  %v4518_v0 = vld [vmem:[#allocation7 + $0x50] sm:$0xf] }
 0x223   :  { %v2084_v16 = vpop.f32.mrf.mxu1 }
 0x224   :  { %v2034_v5 = vadd.f32 %v2033_v54, %v1985_v1  ;;  %v4582_v1 = vld [vmem:[#allocation7 + $0xd0] sm:$0xf] }
 0x225   :  { %v4583_v4 = vor.u32 %v4879_v61, %v4582_v1  ;;  %v4512_v1 = vld [vmem:[#allocation7 + $0x48] sm:$0xf0] }
 0x226   :  { %v6440_v25 = vadd.f32 %v2082_v53, %v2034_v5 }
 0x227   :  { %v1937_v42 = vpop.f32.mrf.mxu2  ;;  %2963 = vmatpush.bf16.msrb.mxu3 %v4583_v4 }
 0x228   :  { %v1938_v2 = vadd.f32 %v1937_v42, %v6270_v10  ;;  %v1986_v59 = vpop.f32.mrf.mxu3 }
 0x229   :  { %v2038_v50 = vpop.f32.mrf.mxu0 }
 0x22a   :  { %v1987_v38 = vadd.f32 %v1986_v59, %v1938_v2  ;;  %v6997_v2 = vld [vmem:[#allocation23_spill] sm:$0xff] }
 0x22b   :  { %v2087_v58 = vpop.f32.mrf.mxu1  ;;  %v6998_v59 = vld [vmem:[#allocation47_spill] sm:$0xff] }
 0x22c   :  { %v2036_v54 = vadd.f32 %v2035_v36, %v1987_v38  ;;  %2135 = vmatmul.bf16.gmra.mxu2 %v6994_v17  ;;  %2233 = vmatmul.bf16.gmra.mxu0 %v6069_v22  ;;  %v4863_v36 = vld [vmem:[#allocation7 + $0x54] sm:$0xf0]  ;;  %v4862_v22 = vld [vmem:[#allocation7 + $0x54] sm:$0xf] }
 0x22d   :  { %2184 = vmatmul.bf16.gmra.mxu3 %v6995_v9  ;;  %v4519_v5 = vor.u32 %v4863_v36, %v4518_v0  ;;  %v4523_v33 = vor.u32 %v4862_v22, %v4520_v43  ;;  %v7000_v38 = vld [vmem:[#allocation46_spill] sm:$0xff]  ;;  %v4877_v0 = vld [vmem:[#allocation7 + $0xc4] sm:$0xf0]  ;;  %v4860_v36 = vld [vmem:[#allocation7 + $0x44] sm:$0xf] }
 0x22e   :  { %2282 = vmatmul.bf16.gmra.mxu1 %v6996_v35  ;;  %v6447_v53 = vadd.f32 %v2084_v16, %v2036_v54  ;;  %v4584_v16 = vld [vmem:[#allocation7 + $0xd8] sm:$0xf0]  ;;  %v4515_v61 = vor.u32 %v4860_v36, %v4512_v1  ;;  %v4576_v22 = vld [vmem:[#allocation7 + $0xc8] sm:$0xf0]  ;;  %v4486_v1 = vld [vmem:[#allocation7 + $0x10] sm:$0xf] }
 0x22f   :  { %v1940_v14 = vpop.f32.mrf.mxu2  ;;  %2914 = vmatpush.bf16.msrb.mxu2 %v4519_v5  ;;  %3012 = vmatpush.bf16.msrb.mxu0 %v4523_v33 }
 0x230   :  { %v1941_v10 = vadd.f32 %v1940_v14, %v6280_v39  ;;  %v1989_v11 = vpop.f32.mrf.mxu3  ;;  %v4587_v39 = vor.u32 %v4878_v47, %v4584_v16 }
 0x231   :  { %v2040_v44 = vpop.f32.mrf.mxu0 }
 0x232   :  { %v1990_v12 = vadd.f32 %v1989_v11, %v1941_v10  ;;  %3061 = vmatpush.bf16.msrb.mxu1 %v4587_v39  ;;  %v4510_v11 = vld [vmem:[#allocation7 + $0x40] sm:$0xf] }
 0x233   :  { %v2089_v26 = vpop.f32.mrf.mxu1  ;;  %3013 = vmatpush.bf16.msrb.mxu0 %v4515_v61  ;;  %v4854_v61 = vld [vmem:[#allocation7 + $0x14] sm:$0xf] }
 0x234   :  { %v2039_v41 = vadd.f32 %v2038_v50, %v1990_v12  ;;  %v6999_v50 = vld [vmem:[#allocation45_spill] sm:$0xff]  ;;  %v4574_v12 = vld [vmem:[#allocation7 + $0xc0] sm:$0xf] }
 0x235   :  { %v4575_v5 = vor.u32 %v4877_v0, %v4574_v12 }
 0x236   :  { %v6450_v40 = vadd.f32 %v2087_v58, %v2039_v41 }
 0x237   :  { %v1942_v3 = vpop.f32.mrf.mxu2  ;;  %2964 = vmatpush.bf16.msrb.mxu3 %v4575_v5  ;;  %v4855_v5 = vld [vmem:[#allocation7 + $0x14] sm:$0xf0] }
 0x238   :  { %v1943_v60 = vadd.f32 %v1942_v3, %v6294_v57  ;;  %v1991_v19 = vpop.f32.mrf.mxu3 }
 0x239   :  { %v2043_v46 = vpop.f32.mrf.mxu0 }
 0x23a   :  { %v1992_v51 = vadd.f32 %v1991_v19, %v1943_v60  ;;  %v4502_v60 = vld [vmem:[#allocation7 + $0x30] sm:$0xf]  ;;  %v4859_v19 = vld [vmem:[#allocation7 + $0x34] sm:$0xf0] }
 0x23b   :  { %v2092_v42 = vpop.f32.mrf.mxu1 }
 0x23c   :  { %v2041_v30 = vadd.f32 %v2040_v44, %v1992_v51  ;;  %2140 = vmatmul.bf16.gmra.mxu2 %v6997_v2  ;;  %2238 = vmatmul.bf16.gmra.mxu0 %v6998_v59  ;;  %v4861_v44 = vld [vmem:[#allocation7 + $0x44] sm:$0xf0]  ;;  %v4503_v2 = vor.u32 %v4859_v19, %v4502_v60  ;;  %v4504_v59 = vld [vmem:[#allocation7 + $0x38] sm:$0xf0] }
 0x23d   :  { %2189 = vmatmul.bf16.gmra.mxu3 %v6999_v50  ;;  %v4511_v41 = vor.u32 %v4861_v44, %v4510_v11  ;;  %v7003_v50 = vld [vmem:[#allocation48_spill] sm:$0xff]  ;;  %v4496_v44 = vld [vmem:[#allocation7 + $0x28] sm:$0xf0]  ;;  %v4568_v60 = vld [vmem:[#allocation7 + $0xb8] sm:$0xf0] }
 0x23e   :  { %2287 = vmatmul.bf16.gmra.mxu1 %v7000_v38  ;;  %v6457_v58 = vadd.f32 %v2089_v26, %v2041_v30  ;;  %v4876_v26 = vld [vmem:[#allocation7 + $0xc4] sm:$0xf]  ;;  %v7001_v30 = vld [vmem:[#allocation27_spill] sm:$0xff]  ;;  %v7004_v38 = vld [vmem:[#allocation49_spill] sm:$0xff] }
 0x23f   :  { %v1945_v54 = vpop.f32.mrf.mxu2  ;;  %2915 = vmatpush.bf16.msrb.mxu2 %v4511_v41  ;;  %v4579_v4 = vor.u32 %v4876_v26, %v4576_v22  ;;  %v4566_v22 = vld [vmem:[#allocation7 + $0xb0] sm:$0xf] }
 0x240   :  { %v1946_v57 = vadd.f32 %v1945_v54, %v6304_v48  ;;  %v1994_v17 = vpop.f32.mrf.mxu3 }
 0x241   :  { %v2045_v9 = vpop.f32.mrf.mxu0  ;;  %3062 = vmatpush.bf16.msrb.mxu1 %v4579_v4  ;;  %v4487_v4 = vor.u32 %v4855_v5, %v4486_v1 }
 0x242   :  { %v1995_v35 = vadd.f32 %v1994_v17, %v1946_v57  ;;  %v4494_v57 = vld [vmem:[#allocation7 + $0x20] sm:$0xf]  ;;  %v4857_v17 = vld [vmem:[#allocation7 + $0x24] sm:$0xf0] }
 0x243   :  { %v6460_v14 = vpop.f32.mrf.mxu1  ;;  %2916 = vmatpush.bf16.msrb.mxu2 %v4503_v2  ;;  %v4495_v11 = vor.u32 %v4857_v17, %v4494_v57  ;;  %v4853_v2 = vld [vmem:[#allocation7 + $0x4] sm:$0xf0] }
 0x244   :  { %v2044_v10 = vadd.f32 %v2043_v46, %v1995_v35  ;;  %v4858_v46 = vld [vmem:[#allocation7 + $0x34] sm:$0xf]  ;;  %v4856_v35 = vld [vmem:[#allocation7 + $0x24] sm:$0xf] }
 0x245   :  { %v4499_v41 = vor.u32 %v4856_v35, %v4496_v44 }
 0x246   :  { %v6462_v43 = vadd.f32 %v2092_v42, %v2044_v10  ;;  %v7002_v42 = vld [vmem:[#allocation50_spill] sm:$0xff] }
 0x247   :  { %v1947_v48 = vpop.f32.mrf.mxu2  ;;  %2917 = vmatpush.bf16.msrb.mxu2 %v4495_v11 }
 0x248   :  { %v1948_v33 = vadd.f32 %v1947_v48, %v6318_v34  ;;  %v1996_v47 = vpop.f32.mrf.mxu3  ;;  %v4507_v34 = vor.u32 %v4858_v46, %v4504_v59  ;;  %v4875_v48 = vld [vmem:[#allocation7 + $0xb4] sm:$0xf0]  ;;  %v4852_v59 = vld [vmem:[#allocation7 + $0x4] sm:$0xf] }
 0x249   :  { %v2048_v16 = vpop.f32.mrf.mxu0 }
 0x24a   :  { %v1997_v3 = vadd.f32 %v1996_v47, %v1948_v33  ;;  %3014 = vmatpush.bf16.msrb.mxu0 %v4507_v34  ;;  %v4488_v33 = vld [vmem:[#allocation7 + $0x18] sm:$0xf0]  ;;  %v4567_v47 = vor.u32 %v4875_v48, %v4566_v22 }
 0x24b   :  { %v2097_v39 = vpop.f32.mrf.mxu1  ;;  %2918 = vmatpush.bf16.msrb.mxu2 %v4487_v4 }
 0x24c   :  { %v6465_v51 = vadd.f32 %v2045_v9, %v1997_v3  ;;  %2145 = vmatmul.bf16.gmra.mxu2 %v7001_v30  ;;  %2243 = vmatmul.bf16.gmra.mxu0 %v7002_v42  ;;  %v4874_v3 = vld [vmem:[#allocation7 + $0xb4] sm:$0xf]  ;;  %v4478_v42 = vld [vmem:[#allocation7] sm:$0xf] }
 0x24d   :  { %2194 = vmatmul.bf16.gmra.mxu3 %v7003_v50  ;;  %v4571_v19 = vor.u32 %v4874_v3, %v4568_v60  ;;  %v4479_v34 = vor.u32 %v4853_v2, %v4478_v42 }
 0x24e   :  { %2292 = vmatmul.bf16.gmra.mxu1 %v7004_v38  ;;  %3015 = vmatpush.bf16.msrb.mxu0 %v4499_v41  ;;  %v4480_v38 = vld [vmem:[#allocation7 + $0x8] sm:$0xf0] }
 0x24f   :  { %v1950_v54 = vpop.f32.mrf.mxu2  ;;  %2965 = vmatpush.bf16.msrb.mxu3 %v4567_v47  ;;  %3063 = vmatpush.bf16.msrb.mxu1 %v4571_v19  ;;  %v4483_v57 = vor.u32 %v4852_v59, %v4480_v38 }
 0x250   :  { %v1951_v9 = vadd.f32 %v1950_v54, %v6328_v55  ;;  %v1999_v10 = vpop.f32.mrf.mxu3  ;;  %v4491_v55 = vor.u32 %v4854_v61, %v4488_v33  ;;  %2919 = vmatpush.bf16.msrb.mxu2 %v4479_v34 }
 0x251   :  { %v2050_v12 = vpop.f32.mrf.mxu0 }
 0x252   :  { %v2000_v0 = vadd.f32 %v1999_v10, %v1951_v9  ;;  %3016 = vmatpush.bf16.msrb.mxu0 %v4491_v55  ;;  %v7005_v9 = vld [vmem:[#allocation31_spill] sm:$0xff] }
 0x253   :  { %v6472_v36 = vpop.f32.mrf.mxu1 }
 0x254   :  { %v2049_v26 = vadd.f32 %v2048_v16, %v2000_v0 }
 0x256   :  { %v6474_v46 = vadd.f32 %v2097_v39, %v2049_v26  ;;  %3017 = vmatpush.bf16.msrb.mxu0 %v4483_v57  ;;  %v4558_v57 = vld [vmem:[#allocation7 + $0xa0] sm:$0xf] }
 0x257   :  { %v1952_v30 = vpop.f32.mrf.mxu2 }
 0x258   :  { %v1953_v16 = vadd.f32 %v1952_v30, %v6342_v45  ;;  %v2001_v50 = vpop.f32.mrf.mxu3 }
 0x259   :  { %v2053_v54 = vpop.f32.mrf.mxu0 }
 0x25a   :  { %v2002_v17 = vadd.f32 %v2001_v50, %v1953_v16 }
 0x25b   :  { %v2102_v35 = vpop.f32.mrf.mxu1 }
 0x25c   :  { %v6477_v39 = vadd.f32 %v2050_v12, %v2002_v17  ;;  %2150 = vmatmul.bf16.gmra.mxu2 %v7005_v9  ;;  %2248 = vmatmul.bf16.gmra.mxu0 %v6171_v20  ;;  %v4873_v17 = vld [vmem:[#allocation7 + $0xa4] sm:$0xf0] }
 0x25d   :  { %2199 = vmatmul.bf16.gmra.mxu3 %v6167_v6 }
 0x25e   :  { %2297 = vmatmul.bf16.gmra.mxu1 %v6169_v31  ;;  %v7006_v31 = vld [vmem:[#allocation35_spill] sm:$0xff] }
 0x25f   :  { %v1955_v45 = vpop.f32.mrf.mxu2 }
 0x260   :  { %v1956_v10 = vadd.f32 %v1955_v45, %v6352_v18  ;;  %v2004_v11 = vpop.f32.mrf.mxu3  ;;  %v7007_v18 = vld [vmem:[#allocation51_spill] sm:$0xff] }
 0x261   :  { %v2055_v44 = vpop.f32.mrf.mxu0  ;;  %v5258_v45 = vld [vmem:[#allocation4] sm:$0x3] }
 0x262   :  { %v2005_v41 = vadd.f32 %v2004_v11, %v1956_v10  ;;  %v6506_v10 = vperm.slane %v5258_v45, 1  ;;  %v4559_v11 = vor.u32 %v4873_v17, %v4558_v57 }
 0x263   :  { %v6484_v0 = vpop.f32.mrf.mxu1 }
 0x264   :  { %v2054_v1 = vadd.f32 %v2053_v54, %v2005_v41  ;;  %2966 = vmatpush.bf16.msrb.mxu3 %v4559_v11 }
 0x266   :  { %v6486_v5 = vadd.f32 %v2102_v35, %v2054_v1 }
 0x267   :  { %v1957_v12 = vpop.f32.mrf.mxu2 }
 0x268   :  { %v1958_v61 = vadd.f32 %v1957_v12, %v6366_v8  ;;  %v2006_v26 = vpop.f32.mrf.mxu3  ;;  %v5259_v12 = vld [vmem:[#allocation6] sm:$0x3] }
 0x269   :  { %v2058_v20 = vpop.f32.mrf.mxu0 }
 0x26a   :  { %v2007_v22 = vadd.f32 %v2006_v26, %v1958_v61  ;;  %v4550_v61 = vld [vmem:[#allocation7 + $0x90] sm:$0xf]  ;;  %v4871_v26 = vld [vmem:[#allocation7 + $0x94] sm:$0xf0] }
 0x26b   :  { %v2107_v6 = vpop.f32.mrf.mxu1 }
 0x26c   :  { %v6489_v48 = vadd.f32 %v2055_v44, %v2007_v22  ;;  %2155 = vmatmul.bf16.gmra.mxu2 %v7006_v31  ;;  %2253 = vmatmul.bf16.gmra.mxu0 %v6205_v15  ;;  %v4560_v44 = vld [vmem:[#allocation7 + $0xa8] sm:$0xf0] }
 0x26d   :  { %2204 = vmatmul.bf16.gmra.mxu3 %v6201_v29 }
 0x26e   :  { %2302 = vmatmul.bf16.gmra.mxu1 %v7007_v18  ;;  %v4551_v18 = vor.u32 %v4871_v26, %v4550_v61 }
 0x26f   :  { %v1960_v4 = vpop.f32.mrf.mxu2 }
 0x270   :  { %v1961_v33 = vadd.f32 %v1960_v4, %v6376_v24  ;;  %v2009_v47 = vpop.f32.mrf.mxu3  ;;  %v4552_v4 = vld [vmem:[#allocation7 + $0x98] sm:$0xf0]  ;;  %2967 = vmatpush.bf16.msrb.mxu3 %v4551_v18 }
 0x271   :  { %v2060_v55 = vpop.f32.mrf.mxu0 }
 0x272   :  { %v2010_v8 = vadd.f32 %v2009_v47, %v1961_v33 }
 0x273   :  { %v6496_v3 = vpop.f32.mrf.mxu1 }
 0x274   :  { %v2059_v60 = vadd.f32 %v2058_v20, %v2010_v8  ;;  %v4870_v20 = vld [vmem:[#allocation7 + $0x94] sm:$0xf] }
 0x275   :  { %v4555_v47 = vor.u32 %v4870_v20, %v4552_v4 }
 0x276   :  { %v6498_v19 = vadd.f32 %v2107_v6, %v2059_v60 }
 0x277   :  { %v1962_v30 = vpop.f32.mrf.mxu2 }
 0x278   :  { %v1963_v42 = vadd.f32 %v1962_v30, %v6390_v62  ;;  %v2011_v2 = vpop.f32.mrf.mxu3  ;;  %v4872_v62 = vld [vmem:[#allocation7 + $0xa4] sm:$0xf]  ;;  %v4542_v30 = vld [vmem:[#allocation7 + $0x80] sm:$0xf] }
 0x279   :  { %v2219_v15 = vpop.f32.mrf.mxu0  ;;  %v4563_v41 = vor.u32 %v4872_v62, %v4560_v44 }
 0x27a   :  { %v2012_v59 = vadd.f32 %v2011_v2, %v1963_v42  ;;  %v4869_v42 = vld [vmem:[#allocation7 + $0x84] sm:$0xf0]  ;;  %v4868_v2 = vld [vmem:[#allocation7 + $0x84] sm:$0xf] }
 0x27b   :  { %v2268_v29 = vpop.f32.mrf.mxu1  ;;  %3064 = vmatpush.bf16.msrb.mxu1 %v4563_v41 }
 0x27c   :  { %v6501_v16 = vadd.f32 %v2060_v55, %v2012_v59  ;;  %2920 = vmatmul.bf16.vlgmr.msrb.gmra.mxu2 %v6284_v32  ;;  %3018 = vmatmul.bf16.vlgmr.msrb.gmra.mxu0 %v6284_v32  ;;  %v6508_v32 = vperm.slane %v5259_v12, 1 }
 0x27f   :  { %v2121_v24 = vpop.f32.mrf.mxu2  ;;  %3065 = vmatpush.bf16.msrb.mxu1 %v4555_v47 }
 0x280   :  { %v2122_v50 = vadd.f32 %v2121_v24, %v6412_v28  ;;  %v2170_v34 = vpop.f32.mrf.mxu3 }
 0x281   :  { %v2221_v38 = vpop.f32.mrf.mxu0 }
 0x282   :  { %v2171_v54 = vadd.f32 %v2170_v34, %v2122_v50 }
 0x283   :  { %v2270_v35 = vpop.f32.mrf.mxu1 }
 0x284   :  { %v2220_v9 = vadd.f32 %v2219_v15, %v2171_v54 }
 0x286   :  { %v2269_v1 = vadd.f32 %v2268_v29, %v2220_v9  ;;  %v4544_v29 = vld [vmem:[#allocation7 + $0x88] sm:$0xf0] }
 0x287   :  { %v2123_v28 = vpop.f32.mrf.mxu2  ;;  %v4547_v24 = vor.u32 %v4868_v2, %v4544_v29 }
 0x288   :  { %v2315_v22 = vmul.f32 %v6506_v10, %v2269_v1  ;;  %v2124_v6 = vadd.f32 %v2123_v28, %v6423_v7  ;;  %v2172_v31 = vpop.f32.mrf.mxu3  ;;  %v4543_v7 = vor.u32 %v4869_v42, %v4542_v30 }
 0x289   :  { %v2224_v33 = vpop.f32.mrf.mxu0  ;;  %3066 = vmatpush.bf16.msrb.mxu1 %v4547_v24 }
 0x28a   :  { %v6513_v55 = vadd.f32 %v6508_v32, %v2315_v22  ;;  %v2173_v8 = vadd.f32 %v2172_v31, %v2124_v6  ;;  %2968 = vmatpush.bf16.msrb.mxu3 %v4543_v7 }
 0x28b   :  { %v2273_v60 = vpop.f32.mrf.mxu1 }
 0x28c   :  { %v2385_v15 = vmin.f32 %v6513_v55, 20.0  ;;  %v2222_v59 = vadd.f32 %v2221_v38, %v2173_v8  ;;  %2925 = vmatmul.bf16.gmra.mxu2 %v6308_v13  ;;  %3023 = vmatmul.bf16.gmra.mxu0 %v6308_v13 }
 0x28e   :  { %v2418_v50 = vmul.f32 1.442695, %v2385_v15  ;;  %v2271_v34 = vadd.f32 %v2270_v35, %v2222_v59 }
 0x28f   :  { %v2126_v54 = vpop.f32.mrf.mxu2 }
 0x290   :  { %5066 = vpow2.f32 %v2418_v50  ;;  %v2317_v57 = vmul.f32 %v6506_v10, %v2271_v34  ;;  %v2127_v17 = vadd.f32 %v2126_v54, %v6426_v27  ;;  %v2175_v62 = vpop.f32.mrf.mxu3 }
 0x291   :  { %v2226_v9 = vpop.f32.mrf.mxu0 }
 0x292   :  { %v2355_v38 = vadd.f32 %v6508_v32, %v2317_v57  ;;  %v2176_v45 = vadd.f32 %v2175_v62, %v2127_v17 }
 0x293   :  { %v2275_v11 = vpop.f32.mrf.mxu1 }
 0x294   :  { %v2387_v13 = vmin.f32 %v2355_v38, 20.0  ;;  %v2225_v44 = vadd.f32 %v2224_v33, %v2176_v45 }
 0x296   :  { %v5067_v41 = vpop.eup %5066  ;;  %v2422_v1 = vmul.f32 1.442695, %v2387_v13  ;;  %v2274_v12 = vadd.f32 %v2273_v60, %v2225_v44 }
 0x297   :  { %v2481_v35 = vadd.f32 1.0, %v5067_v41  ;;  %v2128_v28 = vpop.f32.mrf.mxu2 }
 0x298   :  { %5068 = vpow2.f32 %v2422_v1  ;;  %v2319_v61 = vmul.f32 %v6506_v10, %v2274_v12  ;;  %v2129_v26 = vadd.f32 %v2128_v28, %v6437_v37  ;;  %v2177_v20 = vpop.f32.mrf.mxu3 }
 0x299   :  { %v2229_v27 = vpop.f32.mrf.mxu0  ;;  %v2513_v31 = vmul.f32 %v2481_v35, %v2481_v35 }
 0x29a   :  { %v6524_v22 = vadd.f32 %v6508_v32, %v2319_v61  ;;  %v2178_v6 = vadd.f32 %v2177_v20, %v2129_v26 }
 0x29b   :  { %v2278_v18 = vpop.f32.mrf.mxu1  ;;  %v2609_v30 = vadd.f32 1.0, %v2513_v31  ;;  %v4445_v62 = vadd.f32 -1.0, %v2513_v31 }
 0x29c   :  { %v2389_v4 = vmin.f32 %v6524_v22, 20.0  ;;  %v2227_v33 = vadd.f32 %v2226_v9, %v2178_v6  ;;  %2930 = vmatmul.bf16.gmra.mxu2 %v6332_v56  ;;  %3028 = vmatmul.bf16.gmra.mxu0 %v6332_v56 }
 0x29d   :  { %v2577_v28 = vmul.f32 %v4445_v62, %v6513_v55 }
 0x29e   :  { %v5069_v47 = vpop.eup %5068  ;;  %v2426_v8 = vmul.f32 1.442695, %v2389_v4  ;;  %v2276_v60 = vadd.f32 %v2275_v11, %v2227_v33 }
 0x29f   :  { %v2483_v37 = vadd.f32 1.0, %v5069_v47  ;;  %v2131_v42 = vpop.f32.mrf.mxu2 }
 0x2a0   :  { %5070 = vpow2.f32 %v2426_v8  ;;  %v2321_v2 = vmul.f32 %v6506_v10, %v2276_v60  ;;  %v2132_v15 = vadd.f32 %v2131_v42, %v6440_v25  ;;  %v2180_v59 = vpop.f32.mrf.mxu3 }
 0x2a1   :  { %v2515_v7 = vmul.f32 %v2483_v37, %v2483_v37  ;;  %v2231_v29 = vpop.f32.mrf.mxu0  ;;  %5072 = vrcp.f32 %v2609_v30 }
 0x2a2   :  { %v6532_v24 = vadd.f32 %v6508_v32, %v2321_v2  ;;  %v2181_v50 = vadd.f32 %v2180_v59, %v2132_v15 }
 0x2a3   :  { %v2611_v56 = vadd.f32 1.0, %v2515_v7  ;;  %v2280_v34 = vpop.f32.mrf.mxu1  ;;  %v4447_v9 = vadd.f32 -1.0, %v2515_v7 }
 0x2a4   :  { %v2391_v54 = vmin.f32 %v6532_v24, 20.0  ;;  %v2230_v57 = vadd.f32 %v2229_v27, %v2181_v50 }
 0x2a5   :  { %5074 = vrcp.f32 %v2611_v56  ;;  %v2579_v61 = vmul.f32 %v4447_v9, %v2355_v38 }
 0x2a6   :  { %v5071_v17 = vpop.eup %5070  ;;  %v2430_v45 = vmul.f32 1.442695, %v2391_v54  ;;  %v2279_v11 = vadd.f32 %v2278_v18, %v2230_v57 }
 0x2a7   :  { %v2133_v25 = vpop.f32.mrf.mxu2  ;;  %v2485_v13 = vadd.f32 1.0, %v5071_v17  ;;  %v5073_v12 = vpop.eup %5072 }
 0x2a8   :  { %5076 = vpow2.f32 %v2430_v45  ;;  %v2323_v44 = vmul.f32 %v6506_v10, %v2279_v11  ;;  %v2134_v41 = vadd.f32 %v2133_v25, %v6447_v53  ;;  %v2182_v1 = vpop.f32.mrf.mxu3  ;;  %v2673_v18 = vmul.f32 %v5073_v12, %v2577_v28 }
 0x2a9   :  { %v2234_v35 = vpop.f32.mrf.mxu0  ;;  %v2517_v31 = vmul.f32 %v2485_v13, %v2485_v13 }
 0x2aa   :  { %v6539_v26 = vadd.f32 %v6508_v32, %v2323_v44  ;;  %v2183_v20 = vadd.f32 %v2182_v1, %v2134_v41 }
 0x2ab   :  { %v5075_v27 = vpop.eup %5074  ;;  %v2283_v6 = vpop.f32.mrf.mxu1  ;;  %v2613_v37 = vadd.f32 1.0, %v2517_v31 }
 0x2ac   :  { %v2675_v4 = vmul.f32 %v5075_v27, %v2579_v61  ;;  %v2393_v33 = vmin.f32 %v6539_v26, 20.0  ;;  %v2232_v47 = vadd.f32 %v2231_v29, %v2183_v20  ;;  %2935 = vmatmul.bf16.gmra.mxu2 %v6356_v23  ;;  %3033 = vmatmul.bf16.gmra.mxu0 %v6356_v23 }
 0x2ae   :  { %v5077_v53 = vpop.eup %5076  ;;  %v2434_v8 = vmul.f32 1.442695, %v2393_v33  ;;  %v2281_v55 = vadd.f32 %v2280_v34, %v2232_v47  ;;  %v2705_v38 = vpack.c.bf16 %v2675_v4, %v2673_v18 }
 0x2af   :  { %v2136_v60 = vpop.f32.mrf.mxu2  ;;  %v2487_v30 = vadd.f32 1.0, %v5077_v53 }
 0x2b0   :  { %5078 = vpow2.f32 %v2434_v8  ;;  %v2325_v42 = vmul.f32 %v6506_v10, %v2281_v55  ;;  %v2137_v2 = vadd.f32 %v2136_v60, %v6450_v40  ;;  %v2185_v15 = vpop.f32.mrf.mxu3  ;;  %2969 = vmatmul.bf16.vlgmr.msrb.gmra.mxu3 %v2705_v38  ;;  %3067 = vmatmul.bf16.vlgmr.msrb.gmra.mxu1 %v2705_v38  ;;  %v4449_v40 = vadd.f32 -1.0, %v2517_v31 }
 0x2b1   :  { %v2236_v59 = vpop.f32.mrf.mxu0  ;;  %v2519_v7 = vmul.f32 %v2487_v30, %v2487_v30  ;;  %5080 = vrcp.f32 %v2613_v37 }
 0x2b2   :  { %v6547_v29 = vadd.f32 %v6508_v32, %v2325_v42  ;;  %v2186_v23 = vadd.f32 %v2185_v15, %v2137_v2  ;;  %v2581_v28 = vmul.f32 %v4449_v40, %v6524_v22 }
 0x2b3   :  { %v2285_v50 = vpop.f32.mrf.mxu1  ;;  %v2615_v56 = vadd.f32 1.0, %v2519_v7  ;;  %v4451_v9 = vadd.f32 -1.0, %v2519_v7 }
 0x2b4   :  { %v2395_v34 = vmin.f32 %v6547_v29, 20.0  ;;  %v2235_v54 = vadd.f32 %v2234_v35, %v2186_v23 }
 0x2b5   :  { %5082 = vrcp.f32 %v2615_v56  ;;  %v2583_v61 = vmul.f32 %v4451_v9, %v6532_v24 }
 0x2b6   :  { %v5079_v57 = vpop.eup %5078  ;;  %v2438_v17 = vmul.f32 1.442695, %v2395_v34  ;;  %v2284_v62 = vadd.f32 %v2283_v6, %v2235_v54 }
 0x2b7   :  { %v2138_v45 = vpop.f32.mrf.mxu2  ;;  %v2489_v11 = vadd.f32 1.0, %v5079_v57  ;;  %v5081_v41 = vpop.eup %5080 }
 0x2b8   :  { %5084 = vpow2.f32 %v2438_v17  ;;  %v2327_v25 = vmul.f32 %v6506_v10, %v2284_v62  ;;  %v2139_v13 = vadd.f32 %v2138_v45, %v6457_v58  ;;  %v2187_v44 = vpop.f32.mrf.mxu3  ;;  %v2677_v58 = vmul.f32 %v5081_v41, %v2581_v28 }
 0x2b9   :  { %v2239_v1 = vpop.f32.mrf.mxu0  ;;  %v2521_v6 = vmul.f32 %v2489_v11, %v2489_v11 }
 0x2ba   :  { %v6553_v12 = vadd.f32 %v6508_v32, %v2327_v25  ;;  %v2188_v35 = vadd.f32 %v2187_v44, %v2139_v13 }
 0x2bb   :  { %v5083_v20 = vpop.eup %5082  ;;  %v2288_v27 = vpop.f32.mrf.mxu1  ;;  %v2617_v38 = vadd.f32 1.0, %v2521_v6  ;;  %v4453_v54 = vadd.f32 -1.0, %v2521_v6 }
 0x2bc   :  { %v2397_v31 = vmin.f32 %v6553_v12, 20.0  ;;  %v2237_v18 = vadd.f32 %v2236_v59, %v2188_v35  ;;  %2940 = vmatmul.bf16.gmra.mxu2 %v6380_v49  ;;  %3038 = vmatmul.bf16.gmra.mxu0 %v6380_v49  ;;  %v2679_v4 = vmul.f32 %v5083_v20, %v2583_v61 }
 0x2be   :  { %v5085_v33 = vpop.eup %5084  ;;  %v2442_v47 = vmul.f32 1.442695, %v2397_v31  ;;  %v2286_v53 = vadd.f32 %v2285_v50, %v2237_v18  ;;  %v2707_v8 = vpack.c.bf16 %v2679_v4, %v2677_v58  ;;  %v2095_v50 = vadd.f32 %v6460_v14, %v6465_v51 }
 0x2bf   :  { %v2141_v55 = vpop.f32.mrf.mxu2  ;;  %v2491_v22 = vadd.f32 1.0, %v5085_v33  ;;  %v2585_v14 = vmul.f32 %v4453_v54, %v6539_v26 }
 0x2c0   :  { %5086 = vpow2.f32 %v2442_v47  ;;  %v2329_v24 = vmul.f32 %v6506_v10, %v2286_v53  ;;  %v2142_v60 = vadd.f32 %v2141_v55, %v6462_v43  ;;  %v2190_v30 = vpop.f32.mrf.mxu3  ;;  %2974 = vmatmul.bf16.gmra.mxu3 %v2707_v8  ;;  %3072 = vmatmul.bf16.gmra.mxu1 %v2707_v8 }
 0x2c1   :  { %v2241_v37 = vpop.f32.mrf.mxu0  ;;  %v2523_v42 = vmul.f32 %v2491_v22, %v2491_v22  ;;  %5088 = vrcp.f32 %v2617_v38 }
 0x2c2   :  { %v6563_v49 = vadd.f32 %v6508_v32, %v2329_v24  ;;  %v2191_v2 = vadd.f32 %v2190_v30, %v2142_v60 }
 0x2c3   :  { %v2290_v15 = vpop.f32.mrf.mxu1  ;;  %v2619_v59 = vadd.f32 1.0, %v2523_v42  ;;  %v4455_v57 = vadd.f32 -1.0, %v2523_v42 }
 0x2c4   :  { %v2399_v7 = vmin.f32 %v6563_v49, 20.0  ;;  %v2240_v23 = vadd.f32 %v2239_v1, %v2191_v2 }
 0x2c5   :  { %5090 = vrcp.f32 %v2619_v59  ;;  %v2587_v51 = vmul.f32 %v4455_v57, %v6547_v29 }
 0x2c6   :  { %v5087_v43 = vpop.eup %5086  ;;  %v2446_v56 = vmul.f32 1.442695, %v2399_v7  ;;  %v2289_v34 = vadd.f32 %v2288_v27, %v2240_v23 }
 0x2c7   :  { %v2143_v17 = vpop.f32.mrf.mxu2  ;;  %v2493_v62 = vadd.f32 1.0, %v5087_v43  ;;  %v5089_v11 = vpop.eup %5088 }
 0x2c8   :  { %5092 = vpow2.f32 %v2446_v56  ;;  %v2331_v40 = vmul.f32 %v6506_v10, %v2289_v34  ;;  %v2144_v9 = vadd.f32 %v2143_v17, %v2095_v50  ;;  %v2192_v45 = vpop.f32.mrf.mxu3  ;;  %v2681_v20 = vmul.f32 %v5089_v11, %v2585_v14 }
 0x2c9   :  { %v2244_v25 = vpop.f32.mrf.mxu0  ;;  %v2525_v35 = vmul.f32 %v2493_v62, %v2493_v62 }
 0x2ca   :  { %v6570_v13 = vadd.f32 %v6508_v32, %v2331_v40  ;;  %v2193_v44 = vadd.f32 %v2192_v45, %v2144_v9 }
 0x2cb   :  { %v5091_v41 = vpop.eup %5090  ;;  %v2293_v1 = vpop.f32.mrf.mxu1  ;;  %v2621_v33 = vadd.f32 1.0, %v2525_v35 }
 0x2cc   :  { %v2401_v28 = vmin.f32 %v6570_v13, 20.0  ;;  %v2242_v61 = vadd.f32 %v2241_v37, %v2193_v44  ;;  %2945 = vmatmul.bf16.gmra.mxu2 %v6402_v21  ;;  %3043 = vmatmul.bf16.gmra.mxu0 %v6402_v21  ;;  %v2683_v27 = vmul.f32 %v5091_v41, %v2587_v51  ;;  %v2100_v37 = vadd.f32 %v6472_v36, %v6477_v39 }
 0x2ce   :  { %v5093_v6 = vpop.eup %5092  ;;  %v2450_v31 = vmul.f32 1.442695, %v2401_v28  ;;  %v2291_v18 = vadd.f32 %v2290_v15, %v2242_v61  ;;  %v2709_v58 = vpack.c.bf16 %v2683_v27, %v2681_v20  ;;  %v4457_v15 = vadd.f32 -1.0, %v2525_v35 }
 0x2cf   :  { %v2146_v4 = vpop.f32.mrf.mxu2  ;;  %v2495_v26 = vadd.f32 1.0, %v5093_v6 }
 0x2d0   :  { %5094 = vpow2.f32 %v2450_v31  ;;  %v2333_v29 = vmul.f32 %v6506_v10, %v2291_v18  ;;  %v2147_v47 = vadd.f32 %v2146_v4, %v6474_v46  ;;  %v2195_v53 = vpop.f32.mrf.mxu3  ;;  %2979 = vmatmul.bf16.gmra.mxu3 %v2709_v58  ;;  %3077 = vmatmul.bf16.gmra.mxu1 %v2709_v58  ;;  %v2589_v36 = vmul.f32 %v4457_v15, %v6553_v12 }
 0x2d1   :  { %v2527_v8 = vmul.f32 %v2495_v26, %v2495_v26  ;;  %v2246_v22 = vpop.f32.mrf.mxu0  ;;  %5096 = vrcp.f32 %v2621_v33  ;;  %v2105_v4 = vadd.f32 %v6484_v0, %v6489_v48 }
 0x2d2   :  { %v6580_v21 = vadd.f32 %v6508_v32, %v2333_v29  ;;  %v2196_v55 = vadd.f32 %v2195_v53, %v2147_v47 }
 0x2d3   :  { %v2623_v38 = vadd.f32 1.0, %v2527_v8  ;;  %v2295_v30 = vpop.f32.mrf.mxu1  ;;  %v4459_v59 = vadd.f32 -1.0, %v2527_v8 }
 0x2d4   :  { %v2403_v24 = vmin.f32 %v6580_v21, 20.0  ;;  %v2245_v60 = vadd.f32 %v2244_v25, %v2196_v55 }
 0x2d5   :  { %5098 = vrcp.f32 %v2623_v38  ;;  %v2591_v39 = vmul.f32 %v4459_v59, %v6563_v49 }
 0x2d6   :  { %v5095_v46 = vpop.eup %5094  ;;  %v2454_v42 = vmul.f32 1.442695, %v2403_v24  ;;  %v2294_v2 = vadd.f32 %v2293_v1, %v2245_v60 }
 0x2d7   :  { %v2148_v7 = vpop.f32.mrf.mxu2  ;;  %v2497_v23 = vadd.f32 1.0, %v5095_v46  ;;  %v5097_v34 = vpop.eup %5096 }
 0x2d8   :  { %5100 = vpow2.f32 %v2454_v42  ;;  %v2335_v50 = vmul.f32 %v6506_v10, %v2294_v2  ;;  %v2149_v43 = vadd.f32 %v2148_v7, %v2100_v37  ;;  %v2197_v56 = vpop.f32.mrf.mxu3  ;;  %v2685_v45 = vmul.f32 %v5097_v34, %v2589_v36 }
 0x2d9   :  { %v2529_v62 = vmul.f32 %v2497_v23, %v2497_v23  ;;  %v2249_v25 = vpop.f32.mrf.mxu0 }
 0x2da   :  { %v6587_v54 = vadd.f32 %v6508_v32, %v2335_v50  ;;  %v2198_v57 = vadd.f32 %v2197_v56, %v2149_v43 }
 0x2db   :  { %v5099_v17 = vpop.eup %5098  ;;  %v2298_v1 = vpop.f32.mrf.mxu1  ;;  %v2625_v49 = vadd.f32 1.0, %v2529_v62  ;;  %v4461_v29 = vadd.f32 -1.0, %v2529_v62 }
 0x2dc   :  { %v2405_v40 = vmin.f32 %v6587_v54, 20.0  ;;  %v2247_v9 = vadd.f32 %v2246_v22, %v2198_v57  ;;  %2950 = vmatmul.bf16.gmra.mxu2 %v6419_v52  ;;  %3048 = vmatmul.bf16.gmra.mxu0 %v6419_v52  ;;  %v2687_v11 = vmul.f32 %v5099_v17, %v2591_v39 }
 0x2dd   :  { %v2593_v48 = vmul.f32 %v4461_v29, %v6570_v13 }
 0x2de   :  { %v5101_v44 = vpop.eup %5100  ;;  %v2458_v14 = vmul.f32 1.442695, %v2405_v40  ;;  %v2296_v51 = vadd.f32 %v2295_v30, %v2247_v9  ;;  %v2711_v41 = vpack.c.bf16 %v2687_v11, %v2685_v45 }
 0x2df   :  { %v2151_v12 = vpop.f32.mrf.mxu2  ;;  %v2499_v35 = vadd.f32 1.0, %v5101_v44 }
 0x2e0   :  { %5102 = vpow2.f32 %v2458_v14  ;;  %v2337_v28 = vmul.f32 %v6506_v10, %v2296_v51  ;;  %v2152_v61 = vadd.f32 %v2151_v12, %v6486_v5  ;;  %v2200_v20 = vpop.f32.mrf.mxu3  ;;  %2984 = vmatmul.bf16.gmra.mxu3 %v2711_v41  ;;  %3082 = vmatmul.bf16.gmra.mxu1 %v2711_v41  ;;  %v2110_v14 = vadd.f32 %v6496_v3, %v6501_v16 }
 0x2e1   :  { %v2531_v52 = vmul.f32 %v2499_v35, %v2499_v35  ;;  %5104 = vrcp.f32 %v2625_v49  ;;  %v2251_v53 = vpop.f32.mrf.mxu0 }
 0x2e2   :  { %v6597_v27 = vadd.f32 %v6508_v32, %v2337_v28  ;;  %v2201_v6 = vadd.f32 %v2200_v20, %v2152_v61 }
 0x2e3   :  { %v2627_v31 = vadd.f32 1.0, %v2531_v52  ;;  %v4463_v47 = vadd.f32 -1.0, %v2531_v52  ;;  %v2300_v30 = vpop.f32.mrf.mxu1 }
 0x2e4   :  { %v2407_v18 = vmin.f32 %v6597_v27, 20.0  ;;  %v2250_v58 = vadd.f32 %v2249_v25, %v2201_v6 }
 0x2e5   :  { %5106 = vrcp.f32 %v2627_v31  ;;  %v2595_v46 = vmul.f32 %v4463_v47, %v6580_v21 }
 0x2e6   :  { %v5103_v26 = vpop.eup %5102  ;;  %v2462_v33 = vmul.f32 1.442695, %v2407_v18  ;;  %v2299_v5 = vadd.f32 %v2298_v1, %v2250_v58 }
 0x2e7   :  { %v2153_v8 = vpop.f32.mrf.mxu2  ;;  %v2501_v55 = vadd.f32 1.0, %v5103_v26  ;;  %v5105_v60 = vpop.eup %5104 }
 0x2e8   :  { %5108 = vpow2.f32 %v2462_v33  ;;  %v2339_v22 = vmul.f32 %v6506_v10, %v2299_v5  ;;  %v2154_v38 = vadd.f32 %v2153_v8, %v2105_v4  ;;  %v2202_v24 = vpop.f32.mrf.mxu3  ;;  %v2689_v7 = vmul.f32 %v5105_v60, %v2593_v48 }
 0x2e9   :  { %v2533_v2 = vmul.f32 %v2501_v55, %v2501_v55  ;;  %v2254_v62 = vpop.f32.mrf.mxu0 }
 0x2ea   :  { %v6604_v37 = vadd.f32 %v6508_v32, %v2339_v22  ;;  %v2203_v0 = vadd.f32 %v2202_v24, %v2154_v38 }
 0x2eb   :  { %v5107_v42 = vpop.eup %5106  ;;  %v2629_v13 = vadd.f32 1.0, %v2533_v2  ;;  %v2303_v45 = vpop.f32.mrf.mxu1  ;;  %v4465_v1 = vadd.f32 -1.0, %v2533_v2 }
 0x2ec   :  { %v2409_v15 = vmin.f32 %v6604_v37, 20.0  ;;  %v2252_v59 = vadd.f32 %v2251_v53, %v2203_v0  ;;  %2955 = vmatmul.bf16.gmra.mxu2 %v6433_v63  ;;  %3053 = vmatmul.bf16.gmra.mxu0 %v6433_v63  ;;  %v2691_v23 = vmul.f32 %v5107_v42, %v2595_v46 }
 0x2ed   :  { %v2597_v18 = vmul.f32 %v4465_v1, %v6587_v54 }
 0x2ee   :  { %v5109_v50 = vpop.eup %5108  ;;  %v2466_v43 = vmul.f32 1.442695, %v2409_v15  ;;  %v2301_v56 = vadd.f32 %v2300_v30, %v2252_v59  ;;  %v2713_v34 = vpack.c.bf16 %v2691_v23, %v2689_v7 }
 0x2ef   :  { %v2156_v57 = vpop.f32.mrf.mxu2  ;;  %v2503_v36 = vadd.f32 1.0, %v5109_v50 }
 0x2f0   :  { %5110 = vpow2.f32 %v2466_v43  ;;  %v2341_v21 = vmul.f32 %v6506_v10, %v2301_v56  ;;  %v2157_v39 = vadd.f32 %v2156_v57, %v6498_v19  ;;  %v2205_v17 = vpop.f32.mrf.mxu3  ;;  %2989 = vmatmul.bf16.gmra.mxu3 %v2713_v34  ;;  %3087 = vmatmul.bf16.gmra.mxu1 %v2713_v34 }
 0x2f1   :  { %v2535_v40 = vmul.f32 %v2503_v36, %v2503_v36  ;;  %5112 = vrcp.f32 %v2629_v13  ;;  %v2256_v58 = vpop.f32.mrf.mxu0 }
 0x2f2   :  { %v2379_v63 = vadd.f32 %v6508_v32, %v2341_v21  ;;  %v2206_v9 = vadd.f32 %v2205_v17, %v2157_v39 }
 0x2f3   :  { %v2631_v11 = vadd.f32 1.0, %v2535_v40  ;;  %v4467_v12 = vadd.f32 -1.0, %v2535_v40  ;;  %v2305_v47 = vpop.f32.mrf.mxu1 }
 0x2f4   :  { %v2411_v25 = vmin.f32 %v2379_v63, 20.0  ;;  %v2255_v44 = vadd.f32 %v2254_v62, %v2206_v9 }
 0x2f5   :  { %5114 = vrcp.f32 %v2631_v11  ;;  %v2599_v3 = vmul.f32 %v4467_v12, %v6597_v27  ;;  %v3146_v12 = vld [vmem:[#allocation10] sm:$0x3] }
 0x2f6   :  { %v5111_v51 = vpop.eup %5110  ;;  %v2470_v41 = vmul.f32 1.442695, %v2411_v25  ;;  %v2304_v19 = vadd.f32 %v2303_v45, %v2255_v44 }
 0x2f7   :  { %v2158_v35 = vpop.f32.mrf.mxu2  ;;  %v2505_v49 = vadd.f32 1.0, %v5111_v51  ;;  %v5113_v20 = vpop.eup %5112 }
 0x2f8   :  { %5116 = vpow2.f32 %v2470_v41  ;;  %v2343_v28 = vmul.f32 %v6506_v10, %v2304_v19  ;;  %v2159_v61 = vadd.f32 %v2158_v35, %v2110_v14  ;;  %v2207_v52 = vpop.f32.mrf.mxu3  ;;  %v2693_v5 = vmul.f32 %v5113_v20, %v2597_v18  ;;  %v3108_v19 = vld [vmem:[#allocation9] sm:$0x3] }
 0x2f9   :  { %v2537_v4 = vmul.f32 %v2505_v49, %v2505_v49  ;;  %v3019_v13 = vpop.f32.mrf.mxu0  ;;  %v6623_v35 = vperm.slane %v3108_v19, 1  ;;  %v6625_v20 = vperm.slane %v3146_v12, 1 }
 0x2fa   :  { %v2381_v6 = vadd.f32 %v6508_v32, %v2343_v28  ;;  %v2208_v31 = vadd.f32 %v2207_v52, %v2159_v61 }
 0x2fb   :  { %v5115_v16 = vpop.eup %5114  ;;  %v2633_v24 = vadd.f32 1.0, %v2537_v4  ;;  %v4469_v42 = vadd.f32 -1.0, %v2537_v4 }
 0x2fc   :  { %v2413_v26 = vmin.f32 %v2381_v6, 20.0  ;;  %v2257_v33 = vadd.f32 %v2256_v58, %v2208_v31  ;;  %v2695_v29 = vmul.f32 %v5115_v16, %v2599_v3  ;;  %v6631_v31 = vperm.slane %v3108_v19, 0 }
 0x2fd   :  { %v2601_v7 = vmul.f32 %v4469_v42, %v6604_v37  ;;  %v6634_v58 = vperm.slane %v3146_v12, 0 }
 0x2fe   :  { %v5117_v53 = vpop.eup %5116  ;;  %v2474_v8 = vmul.f32 1.442695, %v2413_v26  ;;  %v2306_v55 = vadd.f32 %v2305_v47, %v2257_v33  ;;  %v2715_v22 = vpack.c.bf16 %v2695_v29, %v2693_v5 }
 0x2ff   :  { %v2507_v38 = vadd.f32 1.0, %v5117_v53  ;;  %v2921_v40 = vpop.f32.mrf.mxu2 }
 0x300   :  { %5118 = vpow2.f32 %v2474_v8  ;;  %v2345_v60 = vmul.f32 %v6506_v10, %v2306_v55  ;;  %2994 = vmatmul.bf16.gmra.mxu3 %v2715_v22  ;;  %3092 = vmatmul.bf16.gmra.mxu1 %v2715_v22 }
 0x301   :  { %v2539_v54 = vmul.f32 %v2507_v38, %v2507_v38  ;;  %5120 = vrcp.f32 %v2633_v24 }
 0x302   :  { %v2383_v27 = vadd.f32 %v6508_v32, %v2345_v60 }
 0x303   :  { %v2635_v30 = vadd.f32 1.0, %v2539_v54  ;;  %v4471_v2 = vadd.f32 -1.0, %v2539_v54 }
 0x304   :  { %v2415_v0 = vmin.f32 %v2383_v27, 20.0 }
 0x305   :  { %5122 = vrcp.f32 %v2635_v30  ;;  %v2603_v23 = vmul.f32 %v4471_v2, %v2379_v63  ;;  %v3021_v63 = vpop.f32.mrf.mxu0 }
 0x306   :  { %v5119_v48 = vpop.eup %5118  ;;  %v2478_v46 = vmul.f32 1.442695, %v2415_v0 }
 0x307   :  { %v2509_v15 = vadd.f32 1.0, %v5119_v48  ;;  %v5121_v59 = vpop.eup %5120  ;;  %v2923_v51 = vpop.f32.mrf.mxu2 }
 0x308   :  { %5124 = vpow2.f32 %v2478_v46  ;;  %v2697_v43 = vmul.f32 %v5121_v59, %v2601_v7 }
 0x309   :  { %v2541_v50 = vmul.f32 %v2509_v15, %v2509_v15 }
 0x30b   :  { %v5123_v10 = vpop.eup %5122  ;;  %v2637_v36 = vadd.f32 1.0, %v2541_v50  ;;  %v4473_v17 = vadd.f32 -1.0, %v2541_v50 }
 0x30c   :  { %v2699_v56 = vmul.f32 %v5123_v10, %v2603_v23 }
 0x30d   :  { %5126 = vrcp.f32 %v2637_v36  ;;  %v2605_v9 = vmul.f32 %v4473_v17, %v2381_v6  ;;  %v3024_v41 = vpop.f32.mrf.mxu0 }
 0x30e   :  { %v5125_v34 = vpop.eup %5124  ;;  %v2717_v32 = vpack.c.bf16 %v2699_v56, %v2697_v43 }
 0x30f   :  { %v2511_v57 = vadd.f32 1.0, %v5125_v34  ;;  %v2926_v1 = vpop.f32.mrf.mxu2 }
 0x310   :  { %2999 = vmatmul.bf16.gmra.mxu3 %v2717_v32  ;;  %3097 = vmatmul.bf16.gmra.mxu1 %v2717_v32 }
 0x311   :  { %v2543_v21 = vmul.f32 %v2511_v57, %v2511_v57 }
 0x313   :  { %v2639_v39 = vadd.f32 1.0, %v2543_v21  ;;  %v4475_v62 = vadd.f32 -1.0, %v2543_v21  ;;  %v5127_v37 = vpop.eup %5126 }
 0x314   :  { %v2701_v25 = vmul.f32 %v5127_v37, %v2605_v9 }
 0x315   :  { %5128 = vrcp.f32 %v2639_v39  ;;  %v2607_v45 = vmul.f32 %v4475_v62, %v2383_v27  ;;  %v3026_v28 = vpop.f32.mrf.mxu0 }
 0x317   :  { %v2928_v4 = vpop.f32.mrf.mxu2 }
 0x31b   :  { %v5129_v11 = vpop.eup %5128 }
 0x31c   :  { %v2703_v44 = vmul.f32 %v5129_v11, %v2607_v45 }
 0x31d   :  { %v6637_v47 = vpop.f32.mrf.mxu0 }
 0x31e   :  { %v2719_v14 = vpack.c.bf16 %v2703_v44, %v2701_v25 }
 0x31f   :  { %v6649_v42 = vpop.f32.mrf.mxu2 }
 0x320   :  { %3004 = vmatmul.bf16.gmra.mxu3 %v2719_v14  ;;  %3102 = vmatmul.bf16.gmra.mxu1 %v2719_v14 }
 0x325   :  { %v6655_v23 = vpop.f32.mrf.mxu0 }
 0x327   :  { %v6667_v45 = vpop.f32.mrf.mxu2 }
 0x32d   :  { %v3068_v49 = vpop.f32.mrf.mxu1 }
 0x32e   :  { %v3069_v61 = vadd.f32 %v3068_v49, %v3019_v13 }
 0x330   :  { %v3115_v52 = vmul.f32 %v6623_v35, %v3069_v61 }
 0x332   :  { %v6629_v6 = vadd.f32 %v6625_v20, %v3115_v52 }
 0x333   :  { %v2970_v18 = vpop.f32.mrf.mxu3 }
 0x334   :  { %v3185_v3 = vmin.f32 %v6629_v6, 20.0  ;;  %v2971_v16 = vadd.f32 %v2970_v18, %v2921_v40 }
 0x335   :  { %v3070_v26 = vpop.f32.mrf.mxu1 }
 0x336   :  { %v3218_v33 = vmul.f32 1.442695, %v3185_v3  ;;  %v3114_v5 = vmul.f32 %v6631_v31, %v2971_v16  ;;  %v3071_v29 = vadd.f32 %v3070_v26, %v3021_v63 }
 0x338   :  { %5130 = vpow2.f32 %v3218_v33  ;;  %v6640_v53 = vadd.f32 %v6634_v58, %v3114_v5  ;;  %v3117_v8 = vmul.f32 %v6623_v35, %v3071_v29 }
 0x33a   :  { %v3184_v55 = vmin.f32 %v6640_v53, 20.0  ;;  %v6645_v22 = vadd.f32 %v6625_v20, %v3117_v8 }
 0x33b   :  { %v2972_v38 = vpop.f32.mrf.mxu3 }
 0x33c   :  { %v3216_v24 = vmul.f32 1.442695, %v3184_v55  ;;  %v3187_v60 = vmin.f32 %v6645_v22, 20.0  ;;  %v2973_v54 = vadd.f32 %v2972_v38, %v2923_v51 }
 0x33d   :  { %v3073_v27 = vpop.f32.mrf.mxu1 }
 0x33e   :  { %v5131_v30 = vpop.eup %5130  ;;  %5132 = vpow2.f32 %v3216_v24  ;;  %v3222_v0 = vmul.f32 1.442695, %v3187_v60  ;;  %v3116_v48 = vmul.f32 %v6631_v31, %v2973_v54  ;;  %v3074_v46 = vadd.f32 %v3073_v27, %v3024_v41 }
 0x33f   :  { %v3281_v2 = vadd.f32 1.0, %v5131_v30 }
 0x340   :  { %5134 = vpow2.f32 %v3222_v0  ;;  %v6652_v15 = vadd.f32 %v6634_v58, %v3116_v48  ;;  %v3119_v59 = vmul.f32 %v6623_v35, %v3074_v46 }
 0x341   :  { %v3313_v7 = vmul.f32 %v3281_v2, %v3281_v2  ;;  %v6688_v2 = vpop.f32.mrf.mxu2 }
 0x342   :  { %v3186_v10 = vmin.f32 %v6652_v15, 20.0  ;;  %v6659_v50 = vadd.f32 %v6625_v20, %v3119_v59 }
 0x343   :  { %v2975_v43 = vpop.f32.mrf.mxu3  ;;  %v3409_v36 = vadd.f32 1.0, %v3313_v7  ;;  %v4605_v12 = vadd.f32 -1.0, %v3313_v7 }
 0x344   :  { %v5133_v56 = vpop.eup %5132  ;;  %v3220_v34 = vmul.f32 1.442695, %v3186_v10  ;;  %v3189_v32 = vmin.f32 %v6659_v50, 20.0  ;;  %v2976_v57 = vadd.f32 %v2975_v43, %v2926_v1  ;;  %v6673_v1 = vpop.f32.mrf.mxu0 }
 0x345   :  { %v3280_v13 = vadd.f32 1.0, %v5133_v56  ;;  %v3075_v21 = vpop.f32.mrf.mxu1  ;;  %v3377_v60 = vmul.f32 %v4605_v12, %v6629_v6 }
 0x346   :  { %v5135_v39 = vpop.eup %5134  ;;  %5136 = vpow2.f32 %v3220_v34  ;;  %v3226_v17 = vmul.f32 1.442695, %v3189_v32  ;;  %v3118_v62 = vmul.f32 %v6631_v31, %v2976_v57  ;;  %v3076_v40 = vadd.f32 %v3075_v21, %v3026_v28 }
 0x347   :  { %v3283_v37 = vadd.f32 1.0, %v5135_v39  ;;  %v3312_v11 = vmul.f32 %v3280_v13, %v3280_v13 }
 0x348   :  { %5138 = vpow2.f32 %v3226_v17  ;;  %v6664_v63 = vadd.f32 %v6634_v58, %v3118_v62  ;;  %v3121_v9 = vmul.f32 %v6623_v35, %v3076_v40 }
 0x349   :  { %v3315_v25 = vmul.f32 %v3283_v37, %v3283_v37  ;;  %5140 = vrcp.f32 %v3409_v36  ;;  %v3408_v52 = vadd.f32 1.0, %v3312_v11  ;;  %v4604_v59 = vadd.f32 -1.0, %v3312_v11 }
 0x34a   :  { %v3188_v44 = vmin.f32 %v6664_v63, 20.0  ;;  %v6671_v14 = vadd.f32 %v6625_v20, %v3121_v9 }
 0x34b   :  { %v3411_v51 = vadd.f32 1.0, %v3315_v25  ;;  %v2977_v41 = vpop.f32.mrf.mxu3  ;;  %v4607_v18 = vadd.f32 -1.0, %v3315_v25  ;;  %v3376_v11 = vmul.f32 %v4604_v59, %v6640_v53 }
 0x34c   :  { %v5137_v19 = vpop.eup %5136  ;;  %v3224_v49 = vmul.f32 1.442695, %v3188_v44  ;;  %v3191_v28 = vmin.f32 %v6671_v14, 20.0  ;;  %v2978_v61 = vadd.f32 %v2977_v41, %v2928_v4  ;;  %v6692_v21 = vpop.f32.mrf.mxu0 }
 0x34d   :  { %5142 = vrcp.f32 %v3411_v51  ;;  %v3282_v3 = vadd.f32 1.0, %v5137_v19  ;;  %v3078_v16 = vpop.f32.mrf.mxu1  ;;  %v3379_v30 = vmul.f32 %v4607_v18, %v6645_v22 }
 0x34e   :  { %v5139_v26 = vpop.eup %5138  ;;  %5144 = vpow2.f32 %v3224_v49  ;;  %v3230_v33 = vmul.f32 1.442695, %v3191_v28  ;;  %v3120_v5 = vmul.f32 %v6631_v31, %v2978_v61  ;;  %v3079_v29 = vadd.f32 %v3078_v16, %v6637_v47  ;;  %v6709_v16 = vpop.f32.mrf.mxu2 }
 0x34f   :  { %v3314_v8 = vmul.f32 %v3282_v3, %v3282_v3  ;;  %v3285_v55 = vadd.f32 1.0, %v5139_v26  ;;  %v5141_v38 = vpop.eup %5140 }
 0x350   :  { %5146 = vpow2.f32 %v3230_v33  ;;  %v6679_v24 = vadd.f32 %v6634_v58, %v3120_v5  ;;  %v3123_v4 = vmul.f32 %v6623_v35, %v3079_v29  ;;  %v3473_v46 = vmul.f32 %v5141_v38, %v3377_v60 }
 0x351   :  { %5148 = vrcp.f32 %v3408_v52  ;;  %v3410_v54 = vadd.f32 1.0, %v3314_v8  ;;  %v3317_v27 = vmul.f32 %v3285_v55, %v3285_v55  ;;  %v4606_v7 = vadd.f32 -1.0, %v3314_v8 }
 0x352   :  { %v3190_v0 = vmin.f32 %v6679_v24, 20.0  ;;  %v6686_v47 = vadd.f32 %v6625_v20, %v3123_v4 }
 0x353   :  { %v5143_v48 = vpop.eup %5142  ;;  %5150 = vrcp.f32 %v3410_v54  ;;  %v2980_v10 = vpop.f32.mrf.mxu3  ;;  %v3413_v32 = vadd.f32 1.0, %v3317_v27  ;;  %v4609_v18 = vadd.f32 -1.0, %v3317_v27 }
 0x354   :  { %v5145_v43 = vpop.eup %5144  ;;  %v3475_v6 = vmul.f32 %v5143_v48, %v3379_v30  ;;  %v3228_v56 = vmul.f32 1.442695, %v3190_v0  ;;  %v3193_v34 = vmin.f32 %v6686_v47, 20.0  ;;  %v2981_v22 = vadd.f32 %v2980_v10, %v6649_v42  ;;  %v3039_v30 = vpop.f32.mrf.mxu0 }
 0x355   :  { %v3284_v57 = vadd.f32 1.0, %v5145_v43  ;;  %v3080_v36 = vpop.f32.mrf.mxu1  ;;  %v3378_v42 = vmul.f32 %v4606_v7, %v6652_v15  ;;  %v3381_v0 = vmul.f32 %v4609_v18, %v6659_v50 }
 0x356   :  { %v5147_v13 = vpop.eup %5146  ;;  %v4927_v39 = vpack.c.bf16 %v3475_v6, %v3473_v46  ;;  %5152 = vpow2.f32 %v3228_v56  ;;  %v3234_v17 = vmul.f32 1.442695, %v3193_v34  ;;  %v3122_v62 = vmul.f32 %v6631_v31, %v2981_v22 }
 0x357   :  { %v5149_v40 = vpop.eup %5148  ;;  %v3287_v37 = vadd.f32 1.0, %v5147_v13  ;;  %v3081_v9 = vadd.f32 %v3080_v36, %v6655_v23  ;;  %v3316_v51 = vmul.f32 %v3284_v57, %v3284_v57 }
 0x358   :  { %4928 = vst [vmem:[%s6899_s8] sm:$0xff] %v4927_v39   ;;  %5154 = vpow2.f32 %v3234_v17  ;;  %v6702_v25 = vadd.f32 %v6634_v58, %v3122_v62  ;;  %v3472_v12 = vmul.f32 %v5149_v40, %v3376_v11 }
 0x359   :  { %v5151_v44 = vpop.eup %5150  ;;  %v3319_v41 = vmul.f32 %v3287_v37, %v3287_v37  ;;  %v3125_v19 = vmul.f32 %v6623_v35, %v3081_v9  ;;  %5156 = vrcp.f32 %v3413_v32  ;;  %v3412_v26 = vadd.f32 1.0, %v3316_v51 }
 0x35a   :  { %v3474_v49 = vmul.f32 %v5151_v44, %v3378_v42  ;;  %v3192_v53 = vmin.f32 %v6702_v25, 20.0  ;;  %v4608_v56 = vadd.f32 -1.0, %v3316_v51  ;;  %v2941_v42 = vpop.f32.mrf.mxu2 }
 0x35b   :  { %v3415_v23 = vadd.f32 1.0, %v3319_v41  ;;  %v2982_v28 = vpop.f32.mrf.mxu3  ;;  %v6707_v3 = vadd.f32 %v6625_v20, %v3125_v19  ;;  %v4611_v55 = vadd.f32 -1.0, %v3319_v41 }
 0x35c   :  { %v5153_v61 = vpop.eup %5152  ;;  %v4887_v52 = vpack.c.bf16 %v3474_v49, %v3472_v12  ;;  %v3232_v15 = vmul.f32 1.442695, %v3192_v53  ;;  %v2983_v5 = vadd.f32 %v2982_v28, %v6667_v45  ;;  %v3380_v41 = vmul.f32 %v4608_v56, %v6664_v63  ;;  %v3041_v28 = vpop.f32.mrf.mxu0 }
 0x35d   :  { %5158 = vrcp.f32 %v3415_v23  ;;  %v3286_v33 = vadd.f32 1.0, %v5153_v61  ;;  %v3083_v29 = vpop.f32.mrf.mxu1  ;;  %v3195_v38 = vmin.f32 %v6707_v3, 20.0  ;;  %v3383_v10 = vmul.f32 %v4611_v55, %v6671_v14 }
 0x35e   :  { %v5155_v8 = vpop.eup %5154  ;;  %4888 = vst [vmem:[%s6898_s7] sm:$0xff] %v4887_v52   ;;  %5160 = vpow2.f32 %v3232_v15  ;;  %v3084_v4 = vadd.f32 %v3083_v29, %v6673_v1  ;;  %v3124_v54 = vmul.f32 %v6631_v31, %v2983_v5 }
 0x35f   :  { %v3318_v60 = vmul.f32 %v3286_v33, %v3286_v33  ;;  %v5157_v27 = vpop.eup %5156  ;;  %v3238_v45 = vmul.f32 1.442695, %v3195_v38  ;;  %5162 = vrcp.f32 %v3412_v26  ;;  %v3289_v59 = vadd.f32 1.0, %v5155_v8 }
 0x360   :  { %v3127_v48 = vmul.f32 %v6623_v35, %v3084_v4  ;;  %v6721_v7 = vadd.f32 %v6634_v58, %v3124_v54  ;;  %v3477_v6 = vmul.f32 %v5157_v27, %v3381_v0 }
 0x361   :  { %v3414_v46 = vadd.f32 1.0, %v3318_v60  ;;  %5164 = vpow2.f32 %v3238_v45  ;;  %v4610_v34 = vadd.f32 -1.0, %v3318_v60  ;;  %v3321_v39 = vmul.f32 %v3289_v59, %v3289_v59 }
 0x362   :  { %v6725_v1 = vadd.f32 %v6625_v20, %v3127_v48  ;;  %v3194_v57 = vmin.f32 %v6721_v7, 20.0  ;;  %v2943_v59 = vpop.f32.mrf.mxu2 }
 0x363   :  { %v5159_v43 = vpop.eup %5158  ;;  %5166 = vrcp.f32 %v3414_v46  ;;  %v2985_v50 = vpop.f32.mrf.mxu3  ;;  %v3417_v49 = vadd.f32 1.0, %v3321_v39  ;;  %v4613_v27 = vadd.f32 -1.0, %v3321_v39 }
 0x364   :  { %v5161_v22 = vpop.eup %5160  ;;  %v3479_v32 = vmul.f32 %v5159_v43, %v3383_v10  ;;  %v3197_v36 = vmin.f32 %v6725_v1, 20.0  ;;  %v2986_v13 = vadd.f32 %v2985_v50, %v6688_v2  ;;  %v3236_v40 = vmul.f32 1.442695, %v3194_v57 }
 0x365   :  { %v3288_v14 = vadd.f32 1.0, %v5161_v22  ;;  %v3085_v17 = vpop.f32.mrf.mxu1  ;;  %v5163_v11 = vpop.eup %5162  ;;  %v3382_v2 = vmul.f32 %v4610_v34, %v6679_v24  ;;  %v3385_v34 = vmul.f32 %v4613_v27, %v6686_v47 }
 0x366   :  { %v4932_v62 = vpack.c.bf16 %v3479_v32, %v3477_v6  ;;  %v3242_v37 = vmul.f32 1.442695, %v3197_v36  ;;  %v3126_v9 = vmul.f32 %v6631_v31, %v2986_v13  ;;  %v3086_v44 = vadd.f32 %v3085_v17, %v6692_v21  ;;  %v3044_v36 = vpop.f32.mrf.mxu0 }
 0x367   :  { %v5165_v51 = vpop.eup %5164  ;;  %5168 = vpow2.f32 %v3236_v40  ;;  %v3320_v53 = vmul.f32 %v3288_v14, %v3288_v14  ;;  %v3476_v21 = vmul.f32 %v5163_v11, %v3380_v41 }
 0x368   :  { %4971 = vst [vmem:[%s6899_s8 + $0x8] sm:$0xff] %v4932_v62   ;;  %v6738_v19 = vadd.f32 %v6634_v58, %v3126_v9  ;;  %v3291_v23 = vadd.f32 1.0, %v5165_v51  ;;  %5170 = vpow2.f32 %v3242_v37  ;;  %v3129_v52 = vmul.f32 %v6623_v35, %v3086_v44 }
 0x369   :  { %v5167_v12 = vpop.eup %5166  ;;  %5172 = vrcp.f32 %v3417_v49  ;;  %v3416_v5 = vadd.f32 1.0, %v3320_v53  ;;  %v4612_v13 = vadd.f32 -1.0, %v3320_v53 }
 0x36a   :  { %v3478_v61 = vmul.f32 %v5167_v12, %v3382_v2  ;;  %v3196_v63 = vmin.f32 %v6738_v19, 20.0  ;;  %v3323_v18 = vmul.f32 %v3291_v23, %v3291_v23  ;;  %v6743_v33 = vadd.f32 %v6625_v20, %v3129_v52 }
 0x36b   :  { %v2987_v15 = vpop.f32.mrf.mxu3 }
 0x36c   :  { %v4892_v26 = vpack.c.bf16 %v3478_v61, %v3476_v21  ;;  %v3240_v24 = vmul.f32 1.442695, %v3196_v63  ;;  %v3419_v29 = vadd.f32 1.0, %v3323_v18  ;;  %v2988_v8 = vadd.f32 %v2987_v15, %v6709_v16  ;;  %v2946_v15 = vpop.f32.mrf.mxu2 }
 0x36d   :  { %v3088_v55 = vpop.f32.mrf.mxu1  ;;  %v5169_v38 = vpop.eup %5168  ;;  %v3199_v4 = vmin.f32 %v6743_v33, 20.0  ;;  %v4615_v48 = vadd.f32 -1.0, %v3323_v18 }
 0x36e   :  { %4964 = vst [vmem:[%s6898_s7 + $0x8] sm:$0xff] %v4892_v26   ;;  %5174 = vpow2.f32 %v3240_v24  ;;  %v3089_v60 = vadd.f32 %v3088_v55, %v3039_v30  ;;  %v5171_v54 = vpop.eup %5170  ;;  %v3290_v0 = vadd.f32 1.0, %v5169_v38  ;;  %v3128_v45 = vmul.f32 %v6631_v31, %v2988_v8 }
 0x36f   :  { %5176 = vrcp.f32 %v3419_v29  ;;  %v3246_v46 = vmul.f32 1.442695, %v3199_v4  ;;  %v3293_v43 = vadd.f32 1.0, %v5171_v54  ;;  %v5173_v56 = vpop.eup %5172  ;;  %v3387_v39 = vmul.f32 %v4615_v48, %v6707_v3 }
 0x370   :  { %v3131_v16 = vmul.f32 %v6623_v35, %v3089_v60  ;;  %5178 = vrcp.f32 %v3416_v5  ;;  %v3322_v10 = vmul.f32 %v3290_v0, %v3290_v0  ;;  %v6753_v6 = vadd.f32 %v6634_v58, %v3128_v45  ;;  %v3046_v45 = vpop.f32.mrf.mxu0 }
 0x371   :  { %5180 = vpow2.f32 %v3246_v46  ;;  %v3325_v40 = vmul.f32 %v3293_v43, %v3293_v43  ;;  %v3481_v44 = vmul.f32 %v5173_v56, %v3385_v34  ;;  %v3384_v3 = vmul.f32 %v4612_v13, %v6702_v25 }
 0x372   :  { %v6756_v30 = vadd.f32 %v6625_v20, %v3131_v16  ;;  %v3418_v50 = vadd.f32 1.0, %v3322_v10  ;;  %v3198_v22 = vmin.f32 %v6753_v6, 20.0  ;;  %v4614_v51 = vadd.f32 -1.0, %v3322_v10 }
 0x373   :  { %v2990_v32 = vpop.f32.mrf.mxu3  ;;  %v4617_v8 = vadd.f32 -1.0, %v3325_v40 }
 0x374   :  { %v5175_v57 = vpop.eup %5174  ;;  %v3201_v14 = vmin.f32 %v6756_v30, 20.0  ;;  %v2991_v17 = vadd.f32 %v2990_v32, %v2941_v42  ;;  %5182 = vrcp.f32 %v3418_v50  ;;  %v3244_v9 = vmul.f32 1.442695, %v3198_v22 }
 0x375   :  { %v5177_v62 = vpop.eup %5176  ;;  %v3292_v37 = vadd.f32 1.0, %v5175_v57  ;;  %v3090_v11 = vpop.f32.mrf.mxu1  ;;  %v3421_v42 = vadd.f32 1.0, %v3325_v40  ;;  %v3386_v52 = vmul.f32 %v4614_v51, %v6721_v7 }
 0x376   :  { %v3483_v47 = vmul.f32 %v5177_v62, %v3387_v39  ;;  %v3250_v41 = vmul.f32 1.442695, %v3201_v14  ;;  %v5179_v2 = vpop.eup %5178  ;;  %5184 = vpow2.f32 %v3244_v9  ;;  %v3130_v12 = vmul.f32 %v6631_v31, %v2991_v17 }
 0x377   :  { %v3091_v49 = vadd.f32 %v3090_v11, %v3041_v28  ;;  %v5181_v53 = vpop.eup %5180  ;;  %v3324_v21 = vmul.f32 %v3292_v37, %v3292_v37  ;;  %v3480_v26 = vmul.f32 %v5179_v2, %v3384_v3  ;;  %v3389_v39 = vmul.f32 %v4617_v8, %v6725_v1 }
 0x378   :  { %v4937_v23 = vpack.c.bf16 %v3483_v47, %v3481_v44  ;;  %5186 = vpow2.f32 %v3250_v41  ;;  %v3295_v61 = vadd.f32 1.0, %v5181_v53  ;;  %v6765_v63 = vadd.f32 %v6634_v58, %v3130_v12  ;;  %v2948_v44 = vpop.f32.mrf.mxu2 }
 0x379   :  { %v3133_v18 = vmul.f32 %v6623_v35, %v3091_v49  ;;  %5188 = vrcp.f32 %v3421_v42  ;;  %v3420_v60 = vadd.f32 1.0, %v3324_v21  ;;  %v4616_v14 = vadd.f32 -1.0, %v3324_v21 }
 0x37a   :  { %4972 = vst [vmem:[%s6899_s8 + $0x10] sm:$0xff] %v4937_v23   ;;  %v5183_v28 = vpop.eup %5182  ;;  %v3327_v25 = vmul.f32 %v3295_v61, %v3295_v61  ;;  %v3200_v24 = vmin.f32 %v6765_v63, 20.0 }
 0x37b   :  { %v2992_v5 = vpop.f32.mrf.mxu3  ;;  %v3482_v29 = vmul.f32 %v5183_v28, %v3386_v52  ;;  %v6774_v55 = vadd.f32 %v6625_v20, %v3133_v18  ;;  %v3388_v42 = vmul.f32 %v4616_v14, %v6738_v19  ;;  %v3049_v52 = vpop.f32.mrf.mxu0 }
 0x37c   :  { %v2993_v38 = vadd.f32 %v2992_v5, %v2943_v59  ;;  %v5185_v4 = vpop.eup %5184  ;;  %v3423_v54 = vadd.f32 1.0, %v3327_v25  ;;  %v3248_v7 = vmul.f32 1.442695, %v3200_v24  ;;  %v4619_v43 = vadd.f32 -1.0, %v3327_v25 }
 0x37d   :  { %v3093_v27 = vpop.f32.mrf.mxu1  ;;  %v4897_v48 = vpack.c.bf16 %v3482_v29, %v3480_v26  ;;  %v3294_v46 = vadd.f32 1.0, %v5185_v4  ;;  %v3203_v16 = vmin.f32 %v6774_v55, 20.0 }
 0x37e   :  { %v5187_v0 = vpop.eup %5186  ;;  %v3132_v10 = vmul.f32 %v6631_v31, %v2993_v38  ;;  %5190 = vrcp.f32 %v3423_v54  ;;  %v3094_v34 = vadd.f32 %v3093_v27, %v3044_v36  ;;  %v3391_v40 = vmul.f32 %v4619_v43, %v6743_v33 }
 0x37f   :  { %v3297_v56 = vadd.f32 1.0, %v5187_v0  ;;  %4965 = vst [vmem:[%s6898_s7 + $0x10] sm:$0xff] %v4897_v48   ;;  %v3326_v59 = vmul.f32 %v3294_v46, %v3294_v46  ;;  %5192 = vpow2.f32 %v3248_v7  ;;  %v3254_v50 = vmul.f32 1.442695, %v3203_v16  ;;  %v5189_v13 = vpop.eup %5188 }
 0x380   :  { %v6782_v22 = vadd.f32 %v6634_v58, %v3132_v10  ;;  %5194 = vrcp.f32 %v3420_v60  ;;  %v3135_v32 = vmul.f32 %v6623_v35, %v3094_v34  ;;  %v3485_v12 = vmul.f32 %v5189_v13, %v3389_v39  ;;  %v2951_v34 = vpop.f32.mrf.mxu2 }
 0x381   :  { %v3422_v57 = vadd.f32 1.0, %v3326_v59  ;;  %5196 = vpow2.f32 %v3254_v50  ;;  %v3329_v37 = vmul.f32 %v3297_v56, %v3297_v56  ;;  %v4618_v47 = vadd.f32 -1.0, %v3326_v59 }
 0x382   :  { %v3202_v36 = vmin.f32 %v6782_v22, 20.0  ;;  %v6788_v17 = vadd.f32 %v6625_v20, %v3135_v32 }
 0x383   :  { %v2995_v62 = vpop.f32.mrf.mxu3  ;;  %5198 = vrcp.f32 %v3422_v57  ;;  %v3425_v28 = vadd.f32 1.0, %v3329_v37  ;;  %v3390_v25 = vmul.f32 %v4618_v47, %v6753_v6  ;;  %v4621_v32 = vadd.f32 -1.0, %v3329_v37 }
 0x384   :  { %v2996_v9 = vadd.f32 %v2995_v62, %v2946_v15  ;;  %v5191_v11 = vpop.eup %5190  ;;  %v3252_v51 = vmul.f32 1.442695, %v3202_v36  ;;  %v3205_v41 = vmin.f32 %v6788_v17, 20.0  ;;  %v3051_v62 = vpop.f32.mrf.mxu0 }
 0x385   :  { %v3095_v2 = vpop.f32.mrf.mxu1  ;;  %v5193_v1 = vpop.eup %5192  ;;  %v3487_v49 = vmul.f32 %v5191_v11, %v3391_v40 }
 0x386   :  { %v3134_v53 = vmul.f32 %v6631_v31, %v2996_v9  ;;  %v3096_v3 = vadd.f32 %v3095_v2, %v3046_v45  ;;  %v5195_v23 = vpop.eup %5194  ;;  %v3296_v33 = vadd.f32 1.0, %v5193_v1  ;;  %5200 = vpow2.f32 %v3252_v51 }
 0x387   :  { %v3258_v21 = vmul.f32 1.442695, %v3205_v41  ;;  %v5197_v61 = vpop.eup %5196  ;;  %v4942_v18 = vpack.c.bf16 %v3487_v49, %v3485_v12  ;;  %v3484_v38 = vmul.f32 %v5195_v23, %v3388_v42  ;;  %v3393_v41 = vmul.f32 %v4621_v32, %v6756_v30 }
 0x388   :  { %v6795_v15 = vadd.f32 %v6634_v58, %v3134_v53  ;;  %v3137_v26 = vmul.f32 %v6623_v35, %v3096_v3  ;;  %v3328_v24 = vmul.f32 %v3296_v33, %v3296_v33  ;;  %v3299_v5 = vadd.f32 1.0, %v5197_v61 }
 0x389   :  { %5202 = vpow2.f32 %v3258_v21  ;;  %v5199_v29 = vpop.eup %5198  ;;  %4973 = vst [vmem:[%s6899_s8 + $0x18] sm:$0xff] %v4942_v18  }
 0x38a   :  { %v3204_v19 = vmin.f32 %v6795_v15, 20.0  ;;  %v6804_v8 = vadd.f32 %v6625_v20, %v3137_v26  ;;  %v3486_v4 = vmul.f32 %v5199_v29, %v3390_v25  ;;  %v3331_v60 = vmul.f32 %v3299_v5, %v3299_v5  ;;  %v2953_v5 = vpop.f32.mrf.mxu2 }
 0x38b   :  { %v2997_v54 = vpop.f32.mrf.mxu3  ;;  %5204 = vrcp.f32 %v3425_v28  ;;  %v3424_v48 = vadd.f32 1.0, %v3328_v24  ;;  %v4620_v2 = vadd.f32 -1.0, %v3328_v24 }
 0x38c   :  { %v3256_v7 = vmul.f32 1.442695, %v3204_v19  ;;  %v3207_v6 = vmin.f32 %v6804_v8, 20.0  ;;  %v2998_v27 = vadd.f32 %v2997_v54, %v2948_v44  ;;  %v5201_v0 = vpop.eup %5200  ;;  %v4902_v45 = vpack.c.bf16 %v3486_v4, %v3484_v38 }
 0x38d   :  { %v3098_v46 = vpop.f32.mrf.mxu1  ;;  %v3427_v16 = vadd.f32 1.0, %v3331_v60  ;;  %v3298_v10 = vadd.f32 1.0, %v5201_v0  ;;  %v4623_v39 = vadd.f32 -1.0, %v3331_v60  ;;  %v3392_v29 = vmul.f32 %v4620_v2, %v6765_v63 }
 0x38e   :  { %5206 = vpow2.f32 %v3256_v7  ;;  %v3262_v43 = vmul.f32 1.442695, %v3207_v6  ;;  %4966 = vst [vmem:[%s6898_s7 + $0x18] sm:$0xff] %v4902_v45   ;;  %v3136_v59 = vmul.f32 %v6631_v31, %v2998_v27  ;;  %v3099_v50 = vadd.f32 %v3098_v46, %v3049_v52  ;;  %v3054_v45 = vpop.f32.mrf.mxu0 }
 0x38f   :  { %v5203_v56 = vpop.eup %5202  ;;  %5208 = vrcp.f32 %v3427_v16  ;;  %v3330_v57 = vmul.f32 %v3298_v10, %v3298_v10  ;;  %v3395_v1 = vmul.f32 %v4623_v39, %v6774_v55 }
 0x390   :  { %v3301_v13 = vadd.f32 1.0, %v5203_v56  ;;  %5210 = vpow2.f32 %v3262_v43  ;;  %v6812_v14 = vadd.f32 %v6634_v58, %v3136_v59  ;;  %v3139_v36 = vmul.f32 %v6623_v35, %v3099_v50 }
 0x391   :  { %5212 = vrcp.f32 %v3424_v48  ;;  %v3426_v40 = vadd.f32 1.0, %v3330_v57  ;;  %v5205_v9 = vpop.eup %5204  ;;  %v4622_v12 = vadd.f32 -1.0, %v3330_v57 }
 0x392   :  { %v3333_v11 = vmul.f32 %v3301_v13, %v3301_v13  ;;  %v3206_v44 = vmin.f32 %v6812_v14, 20.0  ;;  %v6817_v47 = vadd.f32 %v6625_v20, %v3139_v36  ;;  %v3489_v52 = vmul.f32 %v5205_v9, %v3393_v41  ;;  %v2956_v41 = vpop.f32.mrf.mxu2 }
 0x393   :  { %v3000_v37 = vpop.f32.mrf.mxu3  ;;  %5214 = vrcp.f32 %v3426_v40  ;;  %v3394_v38 = vmul.f32 %v4622_v12, %v6782_v22 }
 0x394   :  { %v5207_v51 = vpop.eup %5206  ;;  %v3260_v49 = vmul.f32 1.442695, %v3206_v44  ;;  %v3209_v53 = vmin.f32 %v6817_v47, 20.0  ;;  %v3001_v33 = vadd.f32 %v3000_v37, %v2951_v34  ;;  %v3429_v28 = vadd.f32 1.0, %v3333_v11 }
 0x395   :  { %v3100_v3 = vpop.f32.mrf.mxu1  ;;  %v5209_v23 = vpop.eup %5208  ;;  %v3300_v42 = vadd.f32 1.0, %v5207_v51  ;;  %v4625_v10 = vadd.f32 -1.0, %v3333_v11 }
 0x396   :  { %v3101_v21 = vadd.f32 %v3100_v3, %v3051_v62  ;;  %v5211_v61 = vpop.eup %5210  ;;  %v3491_v18 = vmul.f32 %v5209_v23, %v3395_v1  ;;  %v3266_v26 = vmul.f32 1.442695, %v3209_v53  ;;  %5216 = vpow2.f32 %v3260_v49 }
 0x397   :  { %v5213_v25 = vpop.eup %5212  ;;  %v3303_v30 = vadd.f32 1.0, %v5211_v61  ;;  %v3138_v24 = vmul.f32 %v6631_v31, %v3001_v33  ;;  %v3332_v60 = vmul.f32 %v3300_v42, %v3300_v42  ;;  %v3397_v51 = vmul.f32 %v4625_v10, %v6788_v17 }
 0x398   :  { %v3141_v55 = vmul.f32 %v6623_v35, %v3101_v21  ;;  %v4947_v19 = vpack.c.bf16 %v3491_v18, %v3489_v52  ;;  %5218 = vpow2.f32 %v3266_v26  ;;  %v3488_v27 = vmul.f32 %v5213_v25, %v3392_v29  ;;  %v3056_v26 = vpop.f32.mrf.mxu0 }
 0x399   :  { %v5215_v4 = vpop.eup %5214  ;;  %v3335_v54 = vmul.f32 %v3303_v30, %v3303_v30  ;;  %v6827_v7 = vadd.f32 %v6634_v58, %v3138_v24  ;;  %5220 = vrcp.f32 %v3429_v28  ;;  %v3428_v59 = vadd.f32 1.0, %v3332_v60 }
 0x39a   :  { %v6830_v6 = vadd.f32 %v6625_v20, %v3141_v55  ;;  %4974 = vst [vmem:[%s6899_s8 + $0x20] sm:$0xff] %v4947_v19   ;;  %v3490_v0 = vmul.f32 %v5215_v4, %v3394_v38  ;;  %v4624_v42 = vadd.f32 -1.0, %v3332_v60 }
 0x39b   :  { %v3002_v63 = vpop.f32.mrf.mxu3  ;;  %v3431_v22 = vadd.f32 1.0, %v3335_v54  ;;  %v3208_v48 = vmin.f32 %v6827_v7, 20.0  ;;  %v4627_v50 = vadd.f32 -1.0, %v3335_v54 }
 0x39c   :  { %v3211_v46 = vmin.f32 %v6830_v6, 20.0  ;;  %v4907_v16 = vpack.c.bf16 %v3490_v0, %v3488_v27  ;;  %v3003_v43 = vadd.f32 %v3002_v63, %v2953_v5  ;;  %v5217_v34 = vpop.eup %5216  ;;  %v3396_v54 = vmul.f32 %v4624_v42, %v6795_v15 }
 0x39d   :  { %v3103_v56 = vpop.f32.mrf.mxu1  ;;  %5222 = vrcp.f32 %v3431_v22  ;;  %v3264_v32 = vmul.f32 1.442695, %v3208_v48  ;;  %v3302_v13 = vadd.f32 1.0, %v5217_v34  ;;  %v3399_v2 = vmul.f32 %v4627_v50, %v6804_v8 }
 0x39e   :  { %v5219_v57 = vpop.eup %5218  ;;  %4967 = vst [vmem:[%s6898_s7 + $0x20] sm:$0xff] %v4907_v16   ;;  %v3270_v39 = vmul.f32 1.442695, %v3211_v46  ;;  %v3140_v36 = vmul.f32 %v6631_v31, %v3003_v43  ;;  %v3104_v62 = vadd.f32 %v3103_v56, %v3054_v45 }
 0x39f   :  { %v3305_v40 = vadd.f32 1.0, %v5219_v57  ;;  %5224 = vpow2.f32 %v3264_v32  ;;  %v5221_v9 = vpop.eup %5220  ;;  %v3334_v11 = vmul.f32 %v3302_v13, %v3302_v13 }
 0x3a0   :  { %5226 = vpow2.f32 %v3270_v39  ;;  %v6842_v44 = vadd.f32 %v6634_v58, %v3140_v36  ;;  %v3143_v37 = vmul.f32 %v6623_v35, %v3104_v62  ;;  %v3493_v23 = vmul.f32 %v5221_v9, %v3397_v51 }
 0x3a1   :  { %5228 = vrcp.f32 %v3428_v59  ;;  %v3430_v1 = vadd.f32 1.0, %v3334_v11  ;;  %v3337_v33 = vmul.f32 %v3305_v40, %v3305_v40  ;;  %v4626_v52 = vadd.f32 -1.0, %v3334_v11 }
 0x3a2   :  { %v3210_v12 = vmin.f32 %v6842_v44, 20.0  ;;  %v6849_v49 = vadd.f32 %v6625_v20, %v3143_v37 }
 0x3a3   :  { %v3005_v53 = vpop.f32.mrf.mxu3  ;;  %v5223_v3 = vpop.eup %5222  ;;  %5230 = vrcp.f32 %v3430_v1  ;;  %v3433_v19 = vadd.f32 1.0, %v3337_v33  ;;  %v3398_v27 = vmul.f32 %v4626_v52, %v6812_v14  ;;  %v4629_v59 = vadd.f32 -1.0, %v3337_v33 }
 0x3a4   :  { %v3006_v21 = vadd.f32 %v3005_v53, %v2956_v41  ;;  %v3495_v61 = vmul.f32 %v5223_v3, %v3399_v2  ;;  %v3268_v17 = vmul.f32 1.442695, %v3210_v12  ;;  %v3213_v8 = vmin.f32 %v6849_v49, 20.0 }
 0x3a5   :  { %v3105_v18 = vpop.f32.mrf.mxu1  ;;  %v5225_v28 = vpop.eup %5224  ;;  %v3401_v51 = vmul.f32 %v4629_v59, %v6817_v47 }
 0x3a6   :  { %v3142_v25 = vmul.f32 %v6631_v31, %v3006_v21  ;;  %v5227_v30 = vpop.eup %5226  ;;  %v4952_v24 = vpack.c.bf16 %v3495_v61, %v3493_v23  ;;  %v3304_v55 = vadd.f32 1.0, %v5225_v28  ;;  %5232 = vpow2.f32 %v3268_v17 }
 0x3a7   :  { %v3106_v5 = vadd.f32 %v3105_v18, %v3056_v26  ;;  %v5229_v29 = vpop.eup %5228  ;;  %v3307_v38 = vadd.f32 1.0, %v5227_v30  ;;  %v3274_v4 = vmul.f32 1.442695, %v3213_v8 }
 0x3a8   :  { %v6854_v60 = vadd.f32 %v6634_v58, %v3142_v25  ;;  %4975 = vst [vmem:[%s6899_s8 + $0x28] sm:$0xff] %v4952_v24   ;;  %v3336_v63 = vmul.f32 %v3304_v55, %v3304_v55  ;;  %v3492_v46 = vmul.f32 %v5229_v29, %v3396_v54 }
 0x3a9   :  { %v3145_v0 = vmul.f32 %v6623_v35, %v3106_v5  ;;  %v3339_v45 = vmul.f32 %v3307_v38, %v3307_v38  ;;  %5234 = vpow2.f32 %v3274_v4  ;;  %v5231_v48 = vpop.eup %5230  ;;  %v2958_v35 = vpop.f32.mrf.mxu2 }
 0x3aa   :  { %v3212_v22 = vmin.f32 %v6854_v60, 20.0  ;;  %v3494_v10 = vmul.f32 %v5231_v48, %v3398_v27  ;;  %5236 = vrcp.f32 %v3433_v19  ;;  %v3432_v32 = vadd.f32 1.0, %v3336_v63 }
 0x3ab   :  { %v6864_v16 = vadd.f32 %v6625_v20, %v3145_v0  ;;  %v3435_v15 = vadd.f32 1.0, %v3339_v45  ;;  %v3007_v56 = vpop.f32.mrf.mxu3  ;;  %v4631_v13 = vadd.f32 -1.0, %v3339_v45  ;;  %v4628_v12 = vadd.f32 -1.0, %v3336_v63 }
 0x3ac   :  { %v3272_v43 = vmul.f32 1.442695, %v3212_v22  ;;  %v5233_v34 = vpop.eup %5232  ;;  %v4912_v50 = vpack.c.bf16 %v3494_v10, %v3492_v46  ;;  %v3008_v36 = vadd.f32 %v3007_v56, %v2958_v35 }
 0x3ad   :  { %v3215_v14 = vmin.f32 %v6864_v16, 20.0  ;;  %5238 = vrcp.f32 %v3435_v15  ;;  %v3306_v57 = vadd.f32 1.0, %v5233_v34  ;;  %v3403_v41 = vmul.f32 %v4631_v13, %v6830_v6 }
 0x3ae   :  { %5240 = vpow2.f32 %v3272_v43  ;;  %4968 = vst [vmem:[%s6898_s7 + $0x28] sm:$0xff] %v4912_v50   ;;  %v3144_v9 = vmul.f32 %v6631_v31, %v3008_v36  ;;  %v3400_v6 = vmul.f32 %v4628_v12, %v6827_v7 }
 0x3af   :  { %v3278_v39 = vmul.f32 1.442695, %v3215_v14  ;;  %v5235_v20 = vpop.eup %5234  ;;  %v3338_v62 = vmul.f32 %v3306_v57, %v3306_v57 }
 0x3b0   :  { %v3309_v40 = vadd.f32 1.0, %v5235_v20  ;;  %v5237_v11 = vpop.eup %5236  ;;  %v3182_v2 = vadd.f32 %v6634_v58, %v3144_v9 }
 0x3b1   :  { %5242 = vpow2.f32 %v3278_v39  ;;  %v3434_v37 = vadd.f32 1.0, %v3338_v62  ;;  %v3497_v23 = vmul.f32 %v5237_v11, %v3401_v51  ;;  %v4630_v33 = vadd.f32 -1.0, %v3338_v62 }
 0x3b2   :  { %5244 = vrcp.f32 %v3432_v32  ;;  %v3341_v53 = vmul.f32 %v3309_v40, %v3309_v40  ;;  %v3214_v21 = vmin.f32 %v3182_v2, 20.0 }
 0x3b3   :  { %v5239_v1 = vpop.eup %5238  ;;  %5246 = vrcp.f32 %v3434_v37  ;;  %v3402_v58 = vmul.f32 %v4630_v33, %v6842_v44 }
 0x3b4   :  { %v5241_v3 = vpop.eup %5240  ;;  %v3499_v42 = vmul.f32 %v5239_v1, %v3403_v41  ;;  %v3276_v52 = vmul.f32 1.442695, %v3214_v21  ;;  %v3437_v18 = vadd.f32 1.0, %v3341_v53  ;;  %v4633_v7 = vadd.f32 -1.0, %v3341_v53 }
 0x3b5   :  { %v3308_v28 = vadd.f32 1.0, %v5241_v3 }
 0x3b6   :  { %v4957_v31 = vpack.c.bf16 %v3499_v42, %v3497_v23  ;;  %5248 = vpow2.f32 %v3276_v52  ;;  %v3405_v27 = vmul.f32 %v4633_v7, %v6849_v49 }
 0x3b7   :  { %v5243_v61 = vpop.eup %5242  ;;  %5250 = vrcp.f32 %v3437_v18  ;;  %v3340_v24 = vmul.f32 %v3308_v28, %v3308_v28 }
 0x3b8   :  { %v5245_v17 = vpop.eup %5244  ;;  %v3311_v47 = vadd.f32 1.0, %v5243_v61  ;;  %4976 = vst [vmem:[%s6899_s8 + $0x30] sm:$0xff] %v4957_v31  }
 0x3b9   :  { %v5247_v26 = vpop.eup %5246  ;;  %v3496_v25 = vmul.f32 %v5245_v17, %v3400_v6  ;;  %v3436_v38 = vadd.f32 1.0, %v3340_v24  ;;  %v4632_v46 = vadd.f32 -1.0, %v3340_v24 }
 0x3ba   :  { %v3343_v8 = vmul.f32 %v3311_v47, %v3311_v47  ;;  %v3498_v30 = vmul.f32 %v5247_v26, %v3402_v58 }
 0x3bb   :  { %v3404_v56 = vmul.f32 %v4632_v46, %v6854_v60 }
 0x3bc   :  { %v3439_v55 = vadd.f32 1.0, %v3343_v8  ;;  %v4917_v5 = vpack.c.bf16 %v3498_v30, %v3496_v25  ;;  %v5249_v29 = vpop.eup %5248  ;;  %v4635_v19 = vadd.f32 -1.0, %v3343_v8 }
 0x3bd   :  { %v3310_v4 = vadd.f32 1.0, %v5249_v29  ;;  %v5251_v44 = vpop.eup %5250 }
 0x3be   :  { %5252 = vrcp.f32 %v3439_v55  ;;  %4969 = vst [vmem:[%s6898_s7 + $0x30] sm:$0xff] %v4917_v5   ;;  %v3407_v0 = vmul.f32 %v4635_v19, %v6864_v16  ;;  %v3501_v22 = vmul.f32 %v5251_v44, %v3405_v27 }
 0x3bf   :  { %v3342_v54 = vmul.f32 %v3310_v4, %v3310_v4  ;;  %5254 = vrcp.f32 %v3436_v38 }
 0x3c1   :  { %v3438_v45 = vadd.f32 1.0, %v3342_v54  ;;  %v4634_v15 = vadd.f32 -1.0, %v3342_v54 }
 0x3c3   :  { %5256 = vrcp.f32 %v3438_v45  ;;  %v3406_v34 = vmul.f32 %v4634_v15, %v3182_v2 }
 0x3c4   :  { %v5253_v63 = vpop.eup %5252 }
 0x3c5   :  { %v3503_v48 = vmul.f32 %v5253_v63, %v3407_v0  ;;  %v5255_v43 = vpop.eup %5254 }
 0x3c6   :  { %v3500_v59 = vmul.f32 %v5255_v43, %v3404_v56 }
 0x3c7   :  { %v4962_v10 = vpack.c.bf16 %v3503_v48, %v3501_v22 }
 0x3c9   :  { %4977 = vst [vmem:[%s6899_s8 + $0x38] sm:$0xff] %v4962_v10   ;;  %v5257_v49 = vpop.eup %5256 }
 0x3ca   :  { %v3502_v16 = vmul.f32 %v5257_v49, %v3406_v34 }
 0x3cc   :  { %v4922_v14 = vpack.c.bf16 %v3502_v16, %v3500_v59 }
 0x3ce   :  { %4970 = vst [vmem:[%s6898_s7 + $0x38] sm:$0xff] %v4922_v14  }
 0x3cf   :  { %3576 = vsyncpa [#allocation3], 1 }
 0x3d0   :  { %3577 = vsyncpa [#allocation5], 1 }
 0x3d1   :  { %3578 = vsyncpa [#allocation8], 1 }
 0x3d2   :  { %3579 = vsyncpa [#allocation11], 1 }

// kernel: downsample3_forward.3
= control target key start
LH: loop header
LB: loop body
LE: loop exit
PB: predicated region body
PF: predicated region fallthrough
CT: control target
= control target key end

     0   :  { %s7197_s0 = inlined_call_operand.vmem [shape: bf16[2,8,8,128], index: 0, kind: input, shape index: {}]   ;;  %s7198_s1 = inlined_call_operand.vmem [shape: bf16[2,8,8,128], index: 1, kind: input, shape index: {}]   ;;  %s7199_s2 = inlined_call_operand.hbm [shape: f32[9,64,1], index: 2, kind: input, shape index: {}]   ;;  %s7200_s3 = inlined_call_operand.hbm [shape: bf16[8,128,128], index: 3, kind: input, shape index: {}]   ;;  %s7201_s4 = inlined_call_operand.hbm [shape: f32[8,1,128], index: 4, kind: input, shape index: {}]   ;;  %s7202_s5 = inlined_call_operand.hbm [shape: f32[8,1,128], index: 5, kind: input, shape index: {}]   ;;  %s7203_s6 = inlined_call_operand.hbm [shape: bf16[8,1152,128], index: 6, kind: input, shape index: {}]   ;;  %s7204_s7 = inlined_call_operand.hbm [shape: f32[8,1,128], index: 7, kind: input, shape index: {}]   ;;  %s7205_s8 = inlined_call_operand.hbm [shape: f32[8,1,128], index: 8, kind: input, shape index: {}]   ;;  %s7206_s9 = inlined_call_operand.hbm [shape: bf16[128,128], index: 9, kind: input, shape index: {}]   ;;  %s7207_s10 = inlined_call_operand.hbm [shape: f32[1,128], index: 10, kind: input, shape index: {}]   ;;  %s7208_s11 = inlined_call_operand.hbm [shape: f32[1,128], index: 11, kind: input, shape index: {}]   ;;  %s7209_s12 = inlined_call_operand.hbm [shape: bf16[128,256], index: 12, kind: input, shape index: {}]   ;;  %s7210_s13 = inlined_call_operand.hbm [shape: bf16[128,256], index: 13, kind: input, shape index: {}]   ;;  %s7211_s14 = inlined_call_operand.hbm [shape: f32[1,256], index: 14, kind: input, shape index: {}]   ;;  %s7212_s15 = inlined_call_operand.hbm [shape: f32[1,256], index: 15, kind: input, shape index: {}]   ;;  %s7213_s16 = inlined_call_operand.hbm [shape: f32[2,8,8,256], index: 16, kind: output, shape index: {}]  }
   0x1   :  { %7246 = sst [smem:[#allocation52_spill]] %s7197_s0 }
   0x2   :  { %7247 = sst [smem:[#allocation53_spill]] %s7198_s1 }
   0x3   :  { %7248 = sst [smem:[#allocation54_spill]] %s7199_s2 }
   0x4   :  { %7249 = sst [smem:[#allocation55_spill]] %s7200_s3 }
   0x5   :  { %7250 = sst [smem:[#allocation56_spill]] %s7201_s4 }
   0x6   :  { %7251 = sst [smem:[#allocation57_spill]] %s7202_s5 }
   0x7   :  { %7252 = sst [smem:[#allocation58_spill]] %s7203_s6 }
   0x8   :  { %7253 = sst [smem:[#allocation59_spill]] %s7205_s8 }
   0x9   :  { %7254 = sst [smem:[#allocation60_spill]] %s7206_s9 }
   0xa   :  { %7255 = sst [smem:[#allocation61_spill]] %s7208_s11 }
   0xb   :  { %7256 = sst [smem:[#allocation62_spill]] %s7210_s13 }
   0xc   :  { %7257 = sst [smem:[#allocation63_spill]] %s7213_s16 }
   0xd   :  { %21 = vsyncpa [#allocation5], 0 }
   0xe   :  { %22 = vsyncpa [#allocation8], 0 }
   0xf   :  { %24 = vsyncpa [#allocation8 + $0x1], 0 }
  0x10   :  { %25 = vsyncpa [#allocation11], 0 }
  0x11   :  { %27 = vsyncpa [#allocation11 + $0x1], 0 }
  0x12   :  { %28 = vsyncpa [#allocation14], 0 }
  0x13   :  { %30 = vsyncpa [#allocation14 + $0x1], 0 }
  0x14   :  { %31 = vsyncpa [#allocation17], 0 }
  0x15   :  { %32 = vsyncpa [#allocation20], 0 }
  0x16   :  { %33 = vsyncpa [#allocation23], 0 }
  0x17   :  { %34 = vsyncpa [#allocation26], 0 }
  0x18   :  { %35 = vsyncpa [#allocation6], 0 }
  0x19   :  { %37 = vsyncpa [#allocation6 + $0x1], 0  ;;  %s6007_s21 = smov 0   ;;  %s6009_s22 = smov 0  }
  0x1a   :  { %s6011_s23 = smov 0   ;;  %s6013_s24 = smov 0  }
  0x1b   :  { %s6015_s25 = smov 0   ;;  %s6017_s26 = smov 0  }
  0x1c   :  { %s6019_s27 = smov 0   ;;  %s6021_s28 = smov 0  }
  0x1d   :  { %s6023_s29 = smov 0   ;;  %s6025_s30 = smov 0  }
  0x1e   :  { %s6027_s0 = smov 0  }
  0x1f LB: > { %7258 = sst [smem:[#allocation37_spill]] %s5865_s21  ;;  %s6063_s17 = sadd.s32 4294967295, %s5905_s0   ;;  %s5905_s0 = sphi %s6027_s0, %s43_s0   ;;  %s5901_s30 = sphi %s6025_s30, %s7322_s30   ;;  %s5897_s29 = sphi %s6023_s29, %s7326_s29   ;;  %s5893_s28 = sphi %s6021_s28, %s7320_s28   ;;  %s5889_s27 = sphi %s6019_s27, %s7325_s27   ;;  %s5885_s26 = sphi %s6017_s26, %s7319_s26   ;;  %s5881_s25 = sphi %s6015_s25, %s7324_s25   ;;  %s5877_s24 = sphi %s6013_s24, %s7323_s24   ;;  %s5873_s23 = sphi %s6011_s23, %s7317_s23   ;;  %s5869_s22 = sphi %s6009_s22, %s7316_s22   ;;  %s5865_s21 = sphi %s6007_s21, %s7315_s21  }
  0x20   : > { %7259 = sst [smem:[#allocation38_spill]] %s5869_s22  ;;  %s4008_s18 = sadd.s32 4294967294, %s5905_s0  }
  0x21   : > { %7260 = sst [smem:[#allocation39_spill]] %s5873_s23  ;;  %p149_p0 = scmp.eq.s32.totalorder %s6063_s17, 0 }
  0x22   : > { %7261 = sst [smem:[#allocation40_spill]] %s5885_s26  ;;  %p448_p1 = scmp.ne.s32.totalorder %s5873_s23, %s5869_s22 }
  0x23   : > { %7262 = sst [smem:[#allocation41_spill]] %s5889_s27  ;;  %p449_p2 = scmp.eq.s32.totalorder %s6063_s17, 15 }
  0x24   : > { %7263 = sst [smem:[#allocation42_spill]] %s5893_s28  ;;  %p454_p3 = scmp.ne.s32.totalorder %s5869_s22, %s5865_s21 }
  0x25   : > { %7264 = sst [smem:[#allocation43_spill]] %s5901_s30  ;;  %p455_p4 = scmp.eq.s32.totalorder %s4008_s18, 15 }
  0x26   : > { %7265 = sst [smem:[#allocation44_spill]] %s5905_s0  ;;  %p4009_p5 = scmp.ge.s32.totalorder %s5905_s0, 1 }
  0x27   : > { %p6073_p6 = por %p449_p2, %p448_p1  ;;  %p462_p7 = scmp.lt.s32.totalorder %s5905_s0, 17 }
  0x28   : > { %p6078_p8 = por %p455_p4, %p454_p3  ;;  %s7272_s9 = sld [smem:[#allocation60_spill]] }
  0x29   : > { %s7266_s19 = scalar_select %p6073_p6, 1, 0 }
  0x2a   : > { %s7268_s20 = scalar_select %p6078_p8, 1, 0 }
  0x2b   : > { %7267 = sst [smem:[#allocation45_spill]] %s7266_s19  ;;  %p6082_p9 = pnand %p4009_p5, %p462_p7 }
  0x2c   : > { %7269 = sst [smem:[#allocation46_spill]] %s7268_s20  ;;  %s5907_s18 = smov [#allocation16]  }
  0x2d   : > { %s7270_s16 = scalar_select %p6082_p9, 1, 0 }
  0x2e   : > { %s487_s21 = sshll.u32 %s7272_s9, 4  ;;  %p4989_p10 = pneg %p6082_p9  ;;  %s488_s21 = int_to_ptr.hbm [resolvable:$true] %s487_s21 }
  0x2f   : > { %7271 = sst [smem:[#allocation47_spill]] %s7270_s16  ;;  %s489_s28 = sshll.u32 %s5907_s18, 4  ;;  %s490_s28 = int_to_ptr.vmem [resolvable:$true] %s489_s28 }
  0x30   : > { %p6093_p11 = pnand %p4989_p10, %p149_p0  ;;  %s7274_s11 = sld [smem:[#allocation61_spill]] }
  0x31   : > { %s7227_s1 = smov 64   ;;  %s7229_s27 = smov 4  }
  0x32   : > { %4995 = dma.hbm_to_vmem [thread:$0]  (!%p6093_p11), %s488_s21, 1024, %s490_s28, [#allocation17], %s7227_s1, %s7227_s1, %s7229_s27  }
  0x33   : > { %s5910_s18 = smov [#allocation19]   ;;  %s7275_s13 = sld [smem:[#allocation62_spill]] }
  0x34   : > { %s516_s9 = sshll.u32 %s5910_s18, 4  ;;  %s5911_s16 = smov [#allocation22]   ;;  %s517_s9 = int_to_ptr.vmem [resolvable:$true] %s516_s9 }
  0x35   : > { %s541_s8 = sshll.u32 %s5911_s16, 4  ;;  %s7223_s21 = smov 128   ;;  %s542_s8 = int_to_ptr.vmem [resolvable:$true] %s541_s8 }
  0x36   : > { %s514_s6 = sshll.u32 %s7274_s11, 4  ;;  %s7225_s28 = smov 8   ;;  %s515_s6 = int_to_ptr.hbm [resolvable:$true] %s514_s6 }
  0x37   : > { %5001 = dma.hbm_to_vmem [thread:$0]  (!%p6093_p11), %s515_s6, 16, %s517_s9, [#allocation20]  }
  0x38   : > { %s52_s18 = sadd.s32 1, %s5897_s29  ;;  %s55_s22 = sadd.s32 1, %s5901_s30 }
  0x39   : > { %s539_s11 = sshll.u32 %s7275_s13, 4  ;;  %p53_p12 = scmp.ge.s32.totalorder %s52_s18, 8  ;;  %s540_s11 = int_to_ptr.hbm [resolvable:$true] %s539_s11 }
  0x3a   : > { %5007 = dma.hbm_to_vmem [thread:$0]  (!%p6093_p11), %s540_s11, 2048, %s542_s8, [#allocation23], %s7223_s21, %s7223_s21, %s7225_s28  }
  0x3b   : > { %s135_s6 = sadd.s32 1, %s5885_s26  ;;  %p142_p13 = scmp.ne.s32.totalorder %s5885_s26, %s5881_s25 }
  0x3c   : > { %p143_p1 = scmp.eq.s32.totalorder %s5905_s0, 0  ;;  %s7328_s18 = smov (%p53_p12, %s52_s18), 0 }
  0x3d   : > { %7276 = sst [smem:[#allocation48_spill]] %s7328_s18  ;;  %s7330_s22 = smov (!%p53_p12, %s55_s22), %s5901_s30 }
  0x3e   : > { %s132_s9 = ssub.s32 %s5897_s29, %s7328_s18  ;;  %p6126_p2 = por %p143_p1, %p142_p13 }
  0x3f   : > { %p57_p3 = scmp.ge.s32.totalorder %s7330_s22, 2  ;;  %p133_p4 = scmp.eq.s32.totalorder %s132_s9, 0 }
  0x40   : > { %p148_p5 = scmp.ne.s32.totalorder %s5881_s25, %s5877_s24  ;;  %s438_s11 = sadd.s32 1, %s5873_s23 }
  0x41   : > { %s7332_s22 = smov (%p57_p3, %s7330_s22), 0  ;;  %p5045_p12 = scmp.lt.s32.totalorder %s5905_s0, 16 }
  0x42   : > { %7278 = sst [smem:[#allocation49_spill]] %s7332_s22  ;;  %p6140_p7 = por %p149_p0, %p148_p5 }
  0x43   : > { %s6136_s16 = scalar_select %p133_p4, %s5885_s26, %s135_s6  }
  0x44   : > { %s435_s21 = ssub.s32 %s5901_s30, %s7332_s22  ;;  %s6148_s28 = sand.u32 1, %s5905_s0  }
  0x45   : > { %7279 = sst [smem:[#allocation50_spill]] %s6136_s16  ;;  %p436_p10 = scmp.eq.s32.totalorder %s435_s21, 0 }
  0x46   : > { %s6151_s24 = sand.u32 1, %s5885_s26   ;;  %s4725_s1 = sshll.u32 %s5897_s29, 6 }
  0x47   : > { %s6154_s6 = scalar_select %p436_p10, %s5873_s23, %s438_s11  }
  0x48   : > { %s4019_s9 = sshll.u32 %s6151_s24, 6  ;;  %s7282_s3 = sld [smem:[#allocation55_spill]] }
  0x49   : > { %7281 = sst [smem:[#allocation51_spill]] %s6154_s6  ;;  %s599_s21 = scalar_lea.vmem [#allocation7], %s4019_s9 }
  0x4a   : > { %s607_s22 = sshll.u32 %s599_s21, 4  ;;  %p6163_p13 = pnand %p5045_p12, %p6126_p2  ;;  %s608_s22 = int_to_ptr.vmem [resolvable:$true] %s607_s22 }
  0x4b   : > { %s7284_s5 = sld [smem:[#allocation57_spill]]  ;;  %s7285_s27 = smov 4  }
  0x4c   : > { %s7286_s9 = smov 64   ;;  %s637_s8 = scalar_lea.vmem [#allocation10], %s6151_s24 }
  0x4d   : > { %s644_s21 = sshll.u32 %s637_s8, 4  ;;  %s676_s6 = scalar_lea.vmem [#allocation13], %s6151_s24  ;;  %s645_s21 = int_to_ptr.vmem [resolvable:$true] %s644_s21 }
  0x4e   : > { %s604_s18 = scalar_lea.hbm %s7282_s3, %s4725_s1  ;;  %s7240_s1 = scalar_lea.sflag [#allocation8], %s6148_s28 }
  0x4f   : > { %s605_s30 = sshll.u32 %s604_s18, 4  ;;  %s7238_s3 = scalar_lea.sflag [#allocation11], %s6148_s28  ;;  %s606_s30 = int_to_ptr.hbm [resolvable:$true] %s605_s30 }
  0x50   : > { %5017 = dma.hbm_to_vmem [thread:$0]  (!%p6163_p13), %s606_s30, 1024, %s608_s22, %s7240_s1, %s7286_s9, %s7286_s9, %s7285_s27  }
  0x51   : > { %s640_s13 = scalar_lea.hbm %s7284_s5, %s5897_s29  ;;  %s679_s5 = scalar_lea.hbm %s7204_s7, %s5897_s29 }
  0x52   : > { %s642_s18 = sshll.u32 %s640_s13, 4  ;;  %s683_s23 = sshll.u32 %s676_s6, 4  ;;  %s643_s18 = int_to_ptr.hbm [resolvable:$true] %s642_s18  ;;  %s684_s23 = int_to_ptr.vmem [resolvable:$true] %s683_s23 }
  0x53   : > { %5023 = dma.hbm_to_vmem [thread:$0]  (!%p6163_p13), %s643_s18, 16, %s645_s21, %s7238_s3  }
  0x54   : > { %s681_s0 = sshll.u32 %s679_s5, 4  ;;  %s7239_s30 = scalar_lea.sflag [#allocation14], %s6148_s28  ;;  %s682_s0 = int_to_ptr.hbm [resolvable:$true] %s681_s0 }
  0x55   : > { %5029 = dma.hbm_to_vmem [thread:$0]  (!%p6163_p13), %s682_s0, 16, %s684_s23, %s7239_s30  }
  0x56   : > { %s7287_s2 = sld [smem:[#allocation54_spill]]  ;;  %s5914_s18 = smov [#allocation4]  }
  0x57   : > { %s475_s21 = sshll.u32 %s5914_s18, 4  ;;  %s502_s6 = sshll.u32 %s7207_s10, 4  ;;  %s476_s21 = int_to_ptr.vmem [resolvable:$true] %s475_s21  ;;  %s503_s6 = int_to_ptr.hbm [resolvable:$true] %s502_s6 }
  0x58   : > { %s7288_s5 = smov 8   ;;  %s7289_s3 = smov 128  }
  0x59   : > { %s525_s22 = sshll.u32 %s7209_s12, 4  ;;  %s5915_s13 = smov [#allocation18]   ;;  %s526_s22 = int_to_ptr.hbm [resolvable:$true] %s525_s22 }
  0x5a   : > { %s504_s30 = sshll.u32 %s5915_s13, 4  ;;  %s5916_s18 = smov [#allocation21]   ;;  %s505_s30 = int_to_ptr.vmem [resolvable:$true] %s504_s30 }
  0x5b   : > { %4998 = dma.hbm_to_vmem [thread:$0]  (!%p6093_p11), %s503_s6, 16, %s505_s30, [#allocation17]  }
  0x5c   : > { %s473_s8 = sshll.u32 %s7287_s2, 4  ;;  %s527_s26 = sshll.u32 %s5916_s18, 4  ;;  %s474_s8 = int_to_ptr.hbm [resolvable:$true] %s473_s8  ;;  %s528_s26 = int_to_ptr.vmem [resolvable:$true] %s527_s26 }
  0x5d   : > { %4992 = dma.hbm_to_vmem [thread:$0]  (!%p6093_p11), %s474_s8, 9216, %s476_s21, [#allocation5], %s7289_s3, %s7289_s3, %s7288_s5  }
  0x5e   : > { %s554_s2 = sshll.u32 %s7211_s14, 4  ;;  %s566_s30 = sshll.u32 %s7212_s15, 4  ;;  %s555_s2 = int_to_ptr.hbm [resolvable:$true] %s554_s2  ;;  %s567_s30 = int_to_ptr.hbm [resolvable:$true] %s566_s30 }
  0x5f   : > { %5004 = dma.hbm_to_vmem [thread:$0]  (!%p6093_p11), %s526_s22, 2048, %s528_s26, [#allocation20], %s7289_s3, %s7289_s3, %s7288_s5  }
  0x60   : > { %s5917_s6 = smov [#allocation24]   ;;  %s5918_s1 = smov [#allocation25]  }
  0x61   : > { %s556_s23 = sshll.u32 %s5917_s6, 4  ;;  %s568_s0 = sshll.u32 %s5918_s1, 4  ;;  %s557_s23 = int_to_ptr.vmem [resolvable:$true] %s556_s23  ;;  %s569_s0 = int_to_ptr.vmem [resolvable:$true] %s568_s0 }
  0x62   : > { %5010 = dma.hbm_to_vmem [thread:$0]  (!%p6093_p11), %s555_s2, 32, %s557_s23, [#allocation23]  }
  0x63   : > { %s7290_s4 = sld [smem:[#allocation56_spill]]  ;;  %s620_s18 = scalar_lea.vmem [#allocation9], %s6151_s24 }
  0x64   : > { %5013 = dma.hbm_to_vmem [thread:$0]  (!%p6093_p11), %s567_s30, 32, %s569_s0, [#allocation26]  }
  0x65   : > { %s627_s26 = sshll.u32 %s620_s18, 4  ;;  %s7291_s11 = scalar_lea.sflag [#allocation8], %s6148_s28  ;;  %s628_s26 = int_to_ptr.vmem [resolvable:$true] %s627_s26 }
  0x66   : > { %s4940_s2 = smul.u32 576, %s6151_s24  ;;  %s7292_s23 = sld [smem:[#allocation59_spill]] }
  0x67   : > { %s4941_s8 = smul.u32 576, %s5897_s29  ;;  %s7293_s13 = sld [smem:[#allocation58_spill]] }
  0x68   : > { %s7295_s21 = scalar_lea.sflag [#allocation14], %s6148_s28 }
  0x69   : > { %s623_s5 = scalar_lea.hbm %s7290_s4, %s5897_s29 }
  0x6a   : > { %s625_s22 = sshll.u32 %s623_s5, 4  ;;  %s655_s5 = scalar_lea.vmem [#allocation12], %s4940_s2  ;;  %s626_s22 = int_to_ptr.hbm [resolvable:$true] %s625_s22 }
  0x6b   : > { %5020 = dma.hbm_to_vmem [thread:$0]  (!%p6163_p13), %s626_s22, 16, %s628_s26, %s7291_s11  }
  0x6c   : > { %s696_s19 = scalar_lea.hbm %s7292_s23, %s5897_s29  ;;  %s663_s18 = sshll.u32 %s655_s5, 4  ;;  %s664_s18 = int_to_ptr.vmem [resolvable:$true] %s663_s18 }
  0x6d   : > { %s698_s30 = sshll.u32 %s696_s19, 4  ;;  %s660_s3 = scalar_lea.hbm %s7293_s13, %s4941_s8  ;;  %s699_s30 = int_to_ptr.hbm [resolvable:$true] %s698_s30 }
  0x6e   : > { %s661_s4 = sshll.u32 %s660_s3, 4  ;;  %s7294_s22 = scalar_lea.sflag [#allocation11], %s6148_s28  ;;  %s662_s4 = int_to_ptr.hbm [resolvable:$true] %s661_s4 }
  0x6f   : > { %5026 = dma.hbm_to_vmem [thread:$0]  (!%p6163_p13), %s662_s4, 9216, %s664_s18, %s7294_s22, %s7286_s9, %s7286_s9, %s7285_s27  }
  0x70   : > { %s693_s26 = scalar_lea.vmem [#allocation15], %s6151_s24  ;;  %709 = sbr.rel (%p6082_p9) target bundleno = 1191 (0x4a7), region = 84 }
  0x71   : > { %s700_s11 = sshll.u32 %s693_s26, 4  ;;  %s701_s11 = int_to_ptr.vmem [resolvable:$true] %s700_s11 }
  0x72   : > { %5032 = dma.hbm_to_vmem [thread:$0]  (!%p6163_p13), %s699_s30, 16, %s701_s11, %s7295_s21  }
  0x75   : > { %5828 = dma.done.wait (%p149_p0), [#allocation5], 9216  }
  0x76   : > { %5830 = vsyncadd (%p149_p0), [#allocation5], 4294958080  ;;  %s716_s2 = sand.u32 1, %s6063_s17   ;;  %s6264_s4 = sand.u32 1, %s5881_s25  }
  0x77   : > { %s4025_s24 = sshll.u32 %s6264_s4, 6  ;;  %s717_s16 = scalar_lea.sflag [#allocation8], %s716_s2 }
  0x78   : > { %s6267_s28 = scalar_lea.vmem [#allocation7], %s4025_s24 }
  0x79   : > { %5832 = dma.done.wait (%p6140_p7), %s717_s16, 1040  }
  0x7a   : > { %5834 = vsyncadd (%p6140_p7), %s717_s16, 4294966256  ;;  %s729_s27 = scalar_lea.vmem [#allocation9], %s6264_s4  ;;  %s736_s9 = scalar_lea.sflag [#allocation11], %s716_s2 }
  0x7b   : > { %s738_s8 = scalar_lea.vmem [#allocation10], %s6264_s4 }
  0x7c   : > { %5836 = dma.done.wait (%p6140_p7), %s736_s9, 9232  }
  0x7d   : > { %5838 = vsyncadd (%p6140_p7), %s736_s9, 4294958064  ;;  %s4942_s23 = smul.u32 576, %s6264_s4  ;;  %s755_s30 = scalar_lea.sflag [#allocation14], %s716_s2 }
  0x7e   : > { %s757_s1 = scalar_lea.vmem [#allocation13], %s6264_s4 }
  0x7f   : > { %s6280_s19 = scalar_lea.vmem [#allocation12], %s4942_s23 }
  0x80   : > { %5840 = dma.done.wait (%p6140_p7), %s755_s30, 32  }
  0x81   : > { %5842 = vsyncadd (%p6140_p7), %s755_s30, 4294967264  ;;  %s766_s0 = scalar_lea.vmem [#allocation15], %s6264_s4 }
  0x82   : > { %5844 = dma.done.wait (%p149_p0), [#allocation17], 1040  }
  0x83   : > { %5846 = vsyncadd (%p149_p0), [#allocation17], 4294966256 }
  0x84   : > { %5848 = dma.done.wait (%p149_p0), [#allocation20], 2064  }
  0x85   : > { %5850 = vsyncadd (%p149_p0), [#allocation20], 4294965232 }
  0x86   : > { %5852 = dma.done.wait (%p149_p0), [#allocation23], 2080  }
  0x87   : > { %5854 = vsyncadd (%p149_p0), [#allocation23], 4294965216 }
  0x88   : > { %5856 = dma.done.wait (%p149_p0), [#allocation26], 32  }
  0x89   : > { %5858 = vsyncadd (%p149_p0), [#allocation26], 4294967264  ;;  %s7297_s20 = sld [smem:[#allocation38_spill]] }
  0x8a   : > { %s7298_s13 = sld [smem:[#allocation42_spill]] }
  0x8b   : > { %s7299_s11 = sld [smem:[#allocation52_spill]] }
  0x8c   : > { %s7300_s24 = sld [smem:[#allocation53_spill]] }
  0x8d   : > { %s7301_s9 = sld [smem:[#allocation41_spill]] }
  0x8f   : > { %s879_s3 = sand.u32 1, %s7297_s20  }
  0x90   : > { %p882_p9 = scmp.lt.s32.totalorder %s7298_s13, 1  ;;  %s4033_s5 = sshll.u32 %s879_s3, 7 }
  0x91   : > { %s6317_s17 = scalar_lea.vmem [#allocation27], %s4033_s5 }
  0x92   : > { %s7334_s13 = smov (!%p882_p9, %s7298_s13), 1 }
  0x93   : > { %s4726_s18 = sshll.u32 %s7334_s13, 5  ;;  %p4038_p0 = scmp.ne.s32.totalorder %s7301_s9, 0 }
  0x94   : > { %s886_s21 = scalar_lea.vmem %s7299_s11, %s4726_s18  ;;  %s6315_s16 = scalar_lea.vmem %s7300_s24, %s4726_s18 }
  0x95   : > { %895 = sbr.rel (%p4038_p0) target bundleno = 165 (0xa5), region = 144 }
  0x9a   : > { %v4890_v0 = vld [vmem:[%s886_s21] sm:$0xff]   ;;  %v4905_v1 = vld [vmem:[%s886_s21 + $0x8] sm:$0xff]   ;;  %v4906_v2 = vld [vmem:[%s886_s21 + $0x10] sm:$0xff]  }
  0x9b   : > { %v4891_v3 = vunpack.c.l.bf16 %v4890_v0  ;;  %v4892_v4 = vunpack.c.h.bf16 %v4890_v0  ;;  %v4895_v5 = vunpack.c.l.bf16 %v4905_v1  ;;  %v4896_v6 = vunpack.c.h.bf16 %v4905_v1  ;;  %v4907_v7 = vld [vmem:[%s886_s21 + $0x18] sm:$0xff]  }
  0x9c   : > { %v4899_v8 = vunpack.c.l.bf16 %v4906_v2  ;;  %v4900_v9 = vunpack.c.h.bf16 %v4906_v2  ;;  %v4903_v10 = vunpack.c.l.bf16 %v4907_v7  ;;  %v4904_v11 = vunpack.c.h.bf16 %v4907_v7 }
  0x9d   : > { %912 = vst [vmem:[#allocation2 + $0x30] sm:$0xff] %v4891_v3 }
  0x9e   : > { %913 = vst [vmem:[#allocation2] sm:$0xff] %v4892_v4 }
  0x9f   : > { %914 = vst [vmem:[#allocation2 + $0x18] sm:$0xff] %v4895_v5 }
  0xa0   : > { %915 = vst [vmem:[#allocation2 + $0x10] sm:$0xff] %v4896_v6 }
  0xa1   : > { %916 = vst [vmem:[#allocation2 + $0x8] sm:$0xff] %v4899_v8 }
  0xa2   : > { %917 = vst [vmem:[#allocation2 + $0x20] sm:$0xff] %v4900_v9 }
  0xa3   : > { %918 = vst [vmem:[#allocation2 + $0x28] sm:$0xff] %v4903_v10 }
  0xa4   : > { %919 = vst [vmem:[#allocation2 + $0x38] sm:$0xff] %v4904_v11 }
  0xa5 PF: > { %v1152_v12 = vld [vmem:[#allocation4 + $0x20] sm:$0xff]  ;;  %v1150_v13 = vld [vmem:[#allocation4 + $0x10] sm:$0xff]  ;;  %v5919_v15 = vmov 0   ;;  %v4735_v16 = vld [vmem:[%s6267_s28 + $0x38] sm:$0xff]  ;;  %s7307_s4 = sld [smem:[#allocation41_spill]] }
  0xa6   : > { %v1148_v14 = vld [vmem:[#allocation4] sm:$0xff]  ;;  %5160 = vset.pattern.permute.xlu2 %v5919_v15  ;;  %5159 = vset.pattern.permute.xlu1 %v5919_v15  ;;  %v4734_v17 = vld [vmem:[%s6267_s28 + $0x30] sm:$0xff]  ;;  %v1153_v18 = vld [vmem:[#allocation4 + $0x28] sm:$0xff] }
  0xa7   : > { %5158 = vset.pattern.permute.xlu0 %v5919_v15  ;;  %1178 = vperm.xlu1 %5159, %v1152_v12   ;;  %v1154_v19 = vld [vmem:[#allocation4 + $0x30] sm:$0xff]  ;;  %v1149_v20 = vld [vmem:[#allocation4 + $0x8] sm:$0xff]  ;;  %v4732_v22 = vld [vmem:[%s6267_s28 + $0x20] sm:$0xff] }
  0xa8   : > { %1168 = vperm.xlu2 %5160, %v1150_v13   ;;  %1158 = vperm.xlu0 %5158, %v1148_v14   ;;  %v4733_v21 = vld [vmem:[%s6267_s28 + $0x28] sm:$0xff]  ;;  %v1151_v23 = vld [vmem:[#allocation4 + $0x18] sm:$0xff]  ;;  %v1221_v24 = vld [vmem:[#allocation4 + $0x40] sm:$0xff] }
  0xa9   : > { %996 = vmatpush.bf16.msra.mxu0 %v4735_v16  ;;  %4908 = vmatpush.bf16.msra.mxu2 %v4735_v16  ;;  %v1155_v25 = vld [vmem:[#allocation4 + $0x38] sm:$0xff]  ;;  %v4730_v27 = vld [vmem:[%s6267_s28 + $0x10] sm:$0xff]  ;;  %v1311_v28 = vld [vmem:[#allocation4 + $0x80] sm:$0xff] }
  0xaa   : > { %v4731_v26 = vld [vmem:[%s6267_s28 + $0x18] sm:$0xff]  ;;  %v1312_v29 = vld [vmem:[#allocation4 + $0x88] sm:$0xff]  ;;  %v4728_v32 = vld [vmem:[%s6267_s28] sm:$0xff] }
  0xab   : > { %v1222_v30 = vld [vmem:[#allocation4 + $0x48] sm:$0xff]  ;;  %v920_v33 = vld [vmem:[#allocation2 + $0x30] sm:$0xff]  ;;  %v921_v34 = vld [vmem:[#allocation2] sm:$0xff]  ;;  %p4519_p11 = scmp.ne.s32.totalorder %s7307_s4, 7 }
  0xac   : > { %v4729_v31 = vld [vmem:[%s6267_s28 + $0x8] sm:$0xff]  ;;  %v925_v36 = vld [vmem:[#allocation2 + $0x20] sm:$0xff]  ;;  %v1223_v38 = vld [vmem:[#allocation4 + $0x50] sm:$0xff]  ;;  %v928_v40 = vpack.c.bf16 %v921_v34, %v920_v33 }
  0xad   : > { %997 = vmatpush.bf16.msra.mxu0 %v4734_v17  ;;  %4909 = vmatpush.bf16.msra.mxu2 %v4734_v17  ;;  %v924_v35 = vld [vmem:[#allocation2 + $0x8] sm:$0xff]  ;;  %v1384_v39 = vld [vmem:[#allocation4 + $0xc0] sm:$0xff]  ;;  %v1313_v42 = vld [vmem:[#allocation4 + $0x90] sm:$0xff] }
  0xae   : > { %v1385_v37 = vld [vmem:[#allocation4 + $0xc8] sm:$0xff]  ;;  %v930_v41 = vpack.c.bf16 %v925_v36, %v924_v35  ;;  %v1314_v43 = vld [vmem:[#allocation4 + $0x98] sm:$0xff]  ;;  %v923_v46 = vld [vmem:[#allocation2 + $0x10] sm:$0xff] }
  0xaf   : > { %1183 = vperm.xlu1 %5159, %v1153_v18   ;;  %v1224_v44 = vld [vmem:[#allocation4 + $0x58] sm:$0xff]  ;;  %v926_v47 = vld [vmem:[#allocation2 + $0x28] sm:$0xff]  ;;  %v1225_v50 = vld [vmem:[#allocation4 + $0x60] sm:$0xff] }
  0xb0   : > { %1188 = vperm.xlu2 %5160, %v1154_v19   ;;  %1163 = vperm.xlu0 %5158, %v1149_v20   ;;  %v922_v45 = vld [vmem:[#allocation2 + $0x18] sm:$0xff]  ;;  %v1386_v51 = vld [vmem:[#allocation4 + $0xd0] sm:$0xff]  ;;  %v1315_v54 = vld [vmem:[#allocation4 + $0xa0] sm:$0xff] }
  0xb1   : > { %998 = vmatpush.bf16.msra.mxu0 %v4733_v21  ;;  %4910 = vmatpush.bf16.msra.mxu2 %v4733_v21  ;;  %v927_v48 = vld [vmem:[#allocation2 + $0x38] sm:$0xff]  ;;  %v929_v52 = vpack.c.bf16 %v923_v46, %v922_v45  ;;  %v1316_v55 = vld [vmem:[#allocation4 + $0xa8] sm:$0xff]  ;;  %v1227_v58 = vld [vmem:[#allocation4 + $0x70] sm:$0xff] }
  0xb2   : > { %v1387_v49 = vld [vmem:[#allocation4 + $0xd8] sm:$0xff]  ;;  %v931_v53 = vpack.c.bf16 %v927_v48, %v926_v47  ;;  %v1226_v56 = vld [vmem:[#allocation4 + $0x68] sm:$0xff]  ;;  %v1388_v59 = vld [vmem:[#allocation4 + $0xe0] sm:$0xff] }
  0xb3   : > { %v1389_v57 = vld [vmem:[#allocation4 + $0xe8] sm:$0xff]  ;;  %v1317_v60 = vld [vmem:[#allocation4 + $0xb0] sm:$0xff]  ;;  %v1318_v61 = vld [vmem:[#allocation4 + $0xb8] sm:$0xff] }
  0xb4   : > { %v1228_v62 = vld [vmem:[#allocation4 + $0x78] sm:$0xff]  ;;  %v1473_v0 = vld [vmem:[#allocation4 + $0x140] sm:$0xff]  ;;  %v1390_v1 = vld [vmem:[#allocation4 + $0xf0] sm:$0xff] }
  0xb5   : > { %999 = vmatpush.bf16.msra.mxu0 %v4732_v22  ;;  %4911 = vmatpush.bf16.msra.mxu2 %v4732_v22  ;;  %v1391_v63 = vld [vmem:[#allocation4 + $0xf8] sm:$0xff]  ;;  %v1546_v2 = vld [vmem:[#allocation4 + $0x180] sm:$0xff]  ;;  %v1547_v3 = vld [vmem:[#allocation4 + $0x188] sm:$0xff] }
  0xb6   : > { %v1474_v4 = vld [vmem:[#allocation4 + $0x148] sm:$0xff]  ;;  %v1692_v7 = vld [vmem:[#allocation4 + $0x200] sm:$0xff]  ;;  %v1475_v10 = vld [vmem:[#allocation4 + $0x150] sm:$0xff] }
  0xb7   : > { %1173 = vperm.xlu1 %5159, %v1151_v23   ;;  %v1620_v6 = vld [vmem:[#allocation4 + $0x1c8] sm:$0xff]  ;;  %v1619_v8 = vld [vmem:[#allocation4 + $0x1c0] sm:$0xff]  ;;  %v1476_v11 = vld [vmem:[#allocation4 + $0x158] sm:$0xff] }
  0xb8   : > { %1231 = vperm.xlu2 %5160, %v1221_v24   ;;  %1193 = vperm.xlu0 %5158, %v1155_v25   ;;  %v1693_v12 = vld [vmem:[#allocation4 + $0x208] sm:$0xff]  ;;  %v1549_v14 = vld [vmem:[#allocation4 + $0x198] sm:$0xff]  ;;  %v1621_v15 = vld [vmem:[#allocation4 + $0x1d0] sm:$0xff] }
  0xb9   : > { %1000 = vmatpush.bf16.msra.mxu0 %v4731_v26  ;;  %4912 = vmatpush.bf16.msra.mxu2 %v4731_v26  ;;  %v1548_v16 = vld [vmem:[#allocation4 + $0x190] sm:$0xff]  ;;  %v1695_v21 = vld [vmem:[#allocation4 + $0x218] sm:$0xff]  ;;  %v1478_v26 = vld [vmem:[#allocation4 + $0x168] sm:$0xff] }
  0xba   : > { %v1694_v20 = vld [vmem:[#allocation4 + $0x210] sm:$0xff]  ;;  %v1622_v22 = vld [vmem:[#allocation4 + $0x1d8] sm:$0xff]  ;;  %v1624_v33 = vld [vmem:[#allocation4 + $0x1e8] sm:$0xff] }
  0xbb   : > { %v1551_v34 = vld [vmem:[#allocation4 + $0x1a8] sm:$0xff]  ;;  %v1553_v45 = vld [vmem:[#allocation4 + $0x1b8] sm:$0xff] }
  0xbc   : > { %v1480_v46 = vld [vmem:[#allocation4 + $0x178] sm:$0xff] }
  0xbd   : > { %1001 = vmatpush.bf16.msra.mxu0 %v4730_v27  ;;  %4913 = vmatpush.bf16.msra.mxu2 %v4730_v27  ;;  %v1550_v27 = vld [vmem:[#allocation4 + $0x1a0] sm:$0xff] }
  0xbf   : > { %1321 = vperm.xlu1 %5159, %v1311_v28   ;;  %v1477_v28 = vld [vmem:[#allocation4 + $0x160] sm:$0xff] }
  0xc0   : > { %1326 = vperm.xlu2 %5160, %v1312_v29   ;;  %1236 = vperm.xlu0 %5158, %v1222_v30  }
  0xc1   : > { %1002 = vmatpush.bf16.msra.mxu0 %v4729_v31  ;;  %4914 = vmatpush.bf16.msra.mxu2 %v4729_v31 }
  0xc5   : > { %1003 = vmatpush.bf16.msra.mxu0 %v4728_v32  ;;  %4915 = vmatpush.bf16.msra.mxu2 %v4728_v32  ;;  %v1623_v32 = vld [vmem:[#allocation4 + $0x1e0] sm:$0xff] }
  0xc7   : > { %1399 = vperm.xlu1 %5159, %v1385_v37  }
  0xc8   : > { %1241 = vperm.xlu2 %5160, %v1223_v38   ;;  %1394 = vperm.xlu0 %5158, %v1384_v39   ;;  %v1697_v38 = vld [vmem:[#allocation4 + $0x228] sm:$0xff]  ;;  %v1479_v39 = vld [vmem:[#allocation4 + $0x170] sm:$0xff] }
  0xc9   : > { %1004 = vmatmul.bf16.vlgmr.msra.gmra.mxu0 %v928_v40  ;;  %1014 = vmatmul.bf16.vlgmr.msra.gmra.mxu2 %v930_v41  ;;  %v1696_v40 = vld [vmem:[#allocation4 + $0x220] sm:$0xff] }
  0xcf   : > { %1331 = vperm.xlu1 %5159, %v1313_v42  }
  0xd0   : > { %1336 = vperm.xlu2 %5160, %v1314_v43   ;;  %1246 = vperm.xlu0 %5158, %v1224_v44   ;;  %v1552_v44 = vld [vmem:[#allocation4 + $0x1b0] sm:$0xff] }
  0xd7   : > { %1409 = vperm.xlu1 %5159, %v1387_v49  }
  0xd8   : > { %1251 = vperm.xlu2 %5160, %v1225_v50   ;;  %1404 = vperm.xlu0 %5158, %v1386_v51   ;;  %v6372_v50 = vld [vmem:[%s729_s27] ss:$0 sm:$0xff]  ;;  %v1626_v51 = vld [vmem:[#allocation4 + $0x1f8] sm:$0xff] }
  0xd9   : > { %1009 = vmatmul.bf16.gmra.mxu0 %v929_v52  ;;  %1019 = vmatmul.bf16.gmra.mxu2 %v931_v53  ;;  %v6376_v52 = vld [vmem:[%s738_s8] ss:$0 sm:$0xff]  ;;  %v1698_v53 = vld [vmem:[#allocation4 + $0x230] sm:$0xff] }
  0xdf   : > { %1341 = vperm.xlu1 %5159, %v1315_v54   ;;  %v1625_v54 = vld [vmem:[#allocation4 + $0x1f0] sm:$0xff] }
  0xe0   : > { %1346 = vperm.xlu2 %5160, %v1316_v55   ;;  %1256 = vperm.xlu0 %5158, %v1226_v56  }
  0xe7   : > { %1419 = vperm.xlu1 %5159, %v1389_v57  }
  0xe8   : > { %1261 = vperm.xlu2 %5160, %v1227_v58   ;;  %1414 = vperm.xlu0 %5158, %v1388_v59  }
  0xef   : > { %1351 = vperm.xlu1 %5159, %v1317_v60  }
  0xf0   : > { %1356 = vperm.xlu2 %5160, %v1318_v61   ;;  %1266 = vperm.xlu0 %5158, %v1228_v62  }
  0xf7   : > { %1429 = vperm.xlu1 %5159, %v1391_v63  }
  0xf8   : > { %1483 = vperm.xlu2 %5160, %v1473_v0   ;;  %1424 = vperm.xlu0 %5158, %v1390_v1   ;;  %v1699_v1 = vld [vmem:[#allocation4 + $0x238] sm:$0xff] }
  0xff   : > { %1556 = vperm.xlu1 %5159, %v1546_v2  }
 0x100   : > { %1561 = vperm.xlu2 %5160, %v1547_v3   ;;  %1488 = vperm.xlu0 %5158, %v1474_v4  }
 0x102   : > { %v6328_v5 = vpop.permute.xlu2 %1168 }
 0x107   : > { %1634 = vperm.xlu1 %5159, %v1620_v6  }
 0x108   : > { %1702 = vperm.xlu2 %5160, %v1692_v7   ;;  %1629 = vperm.xlu0 %5158, %v1619_v8  }
 0x10a   : > { %v6330_v9 = vpop.permute.xlu2 %1188 }
 0x10f   : > { %1493 = vperm.xlu1 %5159, %v1475_v10  }
 0x110   : > { %1498 = vperm.xlu2 %5160, %v1476_v11   ;;  %1707 = vperm.xlu0 %5158, %v1693_v12  }
 0x112   : > { %v6332_v13 = vpop.permute.xlu2 %1231 }
 0x117   : > { %1571 = vperm.xlu1 %5159, %v1549_v14  }
 0x118   : > { %1639 = vperm.xlu2 %5160, %v1621_v15   ;;  %1566 = vperm.xlu0 %5158, %v1548_v16  }
 0x119   : > { %v6334_v17 = vpop.permute.xlu1 %1178 }
 0x11a   : > { %v6336_v18 = vpop.permute.xlu2 %1326  ;;  %v6338_v19 = vpop.permute.xlu0 %1158 }
 0x11f   : > { %1712 = vperm.xlu1 %5159, %v1694_v20  }
 0x120   : > { %1717 = vperm.xlu2 %5160, %v1695_v21   ;;  %1644 = vperm.xlu0 %5158, %v1622_v22  }
 0x121   : > { %v6340_v23 = vpop.permute.xlu1 %1183 }
 0x122   : > { %v6342_v24 = vpop.permute.xlu2 %1241  ;;  %v6344_v25 = vpop.permute.xlu0 %1163 }
 0x127   : > { %1508 = vperm.xlu1 %5159, %v1478_v26  }
 0x128   : > { %1576 = vperm.xlu2 %5160, %v1550_v27   ;;  %1503 = vperm.xlu0 %5158, %v1477_v28   ;;  %v4779_v27 = vld [vmem:[%s6280_s19 + $0x38] sm:$0xff] }
 0x129   : > { %v6346_v29 = vpop.permute.xlu1 %1173  ;;  %4916 = vmatpush.bf16.msra.mxu3 %v4779_v27  ;;  %2564 = vmatpush.bf16.msra.mxu1 %v4779_v27 }
 0x12a   : > { %v6348_v30 = vpop.permute.xlu2 %1336  ;;  %v6350_v31 = vpop.permute.xlu0 %1193 }
 0x12f   : > { %1649 = vperm.xlu1 %5159, %v1623_v32  }
 0x130   : > { %1654 = vperm.xlu2 %5160, %v1624_v33   ;;  %1581 = vperm.xlu0 %5158, %v1551_v34  }
 0x131   : > { %v6352_v35 = vpop.permute.xlu1 %1321 }
 0x132   : > { %v6354_v36 = vpop.permute.xlu2 %1251  ;;  %v6356_v37 = vpop.permute.xlu0 %1236 }
 0x137   : > { %1727 = vperm.xlu1 %5159, %v1697_v38  }
 0x138   : > { %1513 = vperm.xlu2 %5160, %v1479_v39   ;;  %1722 = vperm.xlu0 %5158, %v1696_v40   ;;  %v4787_v40 = vld [vmem:[%s6280_s19 + $0x78] sm:$0xff] }
 0x139   : > { %v6358_v41 = vpop.permute.xlu1 %1399  ;;  %2593 = vmatpush.bf16.msrb.mxu2 %v4787_v40 }
 0x13a   : > { %v6360_v42 = vpop.permute.xlu2 %1346  ;;  %v6362_v43 = vpop.permute.xlu0 %1394 }
 0x13f   : > { %1586 = vperm.xlu1 %5159, %v1552_v44  }
 0x140   : > { %1591 = vperm.xlu2 %5160, %v1553_v45   ;;  %1518 = vperm.xlu0 %5158, %v1480_v46  }
 0x141   : > { %v6364_v47 = vpop.permute.xlu1 %1331 }
 0x142   : > { %v6366_v48 = vpop.permute.xlu2 %1261  ;;  %v6368_v49 = vpop.permute.xlu0 %1246 }
 0x146   : > { %v1005_v55 = vpop.f32.mrf.mxu0 }
 0x147   : > { %v1029_v56 = vmul.f32 %v6372_v50, %v1005_v55  ;;  %1664 = vperm.xlu1 %5159, %v1626_v51   ;;  %v4778_v51 = vld [vmem:[%s6280_s19 + $0x30] sm:$0xff] }
 0x148   : > { %1732 = vperm.xlu2 %5160, %v1698_v53   ;;  %1659 = vperm.xlu0 %5158, %v1625_v54  }
 0x149   : > { %v6380_v57 = vadd.f32 %v6376_v52, %v1029_v56  ;;  %v6382_v58 = vpop.permute.xlu1 %1409  ;;  %4917 = vmatpush.bf16.msra.mxu3 %v4778_v51  ;;  %2565 = vmatpush.bf16.msra.mxu1 %v4778_v51 }
 0x14a   : > { %v6384_v59 = vpop.permute.xlu2 %1356  ;;  %v6386_v60 = vpop.permute.xlu0 %1404 }
 0x14b   : > { %v1049_v61 = vmin.f32 %v6380_v57, 20.0 }
 0x14c   : > { %v1015_v62 = vpop.f32.mrf.mxu2 }
 0x14d   : > { %v1057_v63 = vmul.f32 1.442695, %v1049_v61  ;;  %v1033_v0 = vmul.f32 %v6372_v50, %v1015_v62 }
 0x14e   : > { %v1007_v2 = vpop.f32.mrf.mxu0 }
 0x14f   : > { %5165 = vpow2.f32 %v1057_v63  ;;  %v6391_v3 = vadd.f32 %v6376_v52, %v1033_v0  ;;  %v1030_v4 = vmul.f32 %v6372_v50, %v1007_v2 }
 0x150   : > { %1737 = vperm.xlu0 %5158, %v1699_v1  }
 0x151   : > { %v1053_v6 = vmin.f32 %v6391_v3, 20.0  ;;  %v6396_v7 = vadd.f32 %v6376_v52, %v1030_v4  ;;  %v6398_v8 = vpop.permute.xlu1 %1341 }
 0x152   : > { %v6400_v10 = vpop.permute.xlu2 %1483  ;;  %v6402_v11 = vpop.permute.xlu0 %1256 }
 0x153   : > { %v1065_v12 = vmul.f32 1.442695, %v1053_v6  ;;  %v1050_v14 = vmin.f32 %v6396_v7, 20.0 }
 0x154   : > { %v1017_v15 = vpop.f32.mrf.mxu2 }
 0x155   : > { %v5166_v16 = vpop.eup %5165  ;;  %5167 = vpow2.f32 %v1065_v12  ;;  %v1059_v20 = vmul.f32 1.442695, %v1050_v14  ;;  %v1034_v21 = vmul.f32 %v6372_v50, %v1017_v15 }
 0x156   : > { %v1073_v22 = vadd.f32 1.0, %v5166_v16  ;;  %v1010_v26 = vpop.f32.mrf.mxu0 }
 0x157   : > { %5169 = vpow2.f32 %v1059_v20  ;;  %v6408_v28 = vadd.f32 %v6376_v52, %v1034_v21  ;;  %v1031_v32 = vmul.f32 %v6372_v50, %v1010_v26  ;;  %v1137_v20 = vlaneseq }
 0x158   : > { %v1081_v33 = vmul.f32 %v1073_v22, %v1073_v22 }
 0x159   : > { %v1054_v34 = vmin.f32 %v6408_v28, 20.0  ;;  %v6413_v38 = vadd.f32 %v6376_v52, %v1031_v32  ;;  %v6415_v39 = vpop.permute.xlu1 %1419 }
 0x15a   : > { %v1105_v44 = vadd.f32 1.0, %v1081_v33  ;;  %v6418_v45 = vpop.permute.xlu2 %1561  ;;  %v6420_v46 = vpop.permute.xlu0 %1414  ;;  %v4071_v63 = vadd.f32 -1.0, %v1081_v33 }
 0x15b   : > { %v5168_v53 = vpop.eup %5167  ;;  %v1067_v54 = vmul.f32 1.442695, %v1054_v34  ;;  %v1051_v55 = vmin.f32 %v6413_v38, 20.0 }
 0x15c   : > { %5171 = vrcp.f32 %v1105_v44  ;;  %v1077_v56 = vadd.f32 1.0, %v5168_v53  ;;  %v1020_v61 = vpop.f32.mrf.mxu2  ;;  %v1097_v21 = vmul.f32 %v4071_v63, %v6380_v57 }
 0x15d   : > { %v5170_v62 = vpop.eup %5169  ;;  %5173 = vpow2.f32 %v1067_v54  ;;  %v1061_v0 = vmul.f32 1.442695, %v1051_v55  ;;  %v1035_v1 = vmul.f32 %v6372_v50, %v1020_v61  ;;  %v6443_v55 = vshrl.u32 %v1137_v20, 7 }
 0x15e   : > { %v1085_v2 = vmul.f32 %v1077_v56, %v1077_v56  ;;  %v1074_v4 = vadd.f32 1.0, %v5170_v62  ;;  %v1012_v6 = vpop.f32.mrf.mxu0 }
 0x15f   : > { %5175 = vpow2.f32 %v1061_v0  ;;  %v6426_v12 = vadd.f32 %v6376_v52, %v1035_v1  ;;  %v1032_v14 = vmul.f32 %v6372_v50, %v1012_v6  ;;  %vm1301_vm0 = vcmp.lt.s32.totalorder %v6443_v55, 7 }
 0x160   : > { %v1109_v15 = vadd.f32 1.0, %v1085_v2  ;;  %v1082_v16 = vmul.f32 %v1074_v4, %v1074_v4  ;;  %v4075_v53 = vadd.f32 -1.0, %v1085_v2  ;;  %vm1139_vm1 = vcmp.lt.s32.totalorder %v6443_v55, 1 }
 0x161   : > { %v1055_v22 = vmin.f32 %v6426_v12, 20.0  ;;  %v6432_v26 = vadd.f32 %v6376_v52, %v1032_v14  ;;  %v6434_v27 = vpop.permute.xlu1 %1351 }
 0x162   : > { %v5172_v32 = vpop.eup %5171  ;;  %5177 = vrcp.f32 %v1109_v15  ;;  %v1106_v33 = vadd.f32 1.0, %v1082_v16  ;;  %v6436_v34 = vpop.permute.xlu2 %1702  ;;  %v4072_v1 = vadd.f32 -1.0, %v1082_v16  ;;  %v1101_v20 = vmul.f32 %v4075_v53, %v6391_v3 }
 0x163   : > { %v6438_v40 = vpop.permute.xlu0 %1266  ;;  %v5174_v44 = vpop.eup %5173  ;;  %v6440_v51 = vmul.f32 %v5172_v32, %v1097_v21  ;;  %v1069_v54 = vmul.f32 1.442695, %v1055_v22  ;;  %v1052_v57 = vmin.f32 %v6432_v26, 20.0 }
 0x164   : > { %5179 = vrcp.f32 %v1106_v33  ;;  %v1078_v56 = vadd.f32 1.0, %v5174_v44  ;;  %v1022_v61 = vpop.f32.mrf.mxu2  ;;  %v1098_v16 = vmul.f32 %v4072_v1, %v6396_v7 }
 0x165   : > { %v5176_v62 = vpop.eup %5175  ;;  %v1270_v63 = vmul.f32 %v6356_v37, %v6440_v51  ;;  %v1456_v0 = vpack.c.bf16 %v6440_v51, %v6440_v51  ;;  %5181 = vpow2.f32 %v1069_v54  ;;  %v1063_v2 = vmul.f32 1.442695, %v1052_v57 }
 0x166   : > { %v1086_v4 = vmul.f32 %v1078_v56, %v1078_v56  ;;  %v1075_v6 = vadd.f32 1.0, %v5176_v62  ;;  %v1036_v14 = vmul.f32 %v6372_v50, %v1022_v61  ;;  %v7241_v3 = vrot.slane %v6440_v51, 1 }
 0x167   : > { %v1278_v15 = vpack.c.bf16 %v1270_v63, %v1270_v63  ;;  %1464 = vst [vmem:[#allocation3 + $0x10] sm:$0xf] %v1456_v0  ;;  %5183 = vpow2.f32 %v1063_v2 }
 0x168   : > { %v5178_v21 = vpop.eup %5177  ;;  %v1110_v22 = vadd.f32 1.0, %v1086_v4  ;;  %v1083_v32 = vmul.f32 %v1075_v6, %v1075_v6  ;;  %v6457_v33 = vadd.f32 %v6376_v52, %v1036_v14  ;;  %v4076_v53 = vadd.f32 -1.0, %v1086_v4  ;;  %v4803_v6 = vld [vmem:[%s6280_s19 + $0xf8] sm:$0xff] }
 0x169   : > { %1286 = vst [vmem:[#allocation3 + $0x28] sm:$0xf] %v1278_v15  ;;  %v6452_v37 = vmul.f32 %v5178_v21, %v1101_v20  ;;  %v6459_v50 = vpop.permute.xlu1 %1429  ;;  %v1129_v4 = vrot.slane %v6440_v51, 7  ;;  %2651 = vmatpush.bf16.msrb.mxu0 %v4803_v6 }
 0x16a   : > { %v5180_v44 = vpop.eup %5179  ;;  %5185 = vrcp.f32 %v1110_v22  ;;  %v1107_v54 = vadd.f32 1.0, %v1083_v32  ;;  %v6462_v57 = vpop.permute.xlu2 %1498  ;;  %v4073_v63 = vadd.f32 -1.0, %v1083_v32  ;;  %v1056_v1 = vmin.f32 %v6457_v33, 20.0 }
 0x16b   : > { %v6464_v56 = vpop.permute.xlu0 %1424  ;;  %v5182_v7 = vpop.eup %5181  ;;  %v1460_v61 = vpack.c.bf16 %v6452_v37, %v6452_v37  ;;  %v6468_v52 = vmul.f32 %v5180_v44, %v1098_v16  ;;  %v1274_v62 = vmul.f32 %v6402_v11, %v6452_v37  ;;  %v4786_v11 = vld [vmem:[%s6280_s19 + $0x70] sm:$0xff]  ;;  %v1102_v22 = vmul.f32 %v4076_v53, %v6408_v28 }
 0x16c   : > { %5187 = vrcp.f32 %v1107_v54  ;;  %v1079_v0 = vadd.f32 1.0, %v5182_v7  ;;  %v1071_v44 = vmul.f32 1.442695, %v1056_v1  ;;  %v4777_v54 = vld [vmem:[%s6280_s19 + $0x28] sm:$0xff]  ;;  %2594 = vmatpush.bf16.msrb.mxu2 %v4786_v11 }
 0x16d   : > { %1468 = vst [vmem:[#allocation3 + $0xa0] sm:$0xf] %v1460_v61  ;;  %v1271_v2 = vmul.f32 %v6342_v24, %v6468_v52  ;;  %v1457_v14 = vpack.c.bf16 %v6468_v52, %v6468_v52  ;;  %v1294_v15 = vrot.slane %v6468_v52, 1  ;;  %v1282_v20 = vpack.c.bf16 %v1274_v62, %v1274_v62  ;;  %v5184_v21 = vpop.eup %5183  ;;  %4918 = vmatpush.bf16.msra.mxu3 %v4777_v54 }
 0x16e   : > { %v1130_v32 = vrot.slane %v6468_v52, 7  ;;  %v1087_v16 = vmul.f32 %v1079_v0, %v1079_v0  ;;  %v1099_v61 = vmul.f32 %v4073_v63, %v6413_v38  ;;  %v1076_v28 = vadd.f32 1.0, %v5184_v21  ;;  %2566 = vmatpush.bf16.msra.mxu1 %v4777_v54  ;;  %v4776_v54 = vld [vmem:[%s6280_s19 + $0x20] sm:$0xff] }
 0x16f   : > { %v1279_v7 = vpack.c.bf16 %v1271_v2, %v1271_v2  ;;  %1465 = vst [vmem:[#allocation3 + $0x34] sm:$0xf] %v1457_v14  ;;  %v6490_v24 = vsel %vm1301_vm0, %v7241_v3, %v1294_v15  ;;  %v4802_v2 = vld [vmem:[%s6280_s19 + $0xf0] sm:$0xff]  ;;  %5189 = vpow2.f32 %v1071_v44 }
 0x170   : > { %v5186_v53 = vpop.eup %5185  ;;  %v1360_v62 = vmul.f32 %v6336_v18, %v6490_v24  ;;  %v1521_v0 = vmul.f32 %v6400_v10, %v6490_v24  ;;  %1290 = vst [vmem:[#allocation3 + $0xb8] sm:$0xf] %v1282_v20  ;;  %v4077_v1 = vadd.f32 -1.0, %v1087_v16  ;;  %v1111_v6 = vadd.f32 1.0, %v1087_v16  ;;  %v4785_v10 = vld [vmem:[%s6280_s19 + $0x68] sm:$0xff]  ;;  %2652 = vmatpush.bf16.msrb.mxu0 %v4802_v2 }
 0x171   : > { %1287 = vst [vmem:[#allocation3 + $0x4c] sm:$0xf] %v1279_v7  ;;  %v6498_v14 = vmul.f32 %v5186_v53, %v1102_v22  ;;  %v1084_v38 = vmul.f32 %v1076_v28, %v1076_v28  ;;  %v6500_v63 = vpop.permute.xlu1 %1556  ;;  %v6508_v18 = vsel %vm1139_vm1, %v1129_v4, %v1130_v32  ;;  %v7242_v16 = vrot.slane %v6452_v37, 7  ;;  %2595 = vmatpush.bf16.msrb.mxu2 %v4785_v10 }
 0x172   : > { %v5188_v20 = vpop.eup %5187  ;;  %v1368_v11 = vpack.c.bf16 %v1360_v62, %v1360_v62  ;;  %v1529_v21 = vpack.c.bf16 %v1521_v0, %v1521_v0  ;;  %5191 = vrcp.f32 %v1111_v6  ;;  %v6512_v22 = vpop.permute.xlu2 %1639  ;;  %v1103_v0 = vmul.f32 %v4077_v1, %v6426_v12  ;;  %4919 = vmatpush.bf16.msra.mxu3 %v4776_v54  ;;  %2567 = vmatpush.bf16.msra.mxu1 %v4776_v54 }
 0x173   : > { %v6514_v44 = vpop.permute.xlu0 %1488  ;;  %v1275_v7 = vmul.f32 %v6366_v48, %v6498_v14  ;;  %v1461_v28 = vpack.c.bf16 %v6498_v14, %v6498_v14  ;;  %v6521_v53 = vmul.f32 %v5188_v20, %v1099_v61  ;;  %v1134_v62 = vrot.slane %v6498_v14, 7 }
 0x174   : > { %1376 = vst [vmem:[#allocation3 + $0x2c] sm:$0xf] %v1368_v11  ;;  %v1108_v6 = vadd.f32 1.0, %v1084_v38  ;;  %v1198_v3 = vmul.f32 %v6328_v5, %v6508_v18  ;;  %v4074_v10 = vadd.f32 -1.0, %v1084_v38 }
 0x175   : > { %1537 = vst [vmem:[#allocation3 + $0x14] sm:$0xf] %v1529_v21  ;;  %v1283_v2 = vpack.c.bf16 %v1275_v7, %v1275_v7  ;;  %v1272_v48 = vmul.f32 %v6368_v49, %v6521_v53  ;;  %v1458_v61 = vpack.c.bf16 %v6521_v53, %v6521_v53  ;;  %v6537_v12 = vsel %vm1139_vm1, %v7242_v16, %v1134_v62  ;;  %v5190_v20 = vpop.eup %5189 }
 0x176   : > { %1469 = vst [vmem:[#allocation3 + $0xc4] sm:$0xf] %v1461_v28  ;;  %v1202_v5 = vmul.f32 %v6330_v9, %v6537_v12  ;;  %v1437_v1 = vmul.f32 %v6415_v39, %v6537_v12  ;;  %v7243_v49 = vrot.slane %v6521_v53, 7  ;;  %5193 = vrcp.f32 %v1108_v6 }
 0x177   : > { %1291 = vst [vmem:[#allocation3 + $0xdc] sm:$0xf] %v1283_v2  ;;  %v1280_v11 = vpack.c.bf16 %v1272_v48, %v1272_v48  ;;  %v7244_v21 = vrot.slane %v6521_v53, 1  ;;  %v1206_v54 = vpack.c.bf16 %v1198_v3, %v1198_v3  ;;  %v1080_v38 = vadd.f32 1.0, %v5190_v20  ;;  %v4801_v2 = vld [vmem:[%s6280_s19 + $0xe8] sm:$0xff] }
 0x178   : > { %v5192_v7 = vpop.eup %5191  ;;  %1466 = vst [vmem:[#allocation3 + $0x58] sm:$0xf] %v1458_v61  ;;  %v1210_v28 = vpack.c.bf16 %v1202_v5, %v1202_v5  ;;  %v1445_v9 = vpack.c.bf16 %v1437_v1, %v1437_v1  ;;  %v1145_v39 = vsel %vm1139_vm1, %v1130_v32, %v7243_v49  ;;  %v4784_v5 = vld [vmem:[%s6280_s19 + $0x60] sm:$0xff]  ;;  %v4775_v1 = vld [vmem:[%s6280_s19 + $0x18] sm:$0xff]  ;;  %2653 = vmatpush.bf16.msrb.mxu0 %v4801_v2 }
 0x179   : > { %1288 = vst [vmem:[#allocation3 + $0x70] sm:$0xf] %v1280_v11  ;;  %v1199_v6 = vmul.f32 %v6346_v29, %v1145_v39  ;;  %v1434_v48 = vmul.f32 %v6386_v60, %v1145_v39  ;;  %v1595_v3 = vmul.f32 %v6418_v45, %v1145_v39  ;;  %v6555_v16 = vmul.f32 %v5192_v7, %v1103_v0  ;;  %v6557_v61 = vpop.permute.xlu1 %1634 }
 0x17a   : > { %1218 = vst [vmem:[#allocation3 + $0xd8] sm:$0xf] %v1210_v28  ;;  %v6567_v32 = vsel %vm1301_vm0, %v1294_v15, %v7244_v21  ;;  %v1088_v29 = vmul.f32 %v1080_v38, %v1080_v38  ;;  %v6569_v60 = vpop.permute.xlu2 %1717  ;;  %v1298_v7 = vrot.slane %v6498_v14, 1  ;;  %v1100_v39 = vmul.f32 %v4074_v10, %v6432_v26  ;;  %v4800_v38 = vld [vmem:[%s6280_s19 + $0xe0] sm:$0xff]  ;;  %2596 = vmatpush.bf16.msrb.mxu2 %v4784_v5 }
 0x17b   : > { %v6571_v45 = vpop.permute.xlu0 %1629  ;;  %1453 = vst [vmem:[#allocation3 + $0xc0] sm:$0xf] %v1445_v9  ;;  %v1207_v0 = vpack.c.bf16 %v1199_v6, %v1199_v6  ;;  %v1442_v20 = vpack.c.bf16 %v1434_v48, %v1434_v48  ;;  %v1603_v11 = vpack.c.bf16 %v1595_v3, %v1595_v3  ;;  %v1462_v28 = vpack.c.bf16 %v6555_v16, %v6555_v16 }
 0x17c   : > { %v7245_v49 = vrot.slane %v6555_v16, 1  ;;  %v1361_v15 = vmul.f32 %v6364_v47, %v6567_v32  ;;  %1214 = vst [vmem:[#allocation3 + $0x48] sm:$0xf] %v1206_v54  ;;  %v5194_v21 = vpop.eup %5193  ;;  %v1740_v9 = vmul.f32 %v6436_v34, %v6567_v32  ;;  %v1112_v6 = vadd.f32 1.0, %v1088_v29  ;;  %4920 = vmatpush.bf16.msra.mxu3 %v4775_v1  ;;  %2568 = vmatpush.bf16.msra.mxu1 %v4775_v1 }
 0x17d   : > { %1215 = vst [vmem:[#allocation3 + $0x6c] sm:$0xf] %v1207_v0  ;;  %v1135_v48 = vrot.slane %v6555_v16, 7  ;;  %v6584_v26 = vmul.f32 %v5194_v21, %v1100_v39  ;;  %v1276_v34 = vmul.f32 %v6438_v40, %v6555_v16  ;;  %v4078_v2 = vadd.f32 -1.0, %v1088_v29  ;;  %2654 = vmatpush.bf16.msrb.mxu0 %v4800_v38  ;;  %v4774_v39 = vld [vmem:[%s6280_s19 + $0x10] sm:$0xff] }
 0x17e   : > { %1450 = vst [vmem:[#allocation3 + $0x54] sm:$0xf] %v1442_v20  ;;  %v6592_v47 = vsel %vm1301_vm0, %v1298_v7, %v7245_v49  ;;  %v1369_v10 = vpack.c.bf16 %v1361_v15, %v1361_v15  ;;  %5195 = vrcp.f32 %v1112_v6  ;;  %v1297_v21 = vrot.slane %v6452_v37, 1 }
 0x17f   : > { %1611 = vst [vmem:[#allocation3 + $0x3c] sm:$0xf] %v1603_v11  ;;  %v1365_v54 = vmul.f32 %v6434_v27, %v6592_v47  ;;  %v1273_v3 = vmul.f32 %v6354_v36, %v6584_v26  ;;  %v1459_v5 = vpack.c.bf16 %v6584_v26, %v6584_v26  ;;  %v1296_v40 = vrot.slane %v6584_v26, 1 }
 0x180   : > { %1470 = vst [vmem:[#allocation3 + $0xe8] sm:$0xf] %v1462_v28  ;;  %v6610_v27 = vsel %vm1139_vm1, %v1134_v62, %v1135_v48  ;;  %v1748_v29 = vpack.c.bf16 %v1740_v9, %v1740_v9  ;;  %v1284_v11 = vpack.c.bf16 %v1276_v34, %v1276_v34  ;;  %v4783_v62 = vld [vmem:[%s6280_s19 + $0x58] sm:$0xff]  ;;  %v1433_v34 = vmul.f32 %v6358_v41, %v6508_v18 }
 0x181   : > { %v1373_v1 = vpack.c.bf16 %v1365_v54, %v1365_v54  ;;  %1377 = vst [vmem:[#allocation3 + $0x50] sm:$0xf] %v1369_v10  ;;  %v1203_v36 = vmul.f32 %v6350_v31, %v6610_v27  ;;  %v6614_v0 = vpop.permute.xlu1 %1493  ;;  %v1281_v20 = vpack.c.bf16 %v1273_v3, %v1273_v3  ;;  %v6620_v28 = vsel %vm1301_vm0, %v1296_v40, %v1297_v21  ;;  %v4799_v54 = vld [vmem:[%s6280_s19 + $0xd8] sm:$0xff] }
 0x182   : > { %1467 = vst [vmem:[#allocation3 + $0x7c] sm:$0xf] %v1459_v5  ;;  %v6624_v15 = vpop.permute.xlu2 %1576  ;;  %v1363_v31 = vmul.f32 %v6398_v8, %v6620_v28  ;;  %v1524_v9 = vmul.f32 %v6462_v57, %v6620_v28  ;;  %v1438_v6 = vmul.f32 %v6464_v56, %v6610_v27  ;;  %v1104_v10 = vmul.f32 %v4078_v2, %v6457_v33  ;;  %v4782_v56 = vld [vmem:[%s6280_s19 + $0x50] sm:$0xff]  ;;  %v4773_v33 = vld [vmem:[%s6280_s19 + $0x8] sm:$0xff] }
 0x183   : > { %v6626_v38 = vpop.permute.xlu0 %1707  ;;  %1381 = vst [vmem:[#allocation3 + $0xe0] sm:$0xf] %v1373_v1  ;;  %v1211_v8 = vpack.c.bf16 %v1203_v36, %v1203_v36  ;;  %v1594_v57 = vmul.f32 %v6500_v63, %v6508_v18  ;;  %2597 = vmatpush.bf16.msrb.mxu2 %v4783_v62  ;;  %4921 = vmatpush.bf16.msra.mxu3 %v4774_v39  ;;  %v4798_v63 = vld [vmem:[%s6280_s19 + $0xd0] sm:$0xff] }
 0x184   : > { %1289 = vst [vmem:[#allocation3 + $0x94] sm:$0xf] %v1281_v20  ;;  %v5196_v3 = vpop.eup %5195  ;;  %v1371_v5 = vpack.c.bf16 %v1363_v31, %v1363_v31  ;;  %v1532_v1 = vpack.c.bf16 %v1524_v9, %v1524_v9  ;;  %v1446_v2 = vpack.c.bf16 %v1438_v6, %v1438_v6  ;;  %2655 = vmatpush.bf16.msrb.mxu0 %v4799_v54 }
 0x185   : > { %1756 = vst [vmem:[#allocation3 + $0x20] sm:$0xf] %v1748_v29  ;;  %v6640_v49 = vmul.f32 %v5196_v3, %v1104_v10  ;;  %v1441_v18 = vpack.c.bf16 %v1433_v34, %v1433_v34  ;;  %v1602_v20 = vpack.c.bf16 %v1594_v57, %v1594_v57  ;;  %v4795_v3 = vld [vmem:[%s6280_s19 + $0xb8] sm:$0xff]  ;;  %2569 = vmatpush.bf16.msra.mxu1 %v4774_v39  ;;  %v4780_v39 = vld [vmem:[%s6280_s19 + $0x40] sm:$0xff] }
 0x186   : > { %1292 = vst [vmem:[#allocation3 + $0x100] sm:$0xf] %v1284_v11  ;;  %v1669_v11 = vmul.f32 %v6512_v22, %v6584_v26 }
 0x187   : > { %1379 = vst [vmem:[#allocation3 + $0x98] sm:$0xf] %v1371_v5  ;;  %v1269_v41 = vmul.f32 %v6332_v13, %v6640_v49  ;;  %v1463_v29 = vpack.c.bf16 %v6640_v49, %v6640_v49  ;;  %v1136_v36 = vrot.slane %v6640_v49, 7  ;;  %v6656_v13 = vsel %vm1301_vm0, %v1297_v21, %v1298_v7  ;;  %2598 = vmatpush.bf16.msrb.mxu2 %v4782_v56  ;;  %v4781_v7 = vld [vmem:[%s6280_s19 + $0x48] sm:$0xff]  ;;  %v4772_v21 = vld [vmem:[%s6280_s19] sm:$0xff] }
 0x188   : > { %1540 = vst [vmem:[#allocation3 + $0x80] sm:$0xf] %v1532_v1  ;;  %4922 = vmatpush.bf16.msra.mxu3 %v4773_v33  ;;  %v1522_v5 = vmul.f32 %v6514_v44, %v6567_v32  ;;  %v1668_v1 = vmul.f32 %v6557_v61, %v6521_v53  ;;  %2656 = vmatpush.bf16.msrb.mxu0 %v4798_v63  ;;  %v7302_v44 = vrot.slane %v6521_v53, 1  ;;  %v1132_v32 = vrot.slane %v6584_v26, 7 }
 0x189   : > { %1219 = vst [vmem:[#allocation3 + $0xfc] sm:$0xf] %v1211_v8  ;;  %v6658_v62 = vpop.permute.xlu1 %1571  ;;  %v1277_v31 = vpack.c.bf16 %v1269_v41, %v1269_v41  ;;  %v6664_v9 = vsel %vm1139_vm1, %v1135_v48, %v1136_v36  ;;  %v6670_v22 = vsel %vm1139_vm1, %v1136_v36, %v1129_v4  ;;  %v1677_v56 = vpack.c.bf16 %v1669_v11, %v1669_v11  ;;  %v4794_v36 = vld [vmem:[%s6280_s19 + $0xb0] sm:$0xff] }
 0x18a   : > { %1471 = vst [vmem:[#allocation3 + $0x10c] sm:$0xf] %v1463_v29  ;;  %v6674_v6 = vpop.permute.xlu2 %1654  ;;  %v1196_v34 = vmul.f32 %v6338_v19, %v6664_v9  ;;  %v1439_v48 = vmul.f32 %v6459_v50, %v6664_v9  ;;  %v1197_v4 = vmul.f32 %v6344_v25, %v6670_v22  ;;  %v1432_v54 = vmul.f32 %v6362_v43, %v6670_v22  ;;  %v4797_v19 = vld [vmem:[%s6280_s19 + $0xc8] sm:$0xff] }
 0x18b   : > { %v6676_v10 = vpop.permute.xlu0 %1566  ;;  %1454 = vst [vmem:[#allocation3 + $0xe4] sm:$0xf] %v1446_v2  ;;  %v1364_v25 = vmul.f32 %v6360_v42, %v6656_v13  ;;  %v1306_v61 = vsel %vm1301_vm0, %v7302_v44, %v1296_v40  ;;  %2599 = vmatpush.bf16.msrb.mxu2 %v4781_v7  ;;  %v1743_v42 = vmul.f32 %v6569_v60, %v6656_v13  ;;  %v4796_v40 = vld [vmem:[%s6280_s19 + $0xc0] sm:$0xff]  ;;  %v7303_v11 = vrot.slane %v6452_v37, 7  ;;  %v4809_v44 = vld [vmem:[%s6280_s19 + $0x128] sm:$0xff] }
 0x18c   : > { %1285 = vst [vmem:[#allocation3 + $0x4] sm:$0xf] %v1277_v31  ;;  %v1204_v50 = vpack.c.bf16 %v1196_v34, %v1196_v34  ;;  %v1447_v8 = vpack.c.bf16 %v1439_v48, %v1439_v48  ;;  %v1205_v57 = vpack.c.bf16 %v1197_v4, %v1197_v4  ;;  %v1440_v43 = vpack.c.bf16 %v1432_v54, %v1432_v54  ;;  %v4083_v34 = vld [vmem:[#allocation3 + $0x24] sm:$0xf0] }
 0x18d   : > { %1449 = vst [vmem:[#allocation3 + $0x30] sm:$0xf] %v1441_v18  ;;  %4923 = vmatpush.bf16.msra.mxu3 %v4772_v21  ;;  %v1530_v2 = vpack.c.bf16 %v1522_v5, %v1522_v5  ;;  %v1667_v41 = vmul.f32 %v6571_v45, %v6468_v52  ;;  %2570 = vmatpush.bf16.msra.mxu1 %v4773_v33  ;;  %v4811_v18 = vld [vmem:[%s6280_s19 + $0x138] sm:$0xff]  ;;  %v4793_v5 = vld [vmem:[%s6280_s19 + $0xa8] sm:$0xff] }
 0x18e   : > { %1610 = vst [vmem:[#allocation3 + $0x18] sm:$0xf] %v1602_v20  ;;  %2657 = vmatpush.bf16.msrb.mxu0 %v4797_v19  ;;  %v1676_v29 = vpack.c.bf16 %v1668_v1, %v1668_v1  ;;  %v1362_v26 = vmul.f32 %v6348_v30, %v1306_v61  ;;  %v1372_v20 = vpack.c.bf16 %v1364_v25, %v1364_v25  ;;  %v4810_v1 = vld [vmem:[%s6280_s19 + $0x130] sm:$0xff]  ;;  %v7304_v19 = vrot.slane %v6521_v53, 7 }
 0x18f   : > { %1212 = vst [vmem:[#allocation3] sm:$0xf] %v1204_v50  ;;  %v1523_v60 = vmul.f32 %v6614_v0, %v1306_v61  ;;  %v1143_v52 = vsel %vm1139_vm1, %v1132_v32, %v7303_v11  ;;  %2600 = vmatpush.bf16.msrb.mxu2 %v4780_v39  ;;  %v1751_v30 = vpack.c.bf16 %v1743_v42, %v1743_v42  ;;  %v4808_v11 = vld [vmem:[%s6280_s19 + $0x120] sm:$0xff] }
 0x190   : > { %1455 = vst [vmem:[#allocation3 + $0x108] sm:$0xf] %v1447_v8  ;;  %v1598_v31 = vmul.f32 %v6624_v15, %v6537_v12  ;;  %v1675_v0 = vpack.c.bf16 %v1667_v41, %v1667_v41  ;;  %v1741_v48 = vmul.f32 %v6626_v38, %v1306_v61  ;;  %v1370_v54 = vpack.c.bf16 %v1362_v26, %v1362_v26 }
 0x191   : > { %2622 = vmatpush.bf16.msrb.mxu3 %v4795_v3  ;;  %1213 = vst [vmem:[#allocation3 + $0x24] sm:$0xf] %v1205_v57  ;;  %v6709_v63 = vpop.permute.xlu1 %1712  ;;  %2571 = vmatpush.bf16.msra.mxu1 %v4772_v21  ;;  %v1201_v3 = vmul.f32 %v6340_v23, %v1143_v52  ;;  %v1531_v12 = vpack.c.bf16 %v1523_v60, %v1523_v60  ;;  %v1300_v21 = vrot.slane %v6640_v49, 1  ;;  %v7305_v41 = vrot.slane %v6555_v16, 1  ;;  %v4791_v60 = vld [vmem:[%s6280_s19 + $0x98] sm:$0xff] }
 0x192   : > { %1448 = vst [vmem:[#allocation3 + $0xc] sm:$0xf] %v1440_v43  ;;  %v6717_v45 = vpop.permute.xlu2 %1513  ;;  %2658 = vmatpush.bf16.msrb.mxu0 %v4796_v40  ;;  %v1436_v15 = vmul.f32 %v6420_v46, %v1143_v52  ;;  %v1144_v38 = vsel %vm1139_vm1, %v7304_v19, %v1132_v32  ;;  %v1606_v23 = vpack.c.bf16 %v1598_v31, %v1598_v31  ;;  %v4792_v46 = vld [vmem:[%s6280_s19 + $0xa0] sm:$0xff] }
 0x193   : > { %v6719_v33 = vpop.permute.xlu0 %1644  ;;  %1685 = vst [vmem:[#allocation3 + $0x64] sm:$0xf] %v1677_v56  ;;  %v4736_v7 = vld [vmem:[#allocation3 + $0x4] sm:$0xf]  ;;  %v1597_v8 = vmul.f32 %v6658_v62, %v1143_v52  ;;  %v1749_v57 = vpack.c.bf16 %v1741_v48, %v1741_v48  ;;  %v1672_v25 = vmul.f32 %v6674_v6, %v6555_v16  ;;  %v1209_v53 = vpack.c.bf16 %v1201_v3, %v1201_v3  ;;  %v4819_v52 = vld [vmem:[%s6280_s19 + $0x178] sm:$0xff]  ;;  %v4790_v48 = vld [vmem:[%s6280_s19 + $0x90] sm:$0xff] }
 0x194   : > { %1538 = vst [vmem:[#allocation3 + $0x38] sm:$0xf] %v1530_v2  ;;  %v4086_v4 = vor.u32 %v4736_v7, %v4083_v34  ;;  %v1200_v61 = vmul.f32 %v6334_v17, %v1144_v38  ;;  %v4091_v56 = vld [vmem:[#allocation3 + $0x2c] sm:$0xf0]  ;;  %v1444_v62 = vpack.c.bf16 %v1436_v15, %v1436_v15  ;;  %v1435_v2 = vmul.f32 %v6382_v58, %v1144_v38 }
 0x195   : > { %1684 = vst [vmem:[#allocation3 + $0x40] sm:$0xf] %v1676_v29  ;;  %2623 = vmatpush.bf16.msrb.mxu3 %v4794_v36  ;;  %2680 = vmatpush.bf16.msrb.mxu1 %v4811_v18  ;;  %v6744_v6 = vsel %vm1301_vm0, %v7305_v41, %v1300_v21  ;;  %v1605_v26 = vpack.c.bf16 %v1597_v8, %v1597_v8 }
 0x196   : > { %1380 = vst [vmem:[#allocation3 + $0xbc] sm:$0xf] %v1372_v20  ;;  %2601 = vmatmul.bf16.vlgmr.msrb.gmra.mxu2 %v4086_v4  ;;  %v4081_v50 = vld [vmem:[#allocation3] sm:$0xf]  ;;  %v1596_v36 = vmul.f32 %v6676_v10, %v1144_v38  ;;  %v1680_v18 = vpack.c.bf16 %v1672_v25, %v1672_v25  ;;  %v1742_v58 = vmul.f32 %v6709_v63, %v6620_v28  ;;  %v7306_v4 = vrot.slane %v6440_v51, 1 }
 0x197   : > { %1759 = vst [vmem:[#allocation3 + $0x8c] sm:$0xf] %v1751_v30  ;;  %v1208_v16 = vpack.c.bf16 %v1200_v61, %v1200_v61  ;;  %v1366_v20 = vmul.f32 %v6384_v59, %v6744_v6  ;;  %v1443_v10 = vpack.c.bf16 %v1435_v2, %v1435_v2  ;;  %v1527_v30 = vmul.f32 %v6717_v45, %v6744_v6  ;;  %v4749_v25 = vld [vmem:[#allocation3 + $0x68] sm:$0xf0] }
 0x198   : > { %1683 = vst [vmem:[#allocation3 + $0x1c] sm:$0xf] %v1675_v0  ;;  %v4740_v43 = vld [vmem:[#allocation3 + $0x20] sm:$0xf0]  ;;  %v1604_v28 = vpack.c.bf16 %v1596_v36, %v1596_v36  ;;  %v1670_v63 = vmul.f32 %v6719_v33, %v6452_v37  ;;  %2709 = vmatpush.bf16.msra.mxu2 %v4819_v52  ;;  %v1750_v59 = vpack.c.bf16 %v1742_v58, %v1742_v58  ;;  %v4119_v0 = vld [vmem:[#allocation3 + $0x6c] sm:$0xf0] }
 0x199   : > { %1378 = vst [vmem:[#allocation3 + $0x74] sm:$0xf] %v1370_v54  ;;  %v4082_v32 = vor.u32 %v4740_v43, %v4081_v50  ;;  %v4737_v39 = vld [vmem:[#allocation3 + $0xc] sm:$0xf]  ;;  %2624 = vmatpush.bf16.msrb.mxu3 %v4793_v5  ;;  %2681 = vmatpush.bf16.msrb.mxu1 %v4810_v1  ;;  %v1509_v42 = vpop.permute.xlu1 %1508  ;;  %v1374_v7 = vpack.c.bf16 %v1366_v20, %v1366_v20  ;;  %v4807_v37 = vld [vmem:[%s6280_s19 + $0x118] sm:$0xff]  ;;  %v4818_v36 = vld [vmem:[%s6280_s19 + $0x170] sm:$0xff] }
 0x19a   : > { %1539 = vst [vmem:[#allocation3 + $0x5c] sm:$0xf] %v1531_v12  ;;  %v4094_v40 = vor.u32 %v4737_v39, %v4091_v56  ;;  %v1592_v29 = vpop.permute.xlu2 %1591  ;;  %v1526_v31 = vmul.f32 %v1509_v42, %v6592_v47  ;;  %v6765_v54 = vsel %vm1301_vm0, %v1300_v21, %v7306_v4  ;;  %v1535_v33 = vpack.c.bf16 %v1527_v30, %v1527_v30  ;;  %v4745_v12 = vld [vmem:[#allocation3 + $0x4c] sm:$0xf]  ;;  %v4835_v58 = vld [vmem:[%s6280_s19 + $0x1f8] sm:$0xff]  ;;  %v4826_v20 = vld [vmem:[%s6280_s19 + $0x1b0] sm:$0xff] }
 0x19b   : > { %v1504_v17 = vpop.permute.xlu0 %1503  ;;  %1614 = vst [vmem:[#allocation3 + $0xa8] sm:$0xf] %v1606_v23  ;;  %2572 = vmatmul.bf16.vlgmr.msra.gmra.mxu1 %v4082_v32  ;;  %v1601_v34 = vmul.f32 %v1592_v29, %v6670_v22  ;;  %v1678_v1 = vpack.c.bf16 %v1670_v63, %v1670_v63  ;;  %v4122_v38 = vor.u32 %v4745_v12, %v4119_v0  ;;  %v4789_v50 = vld [vmem:[%s6280_s19 + $0x88] sm:$0xff]  ;;  %v4806_v23 = vld [vmem:[%s6280_s19 + $0x110] sm:$0xff] }
 0x19c   : > { %1757 = vst [vmem:[#allocation3 + $0x44] sm:$0xf] %v1749_v57  ;;  %2659 = vmatmul.bf16.vlgmr.msrb.gmra.mxu0 %v4094_v40  ;;  %v1525_v3 = vmul.f32 %v1504_v17, %v6656_v13  ;;  %v1534_v19 = vpack.c.bf16 %v1526_v31, %v1526_v31  ;;  %v1359_v55 = vmul.f32 %v6352_v35, %v6765_v54  ;;  %v4117_v35 = vld [vmem:[#allocation3 + $0x48] sm:$0xf]  ;;  %v4754_v52 = vld [vmem:[#allocation3 + $0x94] sm:$0xf] }
 0x19d   : > { %1217 = vst [vmem:[#allocation3 + $0xb4] sm:$0xf] %v1209_v53  ;;  %2625 = vmatpush.bf16.msrb.mxu3 %v4792_v46  ;;  %2682 = vmatpush.bf16.msrb.mxu1 %v4809_v44  ;;  %v1609_v21 = vpack.c.bf16 %v1601_v34, %v1601_v34  ;;  %v4746_v53 = vld [vmem:[#allocation3 + $0x54] sm:$0xf]  ;;  %v4118_v39 = vor.u32 %v4749_v25, %v4117_v35  ;;  %v4155_v63 = vld [vmem:[#allocation3 + $0xb4] sm:$0xf0] }
 0x19e   : > { %1452 = vst [vmem:[#allocation3 + $0x9c] sm:$0xf] %v1444_v62  ;;  %v1533_v57 = vpack.c.bf16 %v1525_v3, %v1525_v3  ;;  %v1367_v44 = vpack.c.bf16 %v1359_v55, %v1359_v55  ;;  %v4805_v62 = vld [vmem:[%s6280_s19 + $0x108] sm:$0xff]  ;;  %2710 = vmatpush.bf16.msra.mxu2 %v4818_v36  ;;  %2767 = vmatpush.bf16.msra.mxu0 %v4835_v58  ;;  %v4189_v4 = vld [vmem:[#allocation3 + $0xd8] sm:$0xf]  ;;  %v4828_v36 = vld [vmem:[%s6280_s19 + $0x1c0] sm:$0xff] }
 0x19f   : > { %1613 = vst [vmem:[#allocation3 + $0x84] sm:$0xf] %v1605_v26  ;;  %v4827_v26 = vld [vmem:[%s6280_s19 + $0x1b8] sm:$0xff]  ;;  %v4833_v31 = vld [vmem:[%s6280_s19 + $0x1e8] sm:$0xff]  ;;  %v4842_v55 = vld [vmem:[%s6280_s19 + $0x230] sm:$0xff] }
 0x1a0   : > { %1688 = vst [vmem:[#allocation3 + $0xd0] sm:$0xf] %v1680_v18  ;;  %v4763_v35 = vld [vmem:[#allocation3 + $0xdc] sm:$0xf] }
 0x1a1   : > { %1216 = vst [vmem:[#allocation3 + $0x90] sm:$0xf] %v1208_v16  ;;  %2626 = vmatpush.bf16.msrb.mxu3 %v4791_v60  ;;  %2683 = vmatpush.bf16.msrb.mxu1 %v4808_v11  ;;  %v1650_v45 = vpop.permute.xlu1 %1649  ;;  %v4804_v16 = vld [vmem:[%s6280_s19 + $0x100] sm:$0xff]  ;;  %v4843_v60 = vld [vmem:[%s6280_s19 + $0x238] sm:$0xff]  ;;  %v4817_v11 = vld [vmem:[%s6280_s19 + $0x168] sm:$0xff] }
 0x1a2   : > { %1451 = vst [vmem:[#allocation3 + $0x78] sm:$0xf] %v1443_v10  ;;  %v1733_v5 = vpop.permute.xlu2 %1732  ;;  %v1671_v15 = vmul.f32 %v1650_v45, %v6498_v14  ;;  %2711 = vmatpush.bf16.msra.mxu2 %v4817_v11  ;;  %v4742_v45 = vld [vmem:[#allocation3 + $0x30] sm:$0xf0]  ;;  %v4839_v58 = vld [vmem:[%s6280_s19 + $0x218] sm:$0xff] }
 0x1a3   : > { %v1582_v22 = vpop.permute.xlu0 %1581  ;;  %1612 = vst [vmem:[#allocation3 + $0x60] sm:$0xf] %v1604_v28  ;;  %v1746_v13 = vmul.f32 %v1733_v5, %v6765_v54  ;;  %v4739_v11 = vld [vmem:[#allocation3 + $0x1c] sm:$0xf] }
 0x1a4   : > { %1758 = vst [vmem:[#allocation3 + $0x68] sm:$0xf] %v1750_v59  ;;  %v4758_v8 = vld [vmem:[#allocation3 + $0xb0] sm:$0xf0]  ;;  %v1599_v14 = vmul.f32 %v1582_v22, %v6610_v27  ;;  %v1679_v43 = vpack.c.bf16 %v1671_v15, %v1671_v15  ;;  %v4788_v27 = vld [vmem:[%s6280_s19 + $0x80] sm:$0xff] }
 0x1a5   : > { %1382 = vst [vmem:[#allocation3 + $0x104] sm:$0xf] %v1374_v7  ;;  %2627 = vmatpush.bf16.msrb.mxu3 %v4790_v48  ;;  %2684 = vmatpush.bf16.msrb.mxu1 %v4807_v37  ;;  %v1754_v32 = vpack.c.bf16 %v1746_v13, %v1746_v13  ;;  %v4158_v7 = vor.u32 %v4754_v52, %v4155_v63  ;;  %v4767_v48 = vld [vmem:[#allocation3 + $0xf8] sm:$0xf0]  ;;  %v4097_v37 = vld [vmem:[#allocation3 + $0x10] sm:$0xf] }
 0x1a6   : > { %1543 = vst [vmem:[#allocation3 + $0xec] sm:$0xf] %v1535_v33  ;;  %2606 = vmatmul.bf16.gmra.mxu2 %v4122_v38  ;;  %v1607_v2 = vpack.c.bf16 %v1599_v14, %v1599_v14  ;;  %v4163_v33 = vld [vmem:[#allocation3 + $0xbc] sm:$0xf0]  ;;  %v4098_v3 = vor.u32 %v4742_v45, %v4097_v37  ;;  %v4825_v38 = vld [vmem:[%s6280_s19 + $0x1a8] sm:$0xff]  ;;  %v4832_v13 = vld [vmem:[%s6280_s19 + $0x1e0] sm:$0xff] }
 0x1a7   : > { %1686 = vst [vmem:[#allocation3 + $0x88] sm:$0xf] %v1678_v1  ;;  %v4814_v14 = vld [vmem:[%s6280_s19 + $0x150] sm:$0xff]  ;;  %v4107_v52 = vld [vmem:[#allocation3 + $0x3c] sm:$0xf0] }
 0x1a8   : > { %v4153_v46 = vld [vmem:[#allocation3 + $0x90] sm:$0xf]  ;;  %1542 = vst [vmem:[#allocation3 + $0xc8] sm:$0xf] %v1534_v19  ;;  %v4816_v19 = vld [vmem:[%s6280_s19 + $0x160] sm:$0xff] }
 0x1a9   : > { %v4154_v61 = vor.u32 %v4758_v8, %v4153_v46  ;;  %1617 = vst [vmem:[#allocation3 + $0x114] sm:$0xf] %v1609_v21  ;;  %v4127_v56 = vld [vmem:[#allocation3 + $0x74] sm:$0xf0]  ;;  %2628 = vmatpush.bf16.msrb.mxu3 %v4789_v50  ;;  %2685 = vmatpush.bf16.msrb.mxu1 %v4806_v23  ;;  %v1728_v42 = vpop.permute.xlu1 %1727  ;;  %v4815_v23 = vld [vmem:[%s6280_s19 + $0x158] sm:$0xff] }
 0x1aa   : > { %1541 = vst [vmem:[#allocation3 + $0xa4] sm:$0xf] %v1533_v57  ;;  %v4130_v41 = vor.u32 %v4746_v53, %v4127_v56  ;;  %v1745_v40 = vmul.f32 %v1728_v42, %v6744_v6  ;;  %2712 = vmatpush.bf16.msra.mxu2 %v4816_v19  ;;  %v4831_v8 = vld [vmem:[%s6280_s19 + $0x1d8] sm:$0xff]  ;;  %v4829_v56 = vld [vmem:[%s6280_s19 + $0x1c8] sm:$0xff] }
 0x1ab   : > { %v1723_v29 = vpop.permute.xlu0 %1722  ;;  %2582 = vmatmul.bf16.vlgmr.msra.gmra.mxu3 %v4154_v61  ;;  %1687 = vst [vmem:[#allocation3 + $0xac] sm:$0xf] %v1679_v43  ;;  %2577 = vmatmul.bf16.gmra.mxu1 %v4118_v39  ;;  %v4191_v57 = vld [vmem:[#allocation3 + $0xfc] sm:$0xf0]  ;;  %v4830_v43 = vld [vmem:[%s6280_s19 + $0x1d0] sm:$0xff]  ;;  %v4813_v61 = vld [vmem:[%s6280_s19 + $0x148] sm:$0xff] }
 0x1ac   : > { %v1744_v17 = vmul.f32 %v1723_v29, %v6592_v47  ;;  %1375 = vst [vmem:[#allocation3 + $0x8] sm:$0xf] %v1367_v44  ;;  %2664 = vmatmul.bf16.gmra.mxu0 %v4130_v41  ;;  %v1753_v18 = vpack.c.bf16 %v1745_v40, %v1745_v40  ;;  %v4834_v47 = vld [vmem:[%s6280_s19 + $0x1f0] sm:$0xff]  ;;  %v4194_v44 = vor.u32 %v4763_v35, %v4191_v57  ;;  %v4751_v39 = vld [vmem:[#allocation3 + $0x78] sm:$0xf0]  ;;  %v4812_v29 = vld [vmem:[%s6280_s19 + $0x140] sm:$0xff] }
 0x1ad   : > { %1762 = vst [vmem:[#allocation3 + $0xf8] sm:$0xf] %v1754_v32  ;;  %2629 = vmatpush.bf16.msrb.mxu3 %v4788_v27  ;;  %2686 = vmatpush.bf16.msrb.mxu1 %v4805_v62  ;;  %v4199_v27 = vld [vmem:[#allocation3 + $0x104] sm:$0xf0]  ;;  %v4741_v42 = vld [vmem:[#allocation3 + $0x28] sm:$0xf0] }
 0x1ae   : > { %v1752_v6 = vpack.c.bf16 %v1744_v17, %v1744_v17  ;;  %1615 = vst [vmem:[#allocation3 + $0xcc] sm:$0xf] %v1607_v2  ;;  %2768 = vmatpush.bf16.msra.mxu0 %v4834_v47  ;;  %2713 = vmatpush.bf16.msra.mxu2 %v4815_v23  ;;  %v4133_v62 = vld [vmem:[#allocation3 + $0x58] sm:$0xf]  ;;  %v4823_v17 = vld [vmem:[%s6280_s19 + $0x198] sm:$0xff] }
 0x1af   : > { %1761 = vst [vmem:[#allocation3 + $0xd4] sm:$0xf] %v1753_v18  ;;  %v4134_v41 = vor.u32 %v4751_v39, %v4133_v62  ;;  %v4822_v18 = vld [vmem:[%s6280_s19 + $0x190] sm:$0xff]  ;;  %v4760_v47 = vld [vmem:[#allocation3 + $0xc0] sm:$0xf0] }
 0x1b0   : > { %1760 = vst [vmem:[#allocation3 + $0xb0] sm:$0xf] %v1752_v6  ;;  %v4099_v6 = vld [vmem:[#allocation3 + $0x34] sm:$0xf0]  ;;  %v4135_v45 = vld [vmem:[#allocation3 + $0x7c] sm:$0xf0] }
 0x1b1   : > { %2738 = vmatpush.bf16.msra.mxu3 %v4827_v26  ;;  %2687 = vmatpush.bf16.msrb.mxu1 %v4804_v16  ;;  %v1587_v10 = vpop.permute.xlu1 %1586  ;;  %v4840_v26 = vld [vmem:[%s6280_s19 + $0x220] sm:$0xff]  ;;  %v4738_v16 = vld [vmem:[#allocation3 + $0x14] sm:$0xf]  ;;  %v4769_v37 = vld [vmem:[#allocation3 + $0x108] sm:$0xf0] }
 0x1b2   : > { %v1600_v30 = vmul.f32 %v1587_v10, %v6664_v9  ;;  %v4755_v9 = vld [vmem:[#allocation3 + $0x9c] sm:$0xf]  ;;  %2769 = vmatpush.bf16.msra.mxu0 %v4833_v31  ;;  %2714 = vmatpush.bf16.msra.mxu2 %v4814_v14  ;;  %v4125_v10 = vld [vmem:[#allocation3 + $0x50] sm:$0xf]  ;;  %v4756_v19 = vld [vmem:[#allocation3 + $0xa4] sm:$0xf] }
 0x1b3   : > { %v1519_v28 = vpop.permute.xlu0 %1518  ;;  %v4166_v22 = vor.u32 %v4755_v9, %v4163_v33  ;;  %v4089_v32 = vld [vmem:[#allocation3 + $0x8] sm:$0xf]  ;;  %v4821_v31 = vld [vmem:[%s6280_s19 + $0x188] sm:$0xff]  ;;  %v4759_v33 = vld [vmem:[#allocation3 + $0xb8] sm:$0xf0] }
 0x1b4   : > { %v1528_v59 = vmul.f32 %v1519_v28, %v6765_v54  ;;  %v1608_v34 = vpack.c.bf16 %v1600_v30, %v1600_v30  ;;  %v4190_v54 = vor.u32 %v4767_v48, %v4189_v4  ;;  %v4090_v2 = vor.u32 %v4741_v42, %v4089_v32  ;;  %v4169_v30 = vld [vmem:[#allocation3 + $0xa0] sm:$0xf]  ;;  %v4747_v48 = vld [vmem:[#allocation3 + $0x5c] sm:$0xf]  ;;  %v4161_v4 = vld [vmem:[#allocation3 + $0x98] sm:$0xf] }
 0x1b5   : > { %2739 = vmatpush.bf16.msra.mxu3 %v4826_v20  ;;  %2796 = vmatpush.bf16.msra.mxu1 %v4843_v60  ;;  %v4102_v20 = vor.u32 %v4738_v16, %v4099_v6  ;;  %v4750_v60 = vld [vmem:[#allocation3 + $0x70] sm:$0xf0]  ;;  %v4170_v63 = vor.u32 %v4760_v47, %v4169_v30  ;;  %v4138_v9 = vor.u32 %v4747_v48, %v4135_v45  ;;  %v4197_v23 = vld [vmem:[#allocation3 + $0xe0] sm:$0xf]  ;;  %v4105_v32 = vld [vmem:[#allocation3 + $0x18] sm:$0xf] }
 0x1b6   : > { %v1536_v0 = vpack.c.bf16 %v1528_v59, %v1528_v59  ;;  %2611 = vmatmul.bf16.gmra.mxu2 %v4158_v7  ;;  %1616 = vst [vmem:[#allocation3 + $0xf0] sm:$0xf] %v1608_v34  ;;  %2770 = vmatpush.bf16.msra.mxu0 %v4832_v13  ;;  %v4126_v28 = vor.u32 %v4750_v60, %v4125_v10  ;;  %v4838_v7 = vld [vmem:[%s6280_s19 + $0x210] sm:$0xff]  ;;  %v4820_v34 = vld [vmem:[%s6280_s19 + $0x180] sm:$0xff]  ;;  %v4753_v39 = vld [vmem:[#allocation3 + $0x88] sm:$0xf0] }
 0x1b7   : > { %2715 = vmatpush.bf16.msra.mxu2 %v4813_v61  ;;  %v4110_v59 = vor.u32 %v4739_v11, %v4107_v52  ;;  %v4744_v13 = vld [vmem:[#allocation3 + $0x40] sm:$0xf0]  ;;  %v4221_v16 = vld [vmem:[#allocation3 + $0xf8] sm:$0xf] }
 0x1b8   : > { %1544 = vst [vmem:[#allocation3 + $0x110] sm:$0xf] %v1536_v0  ;;  %v4837_v0 = vld [vmem:[%s6280_s19 + $0x208] sm:$0xff]  ;;  %v4752_v62 = vld [vmem:[#allocation3 + $0x80] sm:$0xf0] }
 0x1b9   : > { %v1665_v5 = vpop.permute.xlu1 %1664  ;;  %2740 = vmatpush.bf16.msra.mxu3 %v4825_v38  ;;  %2797 = vmatpush.bf16.msra.mxu1 %v4842_v55  ;;  %v4171_v38 = vld [vmem:[#allocation3 + $0xc4] sm:$0xf0] }
 0x1ba   : > { %v1674_v1 = vmul.f32 %v1665_v5, %v6440_v51  ;;  %v4824_v51 = vld [vmem:[%s6280_s19 + $0x1a0] sm:$0xff]  ;;  %2771 = vmatpush.bf16.msra.mxu0 %v4831_v8  ;;  %v4162_v5 = vor.u32 %v4759_v33, %v4161_v4  ;;  %v4174_v55 = vor.u32 %v4756_v19, %v4171_v38 }
 0x1bb   : > { %v1660_v12 = vpop.permute.xlu0 %1659  ;;  %2587 = vmatmul.bf16.gmra.mxu3 %v4190_v54  ;;  %2688 = vmatmul.bf16.vlgmr.msrb.gmra.mxu1 %v4098_v3  ;;  %v4143_v54 = vld [vmem:[#allocation3 + $0x84] sm:$0xf0] }
 0x1bc   : > { %v1673_v15 = vmul.f32 %v1660_v12, %v6640_v49  ;;  %2669 = vmatmul.bf16.gmra.mxu0 %v4166_v22  ;;  %v1682_v21 = vpack.c.bf16 %v1674_v1, %v1674_v1  ;;  %v4841_v49 = vld [vmem:[%s6280_s19 + $0x228] sm:$0xff]  ;;  %2716 = vmatpush.bf16.msra.mxu2 %v4812_v29  ;;  %v4205_v3 = vld [vmem:[#allocation3 + $0xe8] sm:$0xf]  ;;  %v4748_v1 = vld [vmem:[#allocation3 + $0x64] sm:$0xf] }
 0x1bd   : > { %2741 = vmatpush.bf16.msra.mxu3 %v4824_v51  ;;  %2798 = vmatpush.bf16.msra.mxu1 %v4841_v49  ;;  %v4206_v22 = vor.u32 %v4769_v37, %v4205_v3  ;;  %v4146_v12 = vor.u32 %v4748_v1, %v4143_v54  ;;  %v4113_v51 = vld [vmem:[#allocation3 + $0x20] sm:$0xf]  ;;  %v4179_v49 = vld [vmem:[#allocation3 + $0xcc] sm:$0xf0] }
 0x1be   : > { %v1681_v50 = vpack.c.bf16 %v1673_v15, %v1673_v15  ;;  %1690 = vst [vmem:[#allocation3 + $0x118] sm:$0xf] %v1682_v21  ;;  %2772 = vmatpush.bf16.msra.mxu0 %v4830_v43  ;;  %v4836_v15 = vld [vmem:[%s6280_s19 + $0x200] sm:$0xff]  ;;  %v4114_v57 = vor.u32 %v4744_v13, %v4113_v51  ;;  %v4765_v43 = vld [vmem:[#allocation3 + $0xec] sm:$0xf] }
 0x1bf   : > { %v4768_v21 = vld [vmem:[#allocation3 + $0x100] sm:$0xf0] }
 0x1c0   : > { %1689 = vst [vmem:[#allocation3 + $0xf4] sm:$0xf] %v1681_v50  ;;  %v4757_v50 = vld [vmem:[#allocation3 + $0xac] sm:$0xf]  ;;  %v4198_v8 = vor.u32 %v4768_v21, %v4197_v23 }
 0x1c1   : > { %2742 = vmatpush.bf16.msra.mxu3 %v4823_v17  ;;  %2799 = vmatpush.bf16.msra.mxu1 %v4840_v26  ;;  %v4182_v14 = vor.u32 %v4757_v50, %v4179_v49 }
 0x1c2   : > { %2773 = vmatpush.bf16.msra.mxu0 %v4829_v56 }
 0x1c3   : > { %v1738_v25 = vpop.permute.xlu0 %1737 }
 0x1c4   : > { %v1747_v46 = vmul.f32 %v1738_v25, %v6490_v24  ;;  %v4764_v24 = vld [vmem:[#allocation3 + $0xe4] sm:$0xf]  ;;  %v4207_v25 = vld [vmem:[#allocation3 + $0x10c] sm:$0xf0] }
 0x1c5   : > { %v4202_v40 = vor.u32 %v4764_v24, %v4199_v27  ;;  %2743 = vmatpush.bf16.msra.mxu3 %v4822_v18  ;;  %2800 = vmatpush.bf16.msra.mxu1 %v4839_v58  ;;  %v4210_v35 = vor.u32 %v4765_v43, %v4207_v25  ;;  %v4215_v61 = vld [vmem:[#allocation3 + $0x114] sm:$0xf0]  ;;  %v4185_v24 = vld [vmem:[#allocation3 + $0xb0] sm:$0xf]  ;;  %v4177_v58 = vld [vmem:[#allocation3 + $0xa8] sm:$0xf] }
 0x1c6   : > { %v1755_v53 = vpack.c.bf16 %v1747_v46, %v1747_v46  ;;  %2616 = vmatmul.bf16.gmra.mxu2 %v4194_v44  ;;  %2774 = vmatpush.bf16.msra.mxu0 %v4828_v36  ;;  %v4743_v46 = vld [vmem:[#allocation3 + $0x38] sm:$0xf0]  ;;  %v4149_v44 = vld [vmem:[#allocation3 + $0x68] sm:$0xf]  ;;  %v4761_v36 = vld [vmem:[#allocation3 + $0xc8] sm:$0xf0] }
 0x1c7   : > { %v4106_v56 = vor.u32 %v4743_v46, %v4105_v32  ;;  %v4150_v27 = vor.u32 %v4753_v39, %v4149_v44 }
 0x1c8   : > { %1763 = vst [vmem:[#allocation3 + $0x11c] sm:$0xf] %v1755_v53  ;;  %v4766_v53 = vld [vmem:[#allocation3 + $0xf4] sm:$0xf] }
 0x1c9   : > { %2744 = vmatpush.bf16.msra.mxu3 %v4821_v31  ;;  %2801 = vmatpush.bf16.msra.mxu1 %v4838_v7  ;;  %v4218_v42 = vor.u32 %v4766_v53, %v4215_v61 }
 0x1cb   : > { %2630 = vmatmul.bf16.vlgmr.msrb.gmra.mxu3 %v4090_v2  ;;  %2693 = vmatmul.bf16.gmra.mxu1 %v4134_v41  ;;  %v4141_v2 = vld [vmem:[#allocation3 + $0x60] sm:$0xf]  ;;  %v4762_v41 = vld [vmem:[#allocation3 + $0xd0] sm:$0xf0] }
 0x1cc   : > { %2674 = vmatmul.bf16.gmra.mxu0 %v4202_v40  ;;  %v4142_v29 = vor.u32 %v4752_v62, %v4141_v2  ;;  %v4186_v17 = vor.u32 %v4762_v41, %v4185_v24 }
 0x1cd   : > { %2745 = vmatpush.bf16.msra.mxu3 %v4820_v34  ;;  %2802 = vmatpush.bf16.msra.mxu1 %v4837_v0 }
 0x1cf   : > { %v4771_v18 = vld [vmem:[#allocation3 + $0x118] sm:$0xf0] }
 0x1d0   : > { %v4222_v60 = vor.u32 %v4771_v18, %v4221_v16  ;;  %v6866_v16 = vld [vmem:[%s757_s1] ss:$0 sm:$0xff] }
 0x1d1   : > { %2803 = vmatpush.bf16.msra.mxu1 %v4836_v15 }
 0x1d6   : > { %2717 = vmatmul.bf16.vlgmr.msra.gmra.mxu2 %v4102_v20  ;;  %v4178_v20 = vor.u32 %v4761_v36, %v4177_v58 }
 0x1db   : > { %2635 = vmatmul.bf16.gmra.mxu3 %v4126_v28  ;;  %2698 = vmatmul.bf16.gmra.mxu1 %v4170_v63  ;;  %v4213_v63 = vld [vmem:[#allocation3 + $0xf0] sm:$0xf] }
 0x1dc   : > { %2775 = vmatmul.bf16.vlgmr.msra.gmra.mxu0 %v4110_v59  ;;  %v4770_v59 = vld [vmem:[#allocation3 + $0x110] sm:$0xf0] }
 0x1dd   : > { %v4214_v7 = vor.u32 %v4770_v59, %v4213_v63 }
 0x1e6   : > { %2722 = vmatmul.bf16.gmra.mxu2 %v4138_v9 }
 0x1eb   : > { %2640 = vmatmul.bf16.gmra.mxu3 %v4162_v5  ;;  %2703 = vmatmul.bf16.gmra.mxu1 %v4206_v22 }
 0x1ec   : > { %2780 = vmatmul.bf16.gmra.mxu0 %v4146_v12 }
 0x1f6   : > { %2727 = vmatmul.bf16.gmra.mxu2 %v4174_v55 }
 0x1fb   : > { %2645 = vmatmul.bf16.gmra.mxu3 %v4198_v8  ;;  %2804 = vmatmul.bf16.vlgmr.msra.gmra.mxu1 %v4114_v57 }
 0x1fc   : > { %2785 = vmatmul.bf16.gmra.mxu0 %v4182_v14 }
 0x206   : > { %2732 = vmatmul.bf16.gmra.mxu2 %v4210_v35 }
 0x20b   : > { %2746 = vmatmul.bf16.vlgmr.msra.gmra.mxu3 %v4106_v56  ;;  %2809 = vmatmul.bf16.gmra.mxu1 %v4150_v27 }
 0x20c   : > { %2790 = vmatmul.bf16.gmra.mxu0 %v4218_v42 }
 0x218   : > { %v2573_v40 = vpop.f32.mrf.mxu1 }
 0x219   : > { %v2602_v47 = vpop.f32.mrf.mxu2  ;;  %v2660_v10 = vpop.f32.mrf.mxu0 }
 0x21a   : > { %v2603_v46 = vadd.f32 %v2602_v47, %v2573_v40 }
 0x21b   : > { %2751 = vmatmul.bf16.gmra.mxu3 %v4142_v29  ;;  %2814 = vmatmul.bf16.gmra.mxu1 %v4186_v17 }
 0x220   : > { %v2575_v26 = vpop.f32.mrf.mxu1 }
 0x221   : > { %v2604_v28 = vpop.f32.mrf.mxu2  ;;  %v2662_v34 = vpop.f32.mrf.mxu0 }
 0x222   : > { %v2605_v27 = vadd.f32 %v2604_v28, %v2575_v26  ;;  %v6870_v26 = vld [vmem:[%s766_s0] ss:$0 sm:$0xff] }
 0x228   : > { %v6817_v6 = vpop.f32.mrf.mxu1 }
 0x229   : > { %v2607_v48 = vpop.f32.mrf.mxu2  ;;  %v2665_v9 = vpop.f32.mrf.mxu0 }
 0x22a   : > { %v2608_v40 = vadd.f32 %v2607_v48, %v6817_v6 }
 0x22b   : > { %2756 = vmatmul.bf16.gmra.mxu3 %v4178_v20  ;;  %2819 = vmatmul.bf16.gmra.mxu1 %v4222_v60 }
 0x22e   : > { %v6819_v11 = vpop.f32.mrf.mxu3 }
 0x230   : > { %v6821_v52 = vpop.f32.mrf.mxu1 }
 0x231   : > { %v2609_v54 = vpop.f32.mrf.mxu2  ;;  %v6829_v3 = vpop.f32.mrf.mxu0 }
 0x232   : > { %v2610_v48 = vadd.f32 %v2609_v54, %v6821_v52 }
 0x236   : > { %v6823_v30 = vpop.f32.mrf.mxu3 }
 0x238   : > { %v2689_v31 = vpop.f32.mrf.mxu1 }
 0x239   : > { %v6833_v22 = vpop.f32.mrf.mxu2  ;;  %v6835_v12 = vpop.f32.mrf.mxu0 }
 0x23a   : > { %v2613_v52 = vadd.f32 %v6833_v22, %v6819_v11 }
 0x23b   : > { %2761 = vmatmul.bf16.gmra.mxu3 %v4214_v7 }
 0x23e   : > { %v6825_v0 = vpop.f32.mrf.mxu3 }
 0x240   : > { %v2691_v45 = vpop.f32.mrf.mxu1 }
 0x241   : > { %v6839_v19 = vpop.f32.mrf.mxu2  ;;  %v6841_v55 = vpop.f32.mrf.mxu0 }
 0x246   : > { %v6827_v4 = vpop.f32.mrf.mxu3 }
 0x248   : > { %v2694_v37 = vpop.f32.mrf.mxu1 }
 0x249   : > { %v6845_v50 = vpop.f32.mrf.mxu2  ;;  %v6847_v23 = vpop.f32.mrf.mxu0 }
 0x24e   : > { %v2631_v33 = vpop.f32.mrf.mxu3 }
 0x24f   : > { %v2632_v53 = vadd.f32 %v2631_v33, %v2603_v46 }
 0x250   : > { %v6831_v5 = vpop.f32.mrf.mxu1 }
 0x251   : > { %v6851_v49 = vpop.f32.mrf.mxu2  ;;  %v6855_v14 = vpop.f32.mrf.mxu0  ;;  %v2661_v56 = vadd.f32 %v2660_v10, %v2632_v53 }
 0x253   : > { %v2690_v42 = vadd.f32 %v2689_v31, %v2661_v56 }
 0x256   : > { %v2633_v1 = vpop.f32.mrf.mxu3 }
 0x257   : > { %v2634_v62 = vadd.f32 %v2633_v1, %v2605_v27 }
 0x258   : > { %v6837_v15 = vpop.f32.mrf.mxu1 }
 0x259   : > { %v2718_v43 = vpop.f32.mrf.mxu2  ;;  %v2776_v44 = vpop.f32.mrf.mxu0  ;;  %v2663_v17 = vadd.f32 %v2662_v34, %v2634_v62 }
 0x25a   : > { %v2719_v24 = vadd.f32 %v2718_v43, %v2690_v42 }
 0x25b   : > { %v2692_v20 = vadd.f32 %v2691_v45, %v2663_v17 }
 0x25e   : > { %v2636_v38 = vpop.f32.mrf.mxu3 }
 0x25f   : > { %v2637_v60 = vadd.f32 %v2636_v38, %v2608_v40 }
 0x260   : > { %v6843_v13 = vpop.f32.mrf.mxu1 }
 0x261   : > { %v2720_v32 = vpop.f32.mrf.mxu2  ;;  %v2778_v2 = vpop.f32.mrf.mxu0  ;;  %v2666_v31 = vadd.f32 %v2665_v9, %v2637_v60 }
 0x262   : > { %v2721_v10 = vadd.f32 %v2720_v32, %v2692_v20 }
 0x263   : > { %v2695_v38 = vadd.f32 %v2694_v37, %v2666_v31 }
 0x266   : > { %v2638_v21 = vpop.f32.mrf.mxu3 }
 0x267   : > { %v2639_v43 = vadd.f32 %v2638_v21, %v2610_v48 }
 0x268   : > { %v6849_v8 = vpop.f32.mrf.mxu1 }
 0x269   : > { %v2723_v18 = vpop.f32.mrf.mxu2  ;;  %v2781_v63 = vpop.f32.mrf.mxu0  ;;  %v2668_v9 = vadd.f32 %v6829_v3, %v2639_v43 }
 0x26a   : > { %v2724_v53 = vadd.f32 %v2723_v18, %v2695_v38 }
 0x26e   : > { %v2641_v51 = vpop.f32.mrf.mxu3 }
 0x270   : > { %v6857_v25 = vpop.f32.mrf.mxu1 }
 0x271   : > { %v2725_v45 = vpop.f32.mrf.mxu2  ;;  %v2783_v42 = vpop.f32.mrf.mxu0 }
 0x276   : > { %v6853_v57 = vpop.f32.mrf.mxu3 }
 0x278   : > { %v2805_v61 = vpop.f32.mrf.mxu1 }
 0x279   : > { %v2728_v3 = vpop.f32.mrf.mxu2 }
 0x27e   : > { %v6859_v35 = vpop.f32.mrf.mxu3 }
 0x280   : > { %v2807_v29 = vpop.f32.mrf.mxu1 }
 0x286   : > { %v6861_v39 = vpop.f32.mrf.mxu3 }
 0x288   : > { %v2810_v6 = vpop.f32.mrf.mxu1 }
 0x28e   : > { %v2747_v41 = vpop.f32.mrf.mxu3 }
 0x28f   : > { %v2748_v36 = vadd.f32 %v2747_v41, %v2719_v24  ;;  %v2642_v24 = vadd.f32 %v2641_v51, %v2613_v52 }
 0x290   : > { %v2812_v21 = vpop.f32.mrf.mxu1 }
 0x291   : > { %v2777_v58 = vadd.f32 %v2776_v44, %v2748_v36  ;;  %v2671_v11 = vadd.f32 %v6835_v12, %v2642_v24 }
 0x293   : > { %v2806_v47 = vadd.f32 %v2805_v61, %v2777_v58 }
 0x295   : > { %v2829_v28 = vmul.f32 %v6866_v16, %v2806_v47 }
 0x296   : > { %v2749_v59 = vpop.f32.mrf.mxu3 }
 0x297   : > { %v2841_v7 = vadd.f32 %v6870_v26, %v2829_v28  ;;  %v2750_v34 = vadd.f32 %v2749_v59, %v2721_v10  ;;  %v2786_v28 = vpop.f32.mrf.mxu0  ;;  %v2700_v59 = vadd.f32 %v6837_v15, %v2671_v11 }
 0x298   : > { %v2815_v48 = vpop.f32.mrf.mxu1 }
 0x299   : > { %v2849_v33 = vmin.f32 %v2841_v7, 20.0  ;;  %v2779_v1 = vadd.f32 %v2778_v2, %v2750_v34  ;;  %v2697_v2 = vadd.f32 %v6831_v5, %v2668_v9  ;;  %v2615_v5 = vadd.f32 %v6839_v19, %v6823_v30 }
 0x29b   : > { %v2857_v46 = vmul.f32 1.442695, %v2849_v33  ;;  %v2808_v44 = vadd.f32 %v2807_v29, %v2779_v1  ;;  %v2726_v36 = vadd.f32 %v2725_v45, %v2697_v2  ;;  %v2644_v10 = vadd.f32 %v6853_v57, %v2615_v5  ;;  %v2730_v45 = vpop.f32.mrf.mxu2 }
 0x29c   : > { %v2729_v33 = vadd.f32 %v2728_v3, %v2700_v59 }
 0x29d   : > { %5197 = vpow2.f32 %v2857_v46  ;;  %v2830_v61 = vmul.f32 %v6866_v16, %v2808_v44  ;;  %v2673_v19 = vadd.f32 %v6841_v55, %v2644_v10  ;;  %v2618_v44 = vadd.f32 %v6845_v50, %v6825_v0 }
 0x29e   : > { %v2752_v32 = vpop.f32.mrf.mxu3 }
 0x29f   : > { %v6878_v56 = vadd.f32 %v6870_v26, %v2830_v61  ;;  %v2753_v27 = vadd.f32 %v2752_v32, %v2724_v53  ;;  %v2647_v55 = vadd.f32 %v6859_v35, %v2618_v44 }
 0x2a1   : > { %v2850_v37 = vmin.f32 %v6878_v56, 20.0  ;;  %v2782_v54 = vadd.f32 %v2781_v63, %v2753_v27  ;;  %v2702_v27 = vadd.f32 %v6843_v13, %v2673_v19  ;;  %v2676_v13 = vadd.f32 %v6847_v23, %v2647_v55 }
 0x2a3   : > { %v5198_v62 = vpop.eup %5197  ;;  %v2859_v41 = vmul.f32 1.442695, %v2850_v37  ;;  %v2811_v29 = vadd.f32 %v2810_v6, %v2782_v54  ;;  %v2731_v0 = vadd.f32 %v2730_v45, %v2702_v27  ;;  %v2705_v23 = vadd.f32 %v6849_v8, %v2676_v13 }
 0x2a4   : > { %v2873_v17 = vadd.f32 1.0, %v5198_v62  ;;  %v2788_v62 = vpop.f32.mrf.mxu0 }
 0x2a5   : > { %5199 = vpow2.f32 %v2859_v41  ;;  %v2831_v18 = vmul.f32 %v6866_v16, %v2811_v29  ;;  %v2817_v41 = vpop.f32.mrf.mxu1 }
 0x2a6   : > { %v2881_v40 = vmul.f32 %v2873_v17, %v2873_v17  ;;  %v2754_v58 = vpop.f32.mrf.mxu3 }
 0x2a7   : > { %v6887_v22 = vadd.f32 %v6870_v26, %v2831_v18  ;;  %v2755_v20 = vadd.f32 %v2754_v58, %v2726_v36  ;;  %v2620_v18 = vadd.f32 %v6851_v49, %v6827_v4  ;;  %v2733_v58 = vpop.f32.mrf.mxu2 }
 0x2a8   : > { %v2905_v51 = vadd.f32 1.0, %v2881_v40  ;;  %v4511_v31 = vadd.f32 -1.0, %v2881_v40  ;;  %v2734_v4 = vadd.f32 %v2733_v58, %v2705_v23 }
 0x2a9   : > { %v2851_v60 = vmin.f32 %v6887_v22, 20.0  ;;  %v2784_v47 = vadd.f32 %v2783_v42, %v2755_v20 }
 0x2aa   : > { %5201 = vrcp.f32 %v2905_v51  ;;  %v2897_v57 = vmul.f32 %v4511_v31, %v2841_v7  ;;  %v5229_v7 = vld [vmem:[#allocation2 + $0x30] sm:$0xff]  ;;  %v2649_v51 = vadd.f32 %v6861_v39, %v2620_v18 }
 0x2ab   : > { %v5200_v63 = vpop.eup %5199  ;;  %v2861_v12 = vmul.f32 1.442695, %v2851_v60  ;;  %v2813_v34 = vadd.f32 %v2812_v21, %v2784_v47  ;;  %v5230_v60 = vld [vmem:[#allocation2] sm:$0xff] }
 0x2ac   : > { %v2874_v6 = vadd.f32 1.0, %v5200_v63  ;;  %v2678_v31 = vadd.f32 %v6855_v14, %v2649_v51  ;;  %v2791_v8 = vpop.f32.mrf.mxu0  ;;  %v5231_v14 = vld [vmem:[#allocation2 + $0x18] sm:$0xff] }
 0x2ad   : > { %5203 = vpow2.f32 %v2861_v12  ;;  %v2832_v30 = vmul.f32 %v6866_v16, %v2813_v34  ;;  %v2820_v19 = vpop.f32.mrf.mxu1 }
 0x2ae   : > { %v2882_v1 = vmul.f32 %v2874_v6, %v2874_v6  ;;  %v2757_v38 = vpop.f32.mrf.mxu3 }
 0x2af   : > { %v6897_v43 = vadd.f32 %v6870_v26, %v2832_v30  ;;  %v2758_v46 = vadd.f32 %v2757_v38, %v2729_v33 }
 0x2b0   : > { %v5202_v15 = vpop.eup %5201  ;;  %v2906_v53 = vadd.f32 1.0, %v2882_v1  ;;  %v4512_v37 = vadd.f32 -1.0, %v2882_v1 }
 0x2b1   : > { %v2921_v61 = vmul.f32 %v5202_v15, %v2897_v57  ;;  %v2852_v32 = vmin.f32 %v6897_v43, 20.0  ;;  %v2787_v9 = vadd.f32 %v2786_v28, %v2758_v46  ;;  %v2707_v57 = vadd.f32 %v6857_v25, %v2678_v31  ;;  %v2735_v46 = vpop.f32.mrf.mxu2 }
 0x2b2   : > { %5205 = vrcp.f32 %v2906_v53  ;;  %v2898_v29 = vmul.f32 %v4512_v37, %v6878_v56 }
 0x2b3   : > { %v5204_v42 = vpop.eup %5203  ;;  %v6904_v52 = vadd.f32 %v5229_v7, %v2921_v61  ;;  %v2863_v54 = vmul.f32 1.442695, %v2852_v32  ;;  %v2816_v21 = vadd.f32 %v2815_v48, %v2787_v9  ;;  %v2736_v9 = vadd.f32 %v2735_v46, %v2707_v57 }
 0x2b4   : > { %v2875_v2 = vadd.f32 1.0, %v5204_v42 }
 0x2b5   : > { %2937 = vst [vmem:[#allocation2 + $0x30] sm:$0xff] %v6904_v52  ;;  %5207 = vpow2.f32 %v2863_v54  ;;  %v2833_v50 = vmul.f32 %v6866_v16, %v2816_v21  ;;  %v2793_v21 = vpop.f32.mrf.mxu0  ;;  %v2822_v13 = vpop.f32.mrf.mxu1 }
 0x2b6   : > { %v2883_v24 = vmul.f32 %v2875_v2, %v2875_v2  ;;  %v2759_v35 = vpop.f32.mrf.mxu3 }
 0x2b7   : > { %v6911_v17 = vadd.f32 %v6870_v26, %v2833_v50  ;;  %v2760_v3 = vadd.f32 %v2759_v35, %v2731_v0  ;;  %v5232_v35 = vld [vmem:[#allocation2 + $0x10] sm:$0xff] }
 0x2b8   : > { %v5206_v36 = vpop.eup %5205  ;;  %v2907_v40 = vadd.f32 1.0, %v2883_v24  ;;  %v4513_v10 = vadd.f32 -1.0, %v2883_v24 }
 0x2b9   : > { %v2922_v11 = vmul.f32 %v5206_v36, %v2898_v29  ;;  %v2853_v20 = vmin.f32 %v6911_v17, 20.0  ;;  %v2789_v5 = vadd.f32 %v2788_v62, %v2760_v3 }
 0x2ba   : > { %5209 = vrcp.f32 %v2907_v40  ;;  %v2899_v34 = vmul.f32 %v4513_v10, %v6887_v22 }
 0x2bb   : > { %v5208_v56 = vpop.eup %5207  ;;  %v6918_v47 = vadd.f32 %v5230_v60, %v2922_v11  ;;  %v2865_v28 = vmul.f32 1.442695, %v2853_v20  ;;  %v2818_v63 = vadd.f32 %v2817_v41, %v2789_v5  ;;  %v5233_v60 = vld [vmem:[#allocation2 + $0x8] sm:$0xff] }
 0x2bc   : > { %v2876_v59 = vadd.f32 1.0, %v5208_v56 }
 0x2bd   : > { %2938 = vst [vmem:[#allocation2] sm:$0xff] %v6918_v47  ;;  %5211 = vpow2.f32 %v2865_v28  ;;  %v2834_v49 = vmul.f32 %v6866_v16, %v2818_v63 }
 0x2be   : > { %v2884_v12 = vmul.f32 %v2876_v59, %v2876_v59  ;;  %v2762_v39 = vpop.f32.mrf.mxu3 }
 0x2bf   : > { %v2846_v6 = vadd.f32 %v6870_v26, %v2834_v49  ;;  %v2763_v48 = vadd.f32 %v2762_v39, %v2734_v4 }
 0x2c0   : > { %v5210_v33 = vpop.eup %5209  ;;  %v2908_v30 = vadd.f32 1.0, %v2884_v12  ;;  %v4514_v53 = vadd.f32 -1.0, %v2884_v12 }
 0x2c1   : > { %v2923_v1 = vmul.f32 %v5210_v33, %v2899_v34  ;;  %v2854_v45 = vmin.f32 %v2846_v6, 20.0  ;;  %v2792_v38 = vadd.f32 %v2791_v8, %v2763_v48  ;;  %v5234_v8 = vld [vmem:[#allocation2 + $0x20] sm:$0xff] }
 0x2c2   : > { %5213 = vrcp.f32 %v2908_v30  ;;  %v2900_v25 = vmul.f32 %v4514_v53, %v6897_v43 }
 0x2c3   : > { %v5212_v15 = vpop.eup %5211  ;;  %v6926_v44 = vadd.f32 %v5231_v14, %v2923_v1  ;;  %v2867_v61 = vmul.f32 1.442695, %v2854_v45  ;;  %v2821_v22 = vadd.f32 %v2820_v19, %v2792_v38  ;;  %v5235_v45 = vld [vmem:[#allocation2 + $0x28] sm:$0xff]  ;;  %v5236_v14 = vld [vmem:[#allocation2 + $0x38] sm:$0xff] }
 0x2c4   : > { %v2877_v32 = vadd.f32 1.0, %v5212_v15 }
 0x2c5   : > { %2939 = vst [vmem:[#allocation2 + $0x18] sm:$0xff] %v6926_v44  ;;  %5215 = vpow2.f32 %v2867_v61  ;;  %v2835_v27 = vmul.f32 %v6866_v16, %v2821_v22 }
 0x2c6   : > { %v2885_v55 = vmul.f32 %v2877_v32, %v2877_v32  ;;  %v2764_v42 = vpop.f32.mrf.mxu3 }
 0x2c7   : > { %v2847_v7 = vadd.f32 %v6870_v26, %v2835_v27  ;;  %v2765_v37 = vadd.f32 %v2764_v42, %v2736_v9 }
 0x2c8   : > { %v5214_v54 = vpop.eup %5213  ;;  %v2909_v62 = vadd.f32 1.0, %v2885_v55  ;;  %v4515_v29 = vadd.f32 -1.0, %v2885_v55 }
 0x2c9   : > { %v2924_v2 = vmul.f32 %v5214_v54, %v2900_v25  ;;  %v2855_v0 = vmin.f32 %v2847_v7, 20.0  ;;  %v2794_v50 = vadd.f32 %v2793_v21, %v2765_v37 }
 0x2ca   : > { %5217 = vrcp.f32 %v2909_v62  ;;  %v2901_v58 = vmul.f32 %v4515_v29, %v6911_v17 }
 0x2cb   : > { %v5216_v24 = vpop.eup %5215  ;;  %v6932_v41 = vadd.f32 %v5232_v35, %v2924_v2  ;;  %v2869_v3 = vmul.f32 1.442695, %v2855_v0  ;;  %v2823_v36 = vadd.f32 %v2822_v13, %v2794_v50 }
 0x2cc   : > { %v2878_v18 = vadd.f32 1.0, %v5216_v24 }
 0x2cd   : > { %2940 = vst [vmem:[#allocation2 + $0x10] sm:$0xff] %v6932_v41  ;;  %5219 = vpow2.f32 %v2869_v3  ;;  %v2836_v43 = vmul.f32 %v6866_v16, %v2823_v36 }
 0x2ce   : > { %v2886_v40 = vmul.f32 %v2878_v18, %v2878_v18 }
 0x2cf   : > { %v2848_v11 = vadd.f32 %v6870_v26, %v2836_v43 }
 0x2d0   : > { %v5218_v20 = vpop.eup %5217  ;;  %v2910_v5 = vadd.f32 1.0, %v2886_v40  ;;  %v4516_v28 = vadd.f32 -1.0, %v2886_v40 }
 0x2d1   : > { %v2925_v23 = vmul.f32 %v5218_v20, %v2901_v58  ;;  %v2856_v51 = vmin.f32 %v2848_v11, 20.0 }
 0x2d2   : > { %5221 = vrcp.f32 %v2910_v5  ;;  %v2902_v4 = vmul.f32 %v4516_v28, %v2846_v6 }
 0x2d3   : > { %v5220_v56 = vpop.eup %5219  ;;  %v6938_v10 = vadd.f32 %v5233_v60, %v2925_v23  ;;  %v2871_v63 = vmul.f32 1.442695, %v2856_v51 }
 0x2d4   : > { %v2879_v59 = vadd.f32 1.0, %v5220_v56 }
 0x2d5   : > { %2941 = vst [vmem:[#allocation2 + $0x8] sm:$0xff] %v6938_v10  ;;  %5223 = vpow2.f32 %v2871_v63 }
 0x2d6   : > { %v2887_v16 = vmul.f32 %v2879_v59, %v2879_v59 }
 0x2d8   : > { %v5222_v17 = vpop.eup %5221  ;;  %v2911_v49 = vadd.f32 1.0, %v2887_v16  ;;  %v4517_v39 = vadd.f32 -1.0, %v2887_v16 }
 0x2d9   : > { %v2926_v26 = vmul.f32 %v5222_v17, %v2902_v4 }
 0x2da   : > { %5225 = vrcp.f32 %v2911_v49  ;;  %v2903_v33 = vmul.f32 %v4517_v39, %v2847_v7 }
 0x2db   : > { %v5224_v31 = vpop.eup %5223  ;;  %v6941_v12 = vadd.f32 %v5234_v8, %v2926_v26 }
 0x2dc   : > { %v2880_v34 = vadd.f32 1.0, %v5224_v31 }
 0x2dd   : > { %2942 = vst [vmem:[#allocation2 + $0x20] sm:$0xff] %v6941_v12 }
 0x2de   : > { %v2888_v48 = vmul.f32 %v2880_v34, %v2880_v34 }
 0x2e0   : > { %v5226_v30 = vpop.eup %5225  ;;  %v2912_v19 = vadd.f32 1.0, %v2888_v48  ;;  %v4518_v38 = vadd.f32 -1.0, %v2888_v48 }
 0x2e1   : > { %v2927_v1 = vmul.f32 %v5226_v30, %v2903_v33 }
 0x2e2   : > { %5227 = vrcp.f32 %v2912_v19  ;;  %v2904_v57 = vmul.f32 %v4518_v38, %v2848_v11 }
 0x2e3   : > { %v6944_v6 = vadd.f32 %v5235_v45, %v2927_v1 }
 0x2e5   : > { %2943 = vst [vmem:[#allocation2 + $0x28] sm:$0xff] %v6944_v6 }
 0x2e8   : > { %v5228_v46 = vpop.eup %5227 }
 0x2e9   : > { %v2928_v15 = vmul.f32 %v5228_v46, %v2904_v57  ;;  %2948 = sbr.rel (%p4519_p11) target bundleno = 1169 (0x491), region = 148 }
 0x2eb   : > { %v6947_v53 = vadd.f32 %v5236_v14, %v2928_v15 }
 0x2ed   : > { %2944 = vst [vmem:[#allocation2 + $0x38] sm:$0xff] %v6947_v53 }
 0x2ee   : > { %v4851_v61 = vld [vmem:[#allocation16 + $0x38] sm:$0xff]  ;;  %v4850_v22 = vld [vmem:[#allocation16 + $0x30] sm:$0xff]  ;;  %v4849_v32 = vld [vmem:[#allocation16 + $0x28] sm:$0xff]  ;;  %v2949_v3 = vpack.c.bf16 %v6918_v47, %v6904_v52  ;;  %v2951_v36 = vpack.c.bf16 %v6941_v12, %v6938_v10  ;;  %v2950_v60 = vpack.c.bf16 %v6932_v41, %v6926_v44  ;;  %v2952_v10 = vpack.c.bf16 %v6947_v53, %v6944_v6 }
 0x2ef   : > { %3017 = vmatpush.bf16.msra.mxu0 %v4851_v61  ;;  %4924 = vmatpush.bf16.msra.mxu1 %v4851_v61  ;;  %v4848_v9 = vld [vmem:[#allocation16 + $0x20] sm:$0xff]  ;;  %v4847_v27 = vld [vmem:[#allocation16 + $0x18] sm:$0xff]  ;;  %v4884_v25 = vld [vmem:[#allocation22 + $0x64] sm:$0xf] }
 0x2f0   : > { %v4886_v55 = vld [vmem:[#allocation22 + $0x74] sm:$0xf]  ;;  %v4636_v42 = vld [vmem:[#allocation22 + $0x78] sm:$0xf0]  ;;  %v4846_v7 = vld [vmem:[#allocation16 + $0x10] sm:$0xff] }
 0x2f1   : > { %v4639_v37 = vor.u32 %v4886_v55, %v4636_v42  ;;  %v4628_v54 = vld [vmem:[#allocation22 + $0x68] sm:$0xf0]  ;;  %v4882_v62 = vld [vmem:[#allocation22 + $0x54] sm:$0xf]  ;;  %v4620_v2 = vld [vmem:[#allocation22 + $0x58] sm:$0xf0] }
 0x2f2   : > { %v4631_v21 = vor.u32 %v4884_v25, %v4628_v54  ;;  %v4845_v0 = vld [vmem:[#allocation16 + $0x8] sm:$0xff]  ;;  %v4623_v50 = vor.u32 %v4882_v62, %v4620_v2  ;;  %v4612_v24 = vld [vmem:[#allocation22 + $0x48] sm:$0xf0]  ;;  %v4844_v35 = vld [vmem:[#allocation16] sm:$0xff] }
 0x2f3   : > { %3018 = vmatpush.bf16.msra.mxu0 %v4850_v22  ;;  %4925 = vmatpush.bf16.msra.mxu1 %v4850_v22  ;;  %v4880_v13 = vld [vmem:[#allocation22 + $0x44] sm:$0xf]  ;;  %v4878_v18 = vld [vmem:[#allocation22 + $0x34] sm:$0xf]  ;;  %v4604_v43 = vld [vmem:[#allocation22 + $0x38] sm:$0xf0] }
 0x2f4   : > { %3327 = vmatpush.bf16.msra.mxu2 %v4639_v37  ;;  %v4615_v29 = vor.u32 %v4880_v13, %v4612_v24  ;;  %v4607_v40 = vor.u32 %v4878_v18, %v4604_v43  ;;  %v4876_v58 = vld [vmem:[#allocation22 + $0x24] sm:$0xf]  ;;  %v4596_v11 = vld [vmem:[#allocation22 + $0x28] sm:$0xf0]  ;;  %v4874_v5 = vld [vmem:[#allocation22 + $0x14] sm:$0xf] }
 0x2f5   : > { %v4599_v20 = vor.u32 %v4876_v58, %v4596_v11  ;;  %v4588_v23 = vld [vmem:[#allocation22 + $0x18] sm:$0xf0]  ;;  %v4872_v47 = vld [vmem:[#allocation22 + $0x4] sm:$0xf]  ;;  %v4580_v51 = vld [vmem:[#allocation22 + $0x8] sm:$0xf0] }
 0x2f6   : > { %v4591_v52 = vor.u32 %v4874_v5, %v4588_v23  ;;  %v4583_v56 = vor.u32 %v4872_v47, %v4580_v51  ;;  %v6960_v28 = vld [vmem:[%s6315_s16] sm:$0xff]  ;;  %v4634_v63 = vld [vmem:[#allocation22 + $0x70] sm:$0xf]  ;;  %v6964_v4 = vld [vmem:[%s6315_s16 + $0x8] sm:$0xff] }
 0x2f7   : > { %3019 = vmatpush.bf16.msra.mxu0 %v4849_v32  ;;  %4926 = vmatpush.bf16.msra.mxu1 %v4849_v32  ;;  %v4887_v59 = vld [vmem:[#allocation22 + $0x74] sm:$0xf0]  ;;  %v4698_v17 = vld [vmem:[#allocation21 + $0x70] sm:$0xf]  ;;  %v4870_v44 = vld [vmem:[#allocation21 + $0x74] sm:$0xf] }
 0x2f8   : > { %3328 = vmatpush.bf16.msra.mxu2 %v4631_v21  ;;  %v4635_v16 = vor.u32 %v4887_v59, %v4634_v63  ;;  %v4871_v49 = vld [vmem:[#allocation21 + $0x74] sm:$0xf0]  ;;  %v4700_v41 = vld [vmem:[#allocation21 + $0x78] sm:$0xf0]  ;;  %v4626_v8 = vld [vmem:[#allocation22 + $0x60] sm:$0xf] }
 0x2f9   : > { %v4699_v26 = vor.u32 %v4871_v49, %v4698_v17  ;;  %v4703_v31 = vor.u32 %v4870_v44, %v4700_v41  ;;  %v4885_v12 = vld [vmem:[#allocation22 + $0x64] sm:$0xf0]  ;;  %v4690_v34 = vld [vmem:[#allocation21 + $0x60] sm:$0xf]  ;;  %v4868_v33 = vld [vmem:[#allocation21 + $0x64] sm:$0xf] }
 0x2fa   : > { %v4627_v39 = vor.u32 %v4885_v12, %v4626_v8  ;;  %v4869_v48 = vld [vmem:[#allocation21 + $0x64] sm:$0xf0]  ;;  %v4692_v19 = vld [vmem:[#allocation21 + $0x68] sm:$0xf0]  ;;  %v4618_v45 = vld [vmem:[#allocation22 + $0x50] sm:$0xf] }
 0x2fb   : > { %3020 = vmatpush.bf16.msra.mxu0 %v4848_v9  ;;  %4927 = vmatpush.bf16.msra.mxu1 %v4848_v9  ;;  %v4691_v30 = vor.u32 %v4869_v48, %v4690_v34  ;;  %v4695_v1 = vor.u32 %v4868_v33, %v4692_v19  ;;  %v4883_v6 = vld [vmem:[#allocation22 + $0x54] sm:$0xf0]  ;;  %v4682_v57 = vld [vmem:[#allocation21 + $0x50] sm:$0xf]  ;;  %v4866_v15 = vld [vmem:[#allocation21 + $0x54] sm:$0xf] }
 0x2fc   : > { %3329 = vmatpush.bf16.msra.mxu2 %v4623_v50  ;;  %3436 = vmatpush.bf16.msra.mxu3 %v4699_v26  ;;  %v4619_v38 = vor.u32 %v4883_v6, %v4618_v45  ;;  %v4867_v46 = vld [vmem:[#allocation21 + $0x54] sm:$0xf0]  ;;  %v4684_v53 = vld [vmem:[#allocation21 + $0x58] sm:$0xf0]  ;;  %v4610_v22 = vld [vmem:[#allocation22 + $0x40] sm:$0xf] }
 0x2fd   : > { %v4683_v14 = vor.u32 %v4867_v46, %v4682_v57  ;;  %v4687_v61 = vor.u32 %v4866_v15, %v4684_v53  ;;  %v4881_v32 = vld [vmem:[#allocation22 + $0x44] sm:$0xf0]  ;;  %v4864_v42 = vld [vmem:[#allocation21 + $0x44] sm:$0xf]  ;;  %v4602_v54 = vld [vmem:[#allocation22 + $0x30] sm:$0xf] }
 0x2fe   : > { %v4611_v9 = vor.u32 %v4881_v32, %v4610_v22  ;;  %v4865_v55 = vld [vmem:[#allocation21 + $0x44] sm:$0xf0]  ;;  %v4879_v21 = vld [vmem:[#allocation22 + $0x34] sm:$0xf0]  ;;  %v4862_v24 = vld [vmem:[#allocation21 + $0x34] sm:$0xf] }
 0x2ff   : > { %3021 = vmatpush.bf16.msra.mxu0 %v4847_v27  ;;  %4928 = vmatpush.bf16.msra.mxu1 %v4847_v27  ;;  %v4674_v27 = vld [vmem:[#allocation21 + $0x40] sm:$0xf]  ;;  %v4603_v62 = vor.u32 %v4879_v21, %v4602_v54  ;;  %v6968_v2 = vld [vmem:[%s6315_s16 + $0x10] sm:$0xff]  ;;  %v4863_v50 = vld [vmem:[#allocation21 + $0x34] sm:$0xf0] }
 0x300   : > { %3330 = vmatpush.bf16.msra.mxu2 %v4615_v29  ;;  %3437 = vmatpush.bf16.msra.mxu3 %v4691_v30  ;;  %v4675_v25 = vor.u32 %v4865_v55, %v4674_v27  ;;  %v4658_v43 = vld [vmem:[#allocation21 + $0x20] sm:$0xf]  ;;  %v4860_v58 = vld [vmem:[#allocation21 + $0x24] sm:$0xf]  ;;  %v6971_v11 = vld [vmem:[#allocation18] ss:$0 sm:$0xff] }
 0x301   : > { %v4660_v5 = vld [vmem:[#allocation21 + $0x28] sm:$0xf0]  ;;  %v4875_v47 = vld [vmem:[#allocation22 + $0x14] sm:$0xf0]  ;;  %v6973_v51 = vld [vmem:[#allocation19] ss:$0 sm:$0xff] }
 0x302   : > { %v4663_v23 = vor.u32 %v4860_v58, %v4660_v5  ;;  %v4650_v63 = vld [vmem:[#allocation21 + $0x10] sm:$0xf]  ;;  %v4859_v59 = vld [vmem:[#allocation21 + $0x14] sm:$0xf0]  ;;  %v4652_v26 = vld [vmem:[#allocation21 + $0x18] sm:$0xf0] }
 0x303   : > { %3022 = vmatpush.bf16.msra.mxu0 %v4846_v7  ;;  %4929 = vmatpush.bf16.msra.mxu1 %v4846_v7  ;;  %v4676_v7 = vld [vmem:[#allocation21 + $0x48] sm:$0xf0]  ;;  %v4651_v49 = vor.u32 %v4859_v59, %v4650_v63  ;;  %v4578_v41 = vld [vmem:[#allocation22] sm:$0xf]  ;;  %v4857_v34 = vld [vmem:[#allocation21 + $0x4] sm:$0xf0] }
 0x304   : > { %3331 = vmatpush.bf16.msra.mxu2 %v4607_v40  ;;  %3438 = vmatpush.bf16.msra.mxu3 %v4683_v14  ;;  %v4679_v37 = vor.u32 %v4864_v42, %v4676_v7  ;;  %v4861_v40 = vld [vmem:[#allocation21 + $0x24] sm:$0xf0]  ;;  %v4856_v48 = vld [vmem:[#allocation21 + $0x4] sm:$0xf]  ;;  %v4644_v19 = vld [vmem:[#allocation21 + $0x8] sm:$0xf0] }
 0x305   : > { %v6982_v57 = vld [vmem:[%s6315_s16 + $0x18] sm:$0xff] }
 0x307   : > { %3023 = vmatpush.bf16.msra.mxu0 %v4845_v0  ;;  %4930 = vmatpush.bf16.msra.mxu1 %v4845_v0  ;;  %v4666_v0 = vld [vmem:[#allocation21 + $0x30] sm:$0xf] }
 0x308   : > { %3332 = vmatpush.bf16.msra.mxu2 %v4599_v20  ;;  %3439 = vmatpush.bf16.msra.mxu3 %v4675_v25  ;;  %v4667_v13 = vor.u32 %v4863_v50, %v4666_v0  ;;  %v4659_v20 = vor.u32 %v4861_v40, %v4658_v43 }
 0x30b   : > { %3024 = vmatpush.bf16.msra.mxu0 %v4844_v35  ;;  %4931 = vmatpush.bf16.msra.mxu1 %v4844_v35  ;;  %v4668_v35 = vld [vmem:[#allocation21 + $0x38] sm:$0xf0] }
 0x30c   : > { %3333 = vmatpush.bf16.msra.mxu2 %v4591_v52  ;;  %v4671_v29 = vor.u32 %v4862_v24, %v4668_v35  ;;  %3440 = vmatpush.bf16.msra.mxu3 %v4667_v13  ;;  %v4586_v52 = vld [vmem:[#allocation22 + $0x10] sm:$0xf] }
 0x30e   : > { %3025 = vmatmul.bf16.vlgmr.msra.gmra.mxu0 %v2949_v3  ;;  %3035 = vmatmul.bf16.vlgmr.msra.gmra.mxu1 %v2951_v36  ;;  %v4594_v3 = vld [vmem:[#allocation22 + $0x20] sm:$0xf]  ;;  %v4877_v36 = vld [vmem:[#allocation22 + $0x24] sm:$0xf0] }
 0x30f   : > { %3298 = vmatpush.bf16.msrb.mxu1 %v4635_v16  ;;  %3465 = vmatpush.bf16.msrb.mxu0 %v4703_v31  ;;  %v4595_v18 = vor.u32 %v4877_v36, %v4594_v3  ;;  %v4858_v16 = vld [vmem:[#allocation21 + $0x14] sm:$0xf] }
 0x310   : > { %3334 = vmatpush.bf16.msra.mxu2 %v4583_v56  ;;  %3441 = vmatpush.bf16.msra.mxu3 %v4659_v20  ;;  %v4587_v56 = vor.u32 %v4875_v47, %v4586_v52  ;;  %v4655_v44 = vor.u32 %v4858_v16, %v4652_v26 }
 0x313   : > { %3335 = vmatmul.bf16.vlgmr.msra.gmra.mxu2 %v6960_v28  ;;  %3299 = vmatpush.bf16.msrb.mxu1 %v4627_v39  ;;  %v4642_v39 = vld [vmem:[#allocation21] sm:$0xf] }
 0x314   : > { %4932 = vmatpush.bf16.msrb.mxu2 %v4703_v31  ;;  %3466 = vmatpush.bf16.msrb.mxu0 %v4695_v1  ;;  %v4873_v31 = vld [vmem:[#allocation22 + $0x4] sm:$0xf0]  ;;  %v4643_v30 = vor.u32 %v4857_v34, %v4642_v39 }
 0x315   : > { %3442 = vmatpush.bf16.msra.mxu3 %v4651_v49  ;;  %v4579_v12 = vor.u32 %v4873_v31, %v4578_v41 }
 0x317   : > { %3300 = vmatpush.bf16.msrb.mxu1 %v4619_v38 }
 0x318   : > { %4933 = vmatpush.bf16.msrb.mxu2 %v4695_v1  ;;  %3467 = vmatpush.bf16.msrb.mxu0 %v4687_v61  ;;  %v4647_v1 = vor.u32 %v4856_v48, %v4644_v19 }
 0x319   : > { %3443 = vmatpush.bf16.msra.mxu3 %v4643_v30 }
 0x31b   : > { %3301 = vmatpush.bf16.msrb.mxu1 %v4611_v9 }
 0x31c   : > { %4934 = vmatpush.bf16.msrb.mxu2 %v4687_v61  ;;  %3468 = vmatpush.bf16.msrb.mxu0 %v4679_v37 }
 0x31e   : > { %3030 = vmatmul.bf16.gmra.mxu0 %v2950_v60  ;;  %3040 = vmatmul.bf16.gmra.mxu1 %v2952_v10 }
 0x31f   : > { %3302 = vmatpush.bf16.msrb.mxu1 %v4603_v62 }
 0x320   : > { %4935 = vmatpush.bf16.msrb.mxu2 %v4679_v37  ;;  %3469 = vmatpush.bf16.msrb.mxu0 %v4671_v29 }
 0x323   : > { %3340 = vmatmul.bf16.gmra.mxu2 %v6964_v4  ;;  %3303 = vmatpush.bf16.msrb.mxu1 %v4595_v18 }
 0x324   : > { %4936 = vmatpush.bf16.msrb.mxu2 %v4671_v29  ;;  %3470 = vmatpush.bf16.msrb.mxu0 %v4663_v23 }
 0x327   : > { %3304 = vmatpush.bf16.msrb.mxu1 %v4587_v56 }
 0x328   : > { %4937 = vmatpush.bf16.msrb.mxu2 %v4663_v23  ;;  %3471 = vmatpush.bf16.msrb.mxu0 %v4655_v44 }
 0x32b   : > { %3305 = vmatpush.bf16.msrb.mxu1 %v4579_v12 }
 0x32c   : > { %4938 = vmatpush.bf16.msrb.mxu2 %v4655_v44  ;;  %3472 = vmatpush.bf16.msrb.mxu0 %v4647_v1 }
 0x32e   : > { %3306 = vmatmul.bf16.vlgmr.msrb.gmra.mxu1 %v6960_v28 }
 0x330   : > { %4939 = vmatpush.bf16.msrb.mxu2 %v4647_v1 }
 0x333   : > { %3345 = vmatmul.bf16.gmra.mxu2 %v6968_v2 }
 0x33e   : > { %3311 = vmatmul.bf16.gmra.mxu1 %v6964_v4 }
 0x343   : > { %3350 = vmatmul.bf16.gmra.mxu2 %v6982_v57 }
 0x34e   : > { %3316 = vmatmul.bf16.gmra.mxu1 %v6968_v2 }
 0x35e   : > { %3321 = vmatmul.bf16.gmra.mxu1 %v6982_v57 }
 0x38b   : > { %v3026_v60 = vpop.f32.mrf.mxu0  ;;  %v3036_v10 = vpop.f32.mrf.mxu1 }
 0x38c   : > { %v3050_v17 = vmul.f32 %v6971_v11, %v3026_v60  ;;  %v3054_v7 = vmul.f32 %v6971_v11, %v3036_v10 }
 0x38e   : > { %v6977_v8 = vadd.f32 %v6973_v51, %v3050_v17  ;;  %v7000_v24 = vadd.f32 %v6973_v51, %v3054_v7 }
 0x390   : > { %v3070_v33 = vmin.f32 %v6977_v8, 20.0  ;;  %v3074_v5 = vmin.f32 %v7000_v24, 20.0 }
 0x392   : > { %v3078_v45 = vmul.f32 1.442695, %v3070_v33  ;;  %v3086_v16 = vmul.f32 1.442695, %v3074_v5 }
 0x393   : > { %v3028_v6 = vpop.f32.mrf.mxu0  ;;  %v3038_v38 = vpop.f32.mrf.mxu1 }
 0x394   : > { %5239 = vpow2.f32 %v3078_v45  ;;  %v3051_v46 = vmul.f32 %v6971_v11, %v3028_v6  ;;  %v3055_v37 = vmul.f32 %v6971_v11, %v3038_v38 }
 0x396   : > { %v3063_v15 = vadd.f32 %v6973_v51, %v3051_v46  ;;  %v7004_v36 = vadd.f32 %v6973_v51, %v3055_v37  ;;  %v3336_v57 = vpop.f32.mrf.mxu2 }
 0x398   : > { %v3071_v14 = vmin.f32 %v3063_v15, 20.0  ;;  %v3075_v4 = vmin.f32 %v7004_v36, 20.0 }
 0x39a   : > { %v5240_v53 = vpop.eup %5239  ;;  %v3080_v61 = vmul.f32 1.442695, %v3071_v14  ;;  %v3088_v49 = vmul.f32 1.442695, %v3075_v4 }
 0x39b   : > { %v3094_v22 = vadd.f32 1.0, %v5240_v53  ;;  %v3031_v32 = vpop.f32.mrf.mxu0  ;;  %v3041_v9 = vpop.f32.mrf.mxu1 }
 0x39c   : > { %5241 = vpow2.f32 %v3080_v61  ;;  %v3052_v27 = vmul.f32 %v6971_v11, %v3031_v32  ;;  %v3056_v28 = vmul.f32 %v6971_v11, %v3041_v9 }
 0x39d   : > { %v3102_v25 = vmul.f32 %v3094_v22, %v3094_v22 }
 0x39e   : > { %v6990_v55 = vadd.f32 %v6973_v51, %v3052_v27  ;;  %v6993_v42 = vadd.f32 %v6973_v51, %v3056_v28 }
 0x39f   : > { %v3126_v13 = vadd.f32 1.0, %v3102_v25  ;;  %v4552_v60 = vadd.f32 -1.0, %v3102_v25 }
 0x3a0   : > { %v3072_v54 = vmin.f32 %v6990_v55, 20.0  ;;  %v3076_v21 = vmin.f32 %v6993_v42, 20.0 }
 0x3a1   : > { %v3118_v44 = vmul.f32 %v4552_v60, %v6977_v8 }
 0x3a2   : > { %v5242_v62 = vpop.eup %5241  ;;  %v3082_v0 = vmul.f32 1.442695, %v3072_v54  ;;  %v3090_v50 = vmul.f32 1.442695, %v3076_v21 }
 0x3a3   : > { %v3095_v35 = vadd.f32 1.0, %v5242_v62  ;;  %v3033_v29 = vpop.f32.mrf.mxu0  ;;  %v3043_v3 = vpop.f32.mrf.mxu1 }
 0x3a4   : > { %5243 = vpow2.f32 %v3082_v0  ;;  %v3053_v18 = vmul.f32 %v6971_v11, %v3033_v29  ;;  %v3057_v43 = vmul.f32 %v6971_v11, %v3043_v3 }
 0x3a5   : > { %v3103_v40 = vmul.f32 %v3095_v35, %v3095_v35  ;;  %5245 = vpow2.f32 %v3090_v50 }
 0x3a6   : > { %v7009_v58 = vadd.f32 %v6973_v51, %v3053_v18  ;;  %v3069_v20 = vadd.f32 %v6973_v51, %v3057_v43  ;;  %5247 = vrcp.f32 %v3126_v13 }
 0x3a7   : > { %v3127_v23 = vadd.f32 1.0, %v3103_v40  ;;  %v4553_v11 = vadd.f32 -1.0, %v3103_v40 }
 0x3a8   : > { %v3073_v52 = vmin.f32 %v7009_v58, 20.0  ;;  %v3077_v47 = vmin.f32 %v3069_v20, 20.0 }
 0x3a9   : > { %5249 = vrcp.f32 %v3127_v23  ;;  %v3119_v41 = vmul.f32 %v4553_v11, %v3063_v15 }
 0x3aa   : > { %v5244_v56 = vpop.eup %5243  ;;  %v3084_v10 = vmul.f32 1.442695, %v3073_v52  ;;  %v3092_v63 = vmul.f32 1.442695, %v3077_v47 }
 0x3ab   : > { %v5246_v59 = vpop.eup %5245  ;;  %v3096_v17 = vadd.f32 1.0, %v5244_v56 }
 0x3ac   : > { %v3100_v51 = vadd.f32 1.0, %v5246_v59  ;;  %5251 = vpow2.f32 %v3084_v10  ;;  %v5248_v26 = vpop.eup %5247  ;;  %v3338_v10 = vpop.f32.mrf.mxu2 }
 0x3ad   : > { %5253 = vpow2.f32 %v3092_v63  ;;  %v3104_v39 = vmul.f32 %v3096_v17, %v3096_v17  ;;  %v3142_v34 = vmul.f32 %v5248_v26, %v3118_v44  ;;  %v3307_v17 = vpop.f32.mrf.mxu1 }
 0x3ae   : > { %v3108_v31 = vmul.f32 %v3100_v51, %v3100_v51  ;;  %5255 = vpow2.f32 %v3086_v16  ;;  %v3516_v51 = vld [vmem:[#allocation25] sm:$0x3] }
 0x3af   : > { %v5250_v12 = vpop.eup %5249  ;;  %5257 = vpow2.f32 %v3088_v49  ;;  %v3128_v45 = vadd.f32 1.0, %v3104_v39  ;;  %v4554_v28 = vadd.f32 -1.0, %v3104_v39 }
 0x3b0   : > { %v3143_v48 = vmul.f32 %v5250_v12, %v3119_v41  ;;  %v3132_v30 = vadd.f32 1.0, %v3108_v31  ;;  %v4558_v53 = vadd.f32 -1.0, %v3108_v31  ;;  %v7031_v41 = vperm.slane %v3516_v51, 1 }
 0x3b1   : > { %v3120_v0 = vmul.f32 %v4554_v28, %v6990_v55 }
 0x3b2   : > { %v5252_v33 = vpop.eup %5251  ;;  %v3158_v19 = vpack.c.bf16 %v3143_v48, %v3142_v34  ;;  %5259 = vrcp.f32 %v3132_v30  ;;  %v3124_v2 = vmul.f32 %v4558_v53, %v6993_v42 }
 0x3b3   : > { %v5254_v1 = vpop.eup %5253  ;;  %v3097_v6 = vadd.f32 1.0, %v5252_v33  ;;  %5261 = vrcp.f32 %v3128_v45 }
 0x3b4   : > { %v3101_v38 = vadd.f32 1.0, %v5254_v1  ;;  %3444 = vmatmul.bf16.vlgmr.msra.gmra.mxu3 %v3158_v19  ;;  %3473 = vmatmul.bf16.vlgmr.msrb.gmra.mxu0 %v3158_v19  ;;  %v5256_v8 = vpop.eup %5255  ;;  %v3341_v63 = vpop.f32.mrf.mxu2  ;;  %v7037_v1 = vperm.slane %v3516_v51, 0 }
 0x3b5   : > { %v3105_v46 = vmul.f32 %v3097_v6, %v3097_v6  ;;  %v5258_v15 = vpop.eup %5257  ;;  %v3098_v22 = vadd.f32 1.0, %v5256_v8  ;;  %v3309_v31 = vpop.f32.mrf.mxu1 }
 0x3b6   : > { %v3109_v14 = vmul.f32 %v3101_v38, %v3101_v38  ;;  %v3099_v9 = vadd.f32 1.0, %v5258_v15 }
 0x3b7   : > { %v3129_v61 = vadd.f32 1.0, %v3105_v46  ;;  %v4555_v25 = vadd.f32 -1.0, %v3105_v46  ;;  %v3106_v37 = vmul.f32 %v3098_v22, %v3098_v22 }
 0x3b8   : > { %v3133_v32 = vadd.f32 1.0, %v3109_v14  ;;  %v4559_v27 = vadd.f32 -1.0, %v3109_v14  ;;  %v5260_v7 = vpop.eup %5259  ;;  %v3107_v21 = vmul.f32 %v3099_v9, %v3099_v9 }
 0x3b9   : > { %5263 = vrcp.f32 %v3129_v61  ;;  %v5262_v54 = vpop.eup %5261  ;;  %v3121_v50 = vmul.f32 %v4555_v25, %v7009_v58  ;;  %v3148_v35 = vmul.f32 %v5260_v7, %v3124_v2  ;;  %v3130_v3 = vadd.f32 1.0, %v3106_v37 }
 0x3ba   : > { %5265 = vrcp.f32 %v3133_v32  ;;  %v3125_v62 = vmul.f32 %v4559_v27, %v3069_v20  ;;  %v3144_v18 = vmul.f32 %v5262_v54, %v3120_v0  ;;  %v3131_v40 = vadd.f32 1.0, %v3107_v21 }
 0x3bb   : > { %5267 = vrcp.f32 %v3130_v3  ;;  %v4556_v55 = vadd.f32 -1.0, %v3106_v37  ;;  %v4557_v42 = vadd.f32 -1.0, %v3107_v21 }
 0x3bc   : > { %5269 = vrcp.f32 %v3131_v40  ;;  %v7023_v59 = vpop.f32.mrf.mxu2 }
 0x3bd   : > { %v3122_v20 = vmul.f32 %v4556_v55, %v7000_v24  ;;  %v3123_v52 = vmul.f32 %v4557_v42, %v7004_v36  ;;  %v3494_v24 = vld [vmem:[#allocation24] sm:$0x3]  ;;  %v3312_v14 = vpop.f32.mrf.mxu1 }
 0x3be   : > { %v7029_v36 = vperm.slane %v3494_v24, 1  ;;  %v7035_v48 = vperm.slane %v3494_v24, 0 }
 0x3bf   : > { %v5264_v13 = vpop.eup %5263 }
 0x3c0   : > { %v5266_v29 = vpop.eup %5265  ;;  %v3145_v43 = vmul.f32 %v5264_v13, %v3121_v50 }
 0x3c1   : > { %v3149_v5 = vmul.f32 %v5266_v29, %v3125_v62  ;;  %v5268_v58 = vpop.eup %5267 }
 0x3c2   : > { %v3159_v23 = vpack.c.bf16 %v3145_v43, %v3144_v18  ;;  %v5270_v47 = vpop.eup %5269  ;;  %v3146_v56 = vmul.f32 %v5268_v58, %v3122_v20 }
 0x3c3   : > { %v3161_v4 = vpack.c.bf16 %v3149_v5, %v3148_v35  ;;  %v3147_v60 = vmul.f32 %v5270_v47, %v3123_v52 }
 0x3c4   : > { %3449 = vmatmul.bf16.gmra.mxu3 %v3159_v23  ;;  %3478 = vmatmul.bf16.gmra.mxu0 %v3159_v23  ;;  %v7025_v16 = vpop.f32.mrf.mxu2 }
 0x3c5   : > { %3488 = vmatmul.bf16.vlgmr.msrb.gmra.mxu2 %v3161_v4  ;;  %v3160_v11 = vpack.c.bf16 %v3147_v60, %v3146_v56  ;;  %v3314_v3 = vpop.f32.mrf.mxu1 }
 0x3cc   : > { %v7027_v49 = vpop.f32.mrf.mxu2 }
 0x3d4   : > { %3454 = vmatmul.bf16.gmra.mxu3 %v3160_v11  ;;  %3483 = vmatmul.bf16.gmra.mxu0 %v3160_v11  ;;  %v3351_v39 = vpop.f32.mrf.mxu2 }
 0x3dc   : > { %v7048_v22 = vpop.f32.mrf.mxu2 }
 0x3e4   : > { %3459 = vmatmul.bf16.gmra.mxu3 %v3161_v4 }
 0x431   : > { %v3474_v26 = vpop.f32.mrf.mxu0 }
 0x432   : > { %v3475_v44 = vadd.f32 %v3474_v26, %v3336_v57 }
 0x434   : > { %v3501_v12 = vmul.f32 %v7029_v36, %v3475_v44 }
 0x436   : > { %v3523_v34 = vadd.f32 %v7031_v41, %v3501_v12 }
 0x437   : > { %v3445_v33 = vpop.f32.mrf.mxu3 }
 0x438   : > { %v3539_v30 = vmin.f32 %v3523_v34, 20.0  ;;  %v3446_v19 = vadd.f32 %v3445_v33, %v3307_v17 }
 0x439   : > { %v3476_v45 = vpop.f32.mrf.mxu0 }
 0x43a   : > { %v3556_v6 = vmul.f32 1.442695, %v3539_v30  ;;  %v3500_v38 = vmul.f32 %v7035_v48, %v3446_v19  ;;  %v3477_v8 = vadd.f32 %v3476_v45, %v3338_v10 }
 0x43c   : > { %5271 = vpow2.f32 %v3556_v6  ;;  %v7041_v46 = vadd.f32 %v7037_v1, %v3500_v38  ;;  %v3503_v15 = vmul.f32 %v7029_v36, %v3477_v8 }
 0x43e   : > { %v3538_v53 = vmin.f32 %v7041_v46, 20.0  ;;  %v7046_v61 = vadd.f32 %v7031_v41, %v3503_v15 }
 0x43f   : > { %v3447_v32 = vpop.f32.mrf.mxu3 }
 0x440   : > { %v3554_v9 = vmul.f32 1.442695, %v3538_v53  ;;  %v3541_v27 = vmin.f32 %v7046_v61, 20.0  ;;  %v3448_v28 = vadd.f32 %v3447_v32, %v3309_v31  ;;  %v3317_v53 = vpop.f32.mrf.mxu1 }
 0x441   : > { %v3479_v25 = vpop.f32.mrf.mxu0 }
 0x442   : > { %v5272_v2 = vpop.eup %5271  ;;  %5273 = vpow2.f32 %v3554_v9  ;;  %v3560_v7 = vmul.f32 1.442695, %v3541_v27  ;;  %v3502_v37 = vmul.f32 %v7035_v48, %v3448_v28  ;;  %v3480_v54 = vadd.f32 %v3479_v25, %v3341_v63 }
 0x443   : > { %v3587_v21 = vadd.f32 1.0, %v5272_v2 }
 0x444   : > { %5275 = vpow2.f32 %v3560_v7  ;;  %v7053_v62 = vadd.f32 %v7037_v1, %v3502_v37  ;;  %v3505_v0 = vmul.f32 %v7029_v36, %v3480_v54 }
 0x445   : > { %v3603_v50 = vmul.f32 %v3587_v21, %v3587_v21 }
 0x446   : > { %v3540_v13 = vmin.f32 %v7053_v62, 20.0  ;;  %v7058_v35 = vadd.f32 %v7031_v41, %v3505_v0 }
 0x447   : > { %v3651_v29 = vadd.f32 1.0, %v3603_v50  ;;  %v3450_v18 = vpop.f32.mrf.mxu3  ;;  %v4705_v55 = vadd.f32 -1.0, %v3603_v50 }
 0x448   : > { %v5274_v43 = vpop.eup %5273  ;;  %v3558_v40 = vmul.f32 1.442695, %v3540_v13  ;;  %v3543_v5 = vmin.f32 %v7058_v35, 20.0  ;;  %v3451_v23 = vadd.f32 %v3450_v18, %v3312_v14  ;;  %v3489_v4 = vpop.f32.mrf.mxu2 }
 0x449   : > { %5277 = vrcp.f32 %v3651_v29  ;;  %v3586_v42 = vadd.f32 1.0, %v5274_v43  ;;  %v3490_v58 = vadd.f32 %v3489_v4, %v3351_v39  ;;  %v3481_v20 = vpop.f32.mrf.mxu0  ;;  %v3635_v44 = vmul.f32 %v4705_v55, %v3523_v34 }
 0x44a   : > { %v5276_v52 = vpop.eup %5275  ;;  %5279 = vpow2.f32 %v3558_v40  ;;  %v3564_v47 = vmul.f32 1.442695, %v3543_v5  ;;  %v3504_v56 = vmul.f32 %v7035_v48, %v3451_v23  ;;  %v3482_v60 = vadd.f32 %v3481_v20, %v7023_v59 }
 0x44b   : > { %v3602_v11 = vmul.f32 %v3586_v42, %v3586_v42  ;;  %v3589_v57 = vadd.f32 1.0, %v5276_v52  ;;  %v3513_v10 = vmul.f32 %v7029_v36, %v3490_v58 }
 0x44c   : > { %5281 = vpow2.f32 %v3564_v47  ;;  %v7065_v63 = vadd.f32 %v7037_v1, %v3504_v56  ;;  %v3507_v17 = vmul.f32 %v7029_v36, %v3482_v60 }
 0x44d   : > { %v3650_v24 = vadd.f32 1.0, %v3602_v11  ;;  %v3605_v51 = vmul.f32 %v3589_v57, %v3589_v57  ;;  %v7069_v26 = vadd.f32 %v7031_v41, %v3513_v10  ;;  %v4704_v39 = vadd.f32 -1.0, %v3602_v11 }
 0x44e   : > { %v3542_v31 = vmin.f32 %v7065_v63, 20.0  ;;  %v7073_v59 = vadd.f32 %v7031_v41, %v3507_v17 }
 0x44f   : > { %v5278_v12 = vpop.eup %5277  ;;  %5283 = vrcp.f32 %v3650_v24  ;;  %v3653_v33 = vadd.f32 1.0, %v3605_v51  ;;  %v3452_v30 = vpop.f32.mrf.mxu3  ;;  %v3551_v38 = vmin.f32 %v7069_v26, 20.0  ;;  %v4707_v34 = vadd.f32 -1.0, %v3605_v51 }
 0x450   : > { %v5280_v19 = vpop.eup %5279  ;;  %v3683_v45 = vmul.f32 %v5278_v12, %v3635_v44  ;;  %v3562_v6 = vmul.f32 1.442695, %v3542_v31  ;;  %v3545_v8 = vmin.f32 %v7073_v59, 20.0  ;;  %v3491_v15 = vpop.f32.mrf.mxu2  ;;  %v3453_v32 = vadd.f32 %v3452_v30, %v3314_v3 }
 0x451   : > { %5285 = vrcp.f32 %v3653_v33  ;;  %v3588_v14 = vadd.f32 1.0, %v5280_v19  ;;  %v3484_v9 = vpop.f32.mrf.mxu0  ;;  %v3580_v28 = vmul.f32 1.442695, %v3551_v38  ;;  %v3492_v2 = vadd.f32 %v3491_v15, %v7048_v22 }
 0x452   : > { %v5282_v27 = vpop.eup %5281  ;;  %3699 = vst [vmem:[%s6317_s17 + $0x8] sm:$0xff] %v3683_v45  ;;  %5287 = vpow2.f32 %v3562_v6  ;;  %v3568_v25 = vmul.f32 1.442695, %v3545_v8  ;;  %v3506_v54 = vmul.f32 %v7035_v48, %v3453_v32  ;;  %v3485_v21 = vadd.f32 %v3484_v9, %v7025_v16 }
 0x453   : > { %v3604_v7 = vmul.f32 %v3588_v14, %v3588_v14  ;;  %v3591_v37 = vadd.f32 1.0, %v5282_v27  ;;  %v3634_v0 = vmul.f32 %v4704_v39, %v7041_v46  ;;  %5289 = vpow2.f32 %v3580_v28  ;;  %v3319_v39 = vpop.f32.mrf.mxu1 }
 0x454   : > { %v3515_v50 = vmul.f32 %v7029_v36, %v3492_v2  ;;  %v3637_v29 = vmul.f32 %v4707_v34, %v7046_v61  ;;  %5291 = vpow2.f32 %v3568_v25  ;;  %v7085_v22 = vadd.f32 %v7037_v1, %v3506_v54 }
 0x455   : > { %v5284_v13 = vpop.eup %5283  ;;  %v3652_v3 = vadd.f32 1.0, %v3604_v7  ;;  %v3607_v18 = vmul.f32 %v3591_v37, %v3591_v37  ;;  %v3509_v16 = vmul.f32 %v7029_v36, %v3485_v21  ;;  %v4706_v5 = vadd.f32 -1.0, %v3604_v7 }
 0x456   : > { %v3682_v43 = vmul.f32 %v5284_v13, %v3634_v0  ;;  %v7088_v40 = vadd.f32 %v7031_v41, %v3515_v50  ;;  %v3544_v58 = vmin.f32 %v7085_v22, 20.0 }
 0x457   : > { %v5286_v46 = vpop.eup %5285  ;;  %5293 = vrcp.f32 %v3652_v3  ;;  %v4709_v23 = vadd.f32 -1.0, %v3607_v18  ;;  %v3655_v4 = vadd.f32 1.0, %v3607_v18  ;;  %v3455_v55 = vpop.f32.mrf.mxu3  ;;  %v7095_v52 = vadd.f32 %v7031_v41, %v3509_v16 }
 0x458   : > { %v5288_v61 = vpop.eup %5287  ;;  %3698 = vst [vmem:[%s6317_s17] sm:$0xff] %v3682_v43  ;;  %v3685_v42 = vmul.f32 %v5286_v46, %v3637_v29  ;;  %v3553_v20 = vmin.f32 %v7088_v40, 20.0  ;;  %v3456_v56 = vadd.f32 %v3455_v55, %v3317_v53  ;;  %v3566_v57 = vmul.f32 1.442695, %v3544_v58 }
 0x459   : > { %5295 = vrcp.f32 %v3655_v4  ;;  %v3590_v47 = vadd.f32 1.0, %v5288_v61  ;;  %v3486_v60 = vpop.f32.mrf.mxu0  ;;  %v5290_v11 = vpop.eup %5289  ;;  %v3547_v17 = vmin.f32 %v7095_v52, 20.0  ;;  %v3636_v44 = vmul.f32 %v4706_v5, %v7053_v62 }
 0x45a   : > { %3701 = vst [vmem:[%s6317_s17 + $0x18] sm:$0xff] %v3685_v42  ;;  %v3584_v10 = vmul.f32 1.442695, %v3553_v20  ;;  %v3487_v24 = vadd.f32 %v3486_v60, %v7027_v49  ;;  %v5292_v51 = vpop.eup %5291  ;;  %v3599_v12 = vadd.f32 1.0, %v5290_v11  ;;  %v3508_v33 = vmul.f32 %v7035_v48, %v3456_v56 }
 0x45b   : > { %v3606_v31 = vmul.f32 %v3590_v47, %v3590_v47  ;;  %v3639_v30 = vmul.f32 %v4709_v23, %v7058_v35  ;;  %v3593_v19 = vadd.f32 1.0, %v5292_v51  ;;  %5297 = vpow2.f32 %v3566_v57  ;;  %v3322_v5 = vpop.f32.mrf.mxu1 }
 0x45c   : > { %v3572_v45 = vmul.f32 1.442695, %v3547_v17  ;;  %v3615_v8 = vmul.f32 %v3599_v12, %v3599_v12  ;;  %5299 = vpow2.f32 %v3584_v10  ;;  %v3511_v49 = vmul.f32 %v7029_v36, %v3487_v24 }
 0x45d   : > { %v5294_v6 = vpop.eup %5293  ;;  %v3654_v38 = vadd.f32 1.0, %v3606_v31  ;;  %v3609_v34 = vmul.f32 %v3593_v19, %v3593_v19  ;;  %v7105_v62 = vadd.f32 %v7037_v1, %v3508_v33  ;;  %v4708_v9 = vadd.f32 -1.0, %v3606_v31 }
 0x45e   : > { %v3684_v15 = vmul.f32 %v5294_v6, %v3636_v44  ;;  %5301 = vpow2.f32 %v3572_v45  ;;  %v3663_v35 = vadd.f32 1.0, %v3615_v8  ;;  %v7110_v36 = vadd.f32 %v7031_v41, %v3511_v49 }
 0x45f   : > { %v5296_v14 = vpop.eup %5295  ;;  %5303 = vrcp.f32 %v3654_v38  ;;  %v3457_v53 = vpop.f32.mrf.mxu3  ;;  %v3657_v27 = vadd.f32 1.0, %v3609_v34  ;;  %v3546_v28 = vmin.f32 %v7105_v62, 20.0  ;;  %v4717_v7 = vadd.f32 -1.0, %v3615_v8 }
 0x460   : > { %3700 = vst [vmem:[%s6317_s17 + $0x10] sm:$0xff] %v3684_v15  ;;  %v3687_v32 = vmul.f32 %v5296_v14, %v3639_v30  ;;  %5305 = vrcp.f32 %v3663_v35  ;;  %v3458_v25 = vadd.f32 %v3457_v53, %v3319_v39  ;;  %v4711_v21 = vadd.f32 -1.0, %v3609_v34 }
 0x461   : > { %v5298_v2 = vpop.eup %5297  ;;  %5307 = vrcp.f32 %v3657_v27  ;;  %v3570_v37 = vmul.f32 1.442695, %v3546_v28  ;;  %v3549_v50 = vmin.f32 %v7110_v36, 20.0  ;;  %v3638_v3 = vmul.f32 %v4708_v9, %v7065_v63 }
 0x462   : > { %3703 = vst [vmem:[%s6317_s17 + $0x28] sm:$0xff] %v3687_v32  ;;  %v5300_v54 = vpop.eup %5299  ;;  %v3592_v0 = vadd.f32 1.0, %v5298_v2  ;;  %v3510_v13 = vmul.f32 %v7035_v48, %v3458_v25  ;;  %v3647_v55 = vmul.f32 %v4717_v7, %v7069_v26  ;;  %v3641_v58 = vmul.f32 %v4711_v21, %v7073_v59 }
 0x463   : > { %v3601_v18 = vadd.f32 1.0, %v5300_v54  ;;  %5309 = vpow2.f32 %v3570_v37  ;;  %v3576_v46 = vmul.f32 1.442695, %v3549_v50  ;;  %v3324_v49 = vpop.f32.mrf.mxu1 }
 0x464   : > { %v5302_v29 = vpop.eup %5301  ;;  %v3608_v43 = vmul.f32 %v3592_v0, %v3592_v0  ;;  %v7117_v23 = vadd.f32 %v7037_v1, %v3510_v13 }
 0x465   : > { %v5304_v41 = vpop.eup %5303  ;;  %v3595_v16 = vadd.f32 1.0, %v5302_v29  ;;  %v3617_v61 = vmul.f32 %v3601_v18, %v3601_v18  ;;  %5311 = vpow2.f32 %v3576_v46 }
 0x466   : > { %v3686_v4 = vmul.f32 %v5304_v41, %v3638_v3  ;;  %v5306_v42 = vpop.eup %5305  ;;  %v3656_v63 = vadd.f32 1.0, %v3608_v43  ;;  %v3548_v57 = vmin.f32 %v7117_v23, 20.0  ;;  %v4710_v26 = vadd.f32 -1.0, %v3608_v43 }
 0x467   : > { %v3611_v20 = vmul.f32 %v3595_v16, %v3595_v16  ;;  %v3460_v47 = vpop.f32.mrf.mxu3  ;;  %v5308_v56 = vpop.eup %5307  ;;  %v3695_v60 = vmul.f32 %v5306_v42, %v3647_v55  ;;  %v3665_v11 = vadd.f32 1.0, %v3617_v61  ;;  %v4719_v59 = vadd.f32 -1.0, %v3617_v61 }
 0x468   : > { %3702 = vst [vmem:[%s6317_s17 + $0x20] sm:$0xff] %v3686_v4  ;;  %v3689_v10 = vmul.f32 %v5308_v56, %v3641_v58  ;;  %5313 = vrcp.f32 %v3656_v63  ;;  %v3574_v51 = vmul.f32 1.442695, %v3548_v57  ;;  %v3461_v31 = vadd.f32 %v3460_v47, %v3322_v5 }
 0x469   : > { %v5310_v17 = vpop.eup %5309  ;;  %3711 = vst [vmem:[%s6317_s17 + $0x68] sm:$0xff] %v3695_v60  ;;  %5315 = vrcp.f32 %v3665_v11  ;;  %v3659_v24 = vadd.f32 1.0, %v3611_v20  ;;  %v4713_v39 = vadd.f32 -1.0, %v3611_v20  ;;  %v3640_v19 = vmul.f32 %v4710_v26, %v7085_v22 }
 0x46a   : > { %3705 = vst [vmem:[%s6317_s17 + $0x38] sm:$0xff] %v3689_v10  ;;  %v3594_v44 = vadd.f32 1.0, %v5310_v17  ;;  %v3512_v30 = vmul.f32 %v7035_v48, %v3461_v31  ;;  %v3649_v38 = vmul.f32 %v4719_v59, %v7088_v40 }
 0x46b   : > { %5317 = vrcp.f32 %v3659_v24  ;;  %v5312_v12 = vpop.eup %5311  ;;  %v3643_v27 = vmul.f32 %v4713_v39, %v7095_v52 }
 0x46c   : > { %v3610_v33 = vmul.f32 %v3594_v44, %v3594_v44  ;;  %5319 = vpow2.f32 %v3574_v51  ;;  %v3597_v45 = vadd.f32 1.0, %v5312_v12  ;;  %v3534_v15 = vadd.f32 %v7037_v1, %v3512_v30 }
 0x46e   : > { %v5314_v6 = vpop.eup %5313  ;;  %v3658_v8 = vadd.f32 1.0, %v3610_v33  ;;  %v3613_v53 = vmul.f32 %v3597_v45, %v3597_v45  ;;  %v3550_v22 = vmin.f32 %v3534_v15, 20.0  ;;  %v4712_v25 = vadd.f32 -1.0, %v3610_v33 }
 0x46f   : > { %v3462_v34 = vpop.f32.mrf.mxu3  ;;  %v5316_v14 = vpop.eup %5315  ;;  %v3688_v35 = vmul.f32 %v5314_v6, %v3640_v19 }
 0x470   : > { %v3463_v32 = vadd.f32 %v3462_v34, %v3324_v49  ;;  %v3697_v9 = vmul.f32 %v5316_v14, %v3649_v38  ;;  %5321 = vrcp.f32 %v3658_v8  ;;  %v3661_v40 = vadd.f32 1.0, %v3613_v53 }
 0x471   : > { %v5318_v28 = vpop.eup %5317  ;;  %3704 = vst [vmem:[%s6317_s17 + $0x30] sm:$0xff] %v3688_v35  ;;  %v3578_v54 = vmul.f32 1.442695, %v3550_v22  ;;  %v4715_v50 = vadd.f32 -1.0, %v3613_v53  ;;  %v3642_v52 = vmul.f32 %v4712_v25, %v7105_v62 }
 0x472   : > { %v3514_v2 = vmul.f32 %v7035_v48, %v3463_v32  ;;  %v5320_v7 = vpop.eup %5319  ;;  %3713 = vst [vmem:[%s6317_s17 + $0x78] sm:$0xff] %v3697_v9  ;;  %v3691_v37 = vmul.f32 %v5318_v28, %v3643_v27  ;;  %5323 = vrcp.f32 %v3661_v40 }
 0x473   : > { %v3596_v21 = vadd.f32 1.0, %v5320_v7  ;;  %5325 = vpow2.f32 %v3578_v54  ;;  %v3645_v43 = vmul.f32 %v4715_v50, %v7110_v36 }
 0x474   : > { %v3536_v0 = vadd.f32 %v7037_v1, %v3514_v2  ;;  %3707 = vst [vmem:[%s6317_s17 + $0x48] sm:$0xff] %v3691_v37 }
 0x475   : > { %v3612_v13 = vmul.f32 %v3596_v21, %v3596_v21 }
 0x476   : > { %v3552_v29 = vmin.f32 %v3536_v0, 20.0  ;;  %v5322_v3 = vpop.eup %5321 }
 0x477   : > { %v3690_v18 = vmul.f32 %v5322_v3, %v3642_v52  ;;  %v3660_v48 = vadd.f32 1.0, %v3612_v13  ;;  %v4714_v5 = vadd.f32 -1.0, %v3612_v13 }
 0x478   : > { %v3582_v41 = vmul.f32 1.442695, %v3552_v29  ;;  %v5324_v16 = vpop.eup %5323 }
 0x479   : > { %3706 = vst [vmem:[%s6317_s17 + $0x40] sm:$0xff] %v3690_v18  ;;  %5327 = vrcp.f32 %v3660_v48  ;;  %v5326_v46 = vpop.eup %5325  ;;  %v3693_v1 = vmul.f32 %v5324_v16, %v3645_v43  ;;  %v3644_v55 = vmul.f32 %v4714_v5, %v7117_v23 }
 0x47a   : > { %5329 = vpow2.f32 %v3582_v41  ;;  %v3598_v4 = vadd.f32 1.0, %v5326_v46 }
 0x47b   : > { %3709 = vst [vmem:[%s6317_s17 + $0x58] sm:$0xff] %v3693_v1 }
 0x47c   : > { %v3614_v62 = vmul.f32 %v3598_v4, %v3598_v4 }
 0x47e   : > { %v3662_v42 = vadd.f32 1.0, %v3614_v62  ;;  %v4716_v20 = vadd.f32 -1.0, %v3614_v62 }
 0x47f   : > { %v5328_v61 = vpop.eup %5327 }
 0x480   : > { %v5330_v58 = vpop.eup %5329  ;;  %v3692_v63 = vmul.f32 %v5328_v61, %v3644_v55  ;;  %5331 = vrcp.f32 %v3662_v42  ;;  %v3646_v60 = vmul.f32 %v4716_v20, %v3534_v15 }
 0x481   : > { %v3600_v36 = vadd.f32 1.0, %v5330_v58 }
 0x482   : > { %3708 = vst [vmem:[%s6317_s17 + $0x50] sm:$0xff] %v3692_v63 }
 0x483   : > { %v3616_v47 = vmul.f32 %v3600_v36, %v3600_v36 }
 0x485   : > { %v3664_v56 = vadd.f32 1.0, %v3616_v47  ;;  %v4718_v10 = vadd.f32 -1.0, %v3616_v47 }
 0x486   : > { %v5332_v11 = vpop.eup %5331 }
 0x487   : > { %5333 = vrcp.f32 %v3664_v56  ;;  %v3694_v57 = vmul.f32 %v5332_v11, %v3646_v60  ;;  %v3648_v17 = vmul.f32 %v4718_v10, %v3536_v0 }
 0x489   : > { %3710 = vst [vmem:[%s6317_s17 + $0x60] sm:$0xff] %v3694_v57 }
 0x48d   : > { %v5334_v23 = vpop.eup %5333 }
 0x48e   : > { %v3696_v26 = vmul.f32 %v5334_v23, %v3648_v17 }
 0x490   : > { %3712 = vst [vmem:[%s6317_s17 + $0x70] sm:$0xff] %v3696_v26 }
 0x491 PF: > { %s7308_s28 = sld [smem:[#allocation42_spill]]  ;;  %s3727_s20 = sshll.u32 %s6317_s17, 4  ;;  %s3728_s20 = int_to_ptr.vmem [resolvable:$true] %s3727_s20 }
 0x492   : > { %s7311_s1 = sld [smem:[#allocation63_spill]]  ;;  %s3715_s5 = scalar_lea.sflag [#allocation6], %s879_s3 }
 0x497   : > { %s4888_s23 = sshll.u32 %s7308_s28, 7 }
 0x498   : > { %s3726_s0 = scalar_lea.hbm %s7311_s1, %s4888_s23  ;;  %s5775_s21 = scalar_lea.hbm %s7311_s1, 256 }
 0x499   : > { %s3729_s13 = sshll.u32 %s3726_s0, 4  ;;  %s3730_s13 = int_to_ptr.hbm [resolvable:$true] %s3729_s13 }
 0x49a   : > { %s5769_s18 = sshra.s32 %s3730_s13, 4  ;;  %s5770_s18 = int_to_ptr.hbm [resolvable:$true] %s5769_s18 }
 0x49b   : > { %s5771_s22 = scalar_lea.hbm %s5770_s18, 128  ;;  %p5776_p4 = scmp.lt.s32.totalorder %s5770_s18, %s7311_s1 }
 0x49c   : > { %p5772_p1 = scmp.ne.s32.totalorder %s5770_s18, %s5771_s22  ;;  %p5777_p5 = scmp.lt.s32.totalorder %s5775_s21, %s5771_s22 }
 0x49e   : > { %p5773_p2 = pnand %p5772_p1, %p6073_p6  ;;  %p5778_p7 = por %p5777_p5, %p5776_p4 }
 0x4a0   : > { %p5774_p3 = pneg %p5773_p2 }
 0x4a2   : > { %p5779_p10 = pnand %p5778_p7, %p5774_p3 }
 0x4a4   : > { %5782 = shalt.err (!%p5779_p10)
}
 0x4a5   : > { %s5920_s3 = smov 256   ;;  %s5921_s24 = smov 16  }
 0x4a6   : > { %4987 = dma.vmem_to_hbm [thread:$0]  (%p6073_p6), %s3728_s20, 2048, %s3730_s13, %s3715_s5, %s5920_s3, %s5920_s3, %s5921_s24  }
 0x4a7 PF: > { %s7312_s16 = sld [smem:[#allocation44_spill]] }
 0x4a8   : > { %s7313_s17 = sld [smem:[#allocation37_spill]] }
 0x4ad   : > { %p5054_p12 = scmp.ge.s32.totalorder %s7312_s16, 2 }
 0x4ae   : > { %s3744_s4 = sand.u32 1, %s7313_s17  }
 0x4af   : > { %p5034_p13 = pnand %p5054_p12, %p6078_p8  ;;  %s3745_s28 = scalar_lea.sflag [#allocation6], %s3744_s4 }
 0x4b1   : > { %p5035_p9 = pneg %p5034_p13 }
 0x4b3   : > { %5860 = dma.done.wait (%p5035_p9), %s3745_s28, 2048  }
 0x4b4   : > { %5862 = vsyncadd (%p5035_p9), %s3745_s28, 4294965248  ;;  %s43_s0 = sadd.s32 1, %s7312_s16   ;;  %s7315_s21 = sld [smem:[#allocation38_spill]] }
 0x4b5   : > { %p40_p0 = scmp.ge.s32.totalorder %s43_s0, 18   ;;  %s7316_s22 = sld [smem:[#allocation39_spill]] }
 0x4b6   : > { %s7317_s23 = sld [smem:[#allocation51_spill]]  ;;  %s7323_s24 = smov %s5881_s25 }
 0x4b7   : > { %s7318_s27 = sld [smem:[#allocation40_spill]] }
 0x4b8   : > { %s7319_s26 = sld [smem:[#allocation50_spill]] }
 0x4b9   : > { %s7320_s28 = sld [smem:[#allocation43_spill]] }
 0x4ba   : > { %s7321_s8 = sld [smem:[#allocation48_spill]] }
 0x4bb   : > { %s7322_s30 = sld [smem:[#allocation49_spill]] }
 0x4bc   :  { %42 = sbr.rel (!%p40_p0) target bundleno = 31 (0x1f), region = 242 }
 0x4bd   : > { %s7324_s25 = smov %s7318_s27  ;;  %s7325_s27 = smov %s5897_s29 }
 0x4c0   : > { %s7326_s29 = smov %s7321_s8 }
 0x4c1   :  { %3751 = vsyncpa [#allocation5], 1 }
 0x4c2   :  { %3753 = vsyncpa [#allocation5 + $0x1], 1 }
 0x4c3   :  { %3754 = vsyncpa [#allocation8], 1 }
 0x4c4   :  { %3756 = vsyncpa [#allocation8 + $0x1], 1 }
 0x4c5   :  { %3757 = vsyncpa [#allocation11], 1 }
 0x4c6   :  { %3759 = vsyncpa [#allocation11 + $0x1], 1 }
 0x4c7   :  { %3760 = vsyncpa [#allocation14], 1 }
 0x4c8   :  { %3762 = vsyncpa [#allocation14 + $0x1], 1 }
 0x4c9   :  { %3763 = vsyncpa [#allocation17], 1 }
 0x4ca   :  { %3764 = vsyncpa [#allocation20], 1 }
 0x4cb   :  { %3765 = vsyncpa [#allocation23], 1 }
 0x4cc   :  { %3766 = vsyncpa [#allocation26], 1 }
 0x4cd   :  { %3767 = vsyncpa [#allocation6], 1 }
 0x4ce   :  { %3769 = vsyncpa [#allocation6 + $0x1], 1 }

</bundles_post_ra>
